<compile_context>
chip_gen: v6e
topology: v6e:2x2x1
jax: 0.10.0
libtpu: 0.0.40
codegen_flags: <defaults>
</compile_context>

<pallas_src>
import math
from functools import partial

import jax
import jax.numpy as jnp
from jax.experimental import pallas as pl
from jax.experimental.pallas import tpu as pltpu


# ----------------------------------------------------------------------------
# Pallas hot path: fused  act(X @ W + bias [+ residual])
# ----------------------------------------------------------------------------
def _mm_kernel(x_ref, w_ref, b_ref, o_ref, *, act):
    y = jnp.dot(x_ref[...], w_ref[...], preferred_element_type=jnp.float32)
    y = y + b_ref[...]
    if act == "relu":
        y = jnp.maximum(y, 0.0)
    o_ref[...] = y.astype(o_ref.dtype)


def _mm_res_kernel(x_ref, w_ref, b_ref, r_ref, o_ref, *, act):
    y = jnp.dot(x_ref[...], w_ref[...], preferred_element_type=jnp.float32)
    y = y + b_ref[...] + r_ref[...]
    if act == "relu":
        y = jnp.maximum(y, 0.0)
    o_ref[...] = y.astype(o_ref.dtype)


def _round_up(v, m):
    return ((v + m - 1) // m) * m


def pallas_matmul(x, w, b, residual=None, act="none", tile_m=512):
    """y = act(x @ w + b [+ residual]);  x:(M,K) w:(K,N) b:(N,) residual:(M,N).

    bf16 MXU operands, f32 accumulation, lane-dense (N padded to 128) stores,
    no M padding (ragged last block handled by Pallas masked stores).
    """
    M, K = x.shape
    Kw, N = w.shape
    assert K == Kw

    # lane-dense output: pad N up to a multiple of 128 (extra MXU cols are free)
    Np = _round_up(N, 128)
    if Np != N:
        w = jnp.pad(w, ((0, 0), (0, Np - N)))
        b = jnp.pad(b, (0, Np - N))
        if residual is not None:
            residual = jnp.pad(residual, ((0, 0), (0, Np - N)))

    x = x.astype(jnp.bfloat16)
    w = w.astype(jnp.bfloat16)
    b2 = b.reshape(1, Np).astype(jnp.float32)

    # M tiling: big tiles, multiple of 16 (bf16 sublane packing); give the grid
    # at least 2 blocks when M is big enough so both v7x TensorCores get work.
    TM = min(tile_m, _round_up(M, 16))
    if M >= 256 and pl.cdiv(M, TM) < 2:
        TM = _round_up(-(-M // 2), 16)
    grid = (pl.cdiv(M, TM),)

    x_spec = pl.BlockSpec((TM, K), lambda i: (i, 0))
    w_spec = pl.BlockSpec((K, Np), lambda i: (0, 0))
    b_spec = pl.BlockSpec((1, Np), lambda i: (0, 0))
    o_spec = pl.BlockSpec((TM, Np), lambda i: (i, 0))
    out_shape = jax.ShapeDtypeStruct((M, Np), jnp.float32)
    cparams = pltpu.CompilerParams(
        dimension_semantics=("parallel",),
        vmem_limit_bytes=32 * 1024 * 1024,   # explicit; tiles fit with headroom on v7x (64 MiB VMEM)
    )

    if residual is None:
        y = pl.pallas_call(
            partial(_mm_kernel, act=act),
            grid=grid,
            in_specs=[x_spec, w_spec, b_spec],
            out_specs=o_spec,
            out_shape=out_shape,
            compiler_params=cparams,
        )(x, w, b2)
    else:
        r_spec = pl.BlockSpec((TM, Np), lambda i: (i, 0))
        y = pl.pallas_call(
            partial(_mm_res_kernel, act=act),
            grid=grid,
            in_specs=[x_spec, w_spec, b_spec, r_spec],
            out_specs=o_spec,
            out_shape=out_shape,
            compiler_params=cparams,
        )(x, w, b2, residual.astype(jnp.bfloat16))

    return y if Np == N else y[:, :N]


# ----------------------------------------------------------------------------
# Convolution wrappers (im2col glue in JAX, matmul in Pallas)
# ----------------------------------------------------------------------------
def im2col(x, kh, kw, stride, padding, dilation):
    """x: (N, C, H, W) -> (N*OH*OW, C*kh*kw), K ordered (c, kh, kw); bf16 patches."""
    n, c, h, w = x.shape
    ph, pw = padding
    sh, sw = stride
    dh, dw = dilation
    x = x.astype(jnp.bfloat16)
    xp = jnp.pad(x, ((0, 0), (0, 0), (ph, ph), (pw, pw)))
    oh = (h + 2 * ph - dh * (kh - 1) - 1) // sh + 1
    ow = (w + 2 * pw - dw * (kw - 1) - 1) // sw + 1
    # TODO(synk): direct (non-materializing) conv via a kh*kw grid axis with
    # shifted-window index maps would remove this kh*kw expansion entirely.
    cols = []
    for i in range(kh):
        for j in range(kw):
            cols.append(xp[:, :,
                           i * dh: i * dh + (oh - 1) * sh + 1: sh,
                           j * dw: j * dw + (ow - 1) * sw + 1: sw])
    patches = jnp.stack(cols, axis=2)                 # (N, C, kh*kw, OH, OW)
    patches = patches.transpose(0, 3, 4, 1, 2)        # (N, OH, OW, C, kh*kw)
    return patches.reshape(n * oh * ow, c * kh * kw), oh, ow


def conv2d(x, w, b, stride=(1, 1), padding=(0, 0), dilation=(1, 1),
           act="none", residual=None):
    """PyTorch-semantics Conv2d, NCHW in/out."""
    n = x.shape[0]
    cout, _, kh, kw = w.shape
    cols, oh, ow = im2col(x, kh, kw, stride, padding, dilation)
    wm = w.reshape(cout, -1).T
    resf = None
    if residual is not None:
        resf = residual.transpose(0, 2, 3, 1).reshape(n * oh * ow, cout)
    y = pallas_matmul(cols, wm, b, residual=resf, act=act)
    return y.reshape(n, oh, ow, cout).transpose(0, 3, 1, 2)


def conv1d(x, w, b, padding=0, act="none"):
    """x: (B, Cin, T), PyTorch Conv1d with zero padding."""
    x = x.astype(jnp.bfloat16)
    if padding:
        x = jnp.pad(x, ((0, 0), (0, 0), (padding, padding)))
    B, C, T = x.shape
    cout, _, kt = w.shape
    ot = T - kt + 1
    cols = jnp.stack([x[:, :, i:i + ot] for i in range(kt)], axis=2)  # (B,C,kt,OT)
    cols = cols.transpose(0, 3, 1, 2).reshape(B * ot, C * kt)
    wm = w.reshape(cout, -1).T
    y = pallas_matmul(cols, wm, b, act=act)
    return y.reshape(B, ot, cout).transpose(0, 2, 1)


def conv2_1d(x, p, stride2d, pad2d, dil2d, tcp=False):
    """Conv2_1d: ReLU(conv2d) over space then temporal conv1d (batch=1)."""
    # TODO(synk): like the reference module, the temporal reshape hard-codes b=1.
    t = x.shape[0]
    y = conv2d(x, p["c2_w"], p["c2_b"], stride=stride2d, padding=pad2d,
               dilation=dil2d, act="relu")
    c, dr1, dr2 = y.shape[1], y.shape[2], y.shape[3]
    z = y.reshape(1, t, c, dr1, dr2).transpose(0, 3, 4, 2, 1).reshape(dr1 * dr2, c, t)
    if tcp:
        z = jnp.concatenate([z[:, :, t - 1:t], z, z[:, :, 0:1]], axis=-1)
        z = conv1d(z, p["c1_w"], p["c1_b"], padding=0)
    else:
        z = conv1d(z, p["c1_w"], p["c1_b"], padding=1)
    out_c, out_t = z.shape[1], z.shape[2]
    z = z.reshape(1, dr1, dr2, out_c, out_t).transpose(0, 4, 3, 1, 2)
    return z.reshape(-1, out_c, dr1, dr2)


def conv_transpose2_1d(x, p, tcp=False):
    """ConvTranspose2_1d: ReLU(convT2d k=2 s=2) then temporal conv1d (batch=1)."""
    t, cin, H, W = x.shape
    cout = p["ct_w"].shape[1]
    xm = x.transpose(0, 2, 3, 1).reshape(t * H * W, cin)
    wm = p["ct_w"].transpose(0, 2, 3, 1).reshape(cin, 4 * cout)   # cols = (kh, kw, co)
    bt = jnp.tile(p["ct_b"], 4)
    y = pallas_matmul(xm, wm, bt, act="relu")                     # (M, 4*cout)
    y = y.reshape(t, H, W, 2, 2, cout).transpose(0, 5, 1, 3, 2, 4)
    y = y.reshape(t, cout, 2 * H, 2 * W)
    c, dr1, dr2 = cout, 2 * H, 2 * W
    z = y.reshape(1, t, c, dr1, dr2).transpose(0, 3, 4, 2, 1).reshape(dr1 * dr2, c, t)
    if tcp:
        z = jnp.concatenate([z[:, :, t - 1:t], z, z[:, :, 0:1]], axis=-1)
        z = conv1d(z, p["c1_w"], p["c1_b"], padding=0)
    else:
        z = conv1d(z, p["c1_w"], p["c1_b"], padding=1)
    out_c, out_t = z.shape[1], z.shape[2]
    z = z.reshape(1, dr1, dr2, out_c, out_t).transpose(0, 4, 3, 1, 2)
    return z.reshape(-1, out_c, dr1, dr2)


# ----------------------------------------------------------------------------
# CRNN layers: hoisted non-recurrent terms + lax.scan recurrence
# ----------------------------------------------------------------------------
def crnn_precompute(inp, hid_iter, cp, dilation):
    """pre[t] = i2h(inp[t]) + ih2ih(hid_iter[t]) + (b_i2h + b_ih2ih) for all t.

    Done as ONE big matmul over all timesteps (non-recurrent => hoistable).
    Returns (t, b, H, W, C) f32.
    """
    t, b_, C, H, W = inp.shape
    d = dilation
    Xi, _, _ = im2col(inp.reshape(t * b_, C, H, W), 3, 3, (1, 1), (d, d), (d, d))
    Xhi, _, _ = im2col(hid_iter.reshape(t * b_, C, H, W), 3, 3, (1, 1), (d, d), (d, d))
    xcat = jnp.concatenate([Xi, Xhi], axis=1)
    cout = cp["i2h_w"].shape[0]
    wcat = jnp.concatenate([cp["i2h_w"].reshape(cout, -1).T,
                            cp["ih2ih_w"].reshape(cout, -1).T], axis=0)
    bsum = cp["i2h_b"] + cp["ih2ih_b"]
    pre = pallas_matmul(xcat, wcat, bsum, act="none")             # (t*b*H*W, C)
    return pre.reshape(t, b_, H, W, cout)


def crnn_recurrence(pre, cp, dilation, reverse):
    """hidden_{t} = relu(h2h(hidden_{t-1}) + pre[t]); scanned over time."""
    t, b_, H, W, C = pre.shape
    d = dilation
    w_h = cp["h2h_w"].reshape(C, -1).T
    b_h = cp["h2h_b"]

    def step(hidden, pre_i):
        Xh, _, _ = im2col(hidden, 3, 3, (1, 1), (d, d), (d, d))   # (b*H*W, C*9)
        res = pre_i.reshape(b_ * H * W, C)
        y = pallas_matmul(Xh, w_h, b_h, residual=res, act="relu")
        new_h = y.reshape(b_, H, W, C).transpose(0, 3, 1, 2)
        return new_h, new_h

    hid0 = jnp.zeros((b_, C, H, W), jnp.float32)
    _, outs = jax.lax.scan(step, hid0, pre, reverse=reverse)
    return outs                                                    # (t, b, C, H, W)


def crnn_layer(inp, hid_iter, cp, dilation, reverse=False):
    pre = crnn_precompute(inp, hid_iter, cp, dilation)
    return crnn_recurrence(pre, cp, dilation, reverse)


def bcrnn_layer(inp, hid_iter, cp, dilation):
    pre = crnn_precompute(inp, hid_iter, cp, dilation)   # shared by both directions
    return (crnn_recurrence(pre, cp, dilation, False)
            + crnn_recurrence(pre, cp, dilation, True))


# ----------------------------------------------------------------------------
# fastMRI-style utilities (JAX glue)
# ----------------------------------------------------------------------------
# TODO(synk): FFTs have no Pallas primitive on TPU; the data-consistency FFT
# path stays in jnp.fft, everything else of the DC step is plain complex math.
def _fft2c_c(xc):
    xc = jnp.fft.ifftshift(xc, axes=(-2, -1))
    xc = jnp.fft.fft2(xc, norm="ortho")
    return jnp.fft.fftshift(xc, axes=(-2, -1))


def _ifft2c_c(kc):
    kc = jnp.fft.ifftshift(kc, axes=(-2, -1))
    kc = jnp.fft.ifft2(kc, norm="ortho")
    return jnp.fft.fftshift(kc, axes=(-2, -1))


def data_consistency(img, k0, mask, sens_maps):
    """img: (b,t,1,h,w,2); sens_maps: (b,1,coils,h,w,2); k0 complex (b,t,coils,h,w)."""
    img_c = img[..., 0] + 1j * img[..., 1]
    sens_c = sens_maps[..., 0] + 1j * sens_maps[..., 1]
    k = _fft2c_c(img_c * sens_c)
    out = (1.0 - mask) * k + mask * k0
    x = _ifft2c_c(out)
    red = (x * jnp.conj(sens_c)).sum(axis=2, keepdims=True)[:, :, 0]   # (b,t,h,w)
    return jnp.stack([jnp.real(red), jnp.imag(red)], axis=-1)


def sens_reduce(k_complex, sens_maps):
    sens_c = sens_maps[..., 0] + 1j * sens_maps[..., 1]                # (b,1,coils,h,w)
    x = _ifft2c_c(k_complex)
    red = (x * jnp.conj(sens_c)).sum(axis=2)                            # (b,t,h,w)
    return jnp.stack([jnp.real(red), jnp.imag(red)], axis=-1)           # (b,t,h,w,2)


# ----------------------------------------------------------------------------
# CRUNet_D_Mon_Block forward (norms=True, tcp=False)
# ----------------------------------------------------------------------------
_MON_DIL = (4, 2, 1)      # mon_convs[0]->x2, [1]->x3, [2]->x4 (dilation=padding)


def crunet_d_mon_block_forward(p, ref_kspace, x, net, mask, sens_maps, lls):
    C = p["conv0"]["w"].shape[0]
    b, ch, h, w, t = x.shape
    h2, w2 = h // 2, w // 2

    # ---- norm (per-batch mean / unbiased std) ----
    xp = jnp.transpose(x, (0, 1, 4, 2, 3)).reshape(b, -1, h, w)
    flat = xp.reshape(b, -1)
    mean = flat.mean(axis=1).reshape(b, 1, 1, 1)
    std = jnp.std(flat, axis=1, ddof=1).reshape(b, 1, 1, 1)
    xp = (xp - mean) / std
    xp = xp.reshape(b, 2, -1, h, w)
    xp = jnp.transpose(xp, (2, 0, 1, 3, 4)).astype(jnp.float32).reshape(-1, 2, h, w)

    # ---- monitor convs (dense skip from previous cascades) ----
    net = dict(net)
    lls = {k: list(v) for k, v in lls.items()}
    for times, key in enumerate(("x2", "x3", "x4")):
        if len(lls[key]) > 0:
            net_tmp = jnp.concatenate(lls[key], axis=1)
            mc = p["mon_convs"][times]
            d = _MON_DIL[times]
            net[key] = conv2d(net_tmp, mc["w"], mc["b"], padding=(d, d),
                              dilation=(d, d))
            if key == "x3":
                net["x1"] = net["x3"]
            elif key == "x4":
                net["x0"] = net["x4"]

    # ---- encoder ----
    x0 = conv2d(xp, p["conv0"]["w"], p["conv0"]["b"], padding=(1, 1))

    nx0 = net["x0"].reshape(t, b, C, h, w)
    crnn_o = crnn_layer(x0.reshape(t, b, C, h, w), nx0, p["d_crnn1"], 1)
    net_x0 = conv2d(x0, p["conv11"]["w"], p["conv11"]["b"], padding=(1, 1),
                    residual=crnn_o.reshape(-1, C, h, w))

    x01 = conv2_1d(net_x0, p["d_conv"], stride2d=(2, 2), pad2d=(0, 0),
                   dil2d=(1, 1), tcp=False)

    nx1 = net["x1"].reshape(t, b, C, h2, w2)
    crnn_o = crnn_layer(x01.reshape(t, b, C, h2, w2), nx1, p["d_crnn2"], 2)
    net_x1 = conv2d(x01, p["conv21"]["w"], p["conv21"]["b"], padding=(1, 1),
                    residual=crnn_o.reshape(-1, C, h2, w2))
    net_x1 = conv2_1d(net_x1, p["convs1"], stride2d=(1, 1), pad2d=(2, 2),
                      dil2d=(2, 2), tcp=False)

    nx2 = net["x2"].reshape(t, b, C, h2, w2)
    bc = bcrnn_layer(net_x1.reshape(t, b, C, h2, w2), nx2, p["bcrnn"], 4)
    net_x2 = conv2d(net_x1, p["conv31"]["w"], p["conv31"]["b"], padding=(1, 1),
                    residual=bc.reshape(-1, C, h2, w2))
    net_x2 = conv2_1d(net_x2, p["convs2"], stride2d=(1, 1), pad2d=(4, 4),
                      dil2d=(4, 4), tcp=False)
    lls["x2"].append(net_x2)

    # ---- decoder ----
    nx3 = net["x3"].reshape(t, b, C, h2, w2)
    uc1 = crnn_layer(net_x2.reshape(t, b, C, h2, w2), nx3, p["u_crnn1"], 2,
                     reverse=True)
    net_x3 = conv2d(net_x2, p["conv41"]["w"], p["conv41"]["b"], padding=(1, 1),
                    residual=uc1.reshape(-1, C, h2, w2))
    net_x3 = jnp.concatenate([net_x1, net_x3], axis=1)
    net_x3 = conv2_1d(net_x3, p["conv1"], stride2d=(1, 1), pad2d=(2, 2),
                      dil2d=(2, 2), tcp=False)
    lls["x3"].append(net_x3)

    x01 = conv_transpose2_1d(net_x3, p["u_conv"], tcp=False)     # (t, C, h, w)

    nx4 = net["x4"].reshape(t, b, C, h, w)
    uc2 = crnn_layer(x01.reshape(t, b, C, h, w), nx4, p["u_crnn2"], 1,
                     reverse=True)
    net_x4 = conv2d(x01, p["conv51"]["w"], p["conv51"]["b"], padding=(1, 1),
                    residual=uc2.reshape(-1, C, h, w))
    net_x4 = jnp.concatenate([net_x0, net_x4], axis=1)
    net_x4 = conv2_1d(net_x4, p["conv2"], stride2d=(1, 1), pad2d=(1, 1),
                      dil2d=(1, 1), tcp=False)
    lls["x4"].append(net_x4)

    x01 = conv2d(net_x4, p["conv"]["w"], p["conv"]["b"], padding=(2, 2))   # (t, 2, h, w)
    xp = xp + x01

    # ---- unnorm, data consistency ----
    xout = xp.reshape(-1, b, ch, h, w)
    xout = jnp.transpose(xout, (1, 0, 2, 3, 4)).reshape(b, -1, h, w)
    xout = xout * std + mean
    xout = xout.reshape(b, -1, 2, h, w)
    xout = jnp.transpose(xout, (0, 1, 3, 4, 2))                   # (b, t, h, w, 2)
    xout = data_consistency(xout[:, :, None], ref_kspace, mask, sens_maps)
    xout = jnp.transpose(xout, (0, 4, 2, 3, 1))                   # (b, 2, h, w, t)

    new_net = {"x0": net_x0, "x1": net_x1, "x2": net_x2, "x3": net_x3,
               "x4": net_x4}
    return xout, new_net, lls


# ----------------------------------------------------------------------------
# CRUNet_D_Mon_NWS forward (num_cascades blocks, c_iters = cascade index)
# ----------------------------------------------------------------------------
def crunet_d_mon_nws_forward(params, ref_kspace, mask, sens_maps):
    b, t, coils, h, w = ref_kspace.shape
    C = params[0]["conv0"]["w"].shape[0]

    x_ref = sens_reduce(ref_kspace, sens_maps)                    # (b,t,h,w,2)
    x = jnp.transpose(x_ref, (0, 4, 2, 3, 1))                     # (b,2,h,w,t)

    net = {
        "x0": jnp.zeros((t * b, C, h, w), jnp.float32),
        "x1": jnp.zeros((t * b, C, h // 2, w // 2), jnp.float32),
        "x2": jnp.zeros((t * b, C, h // 2, w // 2), jnp.float32),
        "x3": jnp.zeros((t * b, C, h // 2, w // 2), jnp.float32),
        "x4": jnp.zeros((t * b, C, h, w), jnp.float32),
    }
    lls = {"x2": [], "x3": [], "x4": []}

    for p in params:
        x, net, lls = crunet_d_mon_block_forward(p, ref_kspace, x, net, mask,
                                                 sens_maps, lls)
    return jnp.transpose(x, (0, 4, 2, 3, 1))                      # (b, t, h, w, 2)


# ----------------------------------------------------------------------------
# Parameter init (deterministic, shapes from the module __init__)
# ----------------------------------------------------------------------------
def init_block_params(key, C, c_iters):
    it = iter(jax.random.split(key, 128))

    def u(shape, fan):
        s = 1.0 / math.sqrt(fan)
        return jax.random.uniform(next(it), shape, jnp.float32, -s, s)

    def conv2d_p(cout, cin, kh, kw):
        fan = cin * kh * kw
        return {"w": u((cout, cin, kh, kw), fan), "b": u((cout,), fan)}

    def conv1d_p(cout, cin, kt):
        fan = cin * kt
        return {"w": u((cout, cin, kt), fan), "b": u((cout,), fan)}

    def cell_p():
        a, hh, ih = conv2d_p(C, C, 3, 3), conv2d_p(C, C, 3, 3), conv2d_p(C, C, 3, 3)
        return {"i2h_w": a["w"], "i2h_b": a["b"],
                "h2h_w": hh["w"], "h2h_b": hh["b"],
                "ih2ih_w": ih["w"], "ih2ih_b": ih["b"]}

    def c21_p(cout, cin, kh, kw):
        c2, c1 = conv2d_p(cout, cin, kh, kw), conv1d_p(cout, cout, 3)
        return {"c2_w": c2["w"], "c2_b": c2["b"], "c1_w": c1["w"], "c1_b": c1["b"]}

    p = {}
    p["conv0"] = conv2d_p(C, 2, 3, 3)
    p["d_crnn1"] = cell_p()
    p["d_crnn2"] = cell_p()
    p["bcrnn"] = cell_p()
    p["u_crnn1"] = cell_p()
    p["u_crnn2"] = cell_p()
    for name in ("conv11", "conv21", "conv31", "conv41", "conv51"):
        p[name] = conv2d_p(C, C, 3, 3)
    p["d_conv"] = c21_p(C, C, 2, 2)
    p["convs1"] = c21_p(C, C, 3, 3)
    p["convs2"] = c21_p(C, C, 3, 3)
    p["conv1"] = c21_p(C, 2 * C, 3, 3)
    p["conv2"] = c21_p(C, 2 * C, 3, 3)
    fan = C * 2 * 2
    p["u_conv"] = {"ct_w": u((C, C, 2, 2), fan), "ct_b": u((C,), fan)}
    c1 = conv1d_p(C, C, 3)
    p["u_conv"]["c1_w"], p["u_conv"]["c1_b"] = c1["w"], c1["b"]
    p["conv"] = conv2d_p(2, C, 5, 5)
    if c_iters > 0:
        p["mon_convs"] = [conv2d_p(C, C * c_iters, 3, 3) for _ in range(3)]
    return p


def init_params(key, chans, num_cascades):
    keys = jax.random.split(key, num_cascades)
    return [init_block_params(keys[i], chans, c_iters=i)
            for i in range(num_cascades)]


# ----------------------------------------------------------------------------
if __name__ == "__main__":
    key = jax.random.PRNGKey(0)
    b, t, h, w = 1, 4, 16, 16        # b=1 (Conv2_1d in the reference assumes batch 1)
    chans, coils, num_cascades = 8, 2, 2

    k_p, k_ks, k_sens, k_mask = jax.random.split(key, 4)
    params = init_params(k_p, chans, num_cascades)

    ks1, ks2 = jax.random.split(k_ks)
    ref_kspace = (jax.random.normal(ks1, (b, t, coils, h, w))
                  + 1j * jax.random.normal(ks2, (b, t, coils, h, w))).astype(jnp.complex64)
    sens_maps = 0.5 * jax.random.normal(k_sens, (b, 1, coils, h, w, 2), jnp.float32)
    mask = (jax.random.uniform(k_mask, (1, 1, 1, 1, w)) > 0.5).astype(jnp.float32)

    fwd = jax.jit(crunet_d_mon_nws_forward)
    out = fwd(params, ref_kspace, mask, sens_maps)
    jax.block_until_ready(out)
    assert out.shape == (b, t, h, w, 2)
    assert bool(jnp.all(jnp.isfinite(out)))
    print("KERNEL_OK")
</pallas_src>

<mosaic_0001>
module attributes {stable_mosaic.version = 11 : i64} {
  func.func @_mm_kernel(%arg0: i32, %arg1: memref<512x18xbf16, #tpu.memory_space<vmem>>, %arg2: memref<18x128xbf16, #tpu.memory_space<vmem>>, %arg3: memref<1x128xf32, #tpu.memory_space<vmem>>, %arg4: memref<512x128xf32, #tpu.memory_space<vmem>>) attributes {dimension_semantics = [#tpu.dimension_semantics<parallel>], iteration_bounds = array<i64: 2>, scalar_prefetch = 0 : i64, scratch_operands = 0 : i64, tpu.core_type = #tpu.core_type<tc>, window_params = [{transform_indices = @transform_0, window_bounds = array<i64: 512, 18>}, {pipeline_mode = #tpu.pipeline_mode<synchronous>, transform_indices = @transform_1, window_bounds = array<i64: 18, 128>}, {pipeline_mode = #tpu.pipeline_mode<synchronous>, transform_indices = @transform_2, window_bounds = array<i64: 1, 128>}, {transform_indices = @transform_3, window_bounds = array<i64: 512, 128>}]} {
    %c0 = arith.constant 0 : index
    %c0_0 = arith.constant 0 : index
    %0 = vector.load %arg1[%c0, %c0_0] : memref<512x18xbf16, #tpu.memory_space<vmem>>, vector<512x18xbf16>
    %c0_1 = arith.constant 0 : index
    %c0_2 = arith.constant 0 : index
    %1 = vector.load %arg2[%c0_1, %c0_2] : memref<18x128xbf16, #tpu.memory_space<vmem>>, vector<18x128xbf16>
    %cst = arith.constant dense<0.000000e+00> : vector<512x128xf32>
    %2 = tpu.matmul %0, %1, %cst {dimension_numbers = #tpu.dot_dimension_numbers<[1], [0], [0], [1], [0, 0, 1, 1], [], []>} : vector<512x18xbf16>, vector<18x128xbf16>, vector<512x128xf32> -> vector<512x128xf32>
    %c0_3 = arith.constant 0 : index
    %c0_4 = arith.constant 0 : index
    %3 = vector.load %arg3[%c0_3, %c0_4] : memref<1x128xf32, #tpu.memory_space<vmem>>, vector<1x128xf32>
    %4 = vector.broadcast %3 : vector<1x128xf32> to vector<512x128xf32>
    %5 = arith.addf %2, %4 : vector<512x128xf32>
    %c0_5 = arith.constant 0 : index
    %c0_6 = arith.constant 0 : index
    %6 = vector.load %arg4[%c0_5, %c0_6] : memref<512x128xf32, #tpu.memory_space<vmem>>, vector<512x128xf32>
    tpu.vector_store %arg4[%c0_5, %c0_6], %5 {strides = array<i32>} : memref<512x128xf32, #tpu.memory_space<vmem>>, vector<512x128xf32>,
    return
  }
  func.func @transform_0(%arg0: i32) -> (i32, i32) {
    %c0_i32 = arith.constant 0 : i32
    %c0_i32_0 = arith.constant 0 : i32
    return %arg0, %c0_i32 : i32, i32
  }
  func.func @transform_1(%arg0: i32) -> (i32, i32) {
    %c0_i32 = arith.constant 0 : i32
    %c0_i32_0 = arith.constant 0 : i32
    %c0_i32_1 = arith.constant 0 : i32
    return %c0_i32, %c0_i32_0 : i32, i32
  }
  func.func @transform_2(%arg0: i32) -> (i32, i32) {
    %c0_i32 = arith.constant 0 : i32
    %c0_i32_0 = arith.constant 0 : i32
    %c0_i32_1 = arith.constant 0 : i32
    return %c0_i32, %c0_i32_0 : i32, i32
  }
  func.func @transform_3(%arg0: i32) -> (i32, i32) {
    %c0_i32 = arith.constant 0 : i32
    %c0_i32_0 = arith.constant 0 : i32
    return %arg0, %c0_i32 : i32, i32
  }
}

module attributes {stable_mosaic.version = 11 : i64} {
  func.func @_mm_kernel(%arg0: i32, %arg1: memref<512x144xbf16, #tpu.memory_space<vmem>>, %arg2: memref<144x128xbf16, #tpu.memory_space<vmem>>, %arg3: memref<1x128xf32, #tpu.memory_space<vmem>>, %arg4: memref<512x128xf32, #tpu.memory_space<vmem>>) attributes {dimension_semantics = [#tpu.dimension_semantics<parallel>], iteration_bounds = array<i64: 2>, scalar_prefetch = 0 : i64, scratch_operands = 0 : i64, tpu.core_type = #tpu.core_type<tc>, window_params = [{transform_indices = @transform_0, window_bounds = array<i64: 512, 144>}, {pipeline_mode = #tpu.pipeline_mode<synchronous>, transform_indices = @transform_1, window_bounds = array<i64: 144, 128>}, {pipeline_mode = #tpu.pipeline_mode<synchronous>, transform_indices = @transform_2, window_bounds = array<i64: 1, 128>}, {transform_indices = @transform_3, window_bounds = array<i64: 512, 128>}]} {
    %c0 = arith.constant 0 : index
    %c0_0 = arith.constant 0 : index
    %0 = vector.load %arg1[%c0, %c0_0] : memref<512x144xbf16, #tpu.memory_space<vmem>>, vector<512x144xbf16>
    %c0_1 = arith.constant 0 : index
    %c0_2 = arith.constant 0 : index
    %1 = vector.load %arg2[%c0_1, %c0_2] : memref<144x128xbf16, #tpu.memory_space<vmem>>, vector<144x128xbf16>
    %cst = arith.constant dense<0.000000e+00> : vector<512x128xf32>
    %2 = tpu.matmul %0, %1, %cst {dimension_numbers = #tpu.dot_dimension_numbers<[1], [0], [0], [1], [0, 0, 1, 1], [], []>} : vector<512x144xbf16>, vector<144x128xbf16>, vector<512x128xf32> -> vector<512x128xf32>
    %c0_3 = arith.constant 0 : index
    %c0_4 = arith.constant 0 : index
    %3 = vector.load %arg3[%c0_3, %c0_4] : memref<1x128xf32, #tpu.memory_space<vmem>>, vector<1x128xf32>
    %4 = vector.broadcast %3 : vector<1x128xf32> to vector<512x128xf32>
    %5 = arith.addf %2, %4 : vector<512x128xf32>
    %c0_5 = arith.constant 0 : index
    %c0_6 = arith.constant 0 : index
    %6 = vector.load %arg4[%c0_5, %c0_6] : memref<512x128xf32, #tpu.memory_space<vmem>>, vector<512x128xf32>
    tpu.vector_store %arg4[%c0_5, %c0_6], %5 {strides = array<i32>} : memref<512x128xf32, #tpu.memory_space<vmem>>, vector<512x128xf32>,
    return
  }
  func.func @transform_0(%arg0: i32) -> (i32, i32) {
    %c0_i32 = arith.constant 0 : i32
    %c0_i32_0 = arith.constant 0 : i32
    return %arg0, %c0_i32 : i32, i32
  }
  func.func @transform_1(%arg0: i32) -> (i32, i32) {
    %c0_i32 = arith.constant 0 : i32
    %c0_i32_0 = arith.constant 0 : i32
    %c0_i32_1 = arith.constant 0 : i32
    return %c0_i32, %c0_i32_0 : i32, i32
  }
  func.func @transform_2(%arg0: i32) -> (i32, i32) {
    %c0_i32 = arith.constant 0 : i32
    %c0_i32_0 = arith.constant 0 : i32
    %c0_i32_1 = arith.constant 0 : i32
    return %c0_i32, %c0_i32_0 : i32, i32
  }
  func.func @transform_3(%arg0: i32) -> (i32, i32) {
    %c0_i32 = arith.constant 0 : i32
    %c0_i32_0 = arith.constant 0 : i32
    return %arg0, %c0_i32 : i32, i32
  }
}

module attributes {stable_mosaic.version = 11 : i64} {
  func.func @_mm_res_kernel(%arg0: i32, %arg1: memref<128x72xbf16, #tpu.memory_space<vmem>>, %arg2: memref<72x128xbf16, #tpu.memory_space<vmem>>, %arg3: memref<1x128xf32, #tpu.memory_space<vmem>>, %arg4: memref<128x128xbf16, #tpu.memory_space<vmem>>, %arg5: memref<128x128xf32, #tpu.memory_space<vmem>>) attributes {dimension_semantics = [#tpu.dimension_semantics<parallel>], iteration_bounds = array<i64: 2>, scalar_prefetch = 0 : i64, scratch_operands = 0 : i64, tpu.core_type = #tpu.core_type<tc>, window_params = [{transform_indices = @transform_0, window_bounds = array<i64: 128, 72>}, {pipeline_mode = #tpu.pipeline_mode<synchronous>, transform_indices = @transform_1, window_bounds = array<i64: 72, 128>}, {pipeline_mode = #tpu.pipeline_mode<synchronous>, transform_indices = @transform_2, window_bounds = array<i64: 1, 128>}, {transform_indices = @transform_3, window_bounds = array<i64: 128, 128>}, {transform_indices = @transform_4, window_bounds = array<i64: 128, 128>}]} {
    %c0 = arith.constant 0 : index
    %c0_0 = arith.constant 0 : index
    %0 = vector.load %arg1[%c0, %c0_0] : memref<128x72xbf16, #tpu.memory_space<vmem>>, vector<128x72xbf16>
    %c0_1 = arith.constant 0 : index
    %c0_2 = arith.constant 0 : index
    %1 = vector.load %arg2[%c0_1, %c0_2] : memref<72x128xbf16, #tpu.memory_space<vmem>>, vector<72x128xbf16>
    %cst = arith.constant dense<0.000000e+00> : vector<128x128xf32>
    %2 = tpu.matmul %0, %1, %cst {dimension_numbers = #tpu.dot_dimension_numbers<[1], [0], [0], [1], [0, 0, 1, 1], [], []>} : vector<128x72xbf16>, vector<72x128xbf16>, vector<128x128xf32> -> vector<128x128xf32>
    %c0_3 = arith.constant 0 : index
    %c0_4 = arith.constant 0 : index
    %3 = vector.load %arg3[%c0_3, %c0_4] : memref<1x128xf32, #tpu.memory_space<vmem>>, vector<1x128xf32>
    %4 = vector.broadcast %3 : vector<1x128xf32> to vector<128x128xf32>
    %5 = arith.addf %2, %4 : vector<128x128xf32>
    %c0_5 = arith.constant 0 : index
    %c0_6 = arith.constant 0 : index
    %6 = vector.load %arg4[%c0_5, %c0_6] : memref<128x128xbf16, #tpu.memory_space<vmem>>, vector<128x128xbf16>
    %7 = arith.extf %6 : vector<128x128xbf16> to vector<128x128xf32>
    %8 = arith.addf %5, %7 : vector<128x128xf32>
    %cst_7 = arith.constant 0.000000e+00 : f32
    %9 = vector.broadcast %cst_7 : f32 to vector<128x128xf32>
    %10 = arith.maximumf %8, %9 : vector<128x128xf32>
    %c0_8 = arith.constant 0 : index
    %c0_9 = arith.constant 0 : index
    %11 = vector.load %arg5[%c0_8, %c0_9] : memref<128x128xf32, #tpu.memory_space<vmem>>, vector<128x128xf32>
    tpu.vector_store %arg5[%c0_8, %c0_9], %10 {strides = array<i32>} : memref<128x128xf32, #tpu.memory_space<vmem>>, vector<128x128xf32>,
    return
  }
  func.func @transform_0(%arg0: i32) -> (i32, i32) {
    %c0_i32 = arith.constant 0 : i32
    %c0_i32_0 = arith.constant 0 : i32
    return %arg0, %c0_i32 : i32, i32
  }
  func.func @transform_1(%arg0: i32) -> (i32, i32) {
    %c0_i32 = arith.constant 0 : i32
    %c0_i32_0 = arith.constant 0 : i32
    %c0_i32_1 = arith.constant 0 : i32
    return %c0_i32, %c0_i32_0 : i32, i32
  }
  func.func @transform_2(%arg0: i32) -> (i32, i32) {
    %c0_i32 = arith.constant 0 : i32
    %c0_i32_0 = arith.constant 0 : i32
    %c0_i32_1 = arith.constant 0 : i32
    return %c0_i32, %c0_i32_0 : i32, i32
  }
  func.func @transform_3(%arg0: i32) -> (i32, i32) {
    %c0_i32 = arith.constant 0 : i32
    %c0_i32_0 = arith.constant 0 : i32
    return %arg0, %c0_i32 : i32, i32
  }
  func.func @transform_4(%arg0: i32) -> (i32, i32) {
    %c0_i32 = arith.constant 0 : i32
    %c0_i32_0 = arith.constant 0 : i32
    return %arg0, %c0_i32 : i32, i32
  }
}

module attributes {stable_mosaic.version = 11 : i64} {
  func.func @_mm_res_kernel(%arg0: i32, %arg1: memref<512x72xbf16, #tpu.memory_space<vmem>>, %arg2: memref<72x128xbf16, #tpu.memory_space<vmem>>, %arg3: memref<1x128xf32, #tpu.memory_space<vmem>>, %arg4: memref<512x128xbf16, #tpu.memory_space<vmem>>, %arg5: memref<512x128xf32, #tpu.memory_space<vmem>>) attributes {dimension_semantics = [#tpu.dimension_semantics<parallel>], iteration_bounds = array<i64: 2>, scalar_prefetch = 0 : i64, scratch_operands = 0 : i64, tpu.core_type = #tpu.core_type<tc>, window_params = [{transform_indices = @transform_0, window_bounds = array<i64: 512, 72>}, {pipeline_mode = #tpu.pipeline_mode<synchronous>, transform_indices = @transform_1, window_bounds = array<i64: 72, 128>}, {pipeline_mode = #tpu.pipeline_mode<synchronous>, transform_indices = @transform_2, window_bounds = array<i64: 1, 128>}, {transform_indices = @transform_3, window_bounds = array<i64: 512, 128>}, {transform_indices = @transform_4, window_bounds = array<i64: 512, 128>}]} {
    %c0 = arith.constant 0 : index
    %c0_0 = arith.constant 0 : index
    %0 = vector.load %arg1[%c0, %c0_0] : memref<512x72xbf16, #tpu.memory_space<vmem>>, vector<512x72xbf16>
    %c0_1 = arith.constant 0 : index
    %c0_2 = arith.constant 0 : index
    %1 = vector.load %arg2[%c0_1, %c0_2] : memref<72x128xbf16, #tpu.memory_space<vmem>>, vector<72x128xbf16>
    %cst = arith.constant dense<0.000000e+00> : vector<512x128xf32>
    %2 = tpu.matmul %0, %1, %cst {dimension_numbers = #tpu.dot_dimension_numbers<[1], [0], [0], [1], [0, 0, 1, 1], [], []>} : vector<512x72xbf16>, vector<72x128xbf16>, vector<512x128xf32> -> vector<512x128xf32>
    %c0_3 = arith.constant 0 : index
    %c0_4 = arith.constant 0 : index
    %3 = vector.load %arg3[%c0_3, %c0_4] : memref<1x128xf32, #tpu.memory_space<vmem>>, vector<1x128xf32>
    %4 = vector.broadcast %3 : vector<1x128xf32> to vector<512x128xf32>
    %5 = arith.addf %2, %4 : vector<512x128xf32>
    %c0_5 = arith.constant 0 : index
    %c0_6 = arith.constant 0 : index
    %6 = vector.load %arg4[%c0_5, %c0_6] : memref<512x128xbf16, #tpu.memory_space<vmem>>, vector<512x128xbf16>
    %7 = arith.extf %6 : vector<512x128xbf16> to vector<512x128xf32>
    %8 = arith.addf %5, %7 : vector<512x128xf32>
    %c0_7 = arith.constant 0 : index
    %c0_8 = arith.constant 0 : index
    %9 = vector.load %arg5[%c0_7, %c0_8] : memref<512x128xf32, #tpu.memory_space<vmem>>, vector<512x128xf32>
    tpu.vector_store %arg5[%c0_7, %c0_8], %8 {strides = array<i32>} : memref<512x128xf32, #tpu.memory_space<vmem>>, vector<512x128xf32>,
    return
  }
  func.func @transform_0(%arg0: i32) -> (i32, i32) {
    %c0_i32 = arith.constant 0 : i32
    %c0_i32_0 = arith.constant 0 : i32
    return %arg0, %c0_i32 : i32, i32
  }
  func.func @transform_1(%arg0: i32) -> (i32, i32) {
    %c0_i32 = arith.constant 0 : i32
    %c0_i32_0 = arith.constant 0 : i32
    %c0_i32_1 = arith.constant 0 : i32
    return %c0_i32, %c0_i32_0 : i32, i32
  }
  func.func @transform_2(%arg0: i32) -> (i32, i32) {
    %c0_i32 = arith.constant 0 : i32
    %c0_i32_0 = arith.constant 0 : i32
    %c0_i32_1 = arith.constant 0 : i32
    return %c0_i32, %c0_i32_0 : i32, i32
  }
  func.func @transform_3(%arg0: i32) -> (i32, i32) {
    %c0_i32 = arith.constant 0 : i32
    %c0_i32_0 = arith.constant 0 : i32
    return %arg0, %c0_i32 : i32, i32
  }
  func.func @transform_4(%arg0: i32) -> (i32, i32) {
    %c0_i32 = arith.constant 0 : i32
    %c0_i32_0 = arith.constant 0 : i32
    return %arg0, %c0_i32 : i32, i32
  }
}

module attributes {stable_mosaic.version = 11 : i64} {
  func.func @_mm_kernel(%arg0: i32, %arg1: memref<128x32xbf16, #tpu.memory_space<vmem>>, %arg2: memref<32x128xbf16, #tpu.memory_space<vmem>>, %arg3: memref<1x128xf32, #tpu.memory_space<vmem>>, %arg4: memref<128x128xf32, #tpu.memory_space<vmem>>) attributes {dimension_semantics = [#tpu.dimension_semantics<parallel>], iteration_bounds = array<i64: 2>, scalar_prefetch = 0 : i64, scratch_operands = 0 : i64, tpu.core_type = #tpu.core_type<tc>, window_params = [{transform_indices = @transform_0, window_bounds = array<i64: 128, 32>}, {pipeline_mode = #tpu.pipeline_mode<synchronous>, transform_indices = @transform_1, window_bounds = array<i64: 32, 128>}, {pipeline_mode = #tpu.pipeline_mode<synchronous>, transform_indices = @transform_2, window_bounds = array<i64: 1, 128>}, {transform_indices = @transform_3, window_bounds = array<i64: 128, 128>}]} {
    %c0 = arith.constant 0 : index
    %c0_0 = arith.constant 0 : index
    %0 = vector.load %arg1[%c0, %c0_0] : memref<128x32xbf16, #tpu.memory_space<vmem>>, vector<128x32xbf16>
    %c0_1 = arith.constant 0 : index
    %c0_2 = arith.constant 0 : index
    %1 = vector.load %arg2[%c0_1, %c0_2] : memref<32x128xbf16, #tpu.memory_space<vmem>>, vector<32x128xbf16>
    %cst = arith.constant dense<0.000000e+00> : vector<128x128xf32>
    %2 = tpu.matmul %0, %1, %cst {dimension_numbers = #tpu.dot_dimension_numbers<[1], [0], [0], [1], [0, 0, 1, 1], [], []>} : vector<128x32xbf16>, vector<32x128xbf16>, vector<128x128xf32> -> vector<128x128xf32>
    %c0_3 = arith.constant 0 : index
    %c0_4 = arith.constant 0 : index
    %3 = vector.load %arg3[%c0_3, %c0_4] : memref<1x128xf32, #tpu.memory_space<vmem>>, vector<1x128xf32>
    %4 = vector.broadcast %3 : vector<1x128xf32> to vector<128x128xf32>
    %5 = arith.addf %2, %4 : vector<128x128xf32>
    %cst_5 = arith.constant 0.000000e+00 : f32
    %6 = vector.broadcast %cst_5 : f32 to vector<128x128xf32>
    %7 = arith.maximumf %5, %6 : vector<128x128xf32>
    %c0_6 = arith.constant 0 : index
    %c0_7 = arith.constant 0 : index
    %8 = vector.load %arg4[%c0_6, %c0_7] : memref<128x128xf32, #tpu.memory_space<vmem>>, vector<128x128xf32>
    tpu.vector_store %arg4[%c0_6, %c0_7], %7 {strides = array<i32>} : memref<128x128xf32, #tpu.memory_space<vmem>>, vector<128x128xf32>,
    return
  }
  func.func @transform_0(%arg0: i32) -> (i32, i32) {
    %c0_i32 = arith.constant 0 : i32
    %c0_i32_0 = arith.constant 0 : i32
    return %arg0, %c0_i32 : i32, i32
  }
  func.func @transform_1(%arg0: i32) -> (i32, i32) {
    %c0_i32 = arith.constant 0 : i32
    %c0_i32_0 = arith.constant 0 : i32
    %c0_i32_1 = arith.constant 0 : i32
    return %c0_i32, %c0_i32_0 : i32, i32
  }
  func.func @transform_2(%arg0: i32) -> (i32, i32) {
    %c0_i32 = arith.constant 0 : i32
    %c0_i32_0 = arith.constant 0 : i32
    %c0_i32_1 = arith.constant 0 : i32
    return %c0_i32, %c0_i32_0 : i32, i32
  }
  func.func @transform_3(%arg0: i32) -> (i32, i32) {
    %c0_i32 = arith.constant 0 : i32
    %c0_i32_0 = arith.constant 0 : i32
    return %arg0, %c0_i32 : i32, i32
  }
}

module attributes {stable_mosaic.version = 11 : i64} {
  func.func @_mm_kernel(%arg0: i32, %arg1: memref<128x24xbf16, #tpu.memory_space<vmem>>, %arg2: memref<24x128xbf16, #tpu.memory_space<vmem>>, %arg3: memref<1x128xf32, #tpu.memory_space<vmem>>, %arg4: memref<128x128xf32, #tpu.memory_space<vmem>>) attributes {dimension_semantics = [#tpu.dimension_semantics<parallel>], iteration_bounds = array<i64: 2>, scalar_prefetch = 0 : i64, scratch_operands = 0 : i64, tpu.core_type = #tpu.core_type<tc>, window_params = [{transform_indices = @transform_0, window_bounds = array<i64: 128, 24>}, {pipeline_mode = #tpu.pipeline_mode<synchronous>, transform_indices = @transform_1, window_bounds = array<i64: 24, 128>}, {pipeline_mode = #tpu.pipeline_mode<synchronous>, transform_indices = @transform_2, window_bounds = array<i64: 1, 128>}, {transform_indices = @transform_3, window_bounds = array<i64: 128, 128>}]} {
    %c0 = arith.constant 0 : index
    %c0_0 = arith.constant 0 : index
    %0 = vector.load %arg1[%c0, %c0_0] : memref<128x24xbf16, #tpu.memory_space<vmem>>, vector<128x24xbf16>
    %c0_1 = arith.constant 0 : index
    %c0_2 = arith.constant 0 : index
    %1 = vector.load %arg2[%c0_1, %c0_2] : memref<24x128xbf16, #tpu.memory_space<vmem>>, vector<24x128xbf16>
    %cst = arith.constant dense<0.000000e+00> : vector<128x128xf32>
    %2 = tpu.matmul %0, %1, %cst {dimension_numbers = #tpu.dot_dimension_numbers<[1], [0], [0], [1], [0, 0, 1, 1], [], []>} : vector<128x24xbf16>, vector<24x128xbf16>, vector<128x128xf32> -> vector<128x128xf32>
    %c0_3 = arith.constant 0 : index
    %c0_4 = arith.constant 0 : index
    %3 = vector.load %arg3[%c0_3, %c0_4] : memref<1x128xf32, #tpu.memory_space<vmem>>, vector<1x128xf32>
    %4 = vector.broadcast %3 : vector<1x128xf32> to vector<128x128xf32>
    %5 = arith.addf %2, %4 : vector<128x128xf32>
    %c0_5 = arith.constant 0 : index
    %c0_6 = arith.constant 0 : index
    %6 = vector.load %arg4[%c0_5, %c0_6] : memref<128x128xf32, #tpu.memory_space<vmem>>, vector<128x128xf32>
    tpu.vector_store %arg4[%c0_5, %c0_6], %5 {strides = array<i32>} : memref<128x128xf32, #tpu.memory_space<vmem>>, vector<128x128xf32>,
    return
  }
  func.func @transform_0(%arg0: i32) -> (i32, i32) {
    %c0_i32 = arith.constant 0 : i32
    %c0_i32_0 = arith.constant 0 : i32
    return %arg0, %c0_i32 : i32, i32
  }
  func.func @transform_1(%arg0: i32) -> (i32, i32) {
    %c0_i32 = arith.constant 0 : i32
    %c0_i32_0 = arith.constant 0 : i32
    %c0_i32_1 = arith.constant 0 : i32
    return %c0_i32, %c0_i32_0 : i32, i32
  }
  func.func @transform_2(%arg0: i32) -> (i32, i32) {
    %c0_i32 = arith.constant 0 : i32
    %c0_i32_0 = arith.constant 0 : i32
    %c0_i32_1 = arith.constant 0 : i32
    return %c0_i32, %c0_i32_0 : i32, i32
  }
  func.func @transform_3(%arg0: i32) -> (i32, i32) {
    %c0_i32 = arith.constant 0 : i32
    %c0_i32_0 = arith.constant 0 : i32
    return %arg0, %c0_i32 : i32, i32
  }
}

module attributes {stable_mosaic.version = 11 : i64} {
  func.func @_mm_kernel(%arg0: i32, %arg1: memref<128x144xbf16, #tpu.memory_space<vmem>>, %arg2: memref<144x128xbf16, #tpu.memory_space<vmem>>, %arg3: memref<1x128xf32, #tpu.memory_space<vmem>>, %arg4: memref<128x128xf32, #tpu.memory_space<vmem>>) attributes {dimension_semantics = [#tpu.dimension_semantics<parallel>], iteration_bounds = array<i64: 2>, scalar_prefetch = 0 : i64, scratch_operands = 0 : i64, tpu.core_type = #tpu.core_type<tc>, window_params = [{transform_indices = @transform_0, window_bounds = array<i64: 128, 144>}, {pipeline_mode = #tpu.pipeline_mode<synchronous>, transform_indices = @transform_1, window_bounds = array<i64: 144, 128>}, {pipeline_mode = #tpu.pipeline_mode<synchronous>, transform_indices = @transform_2, window_bounds = array<i64: 1, 128>}, {transform_indices = @transform_3, window_bounds = array<i64: 128, 128>}]} {
    %c0 = arith.constant 0 : index
    %c0_0 = arith.constant 0 : index
    %0 = vector.load %arg1[%c0, %c0_0] : memref<128x144xbf16, #tpu.memory_space<vmem>>, vector<128x144xbf16>
    %c0_1 = arith.constant 0 : index
    %c0_2 = arith.constant 0 : index
    %1 = vector.load %arg2[%c0_1, %c0_2] : memref<144x128xbf16, #tpu.memory_space<vmem>>, vector<144x128xbf16>
    %cst = arith.constant dense<0.000000e+00> : vector<128x128xf32>
    %2 = tpu.matmul %0, %1, %cst {dimension_numbers = #tpu.dot_dimension_numbers<[1], [0], [0], [1], [0, 0, 1, 1], [], []>} : vector<128x144xbf16>, vector<144x128xbf16>, vector<128x128xf32> -> vector<128x128xf32>
    %c0_3 = arith.constant 0 : index
    %c0_4 = arith.constant 0 : index
    %3 = vector.load %arg3[%c0_3, %c0_4] : memref<1x128xf32, #tpu.memory_space<vmem>>, vector<1x128xf32>
    %4 = vector.broadcast %3 : vector<1x128xf32> to vector<128x128xf32>
    %5 = arith.addf %2, %4 : vector<128x128xf32>
    %c0_5 = arith.constant 0 : index
    %c0_6 = arith.constant 0 : index
    %6 = vector.load %arg4[%c0_5, %c0_6] : memref<128x128xf32, #tpu.memory_space<vmem>>, vector<128x128xf32>
    tpu.vector_store %arg4[%c0_5, %c0_6], %5 {strides = array<i32>} : memref<128x128xf32, #tpu.memory_space<vmem>>, vector<128x128xf32>,
    return
  }
  func.func @transform_0(%arg0: i32) -> (i32, i32) {
    %c0_i32 = arith.constant 0 : i32
    %c0_i32_0 = arith.constant 0 : i32
    return %arg0, %c0_i32 : i32, i32
  }
  func.func @transform_1(%arg0: i32) -> (i32, i32) {
    %c0_i32 = arith.constant 0 : i32
    %c0_i32_0 = arith.constant 0 : i32
    %c0_i32_1 = arith.constant 0 : i32
    return %c0_i32, %c0_i32_0 : i32, i32
  }
  func.func @transform_2(%arg0: i32) -> (i32, i32) {
    %c0_i32 = arith.constant 0 : i32
    %c0_i32_0 = arith.constant 0 : i32
    %c0_i32_1 = arith.constant 0 : i32
    return %c0_i32, %c0_i32_0 : i32, i32
  }
  func.func @transform_3(%arg0: i32) -> (i32, i32) {
    %c0_i32 = arith.constant 0 : i32
    %c0_i32_0 = arith.constant 0 : i32
    return %arg0, %c0_i32 : i32, i32
  }
}

module attributes {stable_mosaic.version = 11 : i64} {
  func.func @_mm_res_kernel(%arg0: i32, %arg1: memref<64x72xbf16, #tpu.memory_space<vmem>>, %arg2: memref<72x128xbf16, #tpu.memory_space<vmem>>, %arg3: memref<1x128xf32, #tpu.memory_space<vmem>>, %arg4: memref<64x128xbf16, #tpu.memory_space<vmem>>, %arg5: memref<64x128xf32, #tpu.memory_space<vmem>>) attributes {dimension_semantics = [#tpu.dimension_semantics<parallel>], iteration_bounds = array<i64: 1>, scalar_prefetch = 0 : i64, scratch_operands = 0 : i64, tpu.core_type = #tpu.core_type<tc>, window_params = [{transform_indices = @transform_0, window_bounds = array<i64: 64, 72>}, {pipeline_mode = #tpu.pipeline_mode<synchronous>, transform_indices = @transform_1, window_bounds = array<i64: 72, 128>}, {pipeline_mode = #tpu.pipeline_mode<synchronous>, transform_indices = @transform_2, window_bounds = array<i64: 1, 128>}, {transform_indices = @transform_3, window_bounds = array<i64: 64, 128>}, {transform_indices = @transform_4, window_bounds = array<i64: 64, 128>}]} {
    %c0 = arith.constant 0 : index
    %c0_0 = arith.constant 0 : index
    %0 = vector.load %arg1[%c0, %c0_0] : memref<64x72xbf16, #tpu.memory_space<vmem>>, vector<64x72xbf16>
    %c0_1 = arith.constant 0 : index
    %c0_2 = arith.constant 0 : index
    %1 = vector.load %arg2[%c0_1, %c0_2] : memref<72x128xbf16, #tpu.memory_space<vmem>>, vector<72x128xbf16>
    %cst = arith.constant dense<0.000000e+00> : vector<64x128xf32>
    %2 = tpu.matmul %0, %1, %cst {dimension_numbers = #tpu.dot_dimension_numbers<[1], [0], [0], [1], [0, 0, 1, 1], [], []>} : vector<64x72xbf16>, vector<72x128xbf16>, vector<64x128xf32> -> vector<64x128xf32>
    %c0_3 = arith.constant 0 : index
    %c0_4 = arith.constant 0 : index
    %3 = vector.load %arg3[%c0_3, %c0_4] : memref<1x128xf32, #tpu.memory_space<vmem>>, vector<1x128xf32>
    %4 = vector.broadcast %3 : vector<1x128xf32> to vector<64x128xf32>
    %5 = arith.addf %2, %4 : vector<64x128xf32>
    %c0_5 = arith.constant 0 : index
    %c0_6 = arith.constant 0 : index
    %6 = vector.load %arg4[%c0_5, %c0_6] : memref<64x128xbf16, #tpu.memory_space<vmem>>, vector<64x128xbf16>
    %7 = arith.extf %6 : vector<64x128xbf16> to vector<64x128xf32>
    %8 = arith.addf %5, %7 : vector<64x128xf32>
    %cst_7 = arith.constant 0.000000e+00 : f32
    %9 = vector.broadcast %cst_7 : f32 to vector<64x128xf32>
    %10 = arith.maximumf %8, %9 : vector<64x128xf32>
    %c0_8 = arith.constant 0 : index
    %c0_9 = arith.constant 0 : index
    %11 = vector.load %arg5[%c0_8, %c0_9] : memref<64x128xf32, #tpu.memory_space<vmem>>, vector<64x128xf32>
    tpu.vector_store %arg5[%c0_8, %c0_9], %10 {strides = array<i32>} : memref<64x128xf32, #tpu.memory_space<vmem>>, vector<64x128xf32>,
    return
  }
  func.func @transform_0(%arg0: i32) -> (i32, i32) {
    %c0_i32 = arith.constant 0 : i32
    %c0_i32_0 = arith.constant 0 : i32
    return %arg0, %c0_i32 : i32, i32
  }
  func.func @transform_1(%arg0: i32) -> (i32, i32) {
    %c0_i32 = arith.constant 0 : i32
    %c0_i32_0 = arith.constant 0 : i32
    %c0_i32_1 = arith.constant 0 : i32
    return %c0_i32, %c0_i32_0 : i32, i32
  }
  func.func @transform_2(%arg0: i32) -> (i32, i32) {
    %c0_i32 = arith.constant 0 : i32
    %c0_i32_0 = arith.constant 0 : i32
    %c0_i32_1 = arith.constant 0 : i32
    return %c0_i32, %c0_i32_0 : i32, i32
  }
  func.func @transform_3(%arg0: i32) -> (i32, i32) {
    %c0_i32 = arith.constant 0 : i32
    %c0_i32_0 = arith.constant 0 : i32
    return %arg0, %c0_i32 : i32, i32
  }
  func.func @transform_4(%arg0: i32) -> (i32, i32) {
    %c0_i32 = arith.constant 0 : i32
    %c0_i32_0 = arith.constant 0 : i32
    return %arg0, %c0_i32 : i32, i32
  }
}

module attributes {stable_mosaic.version = 11 : i64} {
  func.func @_mm_res_kernel(%arg0: i32, %arg1: memref<128x72xbf16, #tpu.memory_space<vmem>>, %arg2: memref<72x128xbf16, #tpu.memory_space<vmem>>, %arg3: memref<1x128xf32, #tpu.memory_space<vmem>>, %arg4: memref<128x128xbf16, #tpu.memory_space<vmem>>, %arg5: memref<128x128xf32, #tpu.memory_space<vmem>>) attributes {dimension_semantics = [#tpu.dimension_semantics<parallel>], iteration_bounds = array<i64: 2>, scalar_prefetch = 0 : i64, scratch_operands = 0 : i64, tpu.core_type = #tpu.core_type<tc>, window_params = [{transform_indices = @transform_0, window_bounds = array<i64: 128, 72>}, {pipeline_mode = #tpu.pipeline_mode<synchronous>, transform_indices = @transform_1, window_bounds = array<i64: 72, 128>}, {pipeline_mode = #tpu.pipeline_mode<synchronous>, transform_indices = @transform_2, window_bounds = array<i64: 1, 128>}, {transform_indices = @transform_3, window_bounds = array<i64: 128, 128>}, {transform_indices = @transform_4, window_bounds = array<i64: 128, 128>}]} {
    %c0 = arith.constant 0 : index
    %c0_0 = arith.constant 0 : index
    %0 = vector.load %arg1[%c0, %c0_0] : memref<128x72xbf16, #tpu.memory_space<vmem>>, vector<128x72xbf16>
    %c0_1 = arith.constant 0 : index
    %c0_2 = arith.constant 0 : index
    %1 = vector.load %arg2[%c0_1, %c0_2] : memref<72x128xbf16, #tpu.memory_space<vmem>>, vector<72x128xbf16>
    %cst = arith.constant dense<0.000000e+00> : vector<128x128xf32>
    %2 = tpu.matmul %0, %1, %cst {dimension_numbers = #tpu.dot_dimension_numbers<[1], [0], [0], [1], [0, 0, 1, 1], [], []>} : vector<128x72xbf16>, vector<72x128xbf16>, vector<128x128xf32> -> vector<128x128xf32>
    %c0_3 = arith.constant 0 : index
    %c0_4 = arith.constant 0 : index
    %3 = vector.load %arg3[%c0_3, %c0_4] : memref<1x128xf32, #tpu.memory_space<vmem>>, vector<1x128xf32>
    %4 = vector.broadcast %3 : vector<1x128xf32> to vector<128x128xf32>
    %5 = arith.addf %2, %4 : vector<128x128xf32>
    %c0_5 = arith.constant 0 : index
    %c0_6 = arith.constant 0 : index
    %6 = vector.load %arg4[%c0_5, %c0_6] : memref<128x128xbf16, #tpu.memory_space<vmem>>, vector<128x128xbf16>
    %7 = arith.extf %6 : vector<128x128xbf16> to vector<128x128xf32>
    %8 = arith.addf %5, %7 : vector<128x128xf32>
    %c0_7 = arith.constant 0 : index
    %c0_8 = arith.constant 0 : index
    %9 = vector.load %arg5[%c0_7, %c0_8] : memref<128x128xf32, #tpu.memory_space<vmem>>, vector<128x128xf32>
    tpu.vector_store %arg5[%c0_7, %c0_8], %8 {strides = array<i32>} : memref<128x128xf32, #tpu.memory_space<vmem>>, vector<128x128xf32>,
    return
  }
  func.func @transform_0(%arg0: i32) -> (i32, i32) {
    %c0_i32 = arith.constant 0 : i32
    %c0_i32_0 = arith.constant 0 : i32
    return %arg0, %c0_i32 : i32, i32
  }
  func.func @transform_1(%arg0: i32) -> (i32, i32) {
    %c0_i32 = arith.constant 0 : i32
    %c0_i32_0 = arith.constant 0 : i32
    %c0_i32_1 = arith.constant 0 : i32
    return %c0_i32, %c0_i32_0 : i32, i32
  }
  func.func @transform_2(%arg0: i32) -> (i32, i32) {
    %c0_i32 = arith.constant 0 : i32
    %c0_i32_0 = arith.constant 0 : i32
    %c0_i32_1 = arith.constant 0 : i32
    return %c0_i32, %c0_i32_0 : i32, i32
  }
  func.func @transform_3(%arg0: i32) -> (i32, i32) {
    %c0_i32 = arith.constant 0 : i32
    %c0_i32_0 = arith.constant 0 : i32
    return %arg0, %c0_i32 : i32, i32
  }
  func.func @transform_4(%arg0: i32) -> (i32, i32) {
    %c0_i32 = arith.constant 0 : i32
    %c0_i32_0 = arith.constant 0 : i32
    return %arg0, %c0_i32 : i32, i32
  }
}

module attributes {stable_mosaic.version = 11 : i64} {
  func.func @_mm_kernel(%arg0: i32, %arg1: memref<128x72xbf16, #tpu.memory_space<vmem>>, %arg2: memref<72x128xbf16, #tpu.memory_space<vmem>>, %arg3: memref<1x128xf32, #tpu.memory_space<vmem>>, %arg4: memref<128x128xf32, #tpu.memory_space<vmem>>) attributes {dimension_semantics = [#tpu.dimension_semantics<parallel>], iteration_bounds = array<i64: 2>, scalar_prefetch = 0 : i64, scratch_operands = 0 : i64, tpu.core_type = #tpu.core_type<tc>, window_params = [{transform_indices = @transform_0, window_bounds = array<i64: 128, 72>}, {pipeline_mode = #tpu.pipeline_mode<synchronous>, transform_indices = @transform_1, window_bounds = array<i64: 72, 128>}, {pipeline_mode = #tpu.pipeline_mode<synchronous>, transform_indices = @transform_2, window_bounds = array<i64: 1, 128>}, {transform_indices = @transform_3, window_bounds = array<i64: 128, 128>}]} {
    %c0 = arith.constant 0 : index
    %c0_0 = arith.constant 0 : index
    %0 = vector.load %arg1[%c0, %c0_0] : memref<128x72xbf16, #tpu.memory_space<vmem>>, vector<128x72xbf16>
    %c0_1 = arith.constant 0 : index
    %c0_2 = arith.constant 0 : index
    %1 = vector.load %arg2[%c0_1, %c0_2] : memref<72x128xbf16, #tpu.memory_space<vmem>>, vector<72x128xbf16>
    %cst = arith.constant dense<0.000000e+00> : vector<128x128xf32>
    %2 = tpu.matmul %0, %1, %cst {dimension_numbers = #tpu.dot_dimension_numbers<[1], [0], [0], [1], [0, 0, 1, 1], [], []>} : vector<128x72xbf16>, vector<72x128xbf16>, vector<128x128xf32> -> vector<128x128xf32>
    %c0_3 = arith.constant 0 : index
    %c0_4 = arith.constant 0 : index
    %3 = vector.load %arg3[%c0_3, %c0_4] : memref<1x128xf32, #tpu.memory_space<vmem>>, vector<1x128xf32>
    %4 = vector.broadcast %3 : vector<1x128xf32> to vector<128x128xf32>
    %5 = arith.addf %2, %4 : vector<128x128xf32>
    %cst_5 = arith.constant 0.000000e+00 : f32
    %6 = vector.broadcast %cst_5 : f32 to vector<128x128xf32>
    %7 = arith.maximumf %5, %6 : vector<128x128xf32>
    %c0_6 = arith.constant 0 : index
    %c0_7 = arith.constant 0 : index
    %8 = vector.load %arg4[%c0_6, %c0_7] : memref<128x128xf32, #tpu.memory_space<vmem>>, vector<128x128xf32>
    tpu.vector_store %arg4[%c0_6, %c0_7], %7 {strides = array<i32>} : memref<128x128xf32, #tpu.memory_space<vmem>>, vector<128x128xf32>,
    return
  }
  func.func @transform_0(%arg0: i32) -> (i32, i32) {
    %c0_i32 = arith.constant 0 : i32
    %c0_i32_0 = arith.constant 0 : i32
    return %arg0, %c0_i32 : i32, i32
  }
  func.func @transform_1(%arg0: i32) -> (i32, i32) {
    %c0_i32 = arith.constant 0 : i32
    %c0_i32_0 = arith.constant 0 : i32
    %c0_i32_1 = arith.constant 0 : i32
    return %c0_i32, %c0_i32_0 : i32, i32
  }
  func.func @transform_2(%arg0: i32) -> (i32, i32) {
    %c0_i32 = arith.constant 0 : i32
    %c0_i32_0 = arith.constant 0 : i32
    %c0_i32_1 = arith.constant 0 : i32
    return %c0_i32, %c0_i32_0 : i32, i32
  }
  func.func @transform_3(%arg0: i32) -> (i32, i32) {
    %c0_i32 = arith.constant 0 : i32
    %c0_i32_0 = arith.constant 0 : i32
    return %arg0, %c0_i32 : i32, i32
  }
}

module attributes {stable_mosaic.version = 11 : i64} {
  func.func @_mm_kernel(%arg0: i32, %arg1: memref<128x72xbf16, #tpu.memory_space<vmem>>, %arg2: memref<72x128xbf16, #tpu.memory_space<vmem>>, %arg3: memref<1x128xf32, #tpu.memory_space<vmem>>, %arg4: memref<128x128xf32, #tpu.memory_space<vmem>>) attributes {dimension_semantics = [#tpu.dimension_semantics<parallel>], iteration_bounds = array<i64: 2>, scalar_prefetch = 0 : i64, scratch_operands = 0 : i64, tpu.core_type = #tpu.core_type<tc>, window_params = [{transform_indices = @transform_0, window_bounds = array<i64: 128, 72>}, {pipeline_mode = #tpu.pipeline_mode<synchronous>, transform_indices = @transform_1, window_bounds = array<i64: 72, 128>}, {pipeline_mode = #tpu.pipeline_mode<synchronous>, transform_indices = @transform_2, window_bounds = array<i64: 1, 128>}, {transform_indices = @transform_3, window_bounds = array<i64: 128, 128>}]} {
    %c0 = arith.constant 0 : index
    %c0_0 = arith.constant 0 : index
    %0 = vector.load %arg1[%c0, %c0_0] : memref<128x72xbf16, #tpu.memory_space<vmem>>, vector<128x72xbf16>
    %c0_1 = arith.constant 0 : index
    %c0_2 = arith.constant 0 : index
    %1 = vector.load %arg2[%c0_1, %c0_2] : memref<72x128xbf16, #tpu.memory_space<vmem>>, vector<72x128xbf16>
    %cst = arith.constant dense<0.000000e+00> : vector<128x128xf32>
    %2 = tpu.matmul %0, %1, %cst {dimension_numbers = #tpu.dot_dimension_numbers<[1], [0], [0], [1], [0, 0, 1, 1], [], []>} : vector<128x72xbf16>, vector<72x128xbf16>, vector<128x128xf32> -> vector<128x128xf32>
    %c0_3 = arith.constant 0 : index
    %c0_4 = arith.constant 0 : index
    %3 = vector.load %arg3[%c0_3, %c0_4] : memref<1x128xf32, #tpu.memory_space<vmem>>, vector<1x128xf32>
    %4 = vector.broadcast %3 : vector<1x128xf32> to vector<128x128xf32>
    %5 = arith.addf %2, %4 : vector<128x128xf32>
    %c0_5 = arith.constant 0 : index
    %c0_6 = arith.constant 0 : index
    %6 = vector.load %arg4[%c0_5, %c0_6] : memref<128x128xf32, #tpu.memory_space<vmem>>, vector<128x128xf32>
    tpu.vector_store %arg4[%c0_5, %c0_6], %5 {strides = array<i32>} : memref<128x128xf32, #tpu.memory_space<vmem>>, vector<128x128xf32>,
    return
  }
  func.func @transform_0(%arg0: i32) -> (i32, i32) {
    %c0_i32 = arith.constant 0 : i32
    %c0_i32_0 = arith.constant 0 : i32
    return %arg0, %c0_i32 : i32, i32
  }
  func.func @transform_1(%arg0: i32) -> (i32, i32) {
    %c0_i32 = arith.constant 0 : i32
    %c0_i32_0 = arith.constant 0 : i32
    %c0_i32_1 = arith.constant 0 : i32
    return %c0_i32, %c0_i32_0 : i32, i32
  }
  func.func @transform_2(%arg0: i32) -> (i32, i32) {
    %c0_i32 = arith.constant 0 : i32
    %c0_i32_0 = arith.constant 0 : i32
    %c0_i32_1 = arith.constant 0 : i32
    return %c0_i32, %c0_i32_0 : i32, i32
  }
  func.func @transform_3(%arg0: i32) -> (i32, i32) {
    %c0_i32 = arith.constant 0 : i32
    %c0_i32_0 = arith.constant 0 : i32
    return %arg0, %c0_i32 : i32, i32
  }
}

module attributes {stable_mosaic.version = 11 : i64} {
  func.func @_mm_kernel(%arg0: i32, %arg1: memref<128x144xbf16, #tpu.memory_space<vmem>>, %arg2: memref<144x128xbf16, #tpu.memory_space<vmem>>, %arg3: memref<1x128xf32, #tpu.memory_space<vmem>>, %arg4: memref<128x128xf32, #tpu.memory_space<vmem>>) attributes {dimension_semantics = [#tpu.dimension_semantics<parallel>], iteration_bounds = array<i64: 2>, scalar_prefetch = 0 : i64, scratch_operands = 0 : i64, tpu.core_type = #tpu.core_type<tc>, window_params = [{transform_indices = @transform_0, window_bounds = array<i64: 128, 144>}, {pipeline_mode = #tpu.pipeline_mode<synchronous>, transform_indices = @transform_1, window_bounds = array<i64: 144, 128>}, {pipeline_mode = #tpu.pipeline_mode<synchronous>, transform_indices = @transform_2, window_bounds = array<i64: 1, 128>}, {transform_indices = @transform_3, window_bounds = array<i64: 128, 128>}]} {
    %c0 = arith.constant 0 : index
    %c0_0 = arith.constant 0 : index
    %0 = vector.load %arg1[%c0, %c0_0] : memref<128x144xbf16, #tpu.memory_space<vmem>>, vector<128x144xbf16>
    %c0_1 = arith.constant 0 : index
    %c0_2 = arith.constant 0 : index
    %1 = vector.load %arg2[%c0_1, %c0_2] : memref<144x128xbf16, #tpu.memory_space<vmem>>, vector<144x128xbf16>
    %cst = arith.constant dense<0.000000e+00> : vector<128x128xf32>
    %2 = tpu.matmul %0, %1, %cst {dimension_numbers = #tpu.dot_dimension_numbers<[1], [0], [0], [1], [0, 0, 1, 1], [], []>} : vector<128x144xbf16>, vector<144x128xbf16>, vector<128x128xf32> -> vector<128x128xf32>
    %c0_3 = arith.constant 0 : index
    %c0_4 = arith.constant 0 : index
    %3 = vector.load %arg3[%c0_3, %c0_4] : memref<1x128xf32, #tpu.memory_space<vmem>>, vector<1x128xf32>
    %4 = vector.broadcast %3 : vector<1x128xf32> to vector<128x128xf32>
    %5 = arith.addf %2, %4 : vector<128x128xf32>
    %cst_5 = arith.constant 0.000000e+00 : f32
    %6 = vector.broadcast %cst_5 : f32 to vector<128x128xf32>
    %7 = arith.maximumf %5, %6 : vector<128x128xf32>
    %c0_6 = arith.constant 0 : index
    %c0_7 = arith.constant 0 : index
    %8 = vector.load %arg4[%c0_6, %c0_7] : memref<128x128xf32, #tpu.memory_space<vmem>>, vector<128x128xf32>
    tpu.vector_store %arg4[%c0_6, %c0_7], %7 {strides = array<i32>} : memref<128x128xf32, #tpu.memory_space<vmem>>, vector<128x128xf32>,
    return
  }
  func.func @transform_0(%arg0: i32) -> (i32, i32) {
    %c0_i32 = arith.constant 0 : i32
    %c0_i32_0 = arith.constant 0 : i32
    return %arg0, %c0_i32 : i32, i32
  }
  func.func @transform_1(%arg0: i32) -> (i32, i32) {
    %c0_i32 = arith.constant 0 : i32
    %c0_i32_0 = arith.constant 0 : i32
    %c0_i32_1 = arith.constant 0 : i32
    return %c0_i32, %c0_i32_0 : i32, i32
  }
  func.func @transform_2(%arg0: i32) -> (i32, i32) {
    %c0_i32 = arith.constant 0 : i32
    %c0_i32_0 = arith.constant 0 : i32
    %c0_i32_1 = arith.constant 0 : i32
    return %c0_i32, %c0_i32_0 : i32, i32
  }
  func.func @transform_3(%arg0: i32) -> (i32, i32) {
    %c0_i32 = arith.constant 0 : i32
    %c0_i32_0 = arith.constant 0 : i32
    return %arg0, %c0_i32 : i32, i32
  }
}

module attributes {stable_mosaic.version = 11 : i64} {
  func.func @_mm_kernel(%arg0: i32, %arg1: memref<128x8xbf16, #tpu.memory_space<vmem>>, %arg2: memref<8x128xbf16, #tpu.memory_space<vmem>>, %arg3: memref<1x128xf32, #tpu.memory_space<vmem>>, %arg4: memref<128x128xf32, #tpu.memory_space<vmem>>) attributes {dimension_semantics = [#tpu.dimension_semantics<parallel>], iteration_bounds = array<i64: 2>, scalar_prefetch = 0 : i64, scratch_operands = 0 : i64, tpu.core_type = #tpu.core_type<tc>, window_params = [{transform_indices = @transform_0, window_bounds = array<i64: 128, 8>}, {pipeline_mode = #tpu.pipeline_mode<synchronous>, transform_indices = @transform_1, window_bounds = array<i64: 8, 128>}, {pipeline_mode = #tpu.pipeline_mode<synchronous>, transform_indices = @transform_2, window_bounds = array<i64: 1, 128>}, {transform_indices = @transform_3, window_bounds = array<i64: 128, 128>}]} {
    %c0 = arith.constant 0 : index
    %c0_0 = arith.constant 0 : index
    %0 = vector.load %arg1[%c0, %c0_0] : memref<128x8xbf16, #tpu.memory_space<vmem>>, vector<128x8xbf16>
    %c0_1 = arith.constant 0 : index
    %c0_2 = arith.constant 0 : index
    %1 = vector.load %arg2[%c0_1, %c0_2] : memref<8x128xbf16, #tpu.memory_space<vmem>>, vector<8x128xbf16>
    %cst = arith.constant dense<0.000000e+00> : vector<128x128xf32>
    %2 = tpu.matmul %0, %1, %cst {dimension_numbers = #tpu.dot_dimension_numbers<[1], [0], [0], [1], [0, 0, 1, 1], [], []>} : vector<128x8xbf16>, vector<8x128xbf16>, vector<128x128xf32> -> vector<128x128xf32>
    %c0_3 = arith.constant 0 : index
    %c0_4 = arith.constant 0 : index
    %3 = vector.load %arg3[%c0_3, %c0_4] : memref<1x128xf32, #tpu.memory_space<vmem>>, vector<1x128xf32>
    %4 = vector.broadcast %3 : vector<1x128xf32> to vector<128x128xf32>
    %5 = arith.addf %2, %4 : vector<128x128xf32>
    %cst_5 = arith.constant 0.000000e+00 : f32
    %6 = vector.broadcast %cst_5 : f32 to vector<128x128xf32>
    %7 = arith.maximumf %5, %6 : vector<128x128xf32>
    %c0_6 = arith.constant 0 : index
    %c0_7 = arith.constant 0 : index
    %8 = vector.load %arg4[%c0_6, %c0_7] : memref<128x128xf32, #tpu.memory_space<vmem>>, vector<128x128xf32>
    tpu.vector_store %arg4[%c0_6, %c0_7], %7 {strides = array<i32>} : memref<128x128xf32, #tpu.memory_space<vmem>>, vector<128x128xf32>,
    return
  }
  func.func @transform_0(%arg0: i32) -> (i32, i32) {
    %c0_i32 = arith.constant 0 : i32
    %c0_i32_0 = arith.constant 0 : i32
    return %arg0, %c0_i32 : i32, i32
  }
  func.func @transform_1(%arg0: i32) -> (i32, i32) {
    %c0_i32 = arith.constant 0 : i32
    %c0_i32_0 = arith.constant 0 : i32
    %c0_i32_1 = arith.constant 0 : i32
    return %c0_i32, %c0_i32_0 : i32, i32
  }
  func.func @transform_2(%arg0: i32) -> (i32, i32) {
    %c0_i32 = arith.constant 0 : i32
    %c0_i32_0 = arith.constant 0 : i32
    %c0_i32_1 = arith.constant 0 : i32
    return %c0_i32, %c0_i32_0 : i32, i32
  }
  func.func @transform_3(%arg0: i32) -> (i32, i32) {
    %c0_i32 = arith.constant 0 : i32
    %c0_i32_0 = arith.constant 0 : i32
    return %arg0, %c0_i32 : i32, i32
  }
}

module attributes {stable_mosaic.version = 11 : i64} {
  func.func @_mm_kernel(%arg0: i32, %arg1: memref<512x24xbf16, #tpu.memory_space<vmem>>, %arg2: memref<24x128xbf16, #tpu.memory_space<vmem>>, %arg3: memref<1x128xf32, #tpu.memory_space<vmem>>, %arg4: memref<512x128xf32, #tpu.memory_space<vmem>>) attributes {dimension_semantics = [#tpu.dimension_semantics<parallel>], iteration_bounds = array<i64: 2>, scalar_prefetch = 0 : i64, scratch_operands = 0 : i64, tpu.core_type = #tpu.core_type<tc>, window_params = [{transform_indices = @transform_0, window_bounds = array<i64: 512, 24>}, {pipeline_mode = #tpu.pipeline_mode<synchronous>, transform_indices = @transform_1, window_bounds = array<i64: 24, 128>}, {pipeline_mode = #tpu.pipeline_mode<synchronous>, transform_indices = @transform_2, window_bounds = array<i64: 1, 128>}, {transform_indices = @transform_3, window_bounds = array<i64: 512, 128>}]} {
    %c0 = arith.constant 0 : index
    %c0_0 = arith.constant 0 : index
    %0 = vector.load %arg1[%c0, %c0_0] : memref<512x24xbf16, #tpu.memory_space<vmem>>, vector<512x24xbf16>
    %c0_1 = arith.constant 0 : index
    %c0_2 = arith.constant 0 : index
    %1 = vector.load %arg2[%c0_1, %c0_2] : memref<24x128xbf16, #tpu.memory_space<vmem>>, vector<24x128xbf16>
    %cst = arith.constant dense<0.000000e+00> : vector<512x128xf32>
    %2 = tpu.matmul %0, %1, %cst {dimension_numbers = #tpu.dot_dimension_numbers<[1], [0], [0], [1], [0, 0, 1, 1], [], []>} : vector<512x24xbf16>, vector<24x128xbf16>, vector<512x128xf32> -> vector<512x128xf32>
    %c0_3 = arith.constant 0 : index
    %c0_4 = arith.constant 0 : index
    %3 = vector.load %arg3[%c0_3, %c0_4] : memref<1x128xf32, #tpu.memory_space<vmem>>, vector<1x128xf32>
    %4 = vector.broadcast %3 : vector<1x128xf32> to vector<512x128xf32>
    %5 = arith.addf %2, %4 : vector<512x128xf32>
    %c0_5 = arith.constant 0 : index
    %c0_6 = arith.constant 0 : index
    %6 = vector.load %arg4[%c0_5, %c0_6] : memref<512x128xf32, #tpu.memory_space<vmem>>, vector<512x128xf32>
    tpu.vector_store %arg4[%c0_5, %c0_6], %5 {strides = array<i32>} : memref<512x128xf32, #tpu.memory_space<vmem>>, vector<512x128xf32>,
    return
  }
  func.func @transform_0(%arg0: i32) -> (i32, i32) {
    %c0_i32 = arith.constant 0 : i32
    %c0_i32_0 = arith.constant 0 : i32
    return %arg0, %c0_i32 : i32, i32
  }
  func.func @transform_1(%arg0: i32) -> (i32, i32) {
    %c0_i32 = arith.constant 0 : i32
    %c0_i32_0 = arith.constant 0 : i32
    %c0_i32_1 = arith.constant 0 : i32
    return %c0_i32, %c0_i32_0 : i32, i32
  }
  func.func @transform_2(%arg0: i32) -> (i32, i32) {
    %c0_i32 = arith.constant 0 : i32
    %c0_i32_0 = arith.constant 0 : i32
    %c0_i32_1 = arith.constant 0 : i32
    return %c0_i32, %c0_i32_0 : i32, i32
  }
  func.func @transform_3(%arg0: i32) -> (i32, i32) {
    %c0_i32 = arith.constant 0 : i32
    %c0_i32_0 = arith.constant 0 : i32
    return %arg0, %c0_i32 : i32, i32
  }
}

module attributes {stable_mosaic.version = 11 : i64} {
  func.func @_mm_kernel(%arg0: i32, %arg1: memref<512x144xbf16, #tpu.memory_space<vmem>>, %arg2: memref<144x128xbf16, #tpu.memory_space<vmem>>, %arg3: memref<1x128xf32, #tpu.memory_space<vmem>>, %arg4: memref<512x128xf32, #tpu.memory_space<vmem>>) attributes {dimension_semantics = [#tpu.dimension_semantics<parallel>], iteration_bounds = array<i64: 2>, scalar_prefetch = 0 : i64, scratch_operands = 0 : i64, tpu.core_type = #tpu.core_type<tc>, window_params = [{transform_indices = @transform_0, window_bounds = array<i64: 512, 144>}, {pipeline_mode = #tpu.pipeline_mode<synchronous>, transform_indices = @transform_1, window_bounds = array<i64: 144, 128>}, {pipeline_mode = #tpu.pipeline_mode<synchronous>, transform_indices = @transform_2, window_bounds = array<i64: 1, 128>}, {transform_indices = @transform_3, window_bounds = array<i64: 512, 128>}]} {
    %c0 = arith.constant 0 : index
    %c0_0 = arith.constant 0 : index
    %0 = vector.load %arg1[%c0, %c0_0] : memref<512x144xbf16, #tpu.memory_space<vmem>>, vector<512x144xbf16>
    %c0_1 = arith.constant 0 : index
    %c0_2 = arith.constant 0 : index
    %1 = vector.load %arg2[%c0_1, %c0_2] : memref<144x128xbf16, #tpu.memory_space<vmem>>, vector<144x128xbf16>
    %cst = arith.constant dense<0.000000e+00> : vector<512x128xf32>
    %2 = tpu.matmul %0, %1, %cst {dimension_numbers = #tpu.dot_dimension_numbers<[1], [0], [0], [1], [0, 0, 1, 1], [], []>} : vector<512x144xbf16>, vector<144x128xbf16>, vector<512x128xf32> -> vector<512x128xf32>
    %c0_3 = arith.constant 0 : index
    %c0_4 = arith.constant 0 : index
    %3 = vector.load %arg3[%c0_3, %c0_4] : memref<1x128xf32, #tpu.memory_space<vmem>>, vector<1x128xf32>
    %4 = vector.broadcast %3 : vector<1x128xf32> to vector<512x128xf32>
    %5 = arith.addf %2, %4 : vector<512x128xf32>
    %cst_5 = arith.constant 0.000000e+00 : f32
    %6 = vector.broadcast %cst_5 : f32 to vector<512x128xf32>
    %7 = arith.maximumf %5, %6 : vector<512x128xf32>
    %c0_6 = arith.constant 0 : index
    %c0_7 = arith.constant 0 : index
    %8 = vector.load %arg4[%c0_6, %c0_7] : memref<512x128xf32, #tpu.memory_space<vmem>>, vector<512x128xf32>
    tpu.vector_store %arg4[%c0_6, %c0_7], %7 {strides = array<i32>} : memref<512x128xf32, #tpu.memory_space<vmem>>, vector<512x128xf32>,
    return
  }
  func.func @transform_0(%arg0: i32) -> (i32, i32) {
    %c0_i32 = arith.constant 0 : i32
    %c0_i32_0 = arith.constant 0 : i32
    return %arg0, %c0_i32 : i32, i32
  }
  func.func @transform_1(%arg0: i32) -> (i32, i32) {
    %c0_i32 = arith.constant 0 : i32
    %c0_i32_0 = arith.constant 0 : i32
    %c0_i32_1 = arith.constant 0 : i32
    return %c0_i32, %c0_i32_0 : i32, i32
  }
  func.func @transform_2(%arg0: i32) -> (i32, i32) {
    %c0_i32 = arith.constant 0 : i32
    %c0_i32_0 = arith.constant 0 : i32
    %c0_i32_1 = arith.constant 0 : i32
    return %c0_i32, %c0_i32_0 : i32, i32
  }
  func.func @transform_3(%arg0: i32) -> (i32, i32) {
    %c0_i32 = arith.constant 0 : i32
    %c0_i32_0 = arith.constant 0 : i32
    return %arg0, %c0_i32 : i32, i32
  }
}

module attributes {stable_mosaic.version = 11 : i64} {
  func.func @_mm_kernel(%arg0: i32, %arg1: memref<512x72xbf16, #tpu.memory_space<vmem>>, %arg2: memref<72x128xbf16, #tpu.memory_space<vmem>>, %arg3: memref<1x128xf32, #tpu.memory_space<vmem>>, %arg4: memref<512x128xf32, #tpu.memory_space<vmem>>) attributes {dimension_semantics = [#tpu.dimension_semantics<parallel>], iteration_bounds = array<i64: 2>, scalar_prefetch = 0 : i64, scratch_operands = 0 : i64, tpu.core_type = #tpu.core_type<tc>, window_params = [{transform_indices = @transform_0, window_bounds = array<i64: 512, 72>}, {pipeline_mode = #tpu.pipeline_mode<synchronous>, transform_indices = @transform_1, window_bounds = array<i64: 72, 128>}, {pipeline_mode = #tpu.pipeline_mode<synchronous>, transform_indices = @transform_2, window_bounds = array<i64: 1, 128>}, {transform_indices = @transform_3, window_bounds = array<i64: 512, 128>}]} {
    %c0 = arith.constant 0 : index
    %c0_0 = arith.constant 0 : index
    %0 = vector.load %arg1[%c0, %c0_0] : memref<512x72xbf16, #tpu.memory_space<vmem>>, vector<512x72xbf16>
    %c0_1 = arith.constant 0 : index
    %c0_2 = arith.constant 0 : index
    %1 = vector.load %arg2[%c0_1, %c0_2] : memref<72x128xbf16, #tpu.memory_space<vmem>>, vector<72x128xbf16>
    %cst = arith.constant dense<0.000000e+00> : vector<512x128xf32>
    %2 = tpu.matmul %0, %1, %cst {dimension_numbers = #tpu.dot_dimension_numbers<[1], [0], [0], [1], [0, 0, 1, 1], [], []>} : vector<512x72xbf16>, vector<72x128xbf16>, vector<512x128xf32> -> vector<512x128xf32>
    %c0_3 = arith.constant 0 : index
    %c0_4 = arith.constant 0 : index
    %3 = vector.load %arg3[%c0_3, %c0_4] : memref<1x128xf32, #tpu.memory_space<vmem>>, vector<1x128xf32>
    %4 = vector.broadcast %3 : vector<1x128xf32> to vector<512x128xf32>
    %5 = arith.addf %2, %4 : vector<512x128xf32>
    %c0_5 = arith.constant 0 : index
    %c0_6 = arith.constant 0 : index
    %6 = vector.load %arg4[%c0_5, %c0_6] : memref<512x128xf32, #tpu.memory_space<vmem>>, vector<512x128xf32>
    tpu.vector_store %arg4[%c0_5, %c0_6], %5 {strides = array<i32>} : memref<512x128xf32, #tpu.memory_space<vmem>>, vector<512x128xf32>,
    return
  }
  func.func @transform_0(%arg0: i32) -> (i32, i32) {
    %c0_i32 = arith.constant 0 : i32
    %c0_i32_0 = arith.constant 0 : i32
    return %arg0, %c0_i32 : i32, i32
  }
  func.func @transform_1(%arg0: i32) -> (i32, i32) {
    %c0_i32 = arith.constant 0 : i32
    %c0_i32_0 = arith.constant 0 : i32
    %c0_i32_1 = arith.constant 0 : i32
    return %c0_i32, %c0_i32_0 : i32, i32
  }
  func.func @transform_2(%arg0: i32) -> (i32, i32) {
    %c0_i32 = arith.constant 0 : i32
    %c0_i32_0 = arith.constant 0 : i32
    %c0_i32_1 = arith.constant 0 : i32
    return %c0_i32, %c0_i32_0 : i32, i32
  }
  func.func @transform_3(%arg0: i32) -> (i32, i32) {
    %c0_i32 = arith.constant 0 : i32
    %c0_i32_0 = arith.constant 0 : i32
    return %arg0, %c0_i32 : i32, i32
  }
}

module attributes {stable_mosaic.version = 11 : i64} {
  func.func @_mm_kernel(%arg0: i32, %arg1: memref<512x200xbf16, #tpu.memory_space<vmem>>, %arg2: memref<200x128xbf16, #tpu.memory_space<vmem>>, %arg3: memref<1x128xf32, #tpu.memory_space<vmem>>, %arg4: memref<512x128xf32, #tpu.memory_space<vmem>>) attributes {dimension_semantics = [#tpu.dimension_semantics<parallel>], iteration_bounds = array<i64: 2>, scalar_prefetch = 0 : i64, scratch_operands = 0 : i64, tpu.core_type = #tpu.core_type<tc>, window_params = [{transform_indices = @transform_0, window_bounds = array<i64: 512, 200>}, {pipeline_mode = #tpu.pipeline_mode<synchronous>, transform_indices = @transform_1, window_bounds = array<i64: 200, 128>}, {pipeline_mode = #tpu.pipeline_mode<synchronous>, transform_indices = @transform_2, window_bounds = array<i64: 1, 128>}, {transform_indices = @transform_3, window_bounds = array<i64: 512, 128>}]} {
    %c0 = arith.constant 0 : index
    %c0_0 = arith.constant 0 : index
    %0 = vector.load %arg1[%c0, %c0_0] : memref<512x200xbf16, #tpu.memory_space<vmem>>, vector<512x200xbf16>
    %c0_1 = arith.constant 0 : index
    %c0_2 = arith.constant 0 : index
    %1 = vector.load %arg2[%c0_1, %c0_2] : memref<200x128xbf16, #tpu.memory_space<vmem>>, vector<200x128xbf16>
    %cst = arith.constant dense<0.000000e+00> : vector<512x128xf32>
    %2 = tpu.matmul %0, %1, %cst {dimension_numbers = #tpu.dot_dimension_numbers<[1], [0], [0], [1], [0, 0, 1, 1], [], []>} : vector<512x200xbf16>, vector<200x128xbf16>, vector<512x128xf32> -> vector<512x128xf32>
    %c0_3 = arith.constant 0 : index
    %c0_4 = arith.constant 0 : index
    %3 = vector.load %arg3[%c0_3, %c0_4] : memref<1x128xf32, #tpu.memory_space<vmem>>, vector<1x128xf32>
    %4 = vector.broadcast %3 : vector<1x128xf32> to vector<512x128xf32>
    %5 = arith.addf %2, %4 : vector<512x128xf32>
    %c0_5 = arith.constant 0 : index
    %c0_6 = arith.constant 0 : index
    %6 = vector.load %arg4[%c0_5, %c0_6] : memref<512x128xf32, #tpu.memory_space<vmem>>, vector<512x128xf32>
    tpu.vector_store %arg4[%c0_5, %c0_6], %5 {strides = array<i32>} : memref<512x128xf32, #tpu.memory_space<vmem>>, vector<512x128xf32>,
    return
  }
  func.func @transform_0(%arg0: i32) -> (i32, i32) {
    %c0_i32 = arith.constant 0 : i32
    %c0_i32_0 = arith.constant 0 : i32
    return %arg0, %c0_i32 : i32, i32
  }
  func.func @transform_1(%arg0: i32) -> (i32, i32) {
    %c0_i32 = arith.constant 0 : i32
    %c0_i32_0 = arith.constant 0 : i32
    %c0_i32_1 = arith.constant 0 : i32
    return %c0_i32, %c0_i32_0 : i32, i32
  }
  func.func @transform_2(%arg0: i32) -> (i32, i32) {
    %c0_i32 = arith.constant 0 : i32
    %c0_i32_0 = arith.constant 0 : i32
    %c0_i32_1 = arith.constant 0 : i32
    return %c0_i32, %c0_i32_0 : i32, i32
  }
  func.func @transform_3(%arg0: i32) -> (i32, i32) {
    %c0_i32 = arith.constant 0 : i32
    %c0_i32_0 = arith.constant 0 : i32
    return %arg0, %c0_i32 : i32, i32
  }
}

</mosaic_0001>

<bundles_post_ra>
// kernel: custom-call
= control target key start
LH: loop header
LB: loop body
LE: loop exit
PB: predicated region body
PF: predicated region fallthrough
CT: control target
= control target key end

     0   :  { %2 = vsyncpa [#allocation0], 0  ;;  %s47_s0 = inlined_call_operand.hbm [shape: c64[1,4,2,16,16], index: 0, kind: input, shape index: {}]   ;;  %s48_s1 = inlined_call_operand.vmem [shape: f32[1,4,2,16,16], index: 1, kind: output, shape index: {}]  }
   0x1   :  { %s3_s8 = sshll.u32 %s48_s1, 4  ;;  %s4_s8 = int_to_ptr.vmem [resolvable:$true] %s3_s8 }
   0x2   :  { %s17_s9 = scalar_lea.vmem %s4_s8, 2048  ;;  %p22_p1 = scmp.lt.s32.totalorder %s4_s8, %s4_s8 }
   0x3   :  { %p18_p0 = scmp.ne.s32.totalorder %s4_s8, %s17_s9  ;;  %p23_p2 = scmp.lt.s32.totalorder %s17_s9, %s17_s9 }
   0x5   :  { %p24_p3 = por %p23_p2, %p22_p1 }
   0x7   :  { %p25_p4 = pnand %p24_p3, %p18_p0 }
   0x9   :  { %28 = shalt.err (!%p25_p4)  }
   0xa   :  { %6 = dma.hbm_to_vmem [thread:$0]  %s47_s0, 2048, %s4_s8, [#allocation0] }
   0xb   :  { %29 = dma.done.wait [#allocation0], 2048  }
   0xc   :  { %30 = vsyncadd [#allocation0], 4294965248 }
   0xd   :  { %8 = vsyncpa [#allocation0], 1 }

// kernel: custom-call.1
= control target key start
LH: loop header
LB: loop body
LE: loop exit
PB: predicated region body
PF: predicated region fallthrough
CT: control target
= control target key end

     0   :  { %s51_s0 = inlined_call_operand.hbm [shape: c64[1,4,2,16,16], index: 0, kind: input, shape index: {}]   ;;  %s52_s1 = inlined_call_operand.vmem [shape: f32[1,4,2,16,16], index: 1, kind: output, shape index: {}]  }
   0x1   :  { %s2_s8 = scalar_lea.hbm %s51_s0, 2048 }
   0x2   :  { %3 = vsyncpa [#allocation0], 0  ;;  %s4_s11 = sshll.u32 %s52_s1, 4  ;;  %s5_s11 = int_to_ptr.vmem [resolvable:$true] %s4_s11 }
   0x3   :  { %s20_s12 = scalar_lea.vmem %s5_s11, 2048  ;;  %p25_p1 = scmp.lt.s32.totalorder %s5_s11, %s5_s11 }
   0x4   :  { %p21_p0 = scmp.ne.s32.totalorder %s5_s11, %s20_s12  ;;  %p26_p2 = scmp.lt.s32.totalorder %s20_s12, %s20_s12 }
   0x6   :  { %p27_p3 = por %p26_p2, %p25_p1 }
   0x8   :  { %p28_p4 = pnand %p27_p3, %p21_p0 }
   0xa   :  { %31 = shalt.err (!%p28_p4)  }
   0xb   :  { %7 = dma.hbm_to_vmem [thread:$0]  %s2_s8, 2048, %s5_s11, [#allocation0] }
   0xc   :  { %33 = dma.done.wait [#allocation0], 2048  }
   0xd   :  { %34 = vsyncadd [#allocation0], 4294965248 }
   0xe   :  { %9 = vsyncpa [#allocation0], 1 }

// kernel: crunet_d_mon_nws_forward.51
= control target key start
LH: loop header
LB: loop body
LE: loop exit
PB: predicated region body
PF: predicated region fallthrough
CT: control target
= control target key end

     0   :  { %s1184_s12 = smov 0   ;;  %s1412_s0 = inlined_call_operand.vmem [shape: bf16[1024,18], index: 0, kind: input, shape index: {}]   ;;  %s1413_s1 = inlined_call_operand.vmem [shape: bf16[18,128], index: 1, kind: input, shape index: {}]   ;;  %s1414_s2 = inlined_call_operand.vmem [shape: f32[1,128], index: 2, kind: input, shape index: {}]   ;;  %s1415_s3 = inlined_call_operand.vmem [shape: f32[1024,128], index: 3, kind: output, shape index: {}]  }
   0x1 LB: > { %s928_s13 = sadd.s32 4294967295, %s1162_s12   ;;  %p932_p0 = scmp.ge.s32.totalorder %s1162_s12, 1  ;;  %s1162_s12 = sphi %s1184_s12, %s13_s12  }
   0x2   : > { %p138_p1 = scmp.lt.s32.totalorder %s1162_s12, 3 }
   0x4   : > { %p139_p2 = pnand %p932_p0, %p138_p1 }
   0x5   : > { %s933_s18 = sshll.u32 (!%p139_p2), %s928_s13, 6 }
   0x6   : > { %142 = sbr.rel (%p139_p2) target bundleno = 278 (0x116), region = 32  ;;  %p163_p3 = scmp.lt.s32.totalorder (!%p139_p2), %s933_s18, 127 }
   0xb   : > { %v1122_v0 = vld [vmem:[%s1413_s1 + $0x8] ss:$0 sps:$4 sm:$0x11]   ;;  %vm515_vm0 = vcmask 1040384   ;;  %v1123_v1 = vld [vmem:[%s1413_s1] sm:$0xff]   ;;  %s1417_s18 = smov (!%p163_p3, %s933_s18), 127 }
   0xc   : > { %1112 = vmatprep.subr.msk.bf16.mxu0 %vm515_vm0, %v1122_v0  ;;  %1113 = vmatprep.subr.msk.bf16.mxu1 %vm515_vm0, %v1122_v0  ;;  %v517_v2 = vsel %vm515_vm0, %v1122_v0, 0  ;;  %s934_s19 = sshll.u32 %s1417_s18, 2  ;;  %vm418_vm1 = vcmask 146432   ;;  %s936_s23 = sshll.u32 %s1417_s18, 3  ;;  %v1274_v35 = vld [vmem:[%s1414_s2] ss:$0 sm:$0xff] }
   0xd   : > { %1041 = vmatpush3.bf16.msra.mxu0 %v517_v2  ;;  %1110 = vmatpush3.bf16.msra.mxu1 %v517_v2  ;;  %s1204_s22 = scalar_lea.vmem %s1412_s0, %s934_s19  ;;  %s1279_s28 = scalar_lea.vmem %s1415_s3, %s936_s23 }
   0xe   : > { %1042 = vmatprep.subr.bf16.mxu0 %v1123_v1  ;;  %1109 = vmatprep.subr.bf16.mxu1 %v1123_v1  ;;  %v1124_v3 = vld [vmem:[%s1204_s22] sm:$0xff]   ;;  %v1126_v5 = vld [vmem:[%s1204_s22 + $0x8] sm:$0xff]   ;;  %v1128_v7 = vld [vmem:[%s1204_s22 + $0x10] sm:$0xff]  }
   0xf   : > { %v1125_v4 = vld [vmem:[%s1204_s22 + $0x80] sm:$0xff]   ;;  %1044 = vmatprep.mubr.msk.bf16.mxu0 %vm418_vm1, %v1124_v3  ;;  %v1127_v6 = vld [vmem:[%s1204_s22 + $0x88] sm:$0xff]   ;;  %v1129_v8 = vld [vmem:[%s1204_s22 + $0x90] sm:$0xff]  }
  0x10   : > { %1076 = vmatprep.mubr.msk.bf16.mxu1 %vm418_vm1, %v1125_v4  ;;  %v1130_v9 = vld [vmem:[%s1204_s22 + $0x18] sm:$0xff]   ;;  %v1132_v11 = vld [vmem:[%s1204_s22 + $0x20] sm:$0xff]   ;;  %v1134_v13 = vld [vmem:[%s1204_s22 + $0x28] sm:$0xff]  }
  0x11   : > { %1043 = vmatpush3.bf16.msra.mxu0 %v1123_v1  ;;  %1111 = vmatpush3.bf16.msra.mxu1 %v1123_v1  ;;  %v1131_v10 = vld [vmem:[%s1204_s22 + $0x98] sm:$0xff]   ;;  %v1133_v12 = vld [vmem:[%s1204_s22 + $0xa0] sm:$0xff]   ;;  %v1135_v14 = vld [vmem:[%s1204_s22 + $0xa8] sm:$0xff]  }
  0x12   : > { %v1136_v15 = vld [vmem:[%s1204_s22 + $0x30] sm:$0xff]   ;;  %v1138_v17 = vld [vmem:[%s1204_s22 + $0x38] sm:$0xff]   ;;  %v1140_v19 = vld [vmem:[%s1204_s22 + $0x40] sm:$0xff]  }
  0x13   : > { %v1137_v16 = vld [vmem:[%s1204_s22 + $0xb0] sm:$0xff]   ;;  %v1139_v18 = vld [vmem:[%s1204_s22 + $0xb8] sm:$0xff]   ;;  %v1141_v20 = vld [vmem:[%s1204_s22 + $0xc0] sm:$0xff]  }
  0x14   : > { %1045 = vmatmul.mubr.msk.bf16.vlgmr.msra.gmra.mxu0 %vm418_vm1, %v1126_v5  ;;  %1077 = vmatmul.mubr.msk.bf16.vlgmr.msra.gmra.mxu1 %vm418_vm1, %v1127_v6  ;;  %v1142_v21 = vld [vmem:[%s1204_s22 + $0x48] sm:$0xff]   ;;  %v1144_v23 = vld [vmem:[%s1204_s22 + $0x50] sm:$0xff]   ;;  %v1146_v25 = vld [vmem:[%s1204_s22 + $0x58] sm:$0xff]  }
  0x15   : > { %1048 = vmatprep.mubr.msk.bf16.mxu0 %vm418_vm1, %v1128_v7  ;;  %1080 = vmatprep.mubr.msk.bf16.mxu1 %vm418_vm1, %v1129_v8  ;;  %v1143_v22 = vld [vmem:[%s1204_s22 + $0xc8] sm:$0xff]   ;;  %v1145_v24 = vld [vmem:[%s1204_s22 + $0xd0] sm:$0xff]   ;;  %v1147_v26 = vld [vmem:[%s1204_s22 + $0xd8] sm:$0xff]  }
  0x16   : > { %v1148_v27 = vld [vmem:[%s1204_s22 + $0x60] sm:$0xff]   ;;  %v1150_v29 = vld [vmem:[%s1204_s22 + $0x68] sm:$0xff]   ;;  %v1152_v31 = vld [vmem:[%s1204_s22 + $0x70] sm:$0xff]  }
  0x17   : > { %v1149_v28 = vld [vmem:[%s1204_s22 + $0xe0] sm:$0xff]   ;;  %v1151_v30 = vld [vmem:[%s1204_s22 + $0xe8] sm:$0xff]   ;;  %v1153_v32 = vld [vmem:[%s1204_s22 + $0xf0] sm:$0xff]  }
  0x18   : > { %v1154_v33 = vld [vmem:[%s1204_s22 + $0x78] sm:$0xff]  }
  0x19   : > { %v1155_v34 = vld [vmem:[%s1204_s22 + $0xf8] sm:$0xff]  }
  0x1c   : > { %1049 = vmatmul.mubr.msk.bf16.gmra.mxu0 %vm418_vm1, %v1130_v9  ;;  %1081 = vmatmul.mubr.msk.bf16.gmra.mxu1 %vm418_vm1, %v1131_v10 }
  0x1d   : > { %1052 = vmatprep.mubr.msk.bf16.mxu0 %vm418_vm1, %v1132_v11  ;;  %1084 = vmatprep.mubr.msk.bf16.mxu1 %vm418_vm1, %v1133_v12 }
  0x24   : > { %1053 = vmatmul.mubr.msk.bf16.gmra.mxu0 %vm418_vm1, %v1134_v13  ;;  %1085 = vmatmul.mubr.msk.bf16.gmra.mxu1 %vm418_vm1, %v1135_v14 }
  0x25   : > { %1056 = vmatprep.mubr.msk.bf16.mxu0 %vm418_vm1, %v1136_v15  ;;  %1088 = vmatprep.mubr.msk.bf16.mxu1 %vm418_vm1, %v1137_v16 }
  0x2c   : > { %1057 = vmatmul.mubr.msk.bf16.gmra.mxu0 %vm418_vm1, %v1138_v17  ;;  %1089 = vmatmul.mubr.msk.bf16.gmra.mxu1 %vm418_vm1, %v1139_v18 }
  0x2d   : > { %1060 = vmatprep.mubr.msk.bf16.mxu0 %vm418_vm1, %v1140_v19  ;;  %1092 = vmatprep.mubr.msk.bf16.mxu1 %vm418_vm1, %v1141_v20 }
  0x34   : > { %1061 = vmatmul.mubr.msk.bf16.gmra.mxu0 %vm418_vm1, %v1142_v21  ;;  %1093 = vmatmul.mubr.msk.bf16.gmra.mxu1 %vm418_vm1, %v1143_v22 }
  0x35   : > { %1064 = vmatprep.mubr.msk.bf16.mxu0 %vm418_vm1, %v1144_v23  ;;  %1096 = vmatprep.mubr.msk.bf16.mxu1 %vm418_vm1, %v1145_v24 }
  0x3c   : > { %1065 = vmatmul.mubr.msk.bf16.gmra.mxu0 %vm418_vm1, %v1146_v25  ;;  %1097 = vmatmul.mubr.msk.bf16.gmra.mxu1 %vm418_vm1, %v1147_v26 }
  0x3d   : > { %1068 = vmatprep.mubr.msk.bf16.mxu0 %vm418_vm1, %v1148_v27  ;;  %1100 = vmatprep.mubr.msk.bf16.mxu1 %vm418_vm1, %v1149_v28 }
  0x44   : > { %1069 = vmatmul.mubr.msk.bf16.gmra.mxu0 %vm418_vm1, %v1150_v29  ;;  %1101 = vmatmul.mubr.msk.bf16.gmra.mxu1 %vm418_vm1, %v1151_v30 }
  0x45   : > { %1072 = vmatprep.mubr.msk.bf16.mxu0 %vm418_vm1, %v1152_v31  ;;  %1104 = vmatprep.mubr.msk.bf16.mxu1 %vm418_vm1, %v1153_v32 }
  0x4c   : > { %1073 = vmatmul.mubr.msk.bf16.gmra.mxu0 %vm418_vm1, %v1154_v33  ;;  %1105 = vmatmul.mubr.msk.bf16.gmra.mxu1 %vm418_vm1, %v1155_v34 }
  0xd4   : > { %v1046_v36 = vpop.f32.mrf.mxu0  ;;  %v1078_v38 = vpop.f32.mrf.mxu1 }
  0xd5   : > { %v562_v37 = vadd.f32 %v1046_v36, %v1274_v35  ;;  %v690_v39 = vadd.f32 %v1078_v38, %v1274_v35 }
  0xd6   : > { %v553_v40 = vpop.f32.mrf.mxu0  ;;  %v681_v42 = vpop.f32.mrf.mxu1 }
  0xd7   : > { %810 = vst [vmem:[%s1279_s28 + $0x10] sm:$0xff] %v562_v37  ;;  %v554_v41 = vadd.f32 %v1274_v35, %v553_v40  ;;  %842 = vst [vmem:[%s1279_s28 + $0x110] sm:$0xff] %v690_v39  ;;  %v682_v43 = vadd.f32 %v1274_v35, %v681_v42 }
  0xd8   : > { %v1047_v44 = vpop.f32.mrf.mxu0  ;;  %v1079_v46 = vpop.f32.mrf.mxu1 }
  0xd9   : > { %808 = vst [vmem:[%s1279_s28] sm:$0xff] %v554_v41  ;;  %v565_v45 = vadd.f32 %v1047_v44, %v1274_v35  ;;  %840 = vst [vmem:[%s1279_s28 + $0x100] sm:$0xff] %v682_v43  ;;  %v693_v47 = vadd.f32 %v1079_v46, %v1274_v35 }
  0xda   : > { %v556_v48 = vpop.f32.mrf.mxu0  ;;  %v684_v50 = vpop.f32.mrf.mxu1 }
  0xdb   : > { %811 = vst [vmem:[%s1279_s28 + $0x18] sm:$0xff] %v565_v45  ;;  %v557_v49 = vadd.f32 %v1274_v35, %v556_v48  ;;  %843 = vst [vmem:[%s1279_s28 + $0x118] sm:$0xff] %v693_v47  ;;  %v685_v51 = vadd.f32 %v1274_v35, %v684_v50 }
  0xdc   : > { %v1050_v52 = vpop.f32.mrf.mxu0  ;;  %v1082_v54 = vpop.f32.mrf.mxu1 }
  0xdd   : > { %809 = vst [vmem:[%s1279_s28 + $0x8] sm:$0xff] %v557_v49  ;;  %v578_v53 = vadd.f32 %v1050_v52, %v1274_v35  ;;  %841 = vst [vmem:[%s1279_s28 + $0x108] sm:$0xff] %v685_v51  ;;  %v706_v55 = vadd.f32 %v1082_v54, %v1274_v35 }
  0xde   : > { %v569_v56 = vpop.f32.mrf.mxu0  ;;  %v697_v58 = vpop.f32.mrf.mxu1 }
  0xdf   : > { %814 = vst [vmem:[%s1279_s28 + $0x30] sm:$0xff] %v578_v53  ;;  %v570_v57 = vadd.f32 %v1274_v35, %v569_v56  ;;  %846 = vst [vmem:[%s1279_s28 + $0x130] sm:$0xff] %v706_v55  ;;  %v698_v59 = vadd.f32 %v1274_v35, %v697_v58 }
  0xe0   : > { %v1051_v60 = vpop.f32.mrf.mxu0  ;;  %v1083_v62 = vpop.f32.mrf.mxu1 }
  0xe1   : > { %812 = vst [vmem:[%s1279_s28 + $0x20] sm:$0xff] %v570_v57  ;;  %v581_v61 = vadd.f32 %v1051_v60, %v1274_v35  ;;  %844 = vst [vmem:[%s1279_s28 + $0x120] sm:$0xff] %v698_v59  ;;  %v709_v63 = vadd.f32 %v1083_v62, %v1274_v35 }
  0xe2   : > { %v572_v0 = vpop.f32.mrf.mxu0  ;;  %v700_v2 = vpop.f32.mrf.mxu1 }
  0xe3   : > { %815 = vst [vmem:[%s1279_s28 + $0x38] sm:$0xff] %v581_v61  ;;  %v573_v1 = vadd.f32 %v1274_v35, %v572_v0  ;;  %847 = vst [vmem:[%s1279_s28 + $0x138] sm:$0xff] %v709_v63  ;;  %v701_v3 = vadd.f32 %v1274_v35, %v700_v2 }
  0xe4   : > { %v1054_v4 = vpop.f32.mrf.mxu0  ;;  %v1086_v6 = vpop.f32.mrf.mxu1 }
  0xe5   : > { %813 = vst [vmem:[%s1279_s28 + $0x28] sm:$0xff] %v573_v1  ;;  %v594_v5 = vadd.f32 %v1054_v4, %v1274_v35  ;;  %845 = vst [vmem:[%s1279_s28 + $0x128] sm:$0xff] %v701_v3  ;;  %v722_v7 = vadd.f32 %v1086_v6, %v1274_v35 }
  0xe6   : > { %v585_v8 = vpop.f32.mrf.mxu0  ;;  %v713_v10 = vpop.f32.mrf.mxu1 }
  0xe7   : > { %818 = vst [vmem:[%s1279_s28 + $0x50] sm:$0xff] %v594_v5  ;;  %v586_v9 = vadd.f32 %v1274_v35, %v585_v8  ;;  %850 = vst [vmem:[%s1279_s28 + $0x150] sm:$0xff] %v722_v7  ;;  %v714_v11 = vadd.f32 %v1274_v35, %v713_v10 }
  0xe8   : > { %v1055_v12 = vpop.f32.mrf.mxu0  ;;  %v1087_v14 = vpop.f32.mrf.mxu1 }
  0xe9   : > { %816 = vst [vmem:[%s1279_s28 + $0x40] sm:$0xff] %v586_v9  ;;  %v597_v13 = vadd.f32 %v1055_v12, %v1274_v35  ;;  %848 = vst [vmem:[%s1279_s28 + $0x140] sm:$0xff] %v714_v11  ;;  %v725_v15 = vadd.f32 %v1087_v14, %v1274_v35 }
  0xea   : > { %v588_v16 = vpop.f32.mrf.mxu0  ;;  %v716_v18 = vpop.f32.mrf.mxu1 }
  0xeb   : > { %819 = vst [vmem:[%s1279_s28 + $0x58] sm:$0xff] %v597_v13  ;;  %v589_v17 = vadd.f32 %v1274_v35, %v588_v16  ;;  %851 = vst [vmem:[%s1279_s28 + $0x158] sm:$0xff] %v725_v15  ;;  %v717_v19 = vadd.f32 %v1274_v35, %v716_v18 }
  0xec   : > { %v1058_v20 = vpop.f32.mrf.mxu0  ;;  %v1090_v22 = vpop.f32.mrf.mxu1 }
  0xed   : > { %817 = vst [vmem:[%s1279_s28 + $0x48] sm:$0xff] %v589_v17  ;;  %v610_v21 = vadd.f32 %v1058_v20, %v1274_v35  ;;  %849 = vst [vmem:[%s1279_s28 + $0x148] sm:$0xff] %v717_v19  ;;  %v738_v23 = vadd.f32 %v1090_v22, %v1274_v35 }
  0xee   : > { %v601_v24 = vpop.f32.mrf.mxu0  ;;  %v729_v26 = vpop.f32.mrf.mxu1 }
  0xef   : > { %822 = vst [vmem:[%s1279_s28 + $0x70] sm:$0xff] %v610_v21  ;;  %v602_v25 = vadd.f32 %v1274_v35, %v601_v24  ;;  %854 = vst [vmem:[%s1279_s28 + $0x170] sm:$0xff] %v738_v23  ;;  %v730_v27 = vadd.f32 %v1274_v35, %v729_v26 }
  0xf0   : > { %v1059_v28 = vpop.f32.mrf.mxu0  ;;  %v1091_v30 = vpop.f32.mrf.mxu1 }
  0xf1   : > { %820 = vst [vmem:[%s1279_s28 + $0x60] sm:$0xff] %v602_v25  ;;  %v613_v29 = vadd.f32 %v1059_v28, %v1274_v35  ;;  %852 = vst [vmem:[%s1279_s28 + $0x160] sm:$0xff] %v730_v27  ;;  %v741_v31 = vadd.f32 %v1091_v30, %v1274_v35 }
  0xf2   : > { %v604_v32 = vpop.f32.mrf.mxu0  ;;  %v732_v34 = vpop.f32.mrf.mxu1 }
  0xf3   : > { %823 = vst [vmem:[%s1279_s28 + $0x78] sm:$0xff] %v613_v29  ;;  %v605_v33 = vadd.f32 %v1274_v35, %v604_v32  ;;  %855 = vst [vmem:[%s1279_s28 + $0x178] sm:$0xff] %v741_v31  ;;  %v733_v36 = vadd.f32 %v1274_v35, %v732_v34 }
  0xf4   : > { %v1062_v37 = vpop.f32.mrf.mxu0  ;;  %v1094_v39 = vpop.f32.mrf.mxu1 }
  0xf5   : > { %821 = vst [vmem:[%s1279_s28 + $0x68] sm:$0xff] %v605_v33  ;;  %v626_v38 = vadd.f32 %v1062_v37, %v1274_v35  ;;  %853 = vst [vmem:[%s1279_s28 + $0x168] sm:$0xff] %v733_v36  ;;  %v754_v40 = vadd.f32 %v1094_v39, %v1274_v35 }
  0xf6   : > { %v617_v41 = vpop.f32.mrf.mxu0  ;;  %v745_v43 = vpop.f32.mrf.mxu1 }
  0xf7   : > { %826 = vst [vmem:[%s1279_s28 + $0x90] sm:$0xff] %v626_v38  ;;  %v618_v42 = vadd.f32 %v1274_v35, %v617_v41  ;;  %858 = vst [vmem:[%s1279_s28 + $0x190] sm:$0xff] %v754_v40  ;;  %v746_v44 = vadd.f32 %v1274_v35, %v745_v43 }
  0xf8   : > { %v1063_v45 = vpop.f32.mrf.mxu0  ;;  %v1095_v47 = vpop.f32.mrf.mxu1 }
  0xf9   : > { %824 = vst [vmem:[%s1279_s28 + $0x80] sm:$0xff] %v618_v42  ;;  %v629_v46 = vadd.f32 %v1063_v45, %v1274_v35  ;;  %856 = vst [vmem:[%s1279_s28 + $0x180] sm:$0xff] %v746_v44  ;;  %v757_v48 = vadd.f32 %v1095_v47, %v1274_v35 }
  0xfa   : > { %v620_v49 = vpop.f32.mrf.mxu0  ;;  %v748_v51 = vpop.f32.mrf.mxu1 }
  0xfb   : > { %827 = vst [vmem:[%s1279_s28 + $0x98] sm:$0xff] %v629_v46  ;;  %v621_v50 = vadd.f32 %v1274_v35, %v620_v49  ;;  %859 = vst [vmem:[%s1279_s28 + $0x198] sm:$0xff] %v757_v48  ;;  %v749_v52 = vadd.f32 %v1274_v35, %v748_v51 }
  0xfc   : > { %v1066_v53 = vpop.f32.mrf.mxu0  ;;  %v1098_v55 = vpop.f32.mrf.mxu1 }
  0xfd   : > { %825 = vst [vmem:[%s1279_s28 + $0x88] sm:$0xff] %v621_v50  ;;  %v642_v54 = vadd.f32 %v1066_v53, %v1274_v35  ;;  %857 = vst [vmem:[%s1279_s28 + $0x188] sm:$0xff] %v749_v52  ;;  %v770_v56 = vadd.f32 %v1098_v55, %v1274_v35 }
  0xfe   : > { %v633_v57 = vpop.f32.mrf.mxu0  ;;  %v761_v59 = vpop.f32.mrf.mxu1 }
  0xff   : > { %830 = vst [vmem:[%s1279_s28 + $0xb0] sm:$0xff] %v642_v54  ;;  %v634_v58 = vadd.f32 %v1274_v35, %v633_v57  ;;  %862 = vst [vmem:[%s1279_s28 + $0x1b0] sm:$0xff] %v770_v56  ;;  %v762_v60 = vadd.f32 %v1274_v35, %v761_v59 }
 0x100   : > { %v1067_v61 = vpop.f32.mrf.mxu0  ;;  %v1099_v63 = vpop.f32.mrf.mxu1 }
 0x101   : > { %828 = vst [vmem:[%s1279_s28 + $0xa0] sm:$0xff] %v634_v58  ;;  %v645_v62 = vadd.f32 %v1067_v61, %v1274_v35  ;;  %860 = vst [vmem:[%s1279_s28 + $0x1a0] sm:$0xff] %v762_v60  ;;  %v773_v0 = vadd.f32 %v1099_v63, %v1274_v35 }
 0x102   : > { %v636_v1 = vpop.f32.mrf.mxu0  ;;  %v764_v3 = vpop.f32.mrf.mxu1 }
 0x103   : > { %831 = vst [vmem:[%s1279_s28 + $0xb8] sm:$0xff] %v645_v62  ;;  %v637_v2 = vadd.f32 %v1274_v35, %v636_v1  ;;  %863 = vst [vmem:[%s1279_s28 + $0x1b8] sm:$0xff] %v773_v0  ;;  %v765_v4 = vadd.f32 %v1274_v35, %v764_v3 }
 0x104   : > { %v1070_v5 = vpop.f32.mrf.mxu0  ;;  %v1102_v7 = vpop.f32.mrf.mxu1 }
 0x105   : > { %829 = vst [vmem:[%s1279_s28 + $0xa8] sm:$0xff] %v637_v2  ;;  %v658_v6 = vadd.f32 %v1070_v5, %v1274_v35  ;;  %861 = vst [vmem:[%s1279_s28 + $0x1a8] sm:$0xff] %v765_v4  ;;  %v786_v8 = vadd.f32 %v1102_v7, %v1274_v35 }
 0x106   : > { %v649_v9 = vpop.f32.mrf.mxu0  ;;  %v777_v11 = vpop.f32.mrf.mxu1 }
 0x107   : > { %834 = vst [vmem:[%s1279_s28 + $0xd0] sm:$0xff] %v658_v6  ;;  %v650_v10 = vadd.f32 %v1274_v35, %v649_v9  ;;  %866 = vst [vmem:[%s1279_s28 + $0x1d0] sm:$0xff] %v786_v8  ;;  %v778_v12 = vadd.f32 %v1274_v35, %v777_v11 }
 0x108   : > { %v1071_v13 = vpop.f32.mrf.mxu0  ;;  %v1103_v15 = vpop.f32.mrf.mxu1 }
 0x109   : > { %832 = vst [vmem:[%s1279_s28 + $0xc0] sm:$0xff] %v650_v10  ;;  %v661_v14 = vadd.f32 %v1071_v13, %v1274_v35  ;;  %864 = vst [vmem:[%s1279_s28 + $0x1c0] sm:$0xff] %v778_v12  ;;  %v789_v16 = vadd.f32 %v1103_v15, %v1274_v35 }
 0x10a   : > { %v652_v17 = vpop.f32.mrf.mxu0  ;;  %v780_v19 = vpop.f32.mrf.mxu1 }
 0x10b   : > { %835 = vst [vmem:[%s1279_s28 + $0xd8] sm:$0xff] %v661_v14  ;;  %v653_v18 = vadd.f32 %v1274_v35, %v652_v17  ;;  %867 = vst [vmem:[%s1279_s28 + $0x1d8] sm:$0xff] %v789_v16  ;;  %v781_v20 = vadd.f32 %v1274_v35, %v780_v19 }
 0x10c   : > { %v1074_v21 = vpop.f32.mrf.mxu0  ;;  %v1106_v23 = vpop.f32.mrf.mxu1 }
 0x10d   : > { %833 = vst [vmem:[%s1279_s28 + $0xc8] sm:$0xff] %v653_v18  ;;  %v674_v22 = vadd.f32 %v1074_v21, %v1274_v35  ;;  %865 = vst [vmem:[%s1279_s28 + $0x1c8] sm:$0xff] %v781_v20  ;;  %v802_v24 = vadd.f32 %v1106_v23, %v1274_v35 }
 0x10e   : > { %v665_v25 = vpop.f32.mrf.mxu0  ;;  %v793_v27 = vpop.f32.mrf.mxu1 }
 0x10f   : > { %838 = vst [vmem:[%s1279_s28 + $0xf0] sm:$0xff] %v674_v22  ;;  %v666_v26 = vadd.f32 %v1274_v35, %v665_v25  ;;  %870 = vst [vmem:[%s1279_s28 + $0x1f0] sm:$0xff] %v802_v24  ;;  %v794_v28 = vadd.f32 %v1274_v35, %v793_v27 }
 0x110   : > { %v1075_v29 = vpop.f32.mrf.mxu0  ;;  %v1107_v31 = vpop.f32.mrf.mxu1 }
 0x111   : > { %836 = vst [vmem:[%s1279_s28 + $0xe0] sm:$0xff] %v666_v26  ;;  %v677_v30 = vadd.f32 %v1075_v29, %v1274_v35  ;;  %868 = vst [vmem:[%s1279_s28 + $0x1e0] sm:$0xff] %v794_v28  ;;  %v805_v32 = vadd.f32 %v1107_v31, %v1274_v35 }
 0x112   : > { %v668_v33 = vpop.f32.mrf.mxu0  ;;  %v796_v36 = vpop.f32.mrf.mxu1 }
 0x113   : > { %839 = vst [vmem:[%s1279_s28 + $0xf8] sm:$0xff] %v677_v30  ;;  %v669_v34 = vadd.f32 %v1274_v35, %v668_v33  ;;  %871 = vst [vmem:[%s1279_s28 + $0x1f8] sm:$0xff] %v805_v32  ;;  %v797_v37 = vadd.f32 %v1274_v35, %v796_v36 }
 0x115   : > { %837 = vst [vmem:[%s1279_s28 + $0xe8] sm:$0xff] %v669_v34  ;;  %869 = vst [vmem:[%s1279_s28 + $0x1e8] sm:$0xff] %v797_v37 }
 0x116 PF: > { %s13_s12 = sadd.s32 1, %s1162_s12  }
 0x117   : > { %p10_p4 = scmp.ge.s32.totalorder %s13_s12, 4  }
 0x119   :  { %12 = sbr.rel (!%p10_p4) target bundleno = 1 (0x1), region = 62 }

// kernel: crunet_d_mon_nws_forward.52
= control target key start
LH: loop header
LB: loop body
LE: loop exit
PB: predicated region body
PF: predicated region fallthrough
CT: control target
= control target key end

     0   :  { %s1395_s12 = smov 0   ;;  %s1679_s0 = inlined_call_operand.vmem [shape: bf16[1024,144], index: 0, kind: input, shape index: {}]   ;;  %s1680_s1 = inlined_call_operand.vmem [shape: bf16[144,128], index: 1, kind: input, shape index: {}]   ;;  %s1681_s2 = inlined_call_operand.vmem [shape: f32[1,128], index: 2, kind: input, shape index: {}]   ;;  %s1682_s3 = inlined_call_operand.vmem [shape: f32[1024,128], index: 3, kind: output, shape index: {}]  }
   0x1 LB: > { %s1115_s13 = sadd.s32 4294967295, %s1372_s12   ;;  %p1119_p0 = scmp.ge.s32.totalorder %s1372_s12, 1  ;;  %s1372_s12 = sphi %s1395_s12, %s13_s12  }
   0x2   : > { %p139_p1 = scmp.lt.s32.totalorder %s1372_s12, 3 }
   0x4   : > { %p140_p2 = pnand %p1119_p0, %p139_p1 }
   0x5   : > { %s1120_s16 = sshll.u32 (!%p140_p2), %s1115_s13, 6 }
   0x6   : > { %143 = sbr.rel (%p140_p2) target bundleno = 368 (0x170), region = 32  ;;  %p165_p3 = scmp.lt.s32.totalorder (!%p140_p2), %s1120_s16, 127 }
   0xb   : > { %v1261_v0 = vld [vmem:[%s1680_s1 + $0x38] sm:$0xff]   ;;  %v1374_v1 = vmov 0   ;;  %v1262_v2 = vld [vmem:[%s1680_s1 + $0x30] sm:$0xff]   ;;  %s1684_s16 = smov (!%p165_p3, %s1120_s16), 127  ;;  %v1263_v3 = vld [vmem:[%s1680_s1 + $0x28] sm:$0xff]   ;;  %vm609_vm0 = vcmask 130048  }
   0xc   : > { %706 = vmatprep.subr.bf16.mxu0 %v1374_v1  ;;  %1234 = vmatprep.subr.bf16.mxu1 %v1374_v1  ;;  %s1233_s21 = sshll.u32 %s1684_s16, 3  ;;  %v1264_v4 = vld [vmem:[%s1680_s1 + $0x20] sm:$0xff]   ;;  %v1265_v7 = vld [vmem:[%s1680_s1 + $0x18] sm:$0xff]   ;;  %v1266_v8 = vld [vmem:[%s1680_s1 + $0x10] sm:$0xff]  }
   0xd   : > { %707 = vmatpush1.bf16.msra.mxu0 %v1261_v0  ;;  %1243 = vmatpush1.bf16.msra.mxu1 %v1261_v0  ;;  %s1420_s24 = scalar_lea.vmem %s1679_s0, %s1233_s21  ;;  %v1267_v9 = vld [vmem:[%s1680_s1 + $0x8] sm:$0xff]   ;;  %v1268_v10 = vld [vmem:[%s1680_s1] sm:$0xff]   ;;  %s1546_s15 = scalar_lea.vmem %s1682_s3, %s1233_s21 }
   0xe   : > { %708 = vmatprep.subr.bf16.mxu0 %v1374_v1  ;;  %1235 = vmatprep.subr.bf16.mxu1 %v1374_v1  ;;  %v1272_v5 = vld [vmem:[%s1420_s24 + $0x4] ss:$8 sps:$4 sm:$0xff]   ;;  %v1270_v12 = vld [vmem:[%s1420_s24] ss:$8 sps:$4 sm:$0xff]   ;;  %v1276_v14 = vld [vmem:[%s1420_s24 + $0x14] ss:$8 sps:$4 sm:$0xff]  }
   0xf   : > { %v1275_v6 = vld [vmem:[%s1420_s24 + $0x104] ss:$8 sps:$4 sm:$0xff]   ;;  %1199 = vmatprep.mubr.msk.bf16.mxu0 %vm609_vm0, %v1272_v5  ;;  %v1273_v13 = vld [vmem:[%s1420_s24 + $0x100] ss:$8 sps:$4 sm:$0xff]   ;;  %v1278_v15 = vld [vmem:[%s1420_s24 + $0x114] ss:$8 sps:$4 sm:$0xff]  }
  0x10   : > { %1215 = vmatprep.mubr.msk.bf16.mxu1 %vm609_vm0, %v1275_v6  ;;  %v1269_v11 = vld [vmem:[%s1680_s1 + $0x40] sm:$0xff]   ;;  %v1280_v16 = vld [vmem:[%s1420_s24 + $0x10] ss:$8 sps:$4 sm:$0xff]   ;;  %v1288_v22 = vld [vmem:[%s1420_s24 + $0x34] ss:$8 sps:$4 sm:$0xff]  }
  0x11   : > { %709 = vmatpush1.bf16.msra.mxu0 %v1262_v2  ;;  %1244 = vmatpush1.bf16.msra.mxu1 %v1262_v2  ;;  %v1281_v17 = vld [vmem:[%s1420_s24 + $0x110] ss:$8 sps:$4 sm:$0xff]   ;;  %v1282_v18 = vld [vmem:[%s1420_s24 + $0x24] ss:$8 sps:$4 sm:$0xff]   ;;  %v1286_v20 = vld [vmem:[%s1420_s24 + $0x20] ss:$8 sps:$4 sm:$0xff]  }
  0x12   : > { %710 = vmatprep.subr.bf16.mxu0 %v1374_v1  ;;  %1236 = vmatprep.subr.bf16.mxu1 %v1374_v1  ;;  %v1284_v19 = vld [vmem:[%s1420_s24 + $0x124] ss:$8 sps:$4 sm:$0xff]   ;;  %v1287_v21 = vld [vmem:[%s1420_s24 + $0x120] ss:$8 sps:$4 sm:$0xff]   ;;  %v1290_v23 = vld [vmem:[%s1420_s24 + $0x134] ss:$8 sps:$4 sm:$0xff]  }
  0x13   : > { %v1292_v24 = vld [vmem:[%s1420_s24 + $0x30] ss:$8 sps:$4 sm:$0xff]   ;;  %v1294_v26 = vld [vmem:[%s1420_s24 + $0x44] ss:$8 sps:$4 sm:$0xff]   ;;  %v1298_v28 = vld [vmem:[%s1420_s24 + $0x40] ss:$8 sps:$4 sm:$0xff]  }
  0x14   : > { %v1293_v25 = vld [vmem:[%s1420_s24 + $0x130] ss:$8 sps:$4 sm:$0xff]   ;;  %v1296_v27 = vld [vmem:[%s1420_s24 + $0x144] ss:$8 sps:$4 sm:$0xff]   ;;  %v1299_v29 = vld [vmem:[%s1420_s24 + $0x140] ss:$8 sps:$4 sm:$0xff]  }
  0x15   : > { %711 = vmatpush1.bf16.msra.mxu0 %v1263_v3  ;;  %1245 = vmatpush1.bf16.msra.mxu1 %v1263_v3  ;;  %v1300_v30 = vld [vmem:[%s1420_s24 + $0x54] ss:$8 sps:$4 sm:$0xff]   ;;  %v1304_v32 = vld [vmem:[%s1420_s24 + $0x50] ss:$8 sps:$4 sm:$0xff]   ;;  %v1306_v34 = vld [vmem:[%s1420_s24 + $0x64] ss:$8 sps:$4 sm:$0xff]  }
  0x16   : > { %712 = vmatprep.subr.bf16.mxu0 %v1374_v1  ;;  %1237 = vmatprep.subr.bf16.mxu1 %v1374_v1  ;;  %v1302_v31 = vld [vmem:[%s1420_s24 + $0x154] ss:$8 sps:$4 sm:$0xff]   ;;  %v1305_v33 = vld [vmem:[%s1420_s24 + $0x150] ss:$8 sps:$4 sm:$0xff]   ;;  %v1308_v35 = vld [vmem:[%s1420_s24 + $0x164] ss:$8 sps:$4 sm:$0xff]  }
  0x17   : > { %v1310_v36 = vld [vmem:[%s1420_s24 + $0x60] ss:$8 sps:$4 sm:$0xff]   ;;  %v1312_v38 = vld [vmem:[%s1420_s24 + $0x74] ss:$8 sps:$4 sm:$0xff]   ;;  %v1316_v40 = vld [vmem:[%s1420_s24 + $0x70] ss:$8 sps:$4 sm:$0xff]  }
  0x18   : > { %v1311_v37 = vld [vmem:[%s1420_s24 + $0x160] ss:$8 sps:$4 sm:$0xff]   ;;  %v1314_v39 = vld [vmem:[%s1420_s24 + $0x174] ss:$8 sps:$4 sm:$0xff]   ;;  %v1317_v41 = vld [vmem:[%s1420_s24 + $0x170] ss:$8 sps:$4 sm:$0xff]  }
  0x19   : > { %713 = vmatpush1.bf16.msra.mxu0 %v1264_v4  ;;  %1246 = vmatpush1.bf16.msra.mxu1 %v1264_v4  ;;  %v1318_v42 = vld [vmem:[%s1420_s24 + $0x84] ss:$8 sps:$4 sm:$0xff]   ;;  %v1322_v44 = vld [vmem:[%s1420_s24 + $0x80] ss:$8 sps:$4 sm:$0xff]   ;;  %v1324_v46 = vld [vmem:[%s1420_s24 + $0x94] ss:$8 sps:$4 sm:$0xff]  }
  0x1a   : > { %714 = vmatprep.subr.bf16.mxu0 %v1374_v1  ;;  %1238 = vmatprep.subr.bf16.mxu1 %v1374_v1  ;;  %v1320_v43 = vld [vmem:[%s1420_s24 + $0x184] ss:$8 sps:$4 sm:$0xff]   ;;  %v1323_v45 = vld [vmem:[%s1420_s24 + $0x180] ss:$8 sps:$4 sm:$0xff]   ;;  %v1326_v47 = vld [vmem:[%s1420_s24 + $0x194] ss:$8 sps:$4 sm:$0xff]  }
  0x1b   : > { %v1328_v48 = vld [vmem:[%s1420_s24 + $0x90] ss:$8 sps:$4 sm:$0xff]   ;;  %v1330_v50 = vld [vmem:[%s1420_s24 + $0xa4] ss:$8 sps:$4 sm:$0xff]   ;;  %v1334_v52 = vld [vmem:[%s1420_s24 + $0xa0] ss:$8 sps:$4 sm:$0xff]  }
  0x1c   : > { %v1329_v49 = vld [vmem:[%s1420_s24 + $0x190] ss:$8 sps:$4 sm:$0xff]   ;;  %v1332_v51 = vld [vmem:[%s1420_s24 + $0x1a4] ss:$8 sps:$4 sm:$0xff]   ;;  %v1335_v53 = vld [vmem:[%s1420_s24 + $0x1a0] ss:$8 sps:$4 sm:$0xff]  }
  0x1d   : > { %715 = vmatpush1.bf16.msra.mxu0 %v1265_v7  ;;  %1247 = vmatpush1.bf16.msra.mxu1 %v1265_v7  ;;  %v1336_v54 = vld [vmem:[%s1420_s24 + $0xb4] ss:$8 sps:$4 sm:$0xff]   ;;  %v1340_v56 = vld [vmem:[%s1420_s24 + $0xb0] ss:$8 sps:$4 sm:$0xff]   ;;  %v1342_v58 = vld [vmem:[%s1420_s24 + $0xc4] ss:$8 sps:$4 sm:$0xff]  }
  0x1e   : > { %716 = vmatprep.subr.bf16.mxu0 %v1374_v1  ;;  %1239 = vmatprep.subr.bf16.mxu1 %v1374_v1  ;;  %v1338_v55 = vld [vmem:[%s1420_s24 + $0x1b4] ss:$8 sps:$4 sm:$0xff]   ;;  %v1341_v57 = vld [vmem:[%s1420_s24 + $0x1b0] ss:$8 sps:$4 sm:$0xff]   ;;  %v1344_v59 = vld [vmem:[%s1420_s24 + $0x1c4] ss:$8 sps:$4 sm:$0xff]  }
  0x1f   : > { %v1346_v60 = vld [vmem:[%s1420_s24 + $0xc0] ss:$8 sps:$4 sm:$0xff]   ;;  %v1348_v62 = vld [vmem:[%s1420_s24 + $0xd4] ss:$8 sps:$4 sm:$0xff]   ;;  %v1352_v0 = vld [vmem:[%s1420_s24 + $0xd0] ss:$8 sps:$4 sm:$0xff]  }
  0x20   : > { %v1347_v61 = vld [vmem:[%s1420_s24 + $0x1c0] ss:$8 sps:$4 sm:$0xff]   ;;  %v1350_v63 = vld [vmem:[%s1420_s24 + $0x1d4] ss:$8 sps:$4 sm:$0xff]   ;;  %v1354_v2 = vld [vmem:[%s1420_s24 + $0xe4] ss:$8 sps:$4 sm:$0xff]  }
  0x21   : > { %717 = vmatpush1.bf16.msra.mxu0 %v1266_v8  ;;  %1248 = vmatpush1.bf16.msra.mxu1 %v1266_v8  ;;  %v1356_v3 = vld [vmem:[%s1420_s24 + $0x1e4] ss:$8 sps:$4 sm:$0xff]   ;;  %v1358_v4 = vld [vmem:[%s1420_s24 + $0xe0] ss:$8 sps:$4 sm:$0xff]   ;;  %v1360_v6 = vld [vmem:[%s1420_s24 + $0xf4] ss:$8 sps:$4 sm:$0xff]  }
  0x22   : > { %718 = vmatprep.subr.bf16.mxu0 %v1374_v1  ;;  %1240 = vmatprep.subr.bf16.mxu1 %v1374_v1  ;;  %v1359_v5 = vld [vmem:[%s1420_s24 + $0x1e0] ss:$8 sps:$4 sm:$0xff]   ;;  %v1362_v7 = vld [vmem:[%s1420_s24 + $0x1f4] ss:$8 sps:$4 sm:$0xff]   ;;  %v1364_v8 = vld [vmem:[%s1420_s24 + $0xf0] ss:$8 sps:$4 sm:$0xff]  }
  0x25   : > { %719 = vmatpush1.bf16.msra.mxu0 %v1267_v9  ;;  %1249 = vmatpush1.bf16.msra.mxu1 %v1267_v9  ;;  %v1365_v9 = vld [vmem:[%s1420_s24 + $0x1f0] ss:$8 sps:$4 sm:$0xff]  }
  0x26   : > { %720 = vmatprep.subr.bf16.mxu0 %v1374_v1  ;;  %1241 = vmatprep.subr.bf16.mxu1 %v1374_v1 }
  0x29   : > { %721 = vmatpush1.bf16.msra.mxu0 %v1268_v10  ;;  %1250 = vmatpush1.bf16.msra.mxu1 %v1268_v10  ;;  %v1539_v10 = vld [vmem:[%s1681_s2] ss:$0 sm:$0xff] }
  0x2a   : > { %736 = vmatprep.subr.bf16.mxu0 %v1374_v1  ;;  %1242 = vmatprep.subr.bf16.mxu1 %v1374_v1  ;;  %v1353_v1 = vld [vmem:[%s1420_s24 + $0x1d0] ss:$8 sps:$4 sm:$0xff]  }
  0x2d   : > { %737 = vmatpush2.bf16.msra.mxu0 %v1269_v11  ;;  %1251 = vmatpush2.bf16.msra.mxu1 %v1269_v11 }
  0x30   : > { %739 = vmatmul.mubr.bf16.vlgmr.msra.gmra.mxu0 %v1270_v12  ;;  %867 = vmatmul.mubr.bf16.vlgmr.msra.gmra.mxu1 %v1273_v13 }
  0x31   : > { %1200 = vmatprep.mubr.msk.bf16.mxu0 %vm609_vm0, %v1276_v14  ;;  %1216 = vmatprep.mubr.msk.bf16.mxu1 %vm609_vm0, %v1278_v15 }
  0x38   : > { %747 = vmatmul.mubr.bf16.gmra.mxu0 %v1280_v16  ;;  %875 = vmatmul.mubr.bf16.gmra.mxu1 %v1281_v17 }
  0x39   : > { %1201 = vmatprep.mubr.msk.bf16.mxu0 %vm609_vm0, %v1282_v18  ;;  %1217 = vmatprep.mubr.msk.bf16.mxu1 %vm609_vm0, %v1284_v19 }
  0x40   : > { %755 = vmatmul.mubr.bf16.gmra.mxu0 %v1286_v20  ;;  %883 = vmatmul.mubr.bf16.gmra.mxu1 %v1287_v21 }
  0x41   : > { %1202 = vmatprep.mubr.msk.bf16.mxu0 %vm609_vm0, %v1288_v22  ;;  %1218 = vmatprep.mubr.msk.bf16.mxu1 %vm609_vm0, %v1290_v23 }
  0x48   : > { %763 = vmatmul.mubr.bf16.gmra.mxu0 %v1292_v24  ;;  %891 = vmatmul.mubr.bf16.gmra.mxu1 %v1293_v25 }
  0x49   : > { %1203 = vmatprep.mubr.msk.bf16.mxu0 %vm609_vm0, %v1294_v26  ;;  %1219 = vmatprep.mubr.msk.bf16.mxu1 %vm609_vm0, %v1296_v27 }
  0x50   : > { %771 = vmatmul.mubr.bf16.gmra.mxu0 %v1298_v28  ;;  %899 = vmatmul.mubr.bf16.gmra.mxu1 %v1299_v29 }
  0x51   : > { %1204 = vmatprep.mubr.msk.bf16.mxu0 %vm609_vm0, %v1300_v30  ;;  %1220 = vmatprep.mubr.msk.bf16.mxu1 %vm609_vm0, %v1302_v31 }
  0x58   : > { %779 = vmatmul.mubr.bf16.gmra.mxu0 %v1304_v32  ;;  %907 = vmatmul.mubr.bf16.gmra.mxu1 %v1305_v33 }
  0x59   : > { %1205 = vmatprep.mubr.msk.bf16.mxu0 %vm609_vm0, %v1306_v34  ;;  %1221 = vmatprep.mubr.msk.bf16.mxu1 %vm609_vm0, %v1308_v35 }
  0x60   : > { %787 = vmatmul.mubr.bf16.gmra.mxu0 %v1310_v36  ;;  %915 = vmatmul.mubr.bf16.gmra.mxu1 %v1311_v37 }
  0x61   : > { %1206 = vmatprep.mubr.msk.bf16.mxu0 %vm609_vm0, %v1312_v38  ;;  %1222 = vmatprep.mubr.msk.bf16.mxu1 %vm609_vm0, %v1314_v39 }
  0x68   : > { %795 = vmatmul.mubr.bf16.gmra.mxu0 %v1316_v40  ;;  %923 = vmatmul.mubr.bf16.gmra.mxu1 %v1317_v41 }
  0x69   : > { %1207 = vmatprep.mubr.msk.bf16.mxu0 %vm609_vm0, %v1318_v42  ;;  %1223 = vmatprep.mubr.msk.bf16.mxu1 %vm609_vm0, %v1320_v43 }
  0x70   : > { %803 = vmatmul.mubr.bf16.gmra.mxu0 %v1322_v44  ;;  %931 = vmatmul.mubr.bf16.gmra.mxu1 %v1323_v45 }
  0x71   : > { %1208 = vmatprep.mubr.msk.bf16.mxu0 %vm609_vm0, %v1324_v46  ;;  %1224 = vmatprep.mubr.msk.bf16.mxu1 %vm609_vm0, %v1326_v47 }
  0x78   : > { %811 = vmatmul.mubr.bf16.gmra.mxu0 %v1328_v48  ;;  %939 = vmatmul.mubr.bf16.gmra.mxu1 %v1329_v49 }
  0x79   : > { %1209 = vmatprep.mubr.msk.bf16.mxu0 %vm609_vm0, %v1330_v50  ;;  %1225 = vmatprep.mubr.msk.bf16.mxu1 %vm609_vm0, %v1332_v51 }
  0x80   : > { %819 = vmatmul.mubr.bf16.gmra.mxu0 %v1334_v52  ;;  %947 = vmatmul.mubr.bf16.gmra.mxu1 %v1335_v53 }
  0x81   : > { %1210 = vmatprep.mubr.msk.bf16.mxu0 %vm609_vm0, %v1336_v54  ;;  %1226 = vmatprep.mubr.msk.bf16.mxu1 %vm609_vm0, %v1338_v55 }
  0x88   : > { %827 = vmatmul.mubr.bf16.gmra.mxu0 %v1340_v56  ;;  %955 = vmatmul.mubr.bf16.gmra.mxu1 %v1341_v57 }
  0x89   : > { %1211 = vmatprep.mubr.msk.bf16.mxu0 %vm609_vm0, %v1342_v58  ;;  %1227 = vmatprep.mubr.msk.bf16.mxu1 %vm609_vm0, %v1344_v59 }
  0x90   : > { %835 = vmatmul.mubr.bf16.gmra.mxu0 %v1346_v60  ;;  %963 = vmatmul.mubr.bf16.gmra.mxu1 %v1347_v61 }
  0x91   : > { %1212 = vmatprep.mubr.msk.bf16.mxu0 %vm609_vm0, %v1348_v62  ;;  %1228 = vmatprep.mubr.msk.bf16.mxu1 %vm609_vm0, %v1350_v63 }
  0x98   : > { %843 = vmatmul.mubr.bf16.gmra.mxu0 %v1352_v0  ;;  %971 = vmatmul.mubr.bf16.gmra.mxu1 %v1353_v1 }
  0x99   : > { %1213 = vmatprep.mubr.msk.bf16.mxu0 %vm609_vm0, %v1354_v2  ;;  %1229 = vmatprep.mubr.msk.bf16.mxu1 %vm609_vm0, %v1356_v3 }
  0xa0   : > { %851 = vmatmul.mubr.bf16.gmra.mxu0 %v1358_v4  ;;  %979 = vmatmul.mubr.bf16.gmra.mxu1 %v1359_v5 }
  0xa1   : > { %1214 = vmatprep.mubr.msk.bf16.mxu0 %vm609_vm0, %v1360_v6  ;;  %1230 = vmatprep.mubr.msk.bf16.mxu1 %vm609_vm0, %v1362_v7 }
  0xa8   : > { %859 = vmatmul.mubr.bf16.gmra.mxu0 %v1364_v8  ;;  %987 = vmatmul.mubr.bf16.gmra.mxu1 %v1365_v9 }
  0xf0   : > { %v740_v11 = vpop.f32.mrf.mxu0  ;;  %v868_v12 = vpop.f32.mrf.mxu1 }
  0xf1   : > { %v741_v13 = vadd.f32 %v1539_v10, %v740_v11  ;;  %v869_v14 = vadd.f32 %v1539_v10, %v868_v12 }
  0xf2   : > { %v742_v15 = vpop.f32.mrf.mxu0  ;;  %v870_v16 = vpop.f32.mrf.mxu1 }
  0xf3   : > { %995 = vst [vmem:[%s1546_s15] sm:$0xff] %v741_v13  ;;  %1027 = vst [vmem:[%s1546_s15 + $0x100] sm:$0xff] %v869_v14 }
  0xf4   : > { %v743_v17 = vpop.f32.mrf.mxu0  ;;  %v871_v18 = vpop.f32.mrf.mxu1 }
  0xf5   : > { %v744_v19 = vadd.f32 %v1539_v10, %v743_v17  ;;  %v872_v20 = vadd.f32 %v1539_v10, %v871_v18 }
  0xf6   : > { %v745_v21 = vpop.f32.mrf.mxu0  ;;  %v873_v22 = vpop.f32.mrf.mxu1 }
  0xf7   : > { %996 = vst [vmem:[%s1546_s15 + $0x8] sm:$0xff] %v744_v19  ;;  %1028 = vst [vmem:[%s1546_s15 + $0x108] sm:$0xff] %v872_v20 }
  0xf8   : > { %v748_v23 = vpop.f32.mrf.mxu0  ;;  %v876_v24 = vpop.f32.mrf.mxu1 }
  0xf9   : > { %v749_v25 = vadd.f32 %v1539_v10, %v748_v23  ;;  %v877_v26 = vadd.f32 %v1539_v10, %v876_v24 }
  0xfa   : > { %v750_v27 = vpop.f32.mrf.mxu0  ;;  %v878_v28 = vpop.f32.mrf.mxu1 }
  0xfb   : > { %997 = vst [vmem:[%s1546_s15 + $0x10] sm:$0xff] %v749_v25  ;;  %1029 = vst [vmem:[%s1546_s15 + $0x110] sm:$0xff] %v877_v26 }
  0xfc   : > { %v751_v29 = vpop.f32.mrf.mxu0  ;;  %v879_v30 = vpop.f32.mrf.mxu1 }
  0xfd   : > { %v752_v31 = vadd.f32 %v1539_v10, %v751_v29  ;;  %v880_v32 = vadd.f32 %v1539_v10, %v879_v30 }
  0xfe   : > { %v753_v33 = vpop.f32.mrf.mxu0  ;;  %v881_v34 = vpop.f32.mrf.mxu1 }
  0xff   : > { %998 = vst [vmem:[%s1546_s15 + $0x18] sm:$0xff] %v752_v31  ;;  %1030 = vst [vmem:[%s1546_s15 + $0x118] sm:$0xff] %v880_v32 }
 0x100   : > { %v756_v35 = vpop.f32.mrf.mxu0  ;;  %v884_v36 = vpop.f32.mrf.mxu1 }
 0x101   : > { %v757_v37 = vadd.f32 %v1539_v10, %v756_v35  ;;  %v885_v38 = vadd.f32 %v1539_v10, %v884_v36 }
 0x102   : > { %v758_v39 = vpop.f32.mrf.mxu0  ;;  %v886_v40 = vpop.f32.mrf.mxu1 }
 0x103   : > { %999 = vst [vmem:[%s1546_s15 + $0x20] sm:$0xff] %v757_v37  ;;  %1031 = vst [vmem:[%s1546_s15 + $0x120] sm:$0xff] %v885_v38 }
 0x104   : > { %v759_v41 = vpop.f32.mrf.mxu0  ;;  %v887_v42 = vpop.f32.mrf.mxu1 }
 0x105   : > { %v760_v43 = vadd.f32 %v1539_v10, %v759_v41  ;;  %v888_v44 = vadd.f32 %v1539_v10, %v887_v42 }
 0x106   : > { %v761_v45 = vpop.f32.mrf.mxu0  ;;  %v889_v46 = vpop.f32.mrf.mxu1 }
 0x107   : > { %1000 = vst [vmem:[%s1546_s15 + $0x28] sm:$0xff] %v760_v43  ;;  %1032 = vst [vmem:[%s1546_s15 + $0x128] sm:$0xff] %v888_v44 }
 0x108   : > { %v764_v47 = vpop.f32.mrf.mxu0  ;;  %v892_v48 = vpop.f32.mrf.mxu1 }
 0x109   : > { %v765_v49 = vadd.f32 %v1539_v10, %v764_v47  ;;  %v893_v50 = vadd.f32 %v1539_v10, %v892_v48 }
 0x10a   : > { %v766_v51 = vpop.f32.mrf.mxu0  ;;  %v894_v52 = vpop.f32.mrf.mxu1 }
 0x10b   : > { %1001 = vst [vmem:[%s1546_s15 + $0x30] sm:$0xff] %v765_v49  ;;  %1033 = vst [vmem:[%s1546_s15 + $0x130] sm:$0xff] %v893_v50 }
 0x10c   : > { %v767_v53 = vpop.f32.mrf.mxu0  ;;  %v895_v54 = vpop.f32.mrf.mxu1 }
 0x10d   : > { %v768_v55 = vadd.f32 %v1539_v10, %v767_v53  ;;  %v896_v56 = vadd.f32 %v1539_v10, %v895_v54 }
 0x10e   : > { %v769_v57 = vpop.f32.mrf.mxu0  ;;  %v897_v58 = vpop.f32.mrf.mxu1 }
 0x10f   : > { %1002 = vst [vmem:[%s1546_s15 + $0x38] sm:$0xff] %v768_v55  ;;  %1034 = vst [vmem:[%s1546_s15 + $0x138] sm:$0xff] %v896_v56 }
 0x110   : > { %v772_v59 = vpop.f32.mrf.mxu0  ;;  %v900_v60 = vpop.f32.mrf.mxu1 }
 0x111   : > { %v773_v61 = vadd.f32 %v1539_v10, %v772_v59  ;;  %v901_v62 = vadd.f32 %v1539_v10, %v900_v60 }
 0x112   : > { %v774_v63 = vpop.f32.mrf.mxu0  ;;  %v902_v0 = vpop.f32.mrf.mxu1 }
 0x113   : > { %1003 = vst [vmem:[%s1546_s15 + $0x40] sm:$0xff] %v773_v61  ;;  %1035 = vst [vmem:[%s1546_s15 + $0x140] sm:$0xff] %v901_v62 }
 0x114   : > { %v775_v1 = vpop.f32.mrf.mxu0  ;;  %v903_v2 = vpop.f32.mrf.mxu1 }
 0x115   : > { %v776_v3 = vadd.f32 %v1539_v10, %v775_v1  ;;  %v904_v4 = vadd.f32 %v1539_v10, %v903_v2 }
 0x116   : > { %v777_v5 = vpop.f32.mrf.mxu0  ;;  %v905_v6 = vpop.f32.mrf.mxu1 }
 0x117   : > { %1004 = vst [vmem:[%s1546_s15 + $0x48] sm:$0xff] %v776_v3  ;;  %1036 = vst [vmem:[%s1546_s15 + $0x148] sm:$0xff] %v904_v4 }
 0x118   : > { %v780_v7 = vpop.f32.mrf.mxu0  ;;  %v908_v8 = vpop.f32.mrf.mxu1 }
 0x119   : > { %v781_v9 = vadd.f32 %v1539_v10, %v780_v7  ;;  %v909_v11 = vadd.f32 %v1539_v10, %v908_v8 }
 0x11a   : > { %v782_v12 = vpop.f32.mrf.mxu0  ;;  %v910_v13 = vpop.f32.mrf.mxu1 }
 0x11b   : > { %1005 = vst [vmem:[%s1546_s15 + $0x50] sm:$0xff] %v781_v9  ;;  %1037 = vst [vmem:[%s1546_s15 + $0x150] sm:$0xff] %v909_v11 }
 0x11c   : > { %v783_v14 = vpop.f32.mrf.mxu0  ;;  %v911_v15 = vpop.f32.mrf.mxu1 }
 0x11d   : > { %v784_v16 = vadd.f32 %v1539_v10, %v783_v14  ;;  %v912_v17 = vadd.f32 %v1539_v10, %v911_v15 }
 0x11e   : > { %v785_v18 = vpop.f32.mrf.mxu0  ;;  %v913_v19 = vpop.f32.mrf.mxu1 }
 0x11f   : > { %1006 = vst [vmem:[%s1546_s15 + $0x58] sm:$0xff] %v784_v16  ;;  %1038 = vst [vmem:[%s1546_s15 + $0x158] sm:$0xff] %v912_v17 }
 0x120   : > { %v788_v20 = vpop.f32.mrf.mxu0  ;;  %v916_v21 = vpop.f32.mrf.mxu1 }
 0x121   : > { %v789_v22 = vadd.f32 %v1539_v10, %v788_v20  ;;  %v917_v23 = vadd.f32 %v1539_v10, %v916_v21 }
 0x122   : > { %v790_v24 = vpop.f32.mrf.mxu0  ;;  %v918_v25 = vpop.f32.mrf.mxu1 }
 0x123   : > { %1007 = vst [vmem:[%s1546_s15 + $0x60] sm:$0xff] %v789_v22  ;;  %1039 = vst [vmem:[%s1546_s15 + $0x160] sm:$0xff] %v917_v23 }
 0x124   : > { %v791_v26 = vpop.f32.mrf.mxu0  ;;  %v919_v27 = vpop.f32.mrf.mxu1 }
 0x125   : > { %v792_v28 = vadd.f32 %v1539_v10, %v791_v26  ;;  %v920_v29 = vadd.f32 %v1539_v10, %v919_v27 }
 0x126   : > { %v793_v30 = vpop.f32.mrf.mxu0  ;;  %v921_v31 = vpop.f32.mrf.mxu1 }
 0x127   : > { %1008 = vst [vmem:[%s1546_s15 + $0x68] sm:$0xff] %v792_v28  ;;  %1040 = vst [vmem:[%s1546_s15 + $0x168] sm:$0xff] %v920_v29 }
 0x128   : > { %v796_v32 = vpop.f32.mrf.mxu0  ;;  %v924_v33 = vpop.f32.mrf.mxu1 }
 0x129   : > { %v797_v34 = vadd.f32 %v1539_v10, %v796_v32  ;;  %v925_v35 = vadd.f32 %v1539_v10, %v924_v33 }
 0x12a   : > { %v798_v36 = vpop.f32.mrf.mxu0  ;;  %v926_v37 = vpop.f32.mrf.mxu1 }
 0x12b   : > { %1009 = vst [vmem:[%s1546_s15 + $0x70] sm:$0xff] %v797_v34  ;;  %1041 = vst [vmem:[%s1546_s15 + $0x170] sm:$0xff] %v925_v35 }
 0x12c   : > { %v799_v38 = vpop.f32.mrf.mxu0  ;;  %v927_v39 = vpop.f32.mrf.mxu1 }
 0x12d   : > { %v800_v40 = vadd.f32 %v1539_v10, %v799_v38  ;;  %v928_v41 = vadd.f32 %v1539_v10, %v927_v39 }
 0x12e   : > { %v801_v42 = vpop.f32.mrf.mxu0  ;;  %v929_v43 = vpop.f32.mrf.mxu1 }
 0x12f   : > { %1010 = vst [vmem:[%s1546_s15 + $0x78] sm:$0xff] %v800_v40  ;;  %1042 = vst [vmem:[%s1546_s15 + $0x178] sm:$0xff] %v928_v41 }
 0x130   : > { %v804_v44 = vpop.f32.mrf.mxu0  ;;  %v932_v45 = vpop.f32.mrf.mxu1 }
 0x131   : > { %v805_v46 = vadd.f32 %v1539_v10, %v804_v44  ;;  %v933_v47 = vadd.f32 %v1539_v10, %v932_v45 }
 0x132   : > { %v806_v48 = vpop.f32.mrf.mxu0  ;;  %v934_v49 = vpop.f32.mrf.mxu1 }
 0x133   : > { %1011 = vst [vmem:[%s1546_s15 + $0x80] sm:$0xff] %v805_v46  ;;  %1043 = vst [vmem:[%s1546_s15 + $0x180] sm:$0xff] %v933_v47 }
 0x134   : > { %v807_v50 = vpop.f32.mrf.mxu0  ;;  %v935_v51 = vpop.f32.mrf.mxu1 }
 0x135   : > { %v808_v52 = vadd.f32 %v1539_v10, %v807_v50  ;;  %v936_v53 = vadd.f32 %v1539_v10, %v935_v51 }
 0x136   : > { %v809_v54 = vpop.f32.mrf.mxu0  ;;  %v937_v55 = vpop.f32.mrf.mxu1 }
 0x137   : > { %1012 = vst [vmem:[%s1546_s15 + $0x88] sm:$0xff] %v808_v52  ;;  %1044 = vst [vmem:[%s1546_s15 + $0x188] sm:$0xff] %v936_v53 }
 0x138   : > { %v812_v56 = vpop.f32.mrf.mxu0  ;;  %v940_v57 = vpop.f32.mrf.mxu1 }
 0x139   : > { %v813_v58 = vadd.f32 %v1539_v10, %v812_v56  ;;  %v941_v59 = vadd.f32 %v1539_v10, %v940_v57 }
 0x13a   : > { %v814_v60 = vpop.f32.mrf.mxu0  ;;  %v942_v61 = vpop.f32.mrf.mxu1 }
 0x13b   : > { %1013 = vst [vmem:[%s1546_s15 + $0x90] sm:$0xff] %v813_v58  ;;  %1045 = vst [vmem:[%s1546_s15 + $0x190] sm:$0xff] %v941_v59 }
 0x13c   : > { %v815_v62 = vpop.f32.mrf.mxu0  ;;  %v943_v63 = vpop.f32.mrf.mxu1 }
 0x13d   : > { %v816_v0 = vadd.f32 %v1539_v10, %v815_v62  ;;  %v944_v1 = vadd.f32 %v1539_v10, %v943_v63 }
 0x13e   : > { %v817_v2 = vpop.f32.mrf.mxu0  ;;  %v945_v3 = vpop.f32.mrf.mxu1 }
 0x13f   : > { %1014 = vst [vmem:[%s1546_s15 + $0x98] sm:$0xff] %v816_v0  ;;  %1046 = vst [vmem:[%s1546_s15 + $0x198] sm:$0xff] %v944_v1 }
 0x140   : > { %v820_v4 = vpop.f32.mrf.mxu0  ;;  %v948_v5 = vpop.f32.mrf.mxu1 }
 0x141   : > { %v821_v6 = vadd.f32 %v1539_v10, %v820_v4  ;;  %v949_v7 = vadd.f32 %v1539_v10, %v948_v5 }
 0x142   : > { %v822_v8 = vpop.f32.mrf.mxu0  ;;  %v950_v9 = vpop.f32.mrf.mxu1 }
 0x143   : > { %1015 = vst [vmem:[%s1546_s15 + $0xa0] sm:$0xff] %v821_v6  ;;  %1047 = vst [vmem:[%s1546_s15 + $0x1a0] sm:$0xff] %v949_v7 }
 0x144   : > { %v823_v11 = vpop.f32.mrf.mxu0  ;;  %v951_v12 = vpop.f32.mrf.mxu1 }
 0x145   : > { %v824_v13 = vadd.f32 %v1539_v10, %v823_v11  ;;  %v952_v14 = vadd.f32 %v1539_v10, %v951_v12 }
 0x146   : > { %v825_v15 = vpop.f32.mrf.mxu0  ;;  %v953_v16 = vpop.f32.mrf.mxu1 }
 0x147   : > { %1016 = vst [vmem:[%s1546_s15 + $0xa8] sm:$0xff] %v824_v13  ;;  %1048 = vst [vmem:[%s1546_s15 + $0x1a8] sm:$0xff] %v952_v14 }
 0x148   : > { %v828_v17 = vpop.f32.mrf.mxu0  ;;  %v956_v18 = vpop.f32.mrf.mxu1 }
 0x149   : > { %v829_v19 = vadd.f32 %v1539_v10, %v828_v17  ;;  %v957_v20 = vadd.f32 %v1539_v10, %v956_v18 }
 0x14a   : > { %v830_v21 = vpop.f32.mrf.mxu0  ;;  %v958_v22 = vpop.f32.mrf.mxu1 }
 0x14b   : > { %1017 = vst [vmem:[%s1546_s15 + $0xb0] sm:$0xff] %v829_v19  ;;  %1049 = vst [vmem:[%s1546_s15 + $0x1b0] sm:$0xff] %v957_v20 }
 0x14c   : > { %v831_v23 = vpop.f32.mrf.mxu0  ;;  %v959_v24 = vpop.f32.mrf.mxu1 }
 0x14d   : > { %v832_v25 = vadd.f32 %v1539_v10, %v831_v23  ;;  %v960_v26 = vadd.f32 %v1539_v10, %v959_v24 }
 0x14e   : > { %v833_v27 = vpop.f32.mrf.mxu0  ;;  %v961_v28 = vpop.f32.mrf.mxu1 }
 0x14f   : > { %1018 = vst [vmem:[%s1546_s15 + $0xb8] sm:$0xff] %v832_v25  ;;  %1050 = vst [vmem:[%s1546_s15 + $0x1b8] sm:$0xff] %v960_v26 }
 0x150   : > { %v836_v29 = vpop.f32.mrf.mxu0  ;;  %v964_v30 = vpop.f32.mrf.mxu1 }
 0x151   : > { %v837_v31 = vadd.f32 %v1539_v10, %v836_v29  ;;  %v965_v32 = vadd.f32 %v1539_v10, %v964_v30 }
 0x152   : > { %v838_v33 = vpop.f32.mrf.mxu0  ;;  %v966_v34 = vpop.f32.mrf.mxu1 }
 0x153   : > { %1019 = vst [vmem:[%s1546_s15 + $0xc0] sm:$0xff] %v837_v31  ;;  %1051 = vst [vmem:[%s1546_s15 + $0x1c0] sm:$0xff] %v965_v32 }
 0x154   : > { %v839_v35 = vpop.f32.mrf.mxu0  ;;  %v967_v36 = vpop.f32.mrf.mxu1 }
 0x155   : > { %v840_v37 = vadd.f32 %v1539_v10, %v839_v35  ;;  %v968_v38 = vadd.f32 %v1539_v10, %v967_v36 }
 0x156   : > { %v841_v39 = vpop.f32.mrf.mxu0  ;;  %v969_v40 = vpop.f32.mrf.mxu1 }
 0x157   : > { %1020 = vst [vmem:[%s1546_s15 + $0xc8] sm:$0xff] %v840_v37  ;;  %1052 = vst [vmem:[%s1546_s15 + $0x1c8] sm:$0xff] %v968_v38 }
 0x158   : > { %v844_v41 = vpop.f32.mrf.mxu0  ;;  %v972_v42 = vpop.f32.mrf.mxu1 }
 0x159   : > { %v845_v43 = vadd.f32 %v1539_v10, %v844_v41  ;;  %v973_v44 = vadd.f32 %v1539_v10, %v972_v42 }
 0x15a   : > { %v846_v45 = vpop.f32.mrf.mxu0  ;;  %v974_v46 = vpop.f32.mrf.mxu1 }
 0x15b   : > { %1021 = vst [vmem:[%s1546_s15 + $0xd0] sm:$0xff] %v845_v43  ;;  %1053 = vst [vmem:[%s1546_s15 + $0x1d0] sm:$0xff] %v973_v44 }
 0x15c   : > { %v847_v47 = vpop.f32.mrf.mxu0  ;;  %v975_v48 = vpop.f32.mrf.mxu1 }
 0x15d   : > { %v848_v49 = vadd.f32 %v1539_v10, %v847_v47  ;;  %v976_v50 = vadd.f32 %v1539_v10, %v975_v48 }
 0x15e   : > { %v849_v51 = vpop.f32.mrf.mxu0  ;;  %v977_v52 = vpop.f32.mrf.mxu1 }
 0x15f   : > { %1022 = vst [vmem:[%s1546_s15 + $0xd8] sm:$0xff] %v848_v49  ;;  %1054 = vst [vmem:[%s1546_s15 + $0x1d8] sm:$0xff] %v976_v50 }
 0x160   : > { %v852_v53 = vpop.f32.mrf.mxu0  ;;  %v980_v54 = vpop.f32.mrf.mxu1 }
 0x161   : > { %v853_v55 = vadd.f32 %v1539_v10, %v852_v53  ;;  %v981_v56 = vadd.f32 %v1539_v10, %v980_v54 }
 0x162   : > { %v854_v57 = vpop.f32.mrf.mxu0  ;;  %v982_v58 = vpop.f32.mrf.mxu1 }
 0x163   : > { %1023 = vst [vmem:[%s1546_s15 + $0xe0] sm:$0xff] %v853_v55  ;;  %1055 = vst [vmem:[%s1546_s15 + $0x1e0] sm:$0xff] %v981_v56 }
 0x164   : > { %v855_v59 = vpop.f32.mrf.mxu0  ;;  %v983_v60 = vpop.f32.mrf.mxu1 }
 0x165   : > { %v856_v61 = vadd.f32 %v1539_v10, %v855_v59  ;;  %v984_v62 = vadd.f32 %v1539_v10, %v983_v60 }
 0x166   : > { %v857_v63 = vpop.f32.mrf.mxu0  ;;  %v985_v0 = vpop.f32.mrf.mxu1 }
 0x167   : > { %1024 = vst [vmem:[%s1546_s15 + $0xe8] sm:$0xff] %v856_v61  ;;  %1056 = vst [vmem:[%s1546_s15 + $0x1e8] sm:$0xff] %v984_v62 }
 0x168   : > { %v860_v1 = vpop.f32.mrf.mxu0  ;;  %v988_v2 = vpop.f32.mrf.mxu1 }
 0x169   : > { %v861_v3 = vadd.f32 %v1539_v10, %v860_v1  ;;  %v989_v4 = vadd.f32 %v1539_v10, %v988_v2 }
 0x16a   : > { %v862_v5 = vpop.f32.mrf.mxu0  ;;  %v990_v6 = vpop.f32.mrf.mxu1 }
 0x16b   : > { %1025 = vst [vmem:[%s1546_s15 + $0xf0] sm:$0xff] %v861_v3  ;;  %1057 = vst [vmem:[%s1546_s15 + $0x1f0] sm:$0xff] %v989_v4 }
 0x16c   : > { %v863_v7 = vpop.f32.mrf.mxu0  ;;  %v991_v8 = vpop.f32.mrf.mxu1 }
 0x16d   : > { %v864_v9 = vadd.f32 %v1539_v10, %v863_v7  ;;  %v992_v11 = vadd.f32 %v1539_v10, %v991_v8 }
 0x16e   : > { %v865_v12 = vpop.f32.mrf.mxu0  ;;  %v993_v13 = vpop.f32.mrf.mxu1 }
 0x16f   : > { %1026 = vst [vmem:[%s1546_s15 + $0xf8] sm:$0xff] %v864_v9  ;;  %1058 = vst [vmem:[%s1546_s15 + $0x1f8] sm:$0xff] %v992_v11 }
 0x170 PF: > { %s13_s12 = sadd.s32 1, %s1372_s12  }
 0x171   : > { %p10_p4 = scmp.ge.s32.totalorder %s13_s12, 4  }
 0x173   :  { %12 = sbr.rel (!%p10_p4) target bundleno = 1 (0x1), region = 62 }

// kernel: closed_call.126
= control target key start
LH: loop header
LB: loop body
LE: loop exit
PB: predicated region body
PF: predicated region fallthrough
CT: control target
= control target key end

     0   :  { %s776_s15 = smov 0   ;;  %s892_s0 = inlined_call_operand.vmem [shape: bf16[256,72], index: 0, kind: input, shape index: {}]   ;;  %s893_s1 = inlined_call_operand.vmem [shape: bf16[72,128], index: 1, kind: input, shape index: {}]   ;;  %s894_s2 = inlined_call_operand.vmem [shape: f32[1,128], index: 2, kind: input, shape index: {}]   ;;  %s895_s3 = inlined_call_operand.vmem [shape: bf16[256,128], index: 3, kind: input, shape index: {}]   ;;  %s896_s4 = inlined_call_operand.vmem [shape: f32[256,128], index: 4, kind: output, shape index: {}]  }
   0x1 LB: > { %s597_s16 = sadd.s32 4294967295, %s749_s15   ;;  %p601_p0 = scmp.ge.s32.totalorder %s749_s15, 1  ;;  %s749_s15 = sphi %s776_s15, %s14_s15  }
   0x2   : > { %p174_p1 = scmp.lt.s32.totalorder %s749_s15, 3 }
   0x4   : > { %p175_p2 = pnand %p601_p0, %p174_p1 }
   0x5   : > { %s602_s21 = sshll.u32 (!%p175_p2), %s597_s16, 4 }
   0x6   : > { %178 = sbr.rel (%p175_p2) target bundleno = 246 (0xf6), region = 36  ;;  %p206_p3 = scmp.lt.s32.totalorder (!%p175_p2), %s602_s21, 31 }
   0xb   : > { %v730_v0 = vld [vmem:[%s893_s1 + $0x20] ss:$0 sps:$4 sm:$0xff]   ;;  %vm348_vm0 = vcmask 1043456   ;;  %v731_v1 = vld [vmem:[%s893_s1 + $0x18] sm:$0xff]   ;;  %v732_v3 = vld [vmem:[%s893_s1 + $0x10] sm:$0xff]   ;;  %s898_s21 = smov (!%p206_p3, %s602_s21), 31 }
   0xc   : > { %720 = vmatprep.subr.msk.bf16.mxu0 %vm348_vm0, %v730_v0  ;;  %721 = vmatprep.subr.msk.bf16.mxu1 %vm348_vm0, %v730_v0  ;;  %v350_v2 = vsel %vm348_vm0, %v730_v0, 0  ;;  %v733_v4 = vld [vmem:[%s893_s1 + $0x8] sm:$0xff]   ;;  %s603_s26 = sshll.u32 %s898_s21, 2  ;;  %vm323_vm1 = vcmask 588800   ;;  %v734_v7 = vld [vmem:[%s893_s1] sm:$0xff]   ;;  %s607_s11 = sshll.u32 %s898_s21, 3 }
   0xd   : > { %685 = vmatpush3.bf16.msra.mxu0 %v350_v2  ;;  %715 = vmatpush3.bf16.msra.mxu1 %v350_v2  ;;  %s209_s29 = scalar_lea.vmem %s892_s0, %s603_s26  ;;  %s820_s8 = scalar_lea.vmem %s895_s3, %s603_s26  ;;  %v827_v16 = vld [vmem:[%s894_s2] ss:$0 sm:$0xff] }
   0xe   : > { %686 = vmatprep.subr.bf16.mxu0 %v731_v1  ;;  %711 = vmatprep.subr.bf16.mxu1 %v731_v1  ;;  %v735_v5 = vld [vmem:[%s209_s29] sm:$0xff]   ;;  %v737_v8 = vld [vmem:[%s209_s29 + $0x8] sm:$0xff]   ;;  %v739_v10 = vld [vmem:[%s209_s29 + $0x10] sm:$0xff]   ;;  %s845_s14 = scalar_lea.vmem %s896_s4, %s607_s11 }
   0xf   : > { %v736_v6 = vld [vmem:[%s209_s29 + $0x20] sm:$0xff]   ;;  %694 = vmatprep.mubr.msk.bf16.mxu0 %vm323_vm1, %v735_v5  ;;  %v738_v9 = vld [vmem:[%s209_s29 + $0x28] sm:$0xff]   ;;  %v740_v11 = vld [vmem:[%s209_s29 + $0x30] sm:$0xff]  }
  0x10   : > { %702 = vmatprep.mubr.msk.bf16.mxu1 %vm323_vm1, %v736_v6  ;;  %v741_v12 = vld [vmem:[%s209_s29 + $0x18] sm:$0xff]   ;;  %v664_v14 = vld [vmem:[%s820_s8 + $0x8] sm:$0xff]   ;;  %v633_v17 = vld [vmem:[%s820_s8] sm:$0xff]  }
  0x11   : > { %687 = vmatpush3.bf16.msra.mxu0 %v731_v1  ;;  %716 = vmatpush3.bf16.msra.mxu1 %v731_v1  ;;  %v742_v13 = vld [vmem:[%s209_s29 + $0x38] sm:$0xff]   ;;  %v668_v15 = vld [vmem:[%s820_s8 + $0x28] sm:$0xff]   ;;  %v667_v18 = vld [vmem:[%s820_s8 + $0x20] sm:$0xff]   ;;  %v638_v19 = vunpack.c.l.bf16 %v664_v14  ;;  %v634_v25 = vunpack.c.l.bf16 %v633_v17  ;;  %v639_v36 = vunpack.c.h.bf16 %v664_v14  ;;  %v635_v39 = vunpack.c.h.bf16 %v633_v17 }
  0x12   : > { %688 = vmatprep.subr.bf16.mxu0 %v732_v3  ;;  %712 = vmatprep.subr.bf16.mxu1 %v732_v3  ;;  %v654_v20 = vunpack.c.l.bf16 %v668_v15  ;;  %v650_v26 = vunpack.c.l.bf16 %v667_v18  ;;  %v837_v33 = vld [vmem:[%s820_s8 + $0x18] sm:$0xff]   ;;  %v655_v38 = vunpack.c.h.bf16 %v668_v15  ;;  %v651_v40 = vunpack.c.h.bf16 %v667_v18  ;;  %v848_v45 = vld [vmem:[%s820_s8 + $0x10] sm:$0xff]  }
  0x13   : > { %v840_v34 = vld [vmem:[%s820_s8 + $0x38] sm:$0xff]   ;;  %v851_v46 = vld [vmem:[%s820_s8 + $0x30] sm:$0xff]   ;;  %v646_v51 = vunpack.c.l.bf16 %v837_v33  ;;  %v642_v61 = vunpack.c.l.bf16 %v848_v45  ;;  %v643_v18 = vunpack.c.h.bf16 %v848_v45 }
  0x14   : > { %v662_v52 = vunpack.c.l.bf16 %v840_v34  ;;  %v658_v62 = vunpack.c.l.bf16 %v851_v46 }
  0x15   : > { %689 = vmatpush3.bf16.msra.mxu0 %v732_v3  ;;  %717 = vmatpush3.bf16.msra.mxu1 %v732_v3 }
  0x16   : > { %690 = vmatprep.subr.bf16.mxu0 %v733_v4  ;;  %713 = vmatprep.subr.bf16.mxu1 %v733_v4 }
  0x19   : > { %691 = vmatpush3.bf16.msra.mxu0 %v733_v4  ;;  %718 = vmatpush3.bf16.msra.mxu1 %v733_v4 }
  0x1a   : > { %692 = vmatprep.subr.bf16.mxu0 %v734_v7  ;;  %714 = vmatprep.subr.bf16.mxu1 %v734_v7 }
  0x1d   : > { %693 = vmatpush3.bf16.msra.mxu0 %v734_v7  ;;  %719 = vmatpush3.bf16.msra.mxu1 %v734_v7  ;;  %v647_v7 = vunpack.c.h.bf16 %v837_v33 }
  0x20   : > { %695 = vmatmul.mubr.msk.bf16.vlgmr.msra.gmra.mxu0 %vm323_vm1, %v737_v8  ;;  %703 = vmatmul.mubr.msk.bf16.vlgmr.msra.gmra.mxu1 %vm323_vm1, %v738_v9  ;;  %v663_v8 = vunpack.c.h.bf16 %v840_v34 }
  0x21   : > { %698 = vmatprep.mubr.msk.bf16.mxu0 %vm323_vm1, %v739_v10  ;;  %706 = vmatprep.mubr.msk.bf16.mxu1 %vm323_vm1, %v740_v11 }
  0x28   : > { %699 = vmatmul.mubr.msk.bf16.gmra.mxu0 %vm323_vm1, %v741_v12  ;;  %707 = vmatmul.mubr.msk.bf16.gmra.mxu1 %vm323_vm1, %v742_v13 }
  0xe0   : > { %v696_v21 = vpop.f32.mrf.mxu0  ;;  %v704_v22 = vpop.f32.mrf.mxu1 }
  0xe1   : > { %v395_v23 = vadd.f32 %v696_v21, %v827_v16  ;;  %v427_v24 = vadd.f32 %v704_v22, %v827_v16 }
  0xe2   : > { %v386_v27 = vpop.f32.mrf.mxu0  ;;  %v418_v28 = vpop.f32.mrf.mxu1 }
  0xe3   : > { %v483_v29 = vadd.f32 %v638_v19, %v395_v23  ;;  %v491_v30 = vadd.f32 %v654_v20, %v427_v24  ;;  %v387_v31 = vadd.f32 %v827_v16, %v386_v27  ;;  %v419_v32 = vadd.f32 %v827_v16, %v418_v28 }
  0xe4   : > { %v697_v35 = vpop.f32.mrf.mxu0  ;;  %v705_v37 = vpop.f32.mrf.mxu1  ;;  %v659_v19 = vunpack.c.h.bf16 %v851_v46 }
  0xe5   : > { %v499_v41 = vmax.f32 %v483_v29, 0.0  ;;  %v507_v42 = vmax.f32 %v491_v30, 0.0  ;;  %v481_v43 = vadd.f32 %v634_v25, %v387_v31  ;;  %v489_v44 = vadd.f32 %v650_v26, %v419_v32 }
  0xe6   : > { %v398_v47 = vadd.f32 %v697_v35, %v827_v16  ;;  %v430_v48 = vadd.f32 %v705_v37, %v827_v16  ;;  %v389_v49 = vpop.f32.mrf.mxu0  ;;  %v421_v50 = vpop.f32.mrf.mxu1 }
  0xe7   : > { %515 = vst [vmem:[%s845_s14 + $0x10] sm:$0xff] %v499_v41  ;;  %523 = vst [vmem:[%s845_s14 + $0x50] sm:$0xff] %v507_v42  ;;  %v497_v53 = vmax.f32 %v481_v43, 0.0  ;;  %v505_v54 = vmax.f32 %v489_v44, 0.0  ;;  %v390_v55 = vadd.f32 %v827_v16, %v389_v49  ;;  %v422_v56 = vadd.f32 %v827_v16, %v421_v50 }
  0xe8   : > { %v484_v57 = vadd.f32 %v639_v36, %v398_v47  ;;  %v492_v58 = vadd.f32 %v655_v38, %v430_v48  ;;  %v700_v59 = vpop.f32.mrf.mxu0  ;;  %v708_v60 = vpop.f32.mrf.mxu1 }
  0xe9   : > { %513 = vst [vmem:[%s845_s14] sm:$0xff] %v497_v53  ;;  %521 = vst [vmem:[%s845_s14 + $0x40] sm:$0xff] %v505_v54  ;;  %v482_v63 = vadd.f32 %v635_v39, %v390_v55  ;;  %v490_v0 = vadd.f32 %v651_v40, %v422_v56  ;;  %v411_v1 = vadd.f32 %v700_v59, %v827_v16 }
  0xea   : > { %v443_v2 = vadd.f32 %v708_v60, %v827_v16  ;;  %v500_v3 = vmax.f32 %v484_v57, 0.0  ;;  %v508_v4 = vmax.f32 %v492_v58, 0.0  ;;  %v402_v5 = vpop.f32.mrf.mxu0  ;;  %v434_v6 = vpop.f32.mrf.mxu1 }
  0xeb   : > { %v498_v9 = vmax.f32 %v482_v63, 0.0  ;;  %v506_v10 = vmax.f32 %v490_v0, 0.0  ;;  %v487_v11 = vadd.f32 %v646_v51, %v411_v1  ;;  %v403_v13 = vadd.f32 %v827_v16, %v402_v5 }
  0xec   : > { %v495_v12 = vadd.f32 %v662_v52, %v443_v2  ;;  %516 = vst [vmem:[%s845_s14 + $0x18] sm:$0xff] %v500_v3  ;;  %524 = vst [vmem:[%s845_s14 + $0x58] sm:$0xff] %v508_v4  ;;  %v435_v14 = vadd.f32 %v827_v16, %v434_v6  ;;  %v701_v15 = vpop.f32.mrf.mxu0  ;;  %v709_v17 = vpop.f32.mrf.mxu1 }
  0xed   : > { %514 = vst [vmem:[%s845_s14 + $0x8] sm:$0xff] %v498_v9  ;;  %522 = vst [vmem:[%s845_s14 + $0x48] sm:$0xff] %v506_v10  ;;  %v503_v20 = vmax.f32 %v487_v11, 0.0  ;;  %v414_v22 = vadd.f32 %v701_v15, %v827_v16  ;;  %v446_v23 = vadd.f32 %v709_v17, %v827_v16  ;;  %v485_v24 = vadd.f32 %v642_v61, %v403_v13 }
  0xee   : > { %v511_v21 = vmax.f32 %v495_v12, 0.0  ;;  %v493_v25 = vadd.f32 %v658_v62, %v435_v14  ;;  %v405_v26 = vpop.f32.mrf.mxu0  ;;  %v437_v27 = vpop.f32.mrf.mxu1 }
  0xef   : > { %519 = vst [vmem:[%s845_s14 + $0x30] sm:$0xff] %v503_v20  ;;  %v488_v28 = vadd.f32 %v647_v7, %v414_v22  ;;  %v496_v29 = vadd.f32 %v663_v8, %v446_v23  ;;  %v406_v30 = vadd.f32 %v827_v16, %v405_v26  ;;  %v438_v31 = vadd.f32 %v827_v16, %v437_v27 }
  0xf0   : > { %527 = vst [vmem:[%s845_s14 + $0x70] sm:$0xff] %v511_v21  ;;  %v501_v32 = vmax.f32 %v485_v24, 0.0  ;;  %v509_v33 = vmax.f32 %v493_v25, 0.0 }
  0xf1   : > { %v504_v34 = vmax.f32 %v488_v28, 0.0  ;;  %v512_v35 = vmax.f32 %v496_v29, 0.0  ;;  %v486_v36 = vadd.f32 %v643_v18, %v406_v30  ;;  %v494_v37 = vadd.f32 %v659_v19, %v438_v31 }
  0xf2   : > { %517 = vst [vmem:[%s845_s14 + $0x20] sm:$0xff] %v501_v32  ;;  %525 = vst [vmem:[%s845_s14 + $0x60] sm:$0xff] %v509_v33 }
  0xf3   : > { %520 = vst [vmem:[%s845_s14 + $0x38] sm:$0xff] %v504_v34  ;;  %528 = vst [vmem:[%s845_s14 + $0x78] sm:$0xff] %v512_v35  ;;  %v502_v38 = vmax.f32 %v486_v36, 0.0  ;;  %v510_v39 = vmax.f32 %v494_v37, 0.0 }
  0xf5   : > { %518 = vst [vmem:[%s845_s14 + $0x28] sm:$0xff] %v502_v38  ;;  %526 = vst [vmem:[%s845_s14 + $0x68] sm:$0xff] %v510_v39 }
  0xf6 PF: > { %s14_s15 = sadd.s32 1, %s749_s15  }
  0xf7   : > { %p11_p4 = scmp.ge.s32.totalorder %s14_s15, 4  }
  0xf9   :  { %13 = sbr.rel (!%p11_p4) target bundleno = 1 (0x1), region = 69 }

// kernel: crunet_d_mon_nws_forward.53
= control target key start
LH: loop header
LB: loop body
LE: loop exit
PB: predicated region body
PF: predicated region fallthrough
CT: control target
= control target key end

     0   :  { %s1648_s15 = smov 0   ;;  %s2022_s0 = inlined_call_operand.vmem [shape: bf16[1024,72], index: 0, kind: input, shape index: {}]   ;;  %s2023_s1 = inlined_call_operand.vmem [shape: bf16[72,128], index: 1, kind: input, shape index: {}]   ;;  %s2024_s2 = inlined_call_operand.vmem [shape: f32[1,128], index: 2, kind: input, shape index: {}]   ;;  %s2025_s3 = inlined_call_operand.vmem [shape: bf16[1024,128], index: 3, kind: input, shape index: {}]   ;;  %s2026_s4 = inlined_call_operand.vmem [shape: f32[1024,128], index: 4, kind: output, shape index: {}]  }
   0x1 LB: > { %s1205_s16 = sadd.s32 4294967295, %s1621_s15   ;;  %p1209_p0 = scmp.ge.s32.totalorder %s1621_s15, 1  ;;  %s1621_s15 = sphi %s1648_s15, %s14_s15  }
   0x2   : > { %p174_p1 = scmp.lt.s32.totalorder %s1621_s15, 3 }
   0x4   : > { %p175_p2 = pnand %p1209_p0, %p174_p1 }
   0x5   : > { %s1210_s21 = sshll.u32 (!%p175_p2), %s1205_s16, 6 }
   0x6   : > { %178 = sbr.rel (%p175_p2) target bundleno = 292 (0x124), region = 36  ;;  %p206_p3 = scmp.lt.s32.totalorder (!%p175_p2), %s1210_s21, 127 }
   0xb   : > { %v1578_v0 = vld [vmem:[%s2023_s1 + $0x20] ss:$0 sps:$4 sm:$0xff]   ;;  %vm588_vm0 = vcmask 1043456   ;;  %v1579_v1 = vld [vmem:[%s2023_s1 + $0x18] sm:$0xff]   ;;  %v1580_v3 = vld [vmem:[%s2023_s1 + $0x10] sm:$0xff]   ;;  %s2028_s21 = smov (!%p206_p3, %s1210_s21), 127 }
   0xc   : > { %1568 = vmatprep.subr.msk.bf16.mxu0 %vm588_vm0, %v1578_v0  ;;  %1569 = vmatprep.subr.msk.bf16.mxu1 %vm588_vm0, %v1578_v0  ;;  %v590_v2 = vsel %vm588_vm0, %v1578_v0, 0  ;;  %v1581_v4 = vld [vmem:[%s2023_s1 + $0x8] sm:$0xff]   ;;  %s1211_s26 = sshll.u32 %s2028_s21, 2  ;;  %vm491_vm1 = vcmask 588800   ;;  %v1582_v7 = vld [vmem:[%s2023_s1] sm:$0xff]   ;;  %s1215_s11 = sshll.u32 %s2028_s21, 3 }
   0xd   : > { %1485 = vmatpush3.bf16.msra.mxu0 %v590_v2  ;;  %1563 = vmatpush3.bf16.msra.mxu1 %v590_v2  ;;  %s1676_s29 = scalar_lea.vmem %s2022_s0, %s1211_s26  ;;  %s1750_s8 = scalar_lea.vmem %s2025_s3, %s1211_s26  ;;  %v1757_v40 = vld [vmem:[%s2024_s2] ss:$0 sm:$0xff] }
   0xe   : > { %1486 = vmatprep.subr.bf16.mxu0 %v1579_v1  ;;  %1559 = vmatprep.subr.bf16.mxu1 %v1579_v1  ;;  %v1583_v5 = vld [vmem:[%s1676_s29] sm:$0xff]   ;;  %v1585_v8 = vld [vmem:[%s1676_s29 + $0x8] sm:$0xff]   ;;  %v1587_v10 = vld [vmem:[%s1676_s29 + $0x10] sm:$0xff]   ;;  %s1767_s14 = scalar_lea.vmem %s2026_s4, %s1215_s11 }
   0xf   : > { %v1584_v6 = vld [vmem:[%s1676_s29 + $0x80] sm:$0xff]   ;;  %1494 = vmatprep.mubr.msk.bf16.mxu0 %vm491_vm1, %v1583_v5  ;;  %v1586_v9 = vld [vmem:[%s1676_s29 + $0x88] sm:$0xff]   ;;  %v1588_v11 = vld [vmem:[%s1676_s29 + $0x90] sm:$0xff]  }
  0x10   : > { %1526 = vmatprep.mubr.msk.bf16.mxu1 %vm491_vm1, %v1584_v6  ;;  %v1589_v12 = vld [vmem:[%s1676_s29 + $0x18] sm:$0xff]   ;;  %v1591_v14 = vld [vmem:[%s1676_s29 + $0x20] sm:$0xff]   ;;  %v1593_v16 = vld [vmem:[%s1676_s29 + $0x28] sm:$0xff]  }
  0x11   : > { %1487 = vmatpush3.bf16.msra.mxu0 %v1579_v1  ;;  %1564 = vmatpush3.bf16.msra.mxu1 %v1579_v1  ;;  %v1590_v13 = vld [vmem:[%s1676_s29 + $0x98] sm:$0xff]   ;;  %v1592_v15 = vld [vmem:[%s1676_s29 + $0xa0] sm:$0xff]   ;;  %v1594_v17 = vld [vmem:[%s1676_s29 + $0xa8] sm:$0xff]  }
  0x12   : > { %1488 = vmatprep.subr.bf16.mxu0 %v1580_v3  ;;  %1560 = vmatprep.subr.bf16.mxu1 %v1580_v3  ;;  %v1595_v18 = vld [vmem:[%s1676_s29 + $0x30] sm:$0xff]   ;;  %v1597_v20 = vld [vmem:[%s1676_s29 + $0x38] sm:$0xff]   ;;  %v1599_v22 = vld [vmem:[%s1676_s29 + $0x40] sm:$0xff]  }
  0x13   : > { %v1596_v19 = vld [vmem:[%s1676_s29 + $0xb0] sm:$0xff]   ;;  %v1598_v21 = vld [vmem:[%s1676_s29 + $0xb8] sm:$0xff]   ;;  %v1600_v23 = vld [vmem:[%s1676_s29 + $0xc0] sm:$0xff]  }
  0x14   : > { %v1601_v24 = vld [vmem:[%s1676_s29 + $0x48] sm:$0xff]   ;;  %v1603_v26 = vld [vmem:[%s1676_s29 + $0x50] sm:$0xff]   ;;  %v1605_v28 = vld [vmem:[%s1676_s29 + $0x58] sm:$0xff]  }
  0x15   : > { %1489 = vmatpush3.bf16.msra.mxu0 %v1580_v3  ;;  %1565 = vmatpush3.bf16.msra.mxu1 %v1580_v3  ;;  %v1602_v25 = vld [vmem:[%s1676_s29 + $0xc8] sm:$0xff]   ;;  %v1604_v27 = vld [vmem:[%s1676_s29 + $0xd0] sm:$0xff]   ;;  %v1606_v29 = vld [vmem:[%s1676_s29 + $0xd8] sm:$0xff]  }
  0x16   : > { %1490 = vmatprep.subr.bf16.mxu0 %v1581_v4  ;;  %1561 = vmatprep.subr.bf16.mxu1 %v1581_v4  ;;  %v1607_v30 = vld [vmem:[%s1676_s29 + $0x60] sm:$0xff]   ;;  %v1609_v32 = vld [vmem:[%s1676_s29 + $0x68] sm:$0xff]   ;;  %v1611_v34 = vld [vmem:[%s1676_s29 + $0x70] sm:$0xff]  }
  0x17   : > { %v1608_v31 = vld [vmem:[%s1676_s29 + $0xe0] sm:$0xff]   ;;  %v1610_v33 = vld [vmem:[%s1676_s29 + $0xe8] sm:$0xff]   ;;  %v1612_v35 = vld [vmem:[%s1676_s29 + $0xf0] sm:$0xff]  }
  0x18   : > { %v1613_v36 = vld [vmem:[%s1676_s29 + $0x78] sm:$0xff]   ;;  %v1416_v38 = vld [vmem:[%s1750_s8 + $0x8] sm:$0xff]   ;;  %v1289_v41 = vld [vmem:[%s1750_s8] sm:$0xff]  }
  0x19   : > { %1491 = vmatpush3.bf16.msra.mxu0 %v1581_v4  ;;  %1566 = vmatpush3.bf16.msra.mxu1 %v1581_v4  ;;  %v1614_v37 = vld [vmem:[%s1676_s29 + $0xf8] sm:$0xff]   ;;  %v1432_v39 = vld [vmem:[%s1750_s8 + $0x88] sm:$0xff]   ;;  %v1431_v42 = vld [vmem:[%s1750_s8 + $0x80] sm:$0xff]   ;;  %v1294_v43 = vunpack.c.l.bf16 %v1416_v38  ;;  %v1290_v49 = vunpack.c.l.bf16 %v1289_v41  ;;  %v1295_v53 = vunpack.c.h.bf16 %v1416_v38  ;;  %v1291_v63 = vunpack.c.h.bf16 %v1289_v41 }
  0x1a   : > { %1492 = vmatprep.subr.bf16.mxu0 %v1582_v7  ;;  %1562 = vmatprep.subr.bf16.mxu1 %v1582_v7  ;;  %v1358_v44 = vunpack.c.l.bf16 %v1432_v39  ;;  %v1354_v50 = vunpack.c.l.bf16 %v1431_v42  ;;  %v1359_v54 = vunpack.c.h.bf16 %v1432_v39  ;;  %v1772_v59 = vld [vmem:[%s1750_s8 + $0x18] sm:$0xff]   ;;  %v1355_v0 = vunpack.c.h.bf16 %v1431_v42  ;;  %v1782_v5 = vld [vmem:[%s1750_s8 + $0x10] sm:$0xff]   ;;  %v1818_v42 = vld [vmem:[%s1750_s8 + $0x20] sm:$0xff]  }
  0x1b   : > { %v1775_v60 = vld [vmem:[%s1750_s8 + $0x98] sm:$0xff]   ;;  %v1785_v6 = vld [vmem:[%s1750_s8 + $0x90] sm:$0xff]  }
  0x1d   : > { %1493 = vmatpush3.bf16.msra.mxu0 %v1582_v7  ;;  %1567 = vmatpush3.bf16.msra.mxu1 %v1582_v7 }
  0x20   : > { %1495 = vmatmul.mubr.msk.bf16.vlgmr.msra.gmra.mxu0 %vm491_vm1, %v1585_v8  ;;  %1527 = vmatmul.mubr.msk.bf16.vlgmr.msra.gmra.mxu1 %vm491_vm1, %v1586_v9  ;;  %v1302_v9 = vunpack.c.l.bf16 %v1772_v59 }
  0x21   : > { %1498 = vmatprep.mubr.msk.bf16.mxu0 %vm491_vm1, %v1587_v10  ;;  %1530 = vmatprep.mubr.msk.bf16.mxu1 %vm491_vm1, %v1588_v11  ;;  %v1366_v10 = vunpack.c.l.bf16 %v1775_v60 }
  0x28   : > { %1499 = vmatmul.mubr.msk.bf16.gmra.mxu0 %vm491_vm1, %v1589_v12  ;;  %1531 = vmatmul.mubr.msk.bf16.gmra.mxu1 %vm491_vm1, %v1590_v13 }
  0x29   : > { %1502 = vmatprep.mubr.msk.bf16.mxu0 %vm491_vm1, %v1591_v14  ;;  %1534 = vmatprep.mubr.msk.bf16.mxu1 %vm491_vm1, %v1592_v15 }
  0x30   : > { %1503 = vmatmul.mubr.msk.bf16.gmra.mxu0 %vm491_vm1, %v1593_v16  ;;  %1535 = vmatmul.mubr.msk.bf16.gmra.mxu1 %vm491_vm1, %v1594_v17  ;;  %v1298_v17 = vunpack.c.l.bf16 %v1782_v5 }
  0x31   : > { %1506 = vmatprep.mubr.msk.bf16.mxu0 %vm491_vm1, %v1595_v18  ;;  %1538 = vmatprep.mubr.msk.bf16.mxu1 %vm491_vm1, %v1596_v19  ;;  %v1362_v18 = vunpack.c.l.bf16 %v1785_v6 }
  0x38   : > { %1507 = vmatmul.mubr.msk.bf16.gmra.mxu0 %vm491_vm1, %v1597_v20  ;;  %1539 = vmatmul.mubr.msk.bf16.gmra.mxu1 %vm491_vm1, %v1598_v21 }
  0x39   : > { %1510 = vmatprep.mubr.msk.bf16.mxu0 %vm491_vm1, %v1599_v22  ;;  %1542 = vmatprep.mubr.msk.bf16.mxu1 %vm491_vm1, %v1600_v23 }
  0x40   : > { %1511 = vmatmul.mubr.msk.bf16.gmra.mxu0 %vm491_vm1, %v1601_v24  ;;  %1543 = vmatmul.mubr.msk.bf16.gmra.mxu1 %vm491_vm1, %v1602_v25  ;;  %v1303_v25 = vunpack.c.h.bf16 %v1772_v59 }
  0x41   : > { %1514 = vmatprep.mubr.msk.bf16.mxu0 %vm491_vm1, %v1603_v26  ;;  %1546 = vmatprep.mubr.msk.bf16.mxu1 %vm491_vm1, %v1604_v27  ;;  %v1367_v26 = vunpack.c.h.bf16 %v1775_v60 }
  0x48   : > { %1515 = vmatmul.mubr.msk.bf16.gmra.mxu0 %vm491_vm1, %v1605_v28  ;;  %1547 = vmatmul.mubr.msk.bf16.gmra.mxu1 %vm491_vm1, %v1606_v29 }
  0x49   : > { %1518 = vmatprep.mubr.msk.bf16.mxu0 %vm491_vm1, %v1607_v30  ;;  %1550 = vmatprep.mubr.msk.bf16.mxu1 %vm491_vm1, %v1608_v31  ;;  %v1806_v31 = vld [vmem:[%s1750_s8 + $0x28] sm:$0xff]  }
  0x50   : > { %1519 = vmatmul.mubr.msk.bf16.gmra.mxu0 %vm491_vm1, %v1609_v32  ;;  %1551 = vmatmul.mubr.msk.bf16.gmra.mxu1 %vm491_vm1, %v1610_v33  ;;  %v1809_v32 = vld [vmem:[%s1750_s8 + $0xa8] sm:$0xff]  }
  0x51   : > { %1522 = vmatprep.mubr.msk.bf16.mxu0 %vm491_vm1, %v1611_v34  ;;  %1554 = vmatprep.mubr.msk.bf16.mxu1 %vm491_vm1, %v1612_v35  ;;  %v1299_v35 = vunpack.c.h.bf16 %v1782_v5  ;;  %v1845_v5 = vld [vmem:[%s1750_s8 + $0xb8] sm:$0xff]  }
  0x58   : > { %1523 = vmatmul.mubr.msk.bf16.gmra.mxu0 %vm491_vm1, %v1613_v36  ;;  %1555 = vmatmul.mubr.msk.bf16.gmra.mxu1 %vm491_vm1, %v1614_v37  ;;  %v1363_v36 = vunpack.c.h.bf16 %v1785_v6 }
  0xe0   : > { %v1496_v45 = vpop.f32.mrf.mxu0  ;;  %v1528_v46 = vpop.f32.mrf.mxu1 }
  0xe1   : > { %v635_v47 = vadd.f32 %v1496_v45, %v1757_v40  ;;  %v763_v48 = vadd.f32 %v1528_v46, %v1757_v40  ;;  %v1310_v46 = vunpack.c.l.bf16 %v1806_v31 }
  0xe2   : > { %v626_v51 = vpop.f32.mrf.mxu0  ;;  %v754_v52 = vpop.f32.mrf.mxu1 }
  0xe3   : > { %v1011_v55 = vadd.f32 %v1294_v43, %v635_v47  ;;  %v1043_v56 = vadd.f32 %v1358_v44, %v763_v48  ;;  %v627_v57 = vadd.f32 %v1757_v40, %v626_v51  ;;  %v755_v58 = vadd.f32 %v1757_v40, %v754_v52  ;;  %v1821_v43 = vld [vmem:[%s1750_s8 + $0xa0] sm:$0xff]  }
  0xe4   : > { %v1497_v61 = vpop.f32.mrf.mxu0  ;;  %v1529_v62 = vpop.f32.mrf.mxu1  ;;  %v1374_v47 = vunpack.c.l.bf16 %v1809_v32 }
  0xe5   : > { %1075 = vst [vmem:[%s1767_s14 + $0x10] sm:$0xff] %v1011_v55  ;;  %1107 = vst [vmem:[%s1767_s14 + $0x110] sm:$0xff] %v1043_v56  ;;  %v1009_v1 = vadd.f32 %v1290_v49, %v627_v57  ;;  %v1041_v2 = vadd.f32 %v1354_v50, %v755_v58  ;;  %v638_v3 = vadd.f32 %v1497_v61, %v1757_v40  ;;  %v1370_v55 = vunpack.c.l.bf16 %v1821_v43 }
  0xe6   : > { %v766_v4 = vadd.f32 %v1529_v62, %v1757_v40  ;;  %v629_v7 = vpop.f32.mrf.mxu0  ;;  %v757_v8 = vpop.f32.mrf.mxu1  ;;  %v1311_v62 = vunpack.c.h.bf16 %v1806_v31 }
  0xe7   : > { %1073 = vst [vmem:[%s1767_s14] sm:$0xff] %v1009_v1  ;;  %1105 = vst [vmem:[%s1767_s14 + $0x100] sm:$0xff] %v1041_v2  ;;  %v1012_v11 = vadd.f32 %v1295_v53, %v638_v3  ;;  %v630_v13 = vadd.f32 %v1757_v40, %v629_v7  ;;  %v758_v14 = vadd.f32 %v1757_v40, %v757_v8  ;;  %v1307_v8 = vunpack.c.h.bf16 %v1818_v42 }
  0xe8   : > { %v1044_v12 = vadd.f32 %v1359_v54, %v766_v4  ;;  %v1500_v15 = vpop.f32.mrf.mxu0  ;;  %v1532_v16 = vpop.f32.mrf.mxu1  ;;  %v1306_v54 = vunpack.c.l.bf16 %v1818_v42  ;;  %v1842_v4 = vld [vmem:[%s1750_s8 + $0x38] sm:$0xff]   ;;  %v1881_v42 = vld [vmem:[%s1750_s8 + $0xc8] sm:$0xff]  }
  0xe9   : > { %1076 = vst [vmem:[%s1767_s14 + $0x18] sm:$0xff] %v1012_v11  ;;  %v1010_v19 = vadd.f32 %v1291_v63, %v630_v13  ;;  %v1042_v20 = vadd.f32 %v1355_v0, %v758_v14  ;;  %v651_v21 = vadd.f32 %v1500_v15, %v1757_v40  ;;  %v779_v22 = vadd.f32 %v1532_v16, %v1757_v40  ;;  %v1854_v14 = vld [vmem:[%s1750_s8 + $0x30] sm:$0xff]  }
  0xea   : > { %1108 = vst [vmem:[%s1767_s14 + $0x118] sm:$0xff] %v1044_v12  ;;  %v642_v23 = vpop.f32.mrf.mxu0  ;;  %v770_v24 = vpop.f32.mrf.mxu1  ;;  %v1375_v63 = vunpack.c.h.bf16 %v1809_v32  ;;  %v1857_v15 = vld [vmem:[%s1750_s8 + $0xb0] sm:$0xff]  }
  0xeb   : > { %1074 = vst [vmem:[%s1767_s14 + $0x8] sm:$0xff] %v1010_v19  ;;  %1106 = vst [vmem:[%s1767_s14 + $0x108] sm:$0xff] %v1042_v20  ;;  %v1015_v27 = vadd.f32 %v1302_v9, %v651_v21  ;;  %v1047_v28 = vadd.f32 %v1366_v10, %v779_v22  ;;  %v643_v29 = vadd.f32 %v1757_v40, %v642_v23  ;;  %v1371_v9 = vunpack.c.h.bf16 %v1821_v43 }
  0xec   : > { %v771_v30 = vadd.f32 %v1757_v40, %v770_v24  ;;  %v1501_v33 = vpop.f32.mrf.mxu0  ;;  %v1533_v34 = vpop.f32.mrf.mxu1  ;;  %v1382_v19 = vunpack.c.l.bf16 %v1845_v5 }
  0xed   : > { %1079 = vst [vmem:[%s1767_s14 + $0x30] sm:$0xff] %v1015_v27  ;;  %1111 = vst [vmem:[%s1767_s14 + $0x130] sm:$0xff] %v1047_v28  ;;  %v1013_v37 = vadd.f32 %v1298_v17, %v643_v29  ;;  %v654_v39 = vadd.f32 %v1501_v33, %v1757_v40  ;;  %v782_v41 = vadd.f32 %v1533_v34, %v1757_v40  ;;  %v1378_v27 = vunpack.c.l.bf16 %v1857_v15 }
  0xee   : > { %v1045_v38 = vadd.f32 %v1362_v18, %v771_v30  ;;  %v645_v44 = vpop.f32.mrf.mxu0  ;;  %v773_v45 = vpop.f32.mrf.mxu1  ;;  %v1318_v18 = vunpack.c.l.bf16 %v1842_v4  ;;  %v1319_v34 = vunpack.c.h.bf16 %v1842_v4 }
  0xef   : > { %1077 = vst [vmem:[%s1767_s14 + $0x20] sm:$0xff] %v1013_v37  ;;  %v1016_v48 = vadd.f32 %v1303_v25, %v654_v39  ;;  %v1048_v49 = vadd.f32 %v1367_v26, %v782_v41  ;;  %v646_v50 = vadd.f32 %v1757_v40, %v645_v44  ;;  %v774_v51 = vadd.f32 %v1757_v40, %v773_v45  ;;  %v1878_v41 = vld [vmem:[%s1750_s8 + $0x48] sm:$0xff]  }
  0xf0   : > { %1109 = vst [vmem:[%s1767_s14 + $0x120] sm:$0xff] %v1045_v38  ;;  %v1504_v52 = vpop.f32.mrf.mxu0  ;;  %v1536_v53 = vpop.f32.mrf.mxu1  ;;  %v1314_v26 = vunpack.c.l.bf16 %v1854_v14  ;;  %v1315_v45 = vunpack.c.h.bf16 %v1854_v14  ;;  %v1917_v14 = vld [vmem:[%s1750_s8 + $0xd8] sm:$0xff]  }
  0xf1   : > { %1080 = vst [vmem:[%s1767_s14 + $0x38] sm:$0xff] %v1016_v48  ;;  %1112 = vst [vmem:[%s1767_s14 + $0x138] sm:$0xff] %v1048_v49  ;;  %v1014_v56 = vadd.f32 %v1299_v35, %v646_v50  ;;  %v1046_v57 = vadd.f32 %v1363_v36, %v774_v51  ;;  %v667_v58 = vadd.f32 %v1504_v52, %v1757_v40  ;;  %v1383_v35 = vunpack.c.h.bf16 %v1845_v5  ;;  %v1890_v51 = vld [vmem:[%s1750_s8 + $0x40] sm:$0xff]  }
  0xf2   : > { %v795_v59 = vadd.f32 %v1536_v53, %v1757_v40  ;;  %v658_v60 = vpop.f32.mrf.mxu0  ;;  %v786_v61 = vpop.f32.mrf.mxu1  ;;  %v1893_v52 = vld [vmem:[%s1750_s8 + $0xc0] sm:$0xff]  }
  0xf3   : > { %1078 = vst [vmem:[%s1767_s14 + $0x28] sm:$0xff] %v1014_v56  ;;  %1110 = vst [vmem:[%s1767_s14 + $0x128] sm:$0xff] %v1046_v57  ;;  %v1019_v0 = vadd.f32 %v1310_v46, %v667_v58  ;;  %v659_v2 = vadd.f32 %v1757_v40, %v658_v60  ;;  %v787_v3 = vadd.f32 %v1757_v40, %v786_v61  ;;  %v1379_v46 = vunpack.c.h.bf16 %v1857_v15 }
  0xf4   : > { %v1051_v1 = vadd.f32 %v1374_v47, %v795_v59  ;;  %v1505_v6 = vpop.f32.mrf.mxu0  ;;  %v1537_v7 = vpop.f32.mrf.mxu1  ;;  %v1390_v56 = vunpack.c.l.bf16 %v1881_v42 }
  0xf5   : > { %1083 = vst [vmem:[%s1767_s14 + $0x50] sm:$0xff] %v1019_v0  ;;  %v1017_v10 = vadd.f32 %v1306_v54, %v659_v2  ;;  %v1049_v11 = vadd.f32 %v1370_v55, %v787_v3  ;;  %v670_v12 = vadd.f32 %v1505_v6, %v1757_v40  ;;  %v798_v13 = vadd.f32 %v1537_v7, %v1757_v40 }
  0xf6   : > { %1115 = vst [vmem:[%s1767_s14 + $0x150] sm:$0xff] %v1051_v1  ;;  %v661_v16 = vpop.f32.mrf.mxu0  ;;  %v789_v17 = vpop.f32.mrf.mxu1  ;;  %v1326_v55 = vunpack.c.l.bf16 %v1878_v41  ;;  %v1386_v0 = vunpack.c.l.bf16 %v1893_v52  ;;  %v1327_v7 = vunpack.c.h.bf16 %v1878_v41 }
  0xf7   : > { %1081 = vst [vmem:[%s1767_s14 + $0x40] sm:$0xff] %v1017_v10  ;;  %1113 = vst [vmem:[%s1767_s14 + $0x140] sm:$0xff] %v1049_v11  ;;  %v1020_v20 = vadd.f32 %v1311_v62, %v670_v12  ;;  %v1052_v21 = vadd.f32 %v1375_v63, %v798_v13  ;;  %v662_v22 = vadd.f32 %v1757_v40, %v661_v16  ;;  %v1322_v63 = vunpack.c.l.bf16 %v1890_v51  ;;  %v1914_v13 = vld [vmem:[%s1750_s8 + $0x58] sm:$0xff]  }
  0xf8   : > { %v790_v23 = vadd.f32 %v1757_v40, %v789_v17  ;;  %v1508_v24 = vpop.f32.mrf.mxu0  ;;  %v1540_v25 = vpop.f32.mrf.mxu1  ;;  %v1323_v17 = vunpack.c.h.bf16 %v1890_v51  ;;  %v1953_v51 = vld [vmem:[%s1750_s8 + $0xe8] sm:$0xff]  }
  0xf9   : > { %1084 = vst [vmem:[%s1767_s14 + $0x58] sm:$0xff] %v1020_v20  ;;  %1116 = vst [vmem:[%s1767_s14 + $0x158] sm:$0xff] %v1052_v21  ;;  %v1018_v28 = vadd.f32 %v1307_v8, %v662_v22  ;;  %v683_v30 = vadd.f32 %v1508_v24, %v1757_v40  ;;  %v811_v31 = vadd.f32 %v1540_v25, %v1757_v40  ;;  %v1391_v8 = vunpack.c.h.bf16 %v1881_v42  ;;  %v1929_v24 = vld [vmem:[%s1750_s8 + $0xd0] sm:$0xff]  }
  0xfa   : > { %v1050_v29 = vadd.f32 %v1371_v9, %v790_v23  ;;  %v674_v32 = vpop.f32.mrf.mxu0  ;;  %v802_v33 = vpop.f32.mrf.mxu1  ;;  %v1926_v23 = vld [vmem:[%s1750_s8 + $0x50] sm:$0xff]  }
  0xfb   : > { %1082 = vst [vmem:[%s1767_s14 + $0x48] sm:$0xff] %v1018_v28  ;;  %v1023_v36 = vadd.f32 %v1318_v18, %v683_v30  ;;  %v1055_v37 = vadd.f32 %v1382_v19, %v811_v31  ;;  %v675_v38 = vadd.f32 %v1757_v40, %v674_v32  ;;  %v803_v39 = vadd.f32 %v1757_v40, %v802_v33 }
  0xfc   : > { %1114 = vst [vmem:[%s1767_s14 + $0x148] sm:$0xff] %v1050_v29  ;;  %v1509_v43 = vpop.f32.mrf.mxu0  ;;  %v1541_v44 = vpop.f32.mrf.mxu1  ;;  %v1387_v18 = vunpack.c.h.bf16 %v1893_v52  ;;  %v1398_v28 = vunpack.c.l.bf16 %v1917_v14 }
  0xfd   : > { %1087 = vst [vmem:[%s1767_s14 + $0x70] sm:$0xff] %v1023_v36  ;;  %1119 = vst [vmem:[%s1767_s14 + $0x170] sm:$0xff] %v1055_v37  ;;  %v1021_v47 = vadd.f32 %v1314_v26, %v675_v38  ;;  %v1053_v48 = vadd.f32 %v1378_v27, %v803_v39  ;;  %v686_v49 = vadd.f32 %v1509_v43, %v1757_v40  ;;  %v1334_v27 = vunpack.c.l.bf16 %v1914_v13 }
  0xfe   : > { %v814_v50 = vadd.f32 %v1541_v44, %v1757_v40  ;;  %v677_v53 = vpop.f32.mrf.mxu0  ;;  %v805_v54 = vpop.f32.mrf.mxu1  ;;  %v1394_v36 = vunpack.c.l.bf16 %v1929_v24  ;;  %v1335_v44 = vunpack.c.h.bf16 %v1914_v13 }
  0xff   : > { %1085 = vst [vmem:[%s1767_s14 + $0x60] sm:$0xff] %v1021_v47  ;;  %1117 = vst [vmem:[%s1767_s14 + $0x160] sm:$0xff] %v1053_v48  ;;  %v1024_v57 = vadd.f32 %v1319_v34, %v686_v49  ;;  %v678_v59 = vadd.f32 %v1757_v40, %v677_v53  ;;  %v806_v60 = vadd.f32 %v1757_v40, %v805_v54  ;;  %v1331_v54 = vunpack.c.h.bf16 %v1926_v23 }
 0x100   : > { %v1056_v58 = vadd.f32 %v1383_v35, %v814_v50  ;;  %v1512_v61 = vpop.f32.mrf.mxu0  ;;  %v1544_v62 = vpop.f32.mrf.mxu1  ;;  %v1330_v35 = vunpack.c.l.bf16 %v1926_v23  ;;  %v1950_v50 = vld [vmem:[%s1750_s8 + $0x68] sm:$0xff]   ;;  %v1446_v23 = vld [vmem:[%s1750_s8 + $0xf8] sm:$0xff]  }
 0x101   : > { %1088 = vst [vmem:[%s1767_s14 + $0x78] sm:$0xff] %v1024_v57  ;;  %v1022_v1 = vadd.f32 %v1315_v45, %v678_v59  ;;  %v1054_v2 = vadd.f32 %v1379_v46, %v806_v60  ;;  %v699_v3 = vadd.f32 %v1512_v61, %v1757_v40  ;;  %v827_v4 = vadd.f32 %v1544_v62, %v1757_v40  ;;  %v1962_v60 = vld [vmem:[%s1750_s8 + $0x60] sm:$0xff]  }
 0x102   : > { %1120 = vst [vmem:[%s1767_s14 + $0x178] sm:$0xff] %v1056_v58  ;;  %v690_v5 = vpop.f32.mrf.mxu0  ;;  %v818_v6 = vpop.f32.mrf.mxu1  ;;  %v1399_v45 = vunpack.c.h.bf16 %v1917_v14  ;;  %v1965_v61 = vld [vmem:[%s1750_s8 + $0xe0] sm:$0xff]  }
 0x103   : > { %1086 = vst [vmem:[%s1767_s14 + $0x68] sm:$0xff] %v1022_v1  ;;  %1118 = vst [vmem:[%s1767_s14 + $0x168] sm:$0xff] %v1054_v2  ;;  %v1027_v9 = vadd.f32 %v1326_v55, %v699_v3  ;;  %v1059_v10 = vadd.f32 %v1390_v56, %v827_v4  ;;  %v691_v11 = vadd.f32 %v1757_v40, %v690_v5  ;;  %v1395_v55 = vunpack.c.h.bf16 %v1929_v24 }
 0x104   : > { %v819_v12 = vadd.f32 %v1757_v40, %v818_v6  ;;  %v1513_v15 = vpop.f32.mrf.mxu0  ;;  %v1545_v16 = vpop.f32.mrf.mxu1  ;;  %v1406_v1 = vunpack.c.l.bf16 %v1953_v51 }
 0x105   : > { %1091 = vst [vmem:[%s1767_s14 + $0x90] sm:$0xff] %v1027_v9  ;;  %1123 = vst [vmem:[%s1767_s14 + $0x190] sm:$0xff] %v1059_v10  ;;  %v1025_v19 = vadd.f32 %v1322_v63, %v691_v11  ;;  %v702_v21 = vadd.f32 %v1513_v15, %v1757_v40  ;;  %v830_v22 = vadd.f32 %v1545_v16, %v1757_v40  ;;  %v1402_v9 = vunpack.c.l.bf16 %v1965_v61 }
 0x106   : > { %v1057_v20 = vadd.f32 %v1386_v0, %v819_v12  ;;  %v693_v25 = vpop.f32.mrf.mxu0  ;;  %v821_v26 = vpop.f32.mrf.mxu1  ;;  %v1342_v0 = vunpack.c.l.bf16 %v1950_v50  ;;  %v1343_v16 = vunpack.c.h.bf16 %v1950_v50 }
 0x107   : > { %1089 = vst [vmem:[%s1767_s14 + $0x80] sm:$0xff] %v1025_v19  ;;  %v1028_v29 = vadd.f32 %v1327_v7, %v702_v21  ;;  %v1060_v30 = vadd.f32 %v1391_v8, %v830_v22  ;;  %v694_v31 = vadd.f32 %v1757_v40, %v693_v25  ;;  %v822_v32 = vadd.f32 %v1757_v40, %v821_v26  ;;  %v1430_v22 = vld [vmem:[%s1750_s8 + $0x78] sm:$0xff]  }
 0x108   : > { %1121 = vst [vmem:[%s1767_s14 + $0x180] sm:$0xff] %v1057_v20  ;;  %v1516_v33 = vpop.f32.mrf.mxu0  ;;  %v1548_v34 = vpop.f32.mrf.mxu1  ;;  %v1338_v8 = vunpack.c.l.bf16 %v1962_v60  ;;  %v1339_v26 = vunpack.c.h.bf16 %v1962_v60 }
 0x109   : > { %1092 = vst [vmem:[%s1767_s14 + $0x98] sm:$0xff] %v1028_v29  ;;  %1124 = vst [vmem:[%s1767_s14 + $0x198] sm:$0xff] %v1060_v30  ;;  %v1026_v37 = vadd.f32 %v1323_v17, %v694_v31  ;;  %v1058_v38 = vadd.f32 %v1387_v18, %v822_v32  ;;  %v715_v39 = vadd.f32 %v1516_v33, %v1757_v40  ;;  %v1407_v17 = vunpack.c.h.bf16 %v1953_v51  ;;  %v1429_v32 = vld [vmem:[%s1750_s8 + $0x70] sm:$0xff]  }
 0x10a   : > { %v843_v41 = vadd.f32 %v1548_v34, %v1757_v40  ;;  %v706_v42 = vpop.f32.mrf.mxu0  ;;  %v834_v43 = vpop.f32.mrf.mxu1  ;;  %v1445_v33 = vld [vmem:[%s1750_s8 + $0xf0] sm:$0xff]  }
 0x10b   : > { %1090 = vst [vmem:[%s1767_s14 + $0x88] sm:$0xff] %v1026_v37  ;;  %1122 = vst [vmem:[%s1767_s14 + $0x188] sm:$0xff] %v1058_v38  ;;  %v1031_v46 = vadd.f32 %v1334_v27, %v715_v39  ;;  %v707_v48 = vadd.f32 %v1757_v40, %v706_v42  ;;  %v835_v49 = vadd.f32 %v1757_v40, %v834_v43  ;;  %v1403_v27 = vunpack.c.h.bf16 %v1965_v61 }
 0x10c   : > { %v1063_v47 = vadd.f32 %v1398_v28, %v843_v41  ;;  %v1517_v52 = vpop.f32.mrf.mxu0  ;;  %v1549_v53 = vpop.f32.mrf.mxu1  ;;  %v1414_v37 = vunpack.c.l.bf16 %v1446_v23  ;;  %v1347_v61 = vunpack.c.h.bf16 %v1429_v32 }
 0x10d   : > { %1095 = vst [vmem:[%s1767_s14 + $0xb0] sm:$0xff] %v1031_v46  ;;  %v1029_v56 = vadd.f32 %v1330_v35, %v707_v48  ;;  %v1061_v57 = vadd.f32 %v1394_v36, %v835_v49  ;;  %v718_v58 = vadd.f32 %v1517_v52, %v1757_v40  ;;  %v846_v59 = vadd.f32 %v1549_v53, %v1757_v40 }
 0x10e   : > { %1127 = vst [vmem:[%s1767_s14 + $0x1b0] sm:$0xff] %v1063_v47  ;;  %v709_v62 = vpop.f32.mrf.mxu0  ;;  %v837_v63 = vpop.f32.mrf.mxu1  ;;  %v1350_v36 = vunpack.c.l.bf16 %v1430_v22  ;;  %v1410_v46 = vunpack.c.l.bf16 %v1445_v33  ;;  %v1351_v53 = vunpack.c.h.bf16 %v1430_v22 }
 0x10f   : > { %1093 = vst [vmem:[%s1767_s14 + $0xa0] sm:$0xff] %v1029_v56  ;;  %1125 = vst [vmem:[%s1767_s14 + $0x1a0] sm:$0xff] %v1061_v57  ;;  %v1032_v2 = vadd.f32 %v1335_v44, %v718_v58  ;;  %v1064_v3 = vadd.f32 %v1399_v45, %v846_v59  ;;  %v710_v4 = vadd.f32 %v1757_v40, %v709_v62  ;;  %v1346_v45 = vunpack.c.l.bf16 %v1429_v32 }
 0x110   : > { %v838_v5 = vadd.f32 %v1757_v40, %v837_v63  ;;  %v1520_v6 = vpop.f32.mrf.mxu0  ;;  %v1552_v7 = vpop.f32.mrf.mxu1  ;;  %v1411_v62 = vunpack.c.h.bf16 %v1445_v33 }
 0x111   : > { %1096 = vst [vmem:[%s1767_s14 + $0xb8] sm:$0xff] %v1032_v2  ;;  %1128 = vst [vmem:[%s1767_s14 + $0x1b8] sm:$0xff] %v1064_v3  ;;  %v1030_v10 = vadd.f32 %v1331_v54, %v710_v4  ;;  %v731_v12 = vadd.f32 %v1520_v6, %v1757_v40  ;;  %v859_v13 = vadd.f32 %v1552_v7, %v1757_v40  ;;  %v1415_v54 = vunpack.c.h.bf16 %v1446_v23 }
 0x112   : > { %v1062_v11 = vadd.f32 %v1395_v55, %v838_v5  ;;  %v722_v14 = vpop.f32.mrf.mxu0  ;;  %v850_v15 = vpop.f32.mrf.mxu1 }
 0x113   : > { %1094 = vst [vmem:[%s1767_s14 + $0xa8] sm:$0xff] %v1030_v10  ;;  %v1035_v18 = vadd.f32 %v1342_v0, %v731_v12  ;;  %v1067_v19 = vadd.f32 %v1406_v1, %v859_v13  ;;  %v723_v20 = vadd.f32 %v1757_v40, %v722_v14  ;;  %v851_v21 = vadd.f32 %v1757_v40, %v850_v15 }
 0x114   : > { %1126 = vst [vmem:[%s1767_s14 + $0x1a8] sm:$0xff] %v1062_v11  ;;  %v1521_v24 = vpop.f32.mrf.mxu0  ;;  %v1553_v25 = vpop.f32.mrf.mxu1 }
 0x115   : > { %1099 = vst [vmem:[%s1767_s14 + $0xd0] sm:$0xff] %v1035_v18  ;;  %1131 = vst [vmem:[%s1767_s14 + $0x1d0] sm:$0xff] %v1067_v19  ;;  %v1033_v28 = vadd.f32 %v1338_v8, %v723_v20  ;;  %v1065_v29 = vadd.f32 %v1402_v9, %v851_v21  ;;  %v734_v30 = vadd.f32 %v1521_v24, %v1757_v40 }
 0x116   : > { %v862_v31 = vadd.f32 %v1553_v25, %v1757_v40  ;;  %v725_v34 = vpop.f32.mrf.mxu0  ;;  %v853_v35 = vpop.f32.mrf.mxu1 }
 0x117   : > { %1097 = vst [vmem:[%s1767_s14 + $0xc0] sm:$0xff] %v1033_v28  ;;  %1129 = vst [vmem:[%s1767_s14 + $0x1c0] sm:$0xff] %v1065_v29  ;;  %v1036_v38 = vadd.f32 %v1343_v16, %v734_v30  ;;  %v726_v41 = vadd.f32 %v1757_v40, %v725_v34  ;;  %v854_v42 = vadd.f32 %v1757_v40, %v853_v35 }
 0x118   : > { %v1068_v39 = vadd.f32 %v1407_v17, %v862_v31  ;;  %v1524_v43 = vpop.f32.mrf.mxu0  ;;  %v1556_v44 = vpop.f32.mrf.mxu1 }
 0x119   : > { %1100 = vst [vmem:[%s1767_s14 + $0xd8] sm:$0xff] %v1036_v38  ;;  %v1034_v47 = vadd.f32 %v1339_v26, %v726_v41  ;;  %v1066_v48 = vadd.f32 %v1403_v27, %v854_v42  ;;  %v747_v49 = vadd.f32 %v1524_v43, %v1757_v40  ;;  %v875_v50 = vadd.f32 %v1556_v44, %v1757_v40 }
 0x11a   : > { %1132 = vst [vmem:[%s1767_s14 + $0x1d8] sm:$0xff] %v1068_v39  ;;  %v738_v51 = vpop.f32.mrf.mxu0  ;;  %v866_v52 = vpop.f32.mrf.mxu1 }
 0x11b   : > { %1098 = vst [vmem:[%s1767_s14 + $0xc8] sm:$0xff] %v1034_v47  ;;  %1130 = vst [vmem:[%s1767_s14 + $0x1c8] sm:$0xff] %v1066_v48  ;;  %v1039_v55 = vadd.f32 %v1350_v36, %v747_v49  ;;  %v1071_v56 = vadd.f32 %v1414_v37, %v875_v50  ;;  %v739_v57 = vadd.f32 %v1757_v40, %v738_v51 }
 0x11c   : > { %v867_v58 = vadd.f32 %v1757_v40, %v866_v52  ;;  %v1525_v59 = vpop.f32.mrf.mxu0  ;;  %v1557_v60 = vpop.f32.mrf.mxu1 }
 0x11d   : > { %1103 = vst [vmem:[%s1767_s14 + $0xf0] sm:$0xff] %v1039_v55  ;;  %1135 = vst [vmem:[%s1767_s14 + $0x1f0] sm:$0xff] %v1071_v56  ;;  %v1037_v63 = vadd.f32 %v1346_v45, %v739_v57  ;;  %v750_v1 = vadd.f32 %v1525_v59, %v1757_v40  ;;  %v878_v2 = vadd.f32 %v1557_v60, %v1757_v40 }
 0x11e   : > { %v1069_v0 = vadd.f32 %v1410_v46, %v867_v58  ;;  %v741_v3 = vpop.f32.mrf.mxu0  ;;  %v869_v4 = vpop.f32.mrf.mxu1 }
 0x11f   : > { %1101 = vst [vmem:[%s1767_s14 + $0xe0] sm:$0xff] %v1037_v63  ;;  %v1040_v5 = vadd.f32 %v1351_v53, %v750_v1  ;;  %v1072_v6 = vadd.f32 %v1415_v54, %v878_v2  ;;  %v742_v7 = vadd.f32 %v1757_v40, %v741_v3  ;;  %v870_v8 = vadd.f32 %v1757_v40, %v869_v4 }
 0x120   : > { %1133 = vst [vmem:[%s1767_s14 + $0x1e0] sm:$0xff] %v1069_v0 }
 0x121   : > { %1104 = vst [vmem:[%s1767_s14 + $0xf8] sm:$0xff] %v1040_v5  ;;  %1136 = vst [vmem:[%s1767_s14 + $0x1f8] sm:$0xff] %v1072_v6  ;;  %v1038_v9 = vadd.f32 %v1347_v61, %v742_v7  ;;  %v1070_v10 = vadd.f32 %v1411_v62, %v870_v8 }
 0x123   : > { %1102 = vst [vmem:[%s1767_s14 + $0xe8] sm:$0xff] %v1038_v9  ;;  %1134 = vst [vmem:[%s1767_s14 + $0x1e8] sm:$0xff] %v1070_v10 }
 0x124 PF: > { %s14_s15 = sadd.s32 1, %s1621_s15  }
 0x125   : > { %p11_p4 = scmp.ge.s32.totalorder %s14_s15, 4  }
 0x127   :  { %13 = sbr.rel (!%p11_p4) target bundleno = 1 (0x1), region = 69 }

// kernel: crunet_d_mon_nws_forward.54
= control target key start
LH: loop header
LB: loop body
LE: loop exit
PB: predicated region body
PF: predicated region fallthrough
CT: control target
= control target key end

     0   :  { %s574_s12 = smov 0   ;;  %s630_s0 = inlined_call_operand.vmem [shape: bf16[256,32], index: 0, kind: input, shape index: {}]   ;;  %s631_s1 = inlined_call_operand.vmem [shape: bf16[32,128], index: 1, kind: input, shape index: {}]   ;;  %s632_s2 = inlined_call_operand.vmem [shape: f32[1,128], index: 2, kind: input, shape index: {}]   ;;  %s633_s3 = inlined_call_operand.vmem [shape: f32[256,128], index: 3, kind: output, shape index: {}]  }
   0x1 LB: > { %s464_s13 = sadd.s32 4294967295, %s552_s12   ;;  %p468_p0 = scmp.ge.s32.totalorder %s552_s12, 1  ;;  %s552_s12 = sphi %s574_s12, %s13_s12  }
   0x2   : > { %p138_p1 = scmp.lt.s32.totalorder %s552_s12, 3 }
   0x4   : > { %p139_p2 = pnand %p468_p0, %p138_p1 }
   0x5   : > { %s469_s16 = sshll.u32 (!%p139_p2), %s464_s13, 4 }
   0x6   : > { %142 = sbr.rel (%p139_p2) target bundleno = 232 (0xe8), region = 32  ;;  %p163_p3 = scmp.lt.s32.totalorder (!%p139_p2), %s469_s16, 31 }
   0xb   : > { %v536_v0 = vld [vmem:[%s631_s1 + $0x8] sm:$0xff]   ;;  %v537_v1 = vld [vmem:[%s631_s1] sm:$0xff]   ;;  %s635_s16 = smov (!%p163_p3, %s469_s16), 31  ;;  %vm254_vm0 = vcmask 261120  }
   0xc   : > { %504 = vmatprep.subr.bf16.mxu0 %v536_v0  ;;  %524 = vmatprep.subr.bf16.mxu1 %v536_v0  ;;  %s470_s19 = sshll.u32 %s635_s16, 2  ;;  %v473_v10 = vld [vmem:[%s632_s2] ss:$0 sm:$0xff]  ;;  %s472_s25 = sshll.u32 %s635_s16, 3 }
   0xd   : > { %505 = vmatpush3.bf16.msra.mxu0 %v536_v0  ;;  %526 = vmatpush3.bf16.msra.mxu1 %v536_v0  ;;  %s166_s22 = scalar_lea.vmem %s630_s0, %s470_s19  ;;  %s609_s28 = scalar_lea.vmem %s633_s3, %s472_s25 }
   0xe   : > { %506 = vmatprep.subr.bf16.mxu0 %v537_v1  ;;  %525 = vmatprep.subr.bf16.mxu1 %v537_v1  ;;  %v538_v2 = vld [vmem:[%s166_s22] sm:$0xff]   ;;  %v540_v4 = vld [vmem:[%s166_s22 + $0x8] sm:$0xff]   ;;  %v542_v6 = vld [vmem:[%s166_s22 + $0x10] sm:$0xff]  }
   0xf   : > { %v539_v3 = vld [vmem:[%s166_s22 + $0x20] sm:$0xff]   ;;  %508 = vmatprep.mubr.msk.bf16.mxu0 %vm254_vm0, %v538_v2  ;;  %v541_v5 = vld [vmem:[%s166_s22 + $0x28] sm:$0xff]   ;;  %v543_v7 = vld [vmem:[%s166_s22 + $0x30] sm:$0xff]  }
  0x10   : > { %516 = vmatprep.mubr.msk.bf16.mxu1 %vm254_vm0, %v539_v3  ;;  %v544_v8 = vld [vmem:[%s166_s22 + $0x18] sm:$0xff]  }
  0x11   : > { %507 = vmatpush3.bf16.msra.mxu0 %v537_v1  ;;  %527 = vmatpush3.bf16.msra.mxu1 %v537_v1  ;;  %v545_v9 = vld [vmem:[%s166_s22 + $0x38] sm:$0xff]  }
  0x14   : > { %509 = vmatmul.mubr.msk.bf16.vlgmr.msra.gmra.mxu0 %vm254_vm0, %v540_v4  ;;  %517 = vmatmul.mubr.msk.bf16.vlgmr.msra.gmra.mxu1 %vm254_vm0, %v541_v5 }
  0x15   : > { %512 = vmatprep.mubr.msk.bf16.mxu0 %vm254_vm0, %v542_v6  ;;  %520 = vmatprep.mubr.msk.bf16.mxu1 %vm254_vm0, %v543_v7 }
  0x1c   : > { %513 = vmatmul.mubr.msk.bf16.gmra.mxu0 %vm254_vm0, %v544_v8  ;;  %521 = vmatmul.mubr.msk.bf16.gmra.mxu1 %vm254_vm0, %v545_v9 }
  0xd4   : > { %v510_v11 = vpop.f32.mrf.mxu0  ;;  %v518_v13 = vpop.f32.mrf.mxu1 }
  0xd5   : > { %v322_v12 = vadd.f32 %v510_v11, %v473_v10  ;;  %v354_v14 = vadd.f32 %v518_v13, %v473_v10 }
  0xd6   : > { %v313_v15 = vpop.f32.mrf.mxu0  ;;  %v345_v18 = vpop.f32.mrf.mxu1 }
  0xd7   : > { %v378_v16 = vmax.f32 %v322_v12, 0.0  ;;  %v314_v17 = vadd.f32 %v473_v10, %v313_v15  ;;  %v386_v19 = vmax.f32 %v354_v14, 0.0  ;;  %v346_v20 = vadd.f32 %v473_v10, %v345_v18 }
  0xd8   : > { %v511_v21 = vpop.f32.mrf.mxu0  ;;  %v519_v24 = vpop.f32.mrf.mxu1 }
  0xd9   : > { %394 = vst [vmem:[%s609_s28 + $0x10] sm:$0xff] %v378_v16  ;;  %v376_v22 = vmax.f32 %v314_v17, 0.0  ;;  %v325_v23 = vadd.f32 %v511_v21, %v473_v10  ;;  %402 = vst [vmem:[%s609_s28 + $0x50] sm:$0xff] %v386_v19  ;;  %v384_v25 = vmax.f32 %v346_v20, 0.0  ;;  %v357_v26 = vadd.f32 %v519_v24, %v473_v10 }
  0xda   : > { %v316_v27 = vpop.f32.mrf.mxu0  ;;  %v348_v30 = vpop.f32.mrf.mxu1 }
  0xdb   : > { %392 = vst [vmem:[%s609_s28] sm:$0xff] %v376_v22  ;;  %v379_v28 = vmax.f32 %v325_v23, 0.0  ;;  %v317_v29 = vadd.f32 %v473_v10, %v316_v27  ;;  %400 = vst [vmem:[%s609_s28 + $0x40] sm:$0xff] %v384_v25  ;;  %v387_v31 = vmax.f32 %v357_v26, 0.0  ;;  %v349_v32 = vadd.f32 %v473_v10, %v348_v30 }
  0xdc   : > { %v514_v33 = vpop.f32.mrf.mxu0  ;;  %v522_v36 = vpop.f32.mrf.mxu1 }
  0xdd   : > { %395 = vst [vmem:[%s609_s28 + $0x18] sm:$0xff] %v379_v28  ;;  %v377_v34 = vmax.f32 %v317_v29, 0.0  ;;  %v338_v35 = vadd.f32 %v514_v33, %v473_v10  ;;  %403 = vst [vmem:[%s609_s28 + $0x58] sm:$0xff] %v387_v31  ;;  %v385_v37 = vmax.f32 %v349_v32, 0.0  ;;  %v370_v38 = vadd.f32 %v522_v36, %v473_v10 }
  0xde   : > { %v329_v39 = vpop.f32.mrf.mxu0  ;;  %v361_v42 = vpop.f32.mrf.mxu1 }
  0xdf   : > { %393 = vst [vmem:[%s609_s28 + $0x8] sm:$0xff] %v377_v34  ;;  %v382_v40 = vmax.f32 %v338_v35, 0.0  ;;  %v330_v41 = vadd.f32 %v473_v10, %v329_v39  ;;  %401 = vst [vmem:[%s609_s28 + $0x48] sm:$0xff] %v385_v37  ;;  %v390_v43 = vmax.f32 %v370_v38, 0.0  ;;  %v362_v44 = vadd.f32 %v473_v10, %v361_v42 }
  0xe0   : > { %v515_v45 = vpop.f32.mrf.mxu0  ;;  %v523_v48 = vpop.f32.mrf.mxu1 }
  0xe1   : > { %398 = vst [vmem:[%s609_s28 + $0x30] sm:$0xff] %v382_v40  ;;  %v380_v46 = vmax.f32 %v330_v41, 0.0  ;;  %v341_v47 = vadd.f32 %v515_v45, %v473_v10  ;;  %406 = vst [vmem:[%s609_s28 + $0x70] sm:$0xff] %v390_v43  ;;  %v388_v49 = vmax.f32 %v362_v44, 0.0  ;;  %v373_v50 = vadd.f32 %v523_v48, %v473_v10 }
  0xe2   : > { %v332_v51 = vpop.f32.mrf.mxu0  ;;  %v364_v54 = vpop.f32.mrf.mxu1 }
  0xe3   : > { %396 = vst [vmem:[%s609_s28 + $0x20] sm:$0xff] %v380_v46  ;;  %v383_v52 = vmax.f32 %v341_v47, 0.0  ;;  %v333_v53 = vadd.f32 %v473_v10, %v332_v51  ;;  %404 = vst [vmem:[%s609_s28 + $0x60] sm:$0xff] %v388_v49  ;;  %v391_v55 = vmax.f32 %v373_v50, 0.0  ;;  %v365_v56 = vadd.f32 %v473_v10, %v364_v54 }
  0xe5   : > { %399 = vst [vmem:[%s609_s28 + $0x38] sm:$0xff] %v383_v52  ;;  %v381_v57 = vmax.f32 %v333_v53, 0.0  ;;  %407 = vst [vmem:[%s609_s28 + $0x78] sm:$0xff] %v391_v55  ;;  %v389_v58 = vmax.f32 %v365_v56, 0.0 }
  0xe7   : > { %397 = vst [vmem:[%s609_s28 + $0x28] sm:$0xff] %v381_v57  ;;  %405 = vst [vmem:[%s609_s28 + $0x68] sm:$0xff] %v389_v58 }
  0xe8 PF: > { %s13_s12 = sadd.s32 1, %s552_s12  }
  0xe9   : > { %p10_p4 = scmp.ge.s32.totalorder %s13_s12, 4  }
  0xeb   :  { %12 = sbr.rel (!%p10_p4) target bundleno = 1 (0x1), region = 62 }

// kernel: crunet_d_mon_nws_forward.55
= control target key start
LH: loop header
LB: loop body
LE: loop exit
PB: predicated region body
PF: predicated region fallthrough
CT: control target
= control target key end

     0   :  { %s560_s12 = smov 0   ;;  %s612_s0 = inlined_call_operand.vmem [shape: bf16[256,24], index: 0, kind: input, shape index: {}]   ;;  %s613_s1 = inlined_call_operand.vmem [shape: bf16[24,128], index: 1, kind: input, shape index: {}]   ;;  %s614_s2 = inlined_call_operand.vmem [shape: f32[1,128], index: 2, kind: input, shape index: {}]   ;;  %s615_s3 = inlined_call_operand.vmem [shape: f32[256,128], index: 3, kind: output, shape index: {}]  }
   0x1 LB: > { %s448_s13 = sadd.s32 4294967295, %s538_s12   ;;  %p452_p0 = scmp.ge.s32.totalorder %s538_s12, 1  ;;  %s538_s12 = sphi %s560_s12, %s13_s12  }
   0x2   : > { %p138_p1 = scmp.lt.s32.totalorder %s538_s12, 3 }
   0x4   : > { %p139_p2 = pnand %p452_p0, %p138_p1 }
   0x5   : > { %s453_s18 = sshll.u32 (!%p139_p2), %s448_s13, 4 }
   0x6   : > { %142 = sbr.rel (%p139_p2) target bundleno = 230 (0xe6), region = 32  ;;  %p163_p3 = scmp.lt.s32.totalorder (!%p139_p2), %s453_s18, 31 }
   0xb   : > { %v522_v0 = vld [vmem:[%s613_s1 + $0x8] ss:$0 sps:$4 sm:$0xff]   ;;  %vm275_vm0 = vcmask 1043456   ;;  %v523_v1 = vld [vmem:[%s613_s1] sm:$0xff]   ;;  %s617_s18 = smov (!%p163_p3, %s453_s18), 31  ;;  %vm250_vm1 = vcmask 195584  }
   0xc   : > { %512 = vmatprep.subr.msk.bf16.mxu0 %vm275_vm0, %v522_v0  ;;  %513 = vmatprep.subr.msk.bf16.mxu1 %vm275_vm0, %v522_v0  ;;  %v277_v2 = vsel %vm275_vm0, %v522_v0, 0  ;;  %s454_s19 = sshll.u32 %s617_s18, 2  ;;  %s456_s23 = sshll.u32 %s617_s18, 3  ;;  %v457_v11 = vld [vmem:[%s614_s2] ss:$0 sm:$0xff] }
   0xd   : > { %489 = vmatpush3.bf16.msra.mxu0 %v277_v2  ;;  %510 = vmatpush3.bf16.msra.mxu1 %v277_v2  ;;  %s166_s22 = scalar_lea.vmem %s612_s0, %s454_s19  ;;  %s591_s28 = scalar_lea.vmem %s615_s3, %s456_s23 }
   0xe   : > { %490 = vmatprep.subr.bf16.mxu0 %v523_v1  ;;  %509 = vmatprep.subr.bf16.mxu1 %v523_v1  ;;  %v524_v3 = vld [vmem:[%s166_s22] sm:$0xff]   ;;  %v526_v5 = vld [vmem:[%s166_s22 + $0x8] sm:$0xff]   ;;  %v528_v7 = vld [vmem:[%s166_s22 + $0x10] sm:$0xff]  }
   0xf   : > { %v525_v4 = vld [vmem:[%s166_s22 + $0x20] sm:$0xff]   ;;  %492 = vmatprep.mubr.msk.bf16.mxu0 %vm250_vm1, %v524_v3  ;;  %v527_v6 = vld [vmem:[%s166_s22 + $0x28] sm:$0xff]   ;;  %v529_v8 = vld [vmem:[%s166_s22 + $0x30] sm:$0xff]  }
  0x10   : > { %500 = vmatprep.mubr.msk.bf16.mxu1 %vm250_vm1, %v525_v4  ;;  %v530_v9 = vld [vmem:[%s166_s22 + $0x18] sm:$0xff]  }
  0x11   : > { %491 = vmatpush3.bf16.msra.mxu0 %v523_v1  ;;  %511 = vmatpush3.bf16.msra.mxu1 %v523_v1  ;;  %v531_v10 = vld [vmem:[%s166_s22 + $0x38] sm:$0xff]  }
  0x14   : > { %493 = vmatmul.mubr.msk.bf16.vlgmr.msra.gmra.mxu0 %vm250_vm1, %v526_v5  ;;  %501 = vmatmul.mubr.msk.bf16.vlgmr.msra.gmra.mxu1 %vm250_vm1, %v527_v6 }
  0x15   : > { %496 = vmatprep.mubr.msk.bf16.mxu0 %vm250_vm1, %v528_v7  ;;  %504 = vmatprep.mubr.msk.bf16.mxu1 %vm250_vm1, %v529_v8 }
  0x1c   : > { %497 = vmatmul.mubr.msk.bf16.gmra.mxu0 %vm250_vm1, %v530_v9  ;;  %505 = vmatmul.mubr.msk.bf16.gmra.mxu1 %vm250_vm1, %v531_v10 }
  0xd4   : > { %v494_v12 = vpop.f32.mrf.mxu0  ;;  %v502_v14 = vpop.f32.mrf.mxu1 }
  0xd5   : > { %v322_v13 = vadd.f32 %v494_v12, %v457_v11  ;;  %v354_v15 = vadd.f32 %v502_v14, %v457_v11 }
  0xd6   : > { %v313_v16 = vpop.f32.mrf.mxu0  ;;  %v345_v18 = vpop.f32.mrf.mxu1 }
  0xd7   : > { %378 = vst [vmem:[%s591_s28 + $0x10] sm:$0xff] %v322_v13  ;;  %v314_v17 = vadd.f32 %v457_v11, %v313_v16  ;;  %386 = vst [vmem:[%s591_s28 + $0x50] sm:$0xff] %v354_v15  ;;  %v346_v19 = vadd.f32 %v457_v11, %v345_v18 }
  0xd8   : > { %v495_v20 = vpop.f32.mrf.mxu0  ;;  %v503_v22 = vpop.f32.mrf.mxu1 }
  0xd9   : > { %376 = vst [vmem:[%s591_s28] sm:$0xff] %v314_v17  ;;  %v325_v21 = vadd.f32 %v495_v20, %v457_v11  ;;  %384 = vst [vmem:[%s591_s28 + $0x40] sm:$0xff] %v346_v19  ;;  %v357_v23 = vadd.f32 %v503_v22, %v457_v11 }
  0xda   : > { %v316_v24 = vpop.f32.mrf.mxu0  ;;  %v348_v26 = vpop.f32.mrf.mxu1 }
  0xdb   : > { %379 = vst [vmem:[%s591_s28 + $0x18] sm:$0xff] %v325_v21  ;;  %v317_v25 = vadd.f32 %v457_v11, %v316_v24  ;;  %387 = vst [vmem:[%s591_s28 + $0x58] sm:$0xff] %v357_v23  ;;  %v349_v27 = vadd.f32 %v457_v11, %v348_v26 }
  0xdc   : > { %v498_v28 = vpop.f32.mrf.mxu0  ;;  %v506_v30 = vpop.f32.mrf.mxu1 }
  0xdd   : > { %377 = vst [vmem:[%s591_s28 + $0x8] sm:$0xff] %v317_v25  ;;  %v338_v29 = vadd.f32 %v498_v28, %v457_v11  ;;  %385 = vst [vmem:[%s591_s28 + $0x48] sm:$0xff] %v349_v27  ;;  %v370_v31 = vadd.f32 %v506_v30, %v457_v11 }
  0xde   : > { %v329_v32 = vpop.f32.mrf.mxu0  ;;  %v361_v34 = vpop.f32.mrf.mxu1 }
  0xdf   : > { %382 = vst [vmem:[%s591_s28 + $0x30] sm:$0xff] %v338_v29  ;;  %v330_v33 = vadd.f32 %v457_v11, %v329_v32  ;;  %390 = vst [vmem:[%s591_s28 + $0x70] sm:$0xff] %v370_v31  ;;  %v362_v35 = vadd.f32 %v457_v11, %v361_v34 }
  0xe0   : > { %v499_v36 = vpop.f32.mrf.mxu0  ;;  %v507_v38 = vpop.f32.mrf.mxu1 }
  0xe1   : > { %380 = vst [vmem:[%s591_s28 + $0x20] sm:$0xff] %v330_v33  ;;  %v341_v37 = vadd.f32 %v499_v36, %v457_v11  ;;  %388 = vst [vmem:[%s591_s28 + $0x60] sm:$0xff] %v362_v35  ;;  %v373_v39 = vadd.f32 %v507_v38, %v457_v11 }
  0xe2   : > { %v332_v40 = vpop.f32.mrf.mxu0  ;;  %v364_v42 = vpop.f32.mrf.mxu1 }
  0xe3   : > { %383 = vst [vmem:[%s591_s28 + $0x38] sm:$0xff] %v341_v37  ;;  %v333_v41 = vadd.f32 %v457_v11, %v332_v40  ;;  %391 = vst [vmem:[%s591_s28 + $0x78] sm:$0xff] %v373_v39  ;;  %v365_v43 = vadd.f32 %v457_v11, %v364_v42 }
  0xe5   : > { %381 = vst [vmem:[%s591_s28 + $0x28] sm:$0xff] %v333_v41  ;;  %389 = vst [vmem:[%s591_s28 + $0x68] sm:$0xff] %v365_v43 }
  0xe6 PF: > { %s13_s12 = sadd.s32 1, %s538_s12  }
  0xe7   : > { %p10_p4 = scmp.ge.s32.totalorder %s13_s12, 4  }
  0xe9   :  { %12 = sbr.rel (!%p10_p4) target bundleno = 1 (0x1), region = 62 }

// kernel: crunet_d_mon_nws_forward.56
= control target key start
LH: loop header
LB: loop body
LE: loop exit
PB: predicated region body
PF: predicated region fallthrough
CT: control target
= control target key end

     0   :  { %s675_s12 = smov 0   ;;  %s773_s0 = inlined_call_operand.vmem [shape: bf16[256,144], index: 0, kind: input, shape index: {}]   ;;  %s774_s1 = inlined_call_operand.vmem [shape: bf16[144,128], index: 1, kind: input, shape index: {}]   ;;  %s775_s2 = inlined_call_operand.vmem [shape: f32[1,128], index: 2, kind: input, shape index: {}]   ;;  %s776_s3 = inlined_call_operand.vmem [shape: f32[256,128], index: 3, kind: output, shape index: {}]  }
   0x1 LB: > { %s539_s13 = sadd.s32 4294967295, %s652_s12   ;;  %p543_p0 = scmp.ge.s32.totalorder %s652_s12, 1  ;;  %s652_s12 = sphi %s675_s12, %s13_s12  }
   0x2   : > { %p139_p1 = scmp.lt.s32.totalorder %s652_s12, 3 }
   0x4   : > { %p140_p2 = pnand %p543_p0, %p139_p1 }
   0x5   : > { %s544_s16 = sshll.u32 (!%p140_p2), %s539_s13, 4 }
   0x6   : > { %143 = sbr.rel (%p140_p2) target bundleno = 272 (0x110), region = 32  ;;  %p165_p3 = scmp.lt.s32.totalorder (!%p140_p2), %s544_s16, 31 }
   0xb   : > { %v613_v0 = vld [vmem:[%s774_s1 + $0x38] sm:$0xff]   ;;  %v654_v1 = vmov 0   ;;  %v614_v2 = vld [vmem:[%s774_s1 + $0x30] sm:$0xff]   ;;  %s778_s16 = smov (!%p165_p3, %s544_s16), 31  ;;  %v615_v3 = vld [vmem:[%s774_s1 + $0x28] sm:$0xff]   ;;  %vm345_vm0 = vcmask 130048  }
   0xc   : > { %370 = vmatprep.subr.bf16.mxu0 %v654_v1  ;;  %586 = vmatprep.subr.bf16.mxu1 %v654_v1  ;;  %s585_s21 = sshll.u32 %s778_s16, 3  ;;  %v616_v4 = vld [vmem:[%s774_s1 + $0x20] sm:$0xff]   ;;  %v617_v7 = vld [vmem:[%s774_s1 + $0x18] sm:$0xff]   ;;  %v618_v8 = vld [vmem:[%s774_s1 + $0x10] sm:$0xff]  }
   0xd   : > { %371 = vmatpush1.bf16.msra.mxu0 %v613_v0  ;;  %595 = vmatpush1.bf16.msra.mxu1 %v613_v0  ;;  %s700_s24 = scalar_lea.vmem %s773_s0, %s585_s21  ;;  %v619_v9 = vld [vmem:[%s774_s1 + $0x8] sm:$0xff]   ;;  %v620_v10 = vld [vmem:[%s774_s1] sm:$0xff]   ;;  %s752_s15 = scalar_lea.vmem %s776_s3, %s585_s21 }
   0xe   : > { %372 = vmatprep.subr.bf16.mxu0 %v654_v1  ;;  %587 = vmatprep.subr.bf16.mxu1 %v654_v1  ;;  %v624_v5 = vld [vmem:[%s700_s24 + $0x4] ss:$8 sps:$4 sm:$0xff]   ;;  %v622_v12 = vld [vmem:[%s700_s24] ss:$8 sps:$4 sm:$0xff]   ;;  %v628_v14 = vld [vmem:[%s700_s24 + $0x14] ss:$8 sps:$4 sm:$0xff]  }
   0xf   : > { %v627_v6 = vld [vmem:[%s700_s24 + $0x44] ss:$8 sps:$4 sm:$0xff]   ;;  %575 = vmatprep.mubr.msk.bf16.mxu0 %vm345_vm0, %v624_v5  ;;  %v625_v13 = vld [vmem:[%s700_s24 + $0x40] ss:$8 sps:$4 sm:$0xff]   ;;  %v630_v15 = vld [vmem:[%s700_s24 + $0x54] ss:$8 sps:$4 sm:$0xff]  }
  0x10   : > { %579 = vmatprep.mubr.msk.bf16.mxu1 %vm345_vm0, %v627_v6  ;;  %v621_v11 = vld [vmem:[%s774_s1 + $0x40] sm:$0xff]   ;;  %v632_v16 = vld [vmem:[%s700_s24 + $0x10] ss:$8 sps:$4 sm:$0xff]   ;;  %v640_v22 = vld [vmem:[%s700_s24 + $0x34] ss:$8 sps:$4 sm:$0xff]  }
  0x11   : > { %373 = vmatpush1.bf16.msra.mxu0 %v614_v2  ;;  %596 = vmatpush1.bf16.msra.mxu1 %v614_v2  ;;  %v633_v17 = vld [vmem:[%s700_s24 + $0x50] ss:$8 sps:$4 sm:$0xff]   ;;  %v634_v18 = vld [vmem:[%s700_s24 + $0x24] ss:$8 sps:$4 sm:$0xff]   ;;  %v638_v20 = vld [vmem:[%s700_s24 + $0x20] ss:$8 sps:$4 sm:$0xff]  }
  0x12   : > { %374 = vmatprep.subr.bf16.mxu0 %v654_v1  ;;  %588 = vmatprep.subr.bf16.mxu1 %v654_v1  ;;  %v636_v19 = vld [vmem:[%s700_s24 + $0x64] ss:$8 sps:$4 sm:$0xff]   ;;  %v639_v21 = vld [vmem:[%s700_s24 + $0x60] ss:$8 sps:$4 sm:$0xff]   ;;  %v642_v23 = vld [vmem:[%s700_s24 + $0x74] ss:$8 sps:$4 sm:$0xff]  }
  0x13   : > { %v644_v24 = vld [vmem:[%s700_s24 + $0x30] ss:$8 sps:$4 sm:$0xff]   ;;  %v549_v26 = vld [vmem:[%s775_s2] ss:$0 sm:$0xff] }
  0x14   : > { %v645_v25 = vld [vmem:[%s700_s24 + $0x70] ss:$8 sps:$4 sm:$0xff]  }
  0x15   : > { %375 = vmatpush1.bf16.msra.mxu0 %v615_v3  ;;  %597 = vmatpush1.bf16.msra.mxu1 %v615_v3 }
  0x16   : > { %376 = vmatprep.subr.bf16.mxu0 %v654_v1  ;;  %589 = vmatprep.subr.bf16.mxu1 %v654_v1 }
  0x19   : > { %377 = vmatpush1.bf16.msra.mxu0 %v616_v4  ;;  %598 = vmatpush1.bf16.msra.mxu1 %v616_v4 }
  0x1a   : > { %378 = vmatprep.subr.bf16.mxu0 %v654_v1  ;;  %590 = vmatprep.subr.bf16.mxu1 %v654_v1 }
  0x1d   : > { %379 = vmatpush1.bf16.msra.mxu0 %v617_v7  ;;  %599 = vmatpush1.bf16.msra.mxu1 %v617_v7 }
  0x1e   : > { %380 = vmatprep.subr.bf16.mxu0 %v654_v1  ;;  %591 = vmatprep.subr.bf16.mxu1 %v654_v1 }
  0x21   : > { %381 = vmatpush1.bf16.msra.mxu0 %v618_v8  ;;  %600 = vmatpush1.bf16.msra.mxu1 %v618_v8 }
  0x22   : > { %382 = vmatprep.subr.bf16.mxu0 %v654_v1  ;;  %592 = vmatprep.subr.bf16.mxu1 %v654_v1 }
  0x25   : > { %383 = vmatpush1.bf16.msra.mxu0 %v619_v9  ;;  %601 = vmatpush1.bf16.msra.mxu1 %v619_v9 }
  0x26   : > { %384 = vmatprep.subr.bf16.mxu0 %v654_v1  ;;  %593 = vmatprep.subr.bf16.mxu1 %v654_v1 }
  0x29   : > { %385 = vmatpush1.bf16.msra.mxu0 %v620_v10  ;;  %602 = vmatpush1.bf16.msra.mxu1 %v620_v10 }
  0x2a   : > { %400 = vmatprep.subr.bf16.mxu0 %v654_v1  ;;  %594 = vmatprep.subr.bf16.mxu1 %v654_v1 }
  0x2d   : > { %401 = vmatpush2.bf16.msra.mxu0 %v621_v11  ;;  %603 = vmatpush2.bf16.msra.mxu1 %v621_v11 }
  0x30   : > { %403 = vmatmul.mubr.bf16.vlgmr.msra.gmra.mxu0 %v622_v12  ;;  %435 = vmatmul.mubr.bf16.vlgmr.msra.gmra.mxu1 %v625_v13 }
  0x31   : > { %576 = vmatprep.mubr.msk.bf16.mxu0 %vm345_vm0, %v628_v14  ;;  %580 = vmatprep.mubr.msk.bf16.mxu1 %vm345_vm0, %v630_v15 }
  0x38   : > { %411 = vmatmul.mubr.bf16.gmra.mxu0 %v632_v16  ;;  %443 = vmatmul.mubr.bf16.gmra.mxu1 %v633_v17 }
  0x39   : > { %577 = vmatprep.mubr.msk.bf16.mxu0 %vm345_vm0, %v634_v18  ;;  %581 = vmatprep.mubr.msk.bf16.mxu1 %vm345_vm0, %v636_v19 }
  0x40   : > { %419 = vmatmul.mubr.bf16.gmra.mxu0 %v638_v20  ;;  %451 = vmatmul.mubr.bf16.gmra.mxu1 %v639_v21 }
  0x41   : > { %578 = vmatprep.mubr.msk.bf16.mxu0 %vm345_vm0, %v640_v22  ;;  %582 = vmatprep.mubr.msk.bf16.mxu1 %vm345_vm0, %v642_v23 }
  0x48   : > { %427 = vmatmul.mubr.bf16.gmra.mxu0 %v644_v24  ;;  %459 = vmatmul.mubr.bf16.gmra.mxu1 %v645_v25 }
  0xf0   : > { %v404_v27 = vpop.f32.mrf.mxu0  ;;  %v436_v28 = vpop.f32.mrf.mxu1 }
  0xf1   : > { %v405_v29 = vadd.f32 %v549_v26, %v404_v27  ;;  %v437_v30 = vadd.f32 %v549_v26, %v436_v28 }
  0xf2   : > { %v406_v31 = vpop.f32.mrf.mxu0  ;;  %v438_v32 = vpop.f32.mrf.mxu1 }
  0xf3   : > { %467 = vst [vmem:[%s752_s15] sm:$0xff] %v405_v29  ;;  %475 = vst [vmem:[%s752_s15 + $0x40] sm:$0xff] %v437_v30 }
  0xf4   : > { %v407_v33 = vpop.f32.mrf.mxu0  ;;  %v439_v34 = vpop.f32.mrf.mxu1 }
  0xf5   : > { %v408_v35 = vadd.f32 %v549_v26, %v407_v33  ;;  %v440_v36 = vadd.f32 %v549_v26, %v439_v34 }
  0xf6   : > { %v409_v37 = vpop.f32.mrf.mxu0  ;;  %v441_v38 = vpop.f32.mrf.mxu1 }
  0xf7   : > { %468 = vst [vmem:[%s752_s15 + $0x8] sm:$0xff] %v408_v35  ;;  %476 = vst [vmem:[%s752_s15 + $0x48] sm:$0xff] %v440_v36 }
  0xf8   : > { %v412_v39 = vpop.f32.mrf.mxu0  ;;  %v444_v40 = vpop.f32.mrf.mxu1 }
  0xf9   : > { %v413_v41 = vadd.f32 %v549_v26, %v412_v39  ;;  %v445_v42 = vadd.f32 %v549_v26, %v444_v40 }
  0xfa   : > { %v414_v43 = vpop.f32.mrf.mxu0  ;;  %v446_v44 = vpop.f32.mrf.mxu1 }
  0xfb   : > { %469 = vst [vmem:[%s752_s15 + $0x10] sm:$0xff] %v413_v41  ;;  %477 = vst [vmem:[%s752_s15 + $0x50] sm:$0xff] %v445_v42 }
  0xfc   : > { %v415_v45 = vpop.f32.mrf.mxu0  ;;  %v447_v46 = vpop.f32.mrf.mxu1 }
  0xfd   : > { %v416_v47 = vadd.f32 %v549_v26, %v415_v45  ;;  %v448_v48 = vadd.f32 %v549_v26, %v447_v46 }
  0xfe   : > { %v417_v49 = vpop.f32.mrf.mxu0  ;;  %v449_v50 = vpop.f32.mrf.mxu1 }
  0xff   : > { %470 = vst [vmem:[%s752_s15 + $0x18] sm:$0xff] %v416_v47  ;;  %478 = vst [vmem:[%s752_s15 + $0x58] sm:$0xff] %v448_v48 }
 0x100   : > { %v420_v51 = vpop.f32.mrf.mxu0  ;;  %v452_v52 = vpop.f32.mrf.mxu1 }
 0x101   : > { %v421_v53 = vadd.f32 %v549_v26, %v420_v51  ;;  %v453_v54 = vadd.f32 %v549_v26, %v452_v52 }
 0x102   : > { %v422_v55 = vpop.f32.mrf.mxu0  ;;  %v454_v56 = vpop.f32.mrf.mxu1 }
 0x103   : > { %471 = vst [vmem:[%s752_s15 + $0x20] sm:$0xff] %v421_v53  ;;  %479 = vst [vmem:[%s752_s15 + $0x60] sm:$0xff] %v453_v54 }
 0x104   : > { %v423_v57 = vpop.f32.mrf.mxu0  ;;  %v455_v58 = vpop.f32.mrf.mxu1 }
 0x105   : > { %v424_v59 = vadd.f32 %v549_v26, %v423_v57  ;;  %v456_v60 = vadd.f32 %v549_v26, %v455_v58 }
 0x106   : > { %v425_v61 = vpop.f32.mrf.mxu0  ;;  %v457_v62 = vpop.f32.mrf.mxu1 }
 0x107   : > { %472 = vst [vmem:[%s752_s15 + $0x28] sm:$0xff] %v424_v59  ;;  %480 = vst [vmem:[%s752_s15 + $0x68] sm:$0xff] %v456_v60 }
 0x108   : > { %v428_v63 = vpop.f32.mrf.mxu0  ;;  %v460_v0 = vpop.f32.mrf.mxu1 }
 0x109   : > { %v429_v1 = vadd.f32 %v549_v26, %v428_v63  ;;  %v461_v2 = vadd.f32 %v549_v26, %v460_v0 }
 0x10a   : > { %v430_v3 = vpop.f32.mrf.mxu0  ;;  %v462_v4 = vpop.f32.mrf.mxu1 }
 0x10b   : > { %473 = vst [vmem:[%s752_s15 + $0x30] sm:$0xff] %v429_v1  ;;  %481 = vst [vmem:[%s752_s15 + $0x70] sm:$0xff] %v461_v2 }
 0x10c   : > { %v431_v5 = vpop.f32.mrf.mxu0  ;;  %v463_v6 = vpop.f32.mrf.mxu1 }
 0x10d   : > { %v432_v7 = vadd.f32 %v549_v26, %v431_v5  ;;  %v464_v8 = vadd.f32 %v549_v26, %v463_v6 }
 0x10e   : > { %v433_v9 = vpop.f32.mrf.mxu0  ;;  %v465_v10 = vpop.f32.mrf.mxu1 }
 0x10f   : > { %474 = vst [vmem:[%s752_s15 + $0x38] sm:$0xff] %v432_v7  ;;  %482 = vst [vmem:[%s752_s15 + $0x78] sm:$0xff] %v464_v8 }
 0x110 PF: > { %s13_s12 = sadd.s32 1, %s652_s12  }
 0x111   : > { %p10_p4 = scmp.ge.s32.totalorder %s13_s12, 4  }
 0x113   :  { %12 = sbr.rel (!%p10_p4) target bundleno = 1 (0x1), region = 62 }

// kernel: closed_call.127
= control target key start
LH: loop header
LB: loop body
LE: loop exit
PB: predicated region body
PF: predicated region fallthrough
CT: control target
= control target key end

     0   :  { %vm102_vm0 = vcmask 1043456   ;;  %vm89_vm1 = vcmask 588800   ;;  %s391_s1 = inlined_call_operand.vmem [shape: bf16[72,128], index: 1, kind: input, shape index: {}]   ;;  %s392_s0 = inlined_call_operand.vmem [shape: bf16[64,72], index: 0, kind: input, shape index: {}]   ;;  %s393_s3 = inlined_call_operand.vmem [shape: bf16[64,128], index: 3, kind: input, shape index: {}]   ;;  %s394_s2 = inlined_call_operand.vmem [shape: f32[1,128], index: 2, kind: input, shape index: {}]   ;;  %s395_s4 = inlined_call_operand.vmem [shape: f32[64,128], index: 4, kind: output, shape index: {}]  }
   0x1   :  { %v287_v0 = vld [vmem:[%s391_s1 + $0x20] ss:$0 sps:$4 sm:$0xff]   ;;  %v288_v1 = vld [vmem:[%s391_s1 + $0x18] sm:$0xff]   ;;  %v289_v3 = vld [vmem:[%s391_s1 + $0x10] sm:$0xff]  }
   0x2   :  { %285 = vmatprep.subr.msk.bf16.mxu0 %vm102_vm0, %v287_v0  ;;  %286 = vmatprep.subr.msk.bf16.mxu1 %vm102_vm0, %v287_v0  ;;  %v104_v2 = vsel %vm102_vm0, %v287_v0, 0  ;;  %v292_v4 = vld [vmem:[%s392_s0] sm:$0xff]   ;;  %v293_v5 = vld [vmem:[%s392_s0 + $0x10] sm:$0xff]   ;;  %v290_v6 = vld [vmem:[%s391_s1 + $0x8] sm:$0xff]  }
   0x3   :  { %258 = vmatpush3.bf16.msra.mxu0 %v104_v2  ;;  %280 = vmatpush3.bf16.msra.mxu1 %v104_v2  ;;  %v291_v7 = vld [vmem:[%s391_s1] sm:$0xff]   ;;  %v294_v8 = vld [vmem:[%s392_s0 + $0x8] sm:$0xff]   ;;  %v295_v9 = vld [vmem:[%s392_s0 + $0x18] sm:$0xff]  }
   0x4   :  { %259 = vmatprep.subr.bf16.mxu0 %v288_v1  ;;  %276 = vmatprep.subr.bf16.mxu1 %v288_v1  ;;  %v245_v10 = vld [vmem:[%s393_s3 + $0x8] sm:$0xff]   ;;  %v247_v11 = vld [vmem:[%s393_s3 + $0x18] sm:$0xff]   ;;  %v215_v12 = vld [vmem:[%s394_s2] ss:$0 sm:$0xff] }
   0x5   :  { %267 = vmatprep.mubr.msk.bf16.mxu0 %vm89_vm1, %v292_v4  ;;  %271 = vmatprep.mubr.msk.bf16.mxu1 %vm89_vm1, %v293_v5  ;;  %v230_v13 = vld [vmem:[%s393_s3] sm:$0xff]   ;;  %v246_v14 = vld [vmem:[%s393_s3 + $0x10] sm:$0xff]   ;;  %v235_v15 = vunpack.c.l.bf16 %v245_v10  ;;  %v243_v16 = vunpack.c.l.bf16 %v247_v11  ;;  %v236_v30 = vunpack.c.h.bf16 %v245_v10  ;;  %v244_v32 = vunpack.c.h.bf16 %v247_v11 }
   0x6   :  { %v231_v21 = vunpack.c.l.bf16 %v230_v13  ;;  %v239_v22 = vunpack.c.l.bf16 %v246_v14  ;;  %v232_v33 = vunpack.c.h.bf16 %v230_v13  ;;  %v240_v34 = vunpack.c.h.bf16 %v246_v14 }
   0x7   :  { %260 = vmatpush3.bf16.msra.mxu0 %v288_v1  ;;  %281 = vmatpush3.bf16.msra.mxu1 %v288_v1 }
   0x8   :  { %261 = vmatprep.subr.bf16.mxu0 %v289_v3  ;;  %277 = vmatprep.subr.bf16.mxu1 %v289_v3 }
   0xb   :  { %262 = vmatpush3.bf16.msra.mxu0 %v289_v3  ;;  %282 = vmatpush3.bf16.msra.mxu1 %v289_v3 }
   0xc   :  { %263 = vmatprep.subr.bf16.mxu0 %v290_v6  ;;  %278 = vmatprep.subr.bf16.mxu1 %v290_v6 }
   0xf   :  { %264 = vmatpush3.bf16.msra.mxu0 %v290_v6  ;;  %283 = vmatpush3.bf16.msra.mxu1 %v290_v6 }
  0x10   :  { %265 = vmatprep.subr.bf16.mxu0 %v291_v7  ;;  %279 = vmatprep.subr.bf16.mxu1 %v291_v7 }
  0x13   :  { %266 = vmatpush3.bf16.msra.mxu0 %v291_v7  ;;  %284 = vmatpush3.bf16.msra.mxu1 %v291_v7 }
  0x16   :  { %268 = vmatmul.mubr.msk.bf16.vlgmr.msra.gmra.mxu0 %vm89_vm1, %v294_v8  ;;  %272 = vmatmul.mubr.msk.bf16.vlgmr.msra.gmra.mxu1 %vm89_vm1, %v295_v9 }
  0xd6   :  { %v269_v17 = vpop.f32.mrf.mxu0  ;;  %v273_v18 = vpop.f32.mrf.mxu1 }
  0xd7   :  { %v149_v19 = vadd.f32 %v269_v17, %v215_v12  ;;  %v165_v20 = vadd.f32 %v273_v18, %v215_v12 }
  0xd8   :  { %v140_v23 = vpop.f32.mrf.mxu0  ;;  %v156_v24 = vpop.f32.mrf.mxu1 }
  0xd9   :  { %v189_v25 = vadd.f32 %v235_v15, %v149_v19  ;;  %v193_v26 = vadd.f32 %v243_v16, %v165_v20  ;;  %v141_v27 = vadd.f32 %v215_v12, %v140_v23  ;;  %v157_v28 = vadd.f32 %v215_v12, %v156_v24 }
  0xda   :  { %v270_v29 = vpop.f32.mrf.mxu0  ;;  %v274_v31 = vpop.f32.mrf.mxu1 }
  0xdb   :  { %v197_v35 = vmax.f32 %v189_v25, 0.0  ;;  %v201_v36 = vmax.f32 %v193_v26, 0.0  ;;  %v187_v37 = vadd.f32 %v231_v21, %v141_v27  ;;  %v191_v38 = vadd.f32 %v239_v22, %v157_v28 }
  0xdc   :  { %v152_v39 = vadd.f32 %v270_v29, %v215_v12  ;;  %v168_v40 = vadd.f32 %v274_v31, %v215_v12  ;;  %v143_v41 = vpop.f32.mrf.mxu0  ;;  %v159_v42 = vpop.f32.mrf.mxu1 }
  0xdd   :  { %205 = vst [vmem:[%s395_s4 + $0x10] sm:$0xff] %v197_v35  ;;  %209 = vst [vmem:[%s395_s4 + $0x30] sm:$0xff] %v201_v36  ;;  %v195_v43 = vmax.f32 %v187_v37, 0.0  ;;  %v199_v44 = vmax.f32 %v191_v38, 0.0  ;;  %v144_v45 = vadd.f32 %v215_v12, %v143_v41  ;;  %v160_v46 = vadd.f32 %v215_v12, %v159_v42 }
  0xde   :  { %v190_v47 = vadd.f32 %v236_v30, %v152_v39  ;;  %v194_v48 = vadd.f32 %v244_v32, %v168_v40 }
  0xdf   :  { %203 = vst [vmem:[%s395_s4] sm:$0xff] %v195_v43  ;;  %207 = vst [vmem:[%s395_s4 + $0x20] sm:$0xff] %v199_v44  ;;  %v188_v49 = vadd.f32 %v232_v33, %v144_v45  ;;  %v192_v50 = vadd.f32 %v240_v34, %v160_v46 }
  0xe0   :  { %v198_v51 = vmax.f32 %v190_v47, 0.0  ;;  %v202_v52 = vmax.f32 %v194_v48, 0.0 }
  0xe1   :  { %v196_v53 = vmax.f32 %v188_v49, 0.0  ;;  %v200_v54 = vmax.f32 %v192_v50, 0.0 }
  0xe2   :  { %206 = vst [vmem:[%s395_s4 + $0x18] sm:$0xff] %v198_v51  ;;  %210 = vst [vmem:[%s395_s4 + $0x38] sm:$0xff] %v202_v52 }
  0xe3   :  { %204 = vst [vmem:[%s395_s4 + $0x8] sm:$0xff] %v196_v53  ;;  %208 = vst [vmem:[%s395_s4 + $0x28] sm:$0xff] %v200_v54 }

// kernel: crunet_d_mon_nws_forward.57
= control target key start
LH: loop header
LB: loop body
LE: loop exit
PB: predicated region body
PF: predicated region fallthrough
CT: control target
= control target key end

     0   :  { %s760_s15 = smov 0   ;;  %s860_s0 = inlined_call_operand.vmem [shape: bf16[256,72], index: 0, kind: input, shape index: {}]   ;;  %s861_s1 = inlined_call_operand.vmem [shape: bf16[72,128], index: 1, kind: input, shape index: {}]   ;;  %s862_s2 = inlined_call_operand.vmem [shape: f32[1,128], index: 2, kind: input, shape index: {}]   ;;  %s863_s3 = inlined_call_operand.vmem [shape: bf16[256,128], index: 3, kind: input, shape index: {}]   ;;  %s864_s4 = inlined_call_operand.vmem [shape: f32[256,128], index: 4, kind: output, shape index: {}]  }
   0x1 LB: > { %s581_s16 = sadd.s32 4294967295, %s733_s15   ;;  %p585_p0 = scmp.ge.s32.totalorder %s733_s15, 1  ;;  %s733_s15 = sphi %s760_s15, %s14_s15  }
   0x2   : > { %p174_p1 = scmp.lt.s32.totalorder %s733_s15, 3 }
   0x4   : > { %p175_p2 = pnand %p585_p0, %p174_p1 }
   0x5   : > { %s586_s21 = sshll.u32 (!%p175_p2), %s581_s16, 4 }
   0x6   : > { %178 = sbr.rel (%p175_p2) target bundleno = 244 (0xf4), region = 36  ;;  %p206_p3 = scmp.lt.s32.totalorder (!%p175_p2), %s586_s21, 31 }
   0xb   : > { %v714_v0 = vld [vmem:[%s861_s1 + $0x20] ss:$0 sps:$4 sm:$0xff]   ;;  %vm348_vm0 = vcmask 1043456   ;;  %v715_v1 = vld [vmem:[%s861_s1 + $0x18] sm:$0xff]   ;;  %v716_v3 = vld [vmem:[%s861_s1 + $0x10] sm:$0xff]   ;;  %s866_s21 = smov (!%p206_p3, %s586_s21), 31 }
   0xc   : > { %704 = vmatprep.subr.msk.bf16.mxu0 %vm348_vm0, %v714_v0  ;;  %705 = vmatprep.subr.msk.bf16.mxu1 %vm348_vm0, %v714_v0  ;;  %v350_v2 = vsel %vm348_vm0, %v714_v0, 0  ;;  %v717_v4 = vld [vmem:[%s861_s1 + $0x8] sm:$0xff]   ;;  %s587_s26 = sshll.u32 %s866_s21, 2  ;;  %vm323_vm1 = vcmask 588800   ;;  %v718_v7 = vld [vmem:[%s861_s1] sm:$0xff]   ;;  %s591_s11 = sshll.u32 %s866_s21, 3 }
   0xd   : > { %669 = vmatpush3.bf16.msra.mxu0 %v350_v2  ;;  %699 = vmatpush3.bf16.msra.mxu1 %v350_v2  ;;  %s209_s29 = scalar_lea.vmem %s860_s0, %s587_s26  ;;  %s804_s8 = scalar_lea.vmem %s863_s3, %s587_s26  ;;  %v811_v16 = vld [vmem:[%s862_s2] ss:$0 sm:$0xff] }
   0xe   : > { %670 = vmatprep.subr.bf16.mxu0 %v715_v1  ;;  %695 = vmatprep.subr.bf16.mxu1 %v715_v1  ;;  %v719_v5 = vld [vmem:[%s209_s29] sm:$0xff]   ;;  %v721_v8 = vld [vmem:[%s209_s29 + $0x8] sm:$0xff]   ;;  %v723_v10 = vld [vmem:[%s209_s29 + $0x10] sm:$0xff]   ;;  %s821_s14 = scalar_lea.vmem %s864_s4, %s591_s11 }
   0xf   : > { %v720_v6 = vld [vmem:[%s209_s29 + $0x20] sm:$0xff]   ;;  %678 = vmatprep.mubr.msk.bf16.mxu0 %vm323_vm1, %v719_v5  ;;  %v722_v9 = vld [vmem:[%s209_s29 + $0x28] sm:$0xff]   ;;  %v724_v11 = vld [vmem:[%s209_s29 + $0x30] sm:$0xff]  }
  0x10   : > { %686 = vmatprep.mubr.msk.bf16.mxu1 %vm323_vm1, %v720_v6  ;;  %v725_v12 = vld [vmem:[%s209_s29 + $0x18] sm:$0xff]   ;;  %v648_v14 = vld [vmem:[%s804_s8 + $0x8] sm:$0xff]   ;;  %v617_v17 = vld [vmem:[%s804_s8] sm:$0xff]  }
  0x11   : > { %671 = vmatpush3.bf16.msra.mxu0 %v715_v1  ;;  %700 = vmatpush3.bf16.msra.mxu1 %v715_v1  ;;  %v726_v13 = vld [vmem:[%s209_s29 + $0x38] sm:$0xff]   ;;  %v652_v15 = vld [vmem:[%s804_s8 + $0x28] sm:$0xff]   ;;  %v651_v18 = vld [vmem:[%s804_s8 + $0x20] sm:$0xff]   ;;  %v622_v19 = vunpack.c.l.bf16 %v648_v14  ;;  %v618_v25 = vunpack.c.l.bf16 %v617_v17  ;;  %v623_v29 = vunpack.c.h.bf16 %v648_v14  ;;  %v619_v39 = vunpack.c.h.bf16 %v617_v17 }
  0x12   : > { %672 = vmatprep.subr.bf16.mxu0 %v716_v3  ;;  %696 = vmatprep.subr.bf16.mxu1 %v716_v3  ;;  %v638_v20 = vunpack.c.l.bf16 %v652_v15  ;;  %v634_v26 = vunpack.c.l.bf16 %v651_v18  ;;  %v639_v30 = vunpack.c.h.bf16 %v652_v15  ;;  %v650_v35 = vld [vmem:[%s804_s8 + $0x18] sm:$0xff]   ;;  %v635_v40 = vunpack.c.h.bf16 %v651_v18  ;;  %v649_v45 = vld [vmem:[%s804_s8 + $0x10] sm:$0xff]  }
  0x13   : > { %v654_v36 = vld [vmem:[%s804_s8 + $0x38] sm:$0xff]   ;;  %v653_v46 = vld [vmem:[%s804_s8 + $0x30] sm:$0xff]   ;;  %v630_v49 = vunpack.c.l.bf16 %v650_v35  ;;  %v626_v57 = vunpack.c.l.bf16 %v649_v45  ;;  %v631_v1 = vunpack.c.h.bf16 %v650_v35 }
  0x14   : > { %v646_v50 = vunpack.c.l.bf16 %v654_v36  ;;  %v642_v58 = vunpack.c.l.bf16 %v653_v46  ;;  %v647_v2 = vunpack.c.h.bf16 %v654_v36 }
  0x15   : > { %673 = vmatpush3.bf16.msra.mxu0 %v716_v3  ;;  %701 = vmatpush3.bf16.msra.mxu1 %v716_v3 }
  0x16   : > { %674 = vmatprep.subr.bf16.mxu0 %v717_v4  ;;  %697 = vmatprep.subr.bf16.mxu1 %v717_v4 }
  0x19   : > { %675 = vmatpush3.bf16.msra.mxu0 %v717_v4  ;;  %702 = vmatpush3.bf16.msra.mxu1 %v717_v4 }
  0x1a   : > { %676 = vmatprep.subr.bf16.mxu0 %v718_v7  ;;  %698 = vmatprep.subr.bf16.mxu1 %v718_v7 }
  0x1d   : > { %677 = vmatpush3.bf16.msra.mxu0 %v718_v7  ;;  %703 = vmatpush3.bf16.msra.mxu1 %v718_v7 }
  0x20   : > { %679 = vmatmul.mubr.msk.bf16.vlgmr.msra.gmra.mxu0 %vm323_vm1, %v721_v8  ;;  %687 = vmatmul.mubr.msk.bf16.vlgmr.msra.gmra.mxu1 %vm323_vm1, %v722_v9  ;;  %v627_v9 = vunpack.c.h.bf16 %v649_v45 }
  0x21   : > { %682 = vmatprep.mubr.msk.bf16.mxu0 %vm323_vm1, %v723_v10  ;;  %690 = vmatprep.mubr.msk.bf16.mxu1 %vm323_vm1, %v724_v11  ;;  %v643_v10 = vunpack.c.h.bf16 %v653_v46 }
  0x28   : > { %683 = vmatmul.mubr.msk.bf16.gmra.mxu0 %vm323_vm1, %v725_v12  ;;  %691 = vmatmul.mubr.msk.bf16.gmra.mxu1 %vm323_vm1, %v726_v13 }
  0xe0   : > { %v680_v21 = vpop.f32.mrf.mxu0  ;;  %v688_v22 = vpop.f32.mrf.mxu1 }
  0xe1   : > { %v395_v23 = vadd.f32 %v680_v21, %v811_v16  ;;  %v427_v24 = vadd.f32 %v688_v22, %v811_v16 }
  0xe2   : > { %v386_v27 = vpop.f32.mrf.mxu0  ;;  %v418_v28 = vpop.f32.mrf.mxu1 }
  0xe3   : > { %v483_v31 = vadd.f32 %v622_v19, %v395_v23  ;;  %v491_v32 = vadd.f32 %v638_v20, %v427_v24  ;;  %v387_v33 = vadd.f32 %v811_v16, %v386_v27  ;;  %v419_v34 = vadd.f32 %v811_v16, %v418_v28 }
  0xe4   : > { %v681_v37 = vpop.f32.mrf.mxu0  ;;  %v689_v38 = vpop.f32.mrf.mxu1 }
  0xe5   : > { %499 = vst [vmem:[%s821_s14 + $0x10] sm:$0xff] %v483_v31  ;;  %507 = vst [vmem:[%s821_s14 + $0x50] sm:$0xff] %v491_v32  ;;  %v481_v41 = vadd.f32 %v618_v25, %v387_v33  ;;  %v489_v42 = vadd.f32 %v634_v26, %v419_v34  ;;  %v398_v43 = vadd.f32 %v681_v37, %v811_v16 }
  0xe6   : > { %v430_v44 = vadd.f32 %v689_v38, %v811_v16  ;;  %v389_v47 = vpop.f32.mrf.mxu0  ;;  %v421_v48 = vpop.f32.mrf.mxu1 }
  0xe7   : > { %497 = vst [vmem:[%s821_s14] sm:$0xff] %v481_v41  ;;  %505 = vst [vmem:[%s821_s14 + $0x40] sm:$0xff] %v489_v42  ;;  %v484_v51 = vadd.f32 %v623_v29, %v398_v43  ;;  %v390_v53 = vadd.f32 %v811_v16, %v389_v47  ;;  %v422_v54 = vadd.f32 %v811_v16, %v421_v48 }
  0xe8   : > { %v492_v52 = vadd.f32 %v639_v30, %v430_v44  ;;  %v684_v55 = vpop.f32.mrf.mxu0  ;;  %v692_v56 = vpop.f32.mrf.mxu1 }
  0xe9   : > { %500 = vst [vmem:[%s821_s14 + $0x18] sm:$0xff] %v484_v51  ;;  %v482_v59 = vadd.f32 %v619_v39, %v390_v53  ;;  %v490_v60 = vadd.f32 %v635_v40, %v422_v54  ;;  %v411_v61 = vadd.f32 %v684_v55, %v811_v16  ;;  %v443_v62 = vadd.f32 %v692_v56, %v811_v16 }
  0xea   : > { %508 = vst [vmem:[%s821_s14 + $0x58] sm:$0xff] %v492_v52  ;;  %v402_v63 = vpop.f32.mrf.mxu0  ;;  %v434_v0 = vpop.f32.mrf.mxu1 }
  0xeb   : > { %498 = vst [vmem:[%s821_s14 + $0x8] sm:$0xff] %v482_v59  ;;  %506 = vst [vmem:[%s821_s14 + $0x48] sm:$0xff] %v490_v60  ;;  %v487_v3 = vadd.f32 %v630_v49, %v411_v61  ;;  %v495_v4 = vadd.f32 %v646_v50, %v443_v62  ;;  %v403_v5 = vadd.f32 %v811_v16, %v402_v63 }
  0xec   : > { %v435_v6 = vadd.f32 %v811_v16, %v434_v0  ;;  %v685_v7 = vpop.f32.mrf.mxu0  ;;  %v693_v8 = vpop.f32.mrf.mxu1 }
  0xed   : > { %503 = vst [vmem:[%s821_s14 + $0x30] sm:$0xff] %v487_v3  ;;  %511 = vst [vmem:[%s821_s14 + $0x70] sm:$0xff] %v495_v4  ;;  %v485_v11 = vadd.f32 %v626_v57, %v403_v5  ;;  %v414_v13 = vadd.f32 %v685_v7, %v811_v16  ;;  %v446_v14 = vadd.f32 %v693_v8, %v811_v16 }
  0xee   : > { %v493_v12 = vadd.f32 %v642_v58, %v435_v6  ;;  %v405_v15 = vpop.f32.mrf.mxu0  ;;  %v437_v17 = vpop.f32.mrf.mxu1 }
  0xef   : > { %501 = vst [vmem:[%s821_s14 + $0x20] sm:$0xff] %v485_v11  ;;  %v488_v18 = vadd.f32 %v631_v1, %v414_v13  ;;  %v496_v19 = vadd.f32 %v647_v2, %v446_v14  ;;  %v406_v20 = vadd.f32 %v811_v16, %v405_v15  ;;  %v438_v21 = vadd.f32 %v811_v16, %v437_v17 }
  0xf0   : > { %509 = vst [vmem:[%s821_s14 + $0x60] sm:$0xff] %v493_v12 }
  0xf1   : > { %504 = vst [vmem:[%s821_s14 + $0x38] sm:$0xff] %v488_v18  ;;  %512 = vst [vmem:[%s821_s14 + $0x78] sm:$0xff] %v496_v19  ;;  %v486_v22 = vadd.f32 %v627_v9, %v406_v20  ;;  %v494_v23 = vadd.f32 %v643_v10, %v438_v21 }
  0xf3   : > { %502 = vst [vmem:[%s821_s14 + $0x28] sm:$0xff] %v486_v22  ;;  %510 = vst [vmem:[%s821_s14 + $0x68] sm:$0xff] %v494_v23 }
  0xf4 PF: > { %s14_s15 = sadd.s32 1, %s733_s15  }
  0xf5   : > { %p11_p4 = scmp.ge.s32.totalorder %s14_s15, 4  }
  0xf7   :  { %13 = sbr.rel (!%p11_p4) target bundleno = 1 (0x1), region = 69 }

// kernel: crunet_d_mon_nws_forward.58
= control target key start
LH: loop header
LB: loop body
LE: loop exit
PB: predicated region body
PF: predicated region fallthrough
CT: control target
= control target key end

     0   :  { %s621_s12 = smov 0   ;;  %s686_s0 = inlined_call_operand.vmem [shape: bf16[256,72], index: 0, kind: input, shape index: {}]   ;;  %s687_s1 = inlined_call_operand.vmem [shape: bf16[72,128], index: 1, kind: input, shape index: {}]   ;;  %s688_s2 = inlined_call_operand.vmem [shape: f32[1,128], index: 2, kind: input, shape index: {}]   ;;  %s689_s3 = inlined_call_operand.vmem [shape: f32[256,128], index: 3, kind: output, shape index: {}]  }
   0x1 LB: > { %s488_s13 = sadd.s32 4294967295, %s599_s12   ;;  %p492_p0 = scmp.ge.s32.totalorder %s599_s12, 1  ;;  %s599_s12 = sphi %s621_s12, %s13_s12  }
   0x2   : > { %p138_p1 = scmp.lt.s32.totalorder %s599_s12, 3 }
   0x4   : > { %p139_p2 = pnand %p492_p0, %p138_p1 }
   0x5   : > { %s493_s18 = sshll.u32 (!%p139_p2), %s488_s13, 4 }
   0x6   : > { %142 = sbr.rel (%p139_p2) target bundleno = 244 (0xf4), region = 32  ;;  %p163_p3 = scmp.lt.s32.totalorder (!%p139_p2), %s493_s18, 31 }
   0xb   : > { %v580_v0 = vld [vmem:[%s687_s1 + $0x20] ss:$0 sps:$4 sm:$0xff]   ;;  %vm299_vm0 = vcmask 1043456   ;;  %v581_v1 = vld [vmem:[%s687_s1 + $0x18] sm:$0xff]   ;;  %v582_v3 = vld [vmem:[%s687_s1 + $0x10] sm:$0xff]   ;;  %s691_s18 = smov (!%p163_p3, %s493_s18), 31 }
   0xc   : > { %570 = vmatprep.subr.msk.bf16.mxu0 %vm299_vm0, %v580_v0  ;;  %571 = vmatprep.subr.msk.bf16.mxu1 %vm299_vm0, %v580_v0  ;;  %v301_v2 = vsel %vm299_vm0, %v580_v0, 0  ;;  %v583_v4 = vld [vmem:[%s687_s1 + $0x8] sm:$0xff]   ;;  %s494_s23 = sshll.u32 %s691_s18, 2  ;;  %vm274_vm1 = vcmask 588800   ;;  %v584_v7 = vld [vmem:[%s687_s1] sm:$0xff]   ;;  %s496_s4 = sshll.u32 %s691_s18, 3 }
   0xd   : > { %535 = vmatpush3.bf16.msra.mxu0 %v301_v2  ;;  %565 = vmatpush3.bf16.msra.mxu1 %v301_v2  ;;  %s166_s26 = scalar_lea.vmem %s686_s0, %s494_s23  ;;  %v497_v14 = vld [vmem:[%s688_s2] ss:$0 sm:$0xff]  ;;  %s665_s7 = scalar_lea.vmem %s689_s3, %s496_s4 }
   0xe   : > { %536 = vmatprep.subr.bf16.mxu0 %v581_v1  ;;  %561 = vmatprep.subr.bf16.mxu1 %v581_v1  ;;  %v585_v5 = vld [vmem:[%s166_s26] sm:$0xff]   ;;  %v587_v8 = vld [vmem:[%s166_s26 + $0x8] sm:$0xff]   ;;  %v589_v10 = vld [vmem:[%s166_s26 + $0x10] sm:$0xff]  }
   0xf   : > { %v586_v6 = vld [vmem:[%s166_s26 + $0x20] sm:$0xff]   ;;  %544 = vmatprep.mubr.msk.bf16.mxu0 %vm274_vm1, %v585_v5  ;;  %v588_v9 = vld [vmem:[%s166_s26 + $0x28] sm:$0xff]   ;;  %v590_v11 = vld [vmem:[%s166_s26 + $0x30] sm:$0xff]  }
  0x10   : > { %552 = vmatprep.mubr.msk.bf16.mxu1 %vm274_vm1, %v586_v6  ;;  %v591_v12 = vld [vmem:[%s166_s26 + $0x18] sm:$0xff]  }
  0x11   : > { %537 = vmatpush3.bf16.msra.mxu0 %v581_v1  ;;  %566 = vmatpush3.bf16.msra.mxu1 %v581_v1  ;;  %v592_v13 = vld [vmem:[%s166_s26 + $0x38] sm:$0xff]  }
  0x12   : > { %538 = vmatprep.subr.bf16.mxu0 %v582_v3  ;;  %562 = vmatprep.subr.bf16.mxu1 %v582_v3 }
  0x15   : > { %539 = vmatpush3.bf16.msra.mxu0 %v582_v3  ;;  %567 = vmatpush3.bf16.msra.mxu1 %v582_v3 }
  0x16   : > { %540 = vmatprep.subr.bf16.mxu0 %v583_v4  ;;  %563 = vmatprep.subr.bf16.mxu1 %v583_v4 }
  0x19   : > { %541 = vmatpush3.bf16.msra.mxu0 %v583_v4  ;;  %568 = vmatpush3.bf16.msra.mxu1 %v583_v4 }
  0x1a   : > { %542 = vmatprep.subr.bf16.mxu0 %v584_v7  ;;  %564 = vmatprep.subr.bf16.mxu1 %v584_v7 }
  0x1d   : > { %543 = vmatpush3.bf16.msra.mxu0 %v584_v7  ;;  %569 = vmatpush3.bf16.msra.mxu1 %v584_v7 }
  0x20   : > { %545 = vmatmul.mubr.msk.bf16.vlgmr.msra.gmra.mxu0 %vm274_vm1, %v587_v8  ;;  %553 = vmatmul.mubr.msk.bf16.vlgmr.msra.gmra.mxu1 %vm274_vm1, %v588_v9 }
  0x21   : > { %548 = vmatprep.mubr.msk.bf16.mxu0 %vm274_vm1, %v589_v10  ;;  %556 = vmatprep.mubr.msk.bf16.mxu1 %vm274_vm1, %v590_v11 }
  0x28   : > { %549 = vmatmul.mubr.msk.bf16.gmra.mxu0 %vm274_vm1, %v591_v12  ;;  %557 = vmatmul.mubr.msk.bf16.gmra.mxu1 %vm274_vm1, %v592_v13 }
  0xe0   : > { %v546_v15 = vpop.f32.mrf.mxu0  ;;  %v554_v16 = vpop.f32.mrf.mxu1 }
  0xe1   : > { %v346_v17 = vadd.f32 %v546_v15, %v497_v14  ;;  %v378_v18 = vadd.f32 %v554_v16, %v497_v14 }
  0xe2   : > { %v337_v19 = vpop.f32.mrf.mxu0  ;;  %v369_v20 = vpop.f32.mrf.mxu1 }
  0xe3   : > { %v402_v21 = vmax.f32 %v346_v17, 0.0  ;;  %v410_v22 = vmax.f32 %v378_v18, 0.0  ;;  %v338_v23 = vadd.f32 %v497_v14, %v337_v19  ;;  %v370_v24 = vadd.f32 %v497_v14, %v369_v20 }
  0xe4   : > { %v547_v25 = vpop.f32.mrf.mxu0  ;;  %v555_v26 = vpop.f32.mrf.mxu1 }
  0xe5   : > { %418 = vst [vmem:[%s665_s7 + $0x10] sm:$0xff] %v402_v21  ;;  %426 = vst [vmem:[%s665_s7 + $0x50] sm:$0xff] %v410_v22  ;;  %v400_v27 = vmax.f32 %v338_v23, 0.0  ;;  %v408_v28 = vmax.f32 %v370_v24, 0.0  ;;  %v349_v29 = vadd.f32 %v547_v25, %v497_v14  ;;  %v381_v30 = vadd.f32 %v555_v26, %v497_v14 }
  0xe6   : > { %v340_v31 = vpop.f32.mrf.mxu0  ;;  %v372_v32 = vpop.f32.mrf.mxu1 }
  0xe7   : > { %416 = vst [vmem:[%s665_s7] sm:$0xff] %v400_v27  ;;  %424 = vst [vmem:[%s665_s7 + $0x40] sm:$0xff] %v408_v28  ;;  %v403_v33 = vmax.f32 %v349_v29, 0.0  ;;  %v411_v34 = vmax.f32 %v381_v30, 0.0  ;;  %v341_v35 = vadd.f32 %v497_v14, %v340_v31  ;;  %v373_v36 = vadd.f32 %v497_v14, %v372_v32 }
  0xe8   : > { %v550_v37 = vpop.f32.mrf.mxu0  ;;  %v558_v38 = vpop.f32.mrf.mxu1 }
  0xe9   : > { %419 = vst [vmem:[%s665_s7 + $0x18] sm:$0xff] %v403_v33  ;;  %427 = vst [vmem:[%s665_s7 + $0x58] sm:$0xff] %v411_v34  ;;  %v401_v39 = vmax.f32 %v341_v35, 0.0  ;;  %v409_v40 = vmax.f32 %v373_v36, 0.0  ;;  %v362_v41 = vadd.f32 %v550_v37, %v497_v14  ;;  %v394_v42 = vadd.f32 %v558_v38, %v497_v14 }
  0xea   : > { %v353_v43 = vpop.f32.mrf.mxu0  ;;  %v385_v44 = vpop.f32.mrf.mxu1 }
  0xeb   : > { %417 = vst [vmem:[%s665_s7 + $0x8] sm:$0xff] %v401_v39  ;;  %425 = vst [vmem:[%s665_s7 + $0x48] sm:$0xff] %v409_v40  ;;  %v406_v45 = vmax.f32 %v362_v41, 0.0  ;;  %v414_v46 = vmax.f32 %v394_v42, 0.0  ;;  %v354_v47 = vadd.f32 %v497_v14, %v353_v43  ;;  %v386_v48 = vadd.f32 %v497_v14, %v385_v44 }
  0xec   : > { %v551_v49 = vpop.f32.mrf.mxu0  ;;  %v559_v50 = vpop.f32.mrf.mxu1 }
  0xed   : > { %422 = vst [vmem:[%s665_s7 + $0x30] sm:$0xff] %v406_v45  ;;  %430 = vst [vmem:[%s665_s7 + $0x70] sm:$0xff] %v414_v46  ;;  %v404_v51 = vmax.f32 %v354_v47, 0.0  ;;  %v412_v52 = vmax.f32 %v386_v48, 0.0  ;;  %v365_v53 = vadd.f32 %v551_v49, %v497_v14  ;;  %v397_v54 = vadd.f32 %v559_v50, %v497_v14 }
  0xee   : > { %v356_v55 = vpop.f32.mrf.mxu0  ;;  %v388_v56 = vpop.f32.mrf.mxu1 }
  0xef   : > { %420 = vst [vmem:[%s665_s7 + $0x20] sm:$0xff] %v404_v51  ;;  %428 = vst [vmem:[%s665_s7 + $0x60] sm:$0xff] %v412_v52  ;;  %v407_v57 = vmax.f32 %v365_v53, 0.0  ;;  %v415_v58 = vmax.f32 %v397_v54, 0.0  ;;  %v357_v59 = vadd.f32 %v497_v14, %v356_v55  ;;  %v389_v60 = vadd.f32 %v497_v14, %v388_v56 }
  0xf1   : > { %423 = vst [vmem:[%s665_s7 + $0x38] sm:$0xff] %v407_v57  ;;  %431 = vst [vmem:[%s665_s7 + $0x78] sm:$0xff] %v415_v58  ;;  %v405_v61 = vmax.f32 %v357_v59, 0.0  ;;  %v413_v62 = vmax.f32 %v389_v60, 0.0 }
  0xf3   : > { %421 = vst [vmem:[%s665_s7 + $0x28] sm:$0xff] %v405_v61  ;;  %429 = vst [vmem:[%s665_s7 + $0x68] sm:$0xff] %v413_v62 }
  0xf4 PF: > { %s13_s12 = sadd.s32 1, %s599_s12  }
  0xf5   : > { %p10_p4 = scmp.ge.s32.totalorder %s13_s12, 4  }
  0xf7   :  { %12 = sbr.rel (!%p10_p4) target bundleno = 1 (0x1), region = 62 }

// kernel: crunet_d_mon_nws_forward.86
= control target key start
LH: loop header
LB: loop body
LE: loop exit
PB: predicated region body
PF: predicated region fallthrough
CT: control target
= control target key end

     0   :  { %s605_s12 = smov 0   ;;  %s670_s0 = inlined_call_operand.vmem [shape: bf16[256,72], index: 0, kind: input, shape index: {}]   ;;  %s671_s1 = inlined_call_operand.vmem [shape: bf16[72,128], index: 1, kind: input, shape index: {}]   ;;  %s672_s2 = inlined_call_operand.vmem [shape: f32[1,128], index: 2, kind: input, shape index: {}]   ;;  %s673_s3 = inlined_call_operand.vmem [shape: f32[256,128], index: 3, kind: output, shape index: {}]  }
   0x1 LB: > { %s472_s13 = sadd.s32 4294967295, %s583_s12   ;;  %p476_p0 = scmp.ge.s32.totalorder %s583_s12, 1  ;;  %s583_s12 = sphi %s605_s12, %s13_s12  }
   0x2   : > { %p138_p1 = scmp.lt.s32.totalorder %s583_s12, 3 }
   0x4   : > { %p139_p2 = pnand %p476_p0, %p138_p1 }
   0x5   : > { %s477_s18 = sshll.u32 (!%p139_p2), %s472_s13, 4 }
   0x6   : > { %142 = sbr.rel (%p139_p2) target bundleno = 242 (0xf2), region = 32  ;;  %p163_p3 = scmp.lt.s32.totalorder (!%p139_p2), %s477_s18, 31 }
   0xb   : > { %v564_v0 = vld [vmem:[%s671_s1 + $0x20] ss:$0 sps:$4 sm:$0xff]   ;;  %vm299_vm0 = vcmask 1043456   ;;  %v565_v1 = vld [vmem:[%s671_s1 + $0x18] sm:$0xff]   ;;  %v566_v3 = vld [vmem:[%s671_s1 + $0x10] sm:$0xff]   ;;  %s675_s18 = smov (!%p163_p3, %s477_s18), 31 }
   0xc   : > { %554 = vmatprep.subr.msk.bf16.mxu0 %vm299_vm0, %v564_v0  ;;  %555 = vmatprep.subr.msk.bf16.mxu1 %vm299_vm0, %v564_v0  ;;  %v301_v2 = vsel %vm299_vm0, %v564_v0, 0  ;;  %v567_v4 = vld [vmem:[%s671_s1 + $0x8] sm:$0xff]   ;;  %s478_s23 = sshll.u32 %s675_s18, 2  ;;  %vm274_vm1 = vcmask 588800   ;;  %v568_v7 = vld [vmem:[%s671_s1] sm:$0xff]   ;;  %s480_s29 = sshll.u32 %s675_s18, 3 }
   0xd   : > { %519 = vmatpush3.bf16.msra.mxu0 %v301_v2  ;;  %549 = vmatpush3.bf16.msra.mxu1 %v301_v2  ;;  %s166_s26 = scalar_lea.vmem %s670_s0, %s478_s23  ;;  %v481_v14 = vld [vmem:[%s672_s2] ss:$0 sm:$0xff]  ;;  %s649_s7 = scalar_lea.vmem %s673_s3, %s480_s29 }
   0xe   : > { %520 = vmatprep.subr.bf16.mxu0 %v565_v1  ;;  %545 = vmatprep.subr.bf16.mxu1 %v565_v1  ;;  %v569_v5 = vld [vmem:[%s166_s26] sm:$0xff]   ;;  %v571_v8 = vld [vmem:[%s166_s26 + $0x8] sm:$0xff]   ;;  %v573_v10 = vld [vmem:[%s166_s26 + $0x10] sm:$0xff]  }
   0xf   : > { %v570_v6 = vld [vmem:[%s166_s26 + $0x20] sm:$0xff]   ;;  %528 = vmatprep.mubr.msk.bf16.mxu0 %vm274_vm1, %v569_v5  ;;  %v572_v9 = vld [vmem:[%s166_s26 + $0x28] sm:$0xff]   ;;  %v574_v11 = vld [vmem:[%s166_s26 + $0x30] sm:$0xff]  }
  0x10   : > { %536 = vmatprep.mubr.msk.bf16.mxu1 %vm274_vm1, %v570_v6  ;;  %v575_v12 = vld [vmem:[%s166_s26 + $0x18] sm:$0xff]  }
  0x11   : > { %521 = vmatpush3.bf16.msra.mxu0 %v565_v1  ;;  %550 = vmatpush3.bf16.msra.mxu1 %v565_v1  ;;  %v576_v13 = vld [vmem:[%s166_s26 + $0x38] sm:$0xff]  }
  0x12   : > { %522 = vmatprep.subr.bf16.mxu0 %v566_v3  ;;  %546 = vmatprep.subr.bf16.mxu1 %v566_v3 }
  0x15   : > { %523 = vmatpush3.bf16.msra.mxu0 %v566_v3  ;;  %551 = vmatpush3.bf16.msra.mxu1 %v566_v3 }
  0x16   : > { %524 = vmatprep.subr.bf16.mxu0 %v567_v4  ;;  %547 = vmatprep.subr.bf16.mxu1 %v567_v4 }
  0x19   : > { %525 = vmatpush3.bf16.msra.mxu0 %v567_v4  ;;  %552 = vmatpush3.bf16.msra.mxu1 %v567_v4 }
  0x1a   : > { %526 = vmatprep.subr.bf16.mxu0 %v568_v7  ;;  %548 = vmatprep.subr.bf16.mxu1 %v568_v7 }
  0x1d   : > { %527 = vmatpush3.bf16.msra.mxu0 %v568_v7  ;;  %553 = vmatpush3.bf16.msra.mxu1 %v568_v7 }
  0x20   : > { %529 = vmatmul.mubr.msk.bf16.vlgmr.msra.gmra.mxu0 %vm274_vm1, %v571_v8  ;;  %537 = vmatmul.mubr.msk.bf16.vlgmr.msra.gmra.mxu1 %vm274_vm1, %v572_v9 }
  0x21   : > { %532 = vmatprep.mubr.msk.bf16.mxu0 %vm274_vm1, %v573_v10  ;;  %540 = vmatprep.mubr.msk.bf16.mxu1 %vm274_vm1, %v574_v11 }
  0x28   : > { %533 = vmatmul.mubr.msk.bf16.gmra.mxu0 %vm274_vm1, %v575_v12  ;;  %541 = vmatmul.mubr.msk.bf16.gmra.mxu1 %vm274_vm1, %v576_v13 }
  0xe0   : > { %v530_v15 = vpop.f32.mrf.mxu0  ;;  %v538_v16 = vpop.f32.mrf.mxu1 }
  0xe1   : > { %v346_v17 = vadd.f32 %v530_v15, %v481_v14  ;;  %v378_v18 = vadd.f32 %v538_v16, %v481_v14 }
  0xe2   : > { %v337_v19 = vpop.f32.mrf.mxu0  ;;  %v369_v20 = vpop.f32.mrf.mxu1 }
  0xe3   : > { %402 = vst [vmem:[%s649_s7 + $0x10] sm:$0xff] %v346_v17  ;;  %410 = vst [vmem:[%s649_s7 + $0x50] sm:$0xff] %v378_v18  ;;  %v338_v21 = vadd.f32 %v481_v14, %v337_v19  ;;  %v370_v22 = vadd.f32 %v481_v14, %v369_v20 }
  0xe4   : > { %v531_v23 = vpop.f32.mrf.mxu0  ;;  %v539_v24 = vpop.f32.mrf.mxu1 }
  0xe5   : > { %400 = vst [vmem:[%s649_s7] sm:$0xff] %v338_v21  ;;  %408 = vst [vmem:[%s649_s7 + $0x40] sm:$0xff] %v370_v22  ;;  %v349_v25 = vadd.f32 %v531_v23, %v481_v14  ;;  %v381_v26 = vadd.f32 %v539_v24, %v481_v14 }
  0xe6   : > { %v340_v27 = vpop.f32.mrf.mxu0  ;;  %v372_v28 = vpop.f32.mrf.mxu1 }
  0xe7   : > { %403 = vst [vmem:[%s649_s7 + $0x18] sm:$0xff] %v349_v25  ;;  %411 = vst [vmem:[%s649_s7 + $0x58] sm:$0xff] %v381_v26  ;;  %v341_v29 = vadd.f32 %v481_v14, %v340_v27  ;;  %v373_v30 = vadd.f32 %v481_v14, %v372_v28 }
  0xe8   : > { %v534_v31 = vpop.f32.mrf.mxu0  ;;  %v542_v32 = vpop.f32.mrf.mxu1 }
  0xe9   : > { %401 = vst [vmem:[%s649_s7 + $0x8] sm:$0xff] %v341_v29  ;;  %409 = vst [vmem:[%s649_s7 + $0x48] sm:$0xff] %v373_v30  ;;  %v362_v33 = vadd.f32 %v534_v31, %v481_v14  ;;  %v394_v34 = vadd.f32 %v542_v32, %v481_v14 }
  0xea   : > { %v353_v35 = vpop.f32.mrf.mxu0  ;;  %v385_v36 = vpop.f32.mrf.mxu1 }
  0xeb   : > { %406 = vst [vmem:[%s649_s7 + $0x30] sm:$0xff] %v362_v33  ;;  %414 = vst [vmem:[%s649_s7 + $0x70] sm:$0xff] %v394_v34  ;;  %v354_v37 = vadd.f32 %v481_v14, %v353_v35  ;;  %v386_v38 = vadd.f32 %v481_v14, %v385_v36 }
  0xec   : > { %v535_v39 = vpop.f32.mrf.mxu0  ;;  %v543_v40 = vpop.f32.mrf.mxu1 }
  0xed   : > { %404 = vst [vmem:[%s649_s7 + $0x20] sm:$0xff] %v354_v37  ;;  %412 = vst [vmem:[%s649_s7 + $0x60] sm:$0xff] %v386_v38  ;;  %v365_v41 = vadd.f32 %v535_v39, %v481_v14  ;;  %v397_v42 = vadd.f32 %v543_v40, %v481_v14 }
  0xee   : > { %v356_v43 = vpop.f32.mrf.mxu0  ;;  %v388_v44 = vpop.f32.mrf.mxu1 }
  0xef   : > { %407 = vst [vmem:[%s649_s7 + $0x38] sm:$0xff] %v365_v41  ;;  %415 = vst [vmem:[%s649_s7 + $0x78] sm:$0xff] %v397_v42  ;;  %v357_v45 = vadd.f32 %v481_v14, %v356_v43  ;;  %v389_v46 = vadd.f32 %v481_v14, %v388_v44 }
  0xf1   : > { %405 = vst [vmem:[%s649_s7 + $0x28] sm:$0xff] %v357_v45  ;;  %413 = vst [vmem:[%s649_s7 + $0x68] sm:$0xff] %v389_v46 }
  0xf2 PF: > { %s13_s12 = sadd.s32 1, %s583_s12  }
  0xf3   : > { %p10_p4 = scmp.ge.s32.totalorder %s13_s12, 4  }
  0xf5   :  { %12 = sbr.rel (!%p10_p4) target bundleno = 1 (0x1), region = 62 }

// kernel: crunet_d_mon_nws_forward.66
= control target key start
LH: loop header
LB: loop body
LE: loop exit
PB: predicated region body
PF: predicated region fallthrough
CT: control target
= control target key end

     0   :  { %s691_s12 = smov 0   ;;  %s807_s0 = inlined_call_operand.vmem [shape: bf16[256,144], index: 0, kind: input, shape index: {}]   ;;  %s808_s1 = inlined_call_operand.vmem [shape: bf16[144,128], index: 1, kind: input, shape index: {}]   ;;  %s809_s2 = inlined_call_operand.vmem [shape: f32[1,128], index: 2, kind: input, shape index: {}]   ;;  %s810_s3 = inlined_call_operand.vmem [shape: f32[256,128], index: 3, kind: output, shape index: {}]  }
   0x1 LB: > { %s555_s13 = sadd.s32 4294967295, %s668_s12   ;;  %p559_p0 = scmp.ge.s32.totalorder %s668_s12, 1  ;;  %s668_s12 = sphi %s691_s12, %s13_s12  }
   0x2   : > { %p139_p1 = scmp.lt.s32.totalorder %s668_s12, 3 }
   0x4   : > { %p140_p2 = pnand %p559_p0, %p139_p1 }
   0x5   : > { %s560_s16 = sshll.u32 (!%p140_p2), %s555_s13, 4 }
   0x6   : > { %143 = sbr.rel (%p140_p2) target bundleno = 274 (0x112), region = 32  ;;  %p165_p3 = scmp.lt.s32.totalorder (!%p140_p2), %s560_s16, 31 }
   0xb   : > { %v629_v0 = vld [vmem:[%s808_s1 + $0x38] sm:$0xff]   ;;  %v670_v1 = vmov 0   ;;  %v630_v2 = vld [vmem:[%s808_s1 + $0x30] sm:$0xff]   ;;  %s812_s16 = smov (!%p165_p3, %s560_s16), 31  ;;  %v631_v3 = vld [vmem:[%s808_s1 + $0x28] sm:$0xff]   ;;  %vm345_vm0 = vcmask 130048  }
   0xc   : > { %370 = vmatprep.subr.bf16.mxu0 %v670_v1  ;;  %602 = vmatprep.subr.bf16.mxu1 %v670_v1  ;;  %s601_s21 = sshll.u32 %s812_s16, 3  ;;  %v632_v4 = vld [vmem:[%s808_s1 + $0x20] sm:$0xff]   ;;  %v633_v7 = vld [vmem:[%s808_s1 + $0x18] sm:$0xff]   ;;  %v634_v8 = vld [vmem:[%s808_s1 + $0x10] sm:$0xff]  }
   0xd   : > { %371 = vmatpush1.bf16.msra.mxu0 %v629_v0  ;;  %611 = vmatpush1.bf16.msra.mxu1 %v629_v0  ;;  %s716_s24 = scalar_lea.vmem %s807_s0, %s601_s21  ;;  %v635_v9 = vld [vmem:[%s808_s1 + $0x8] sm:$0xff]   ;;  %v636_v10 = vld [vmem:[%s808_s1] sm:$0xff]   ;;  %s772_s15 = scalar_lea.vmem %s810_s3, %s601_s21 }
   0xe   : > { %372 = vmatprep.subr.bf16.mxu0 %v670_v1  ;;  %603 = vmatprep.subr.bf16.mxu1 %v670_v1  ;;  %v640_v5 = vld [vmem:[%s716_s24 + $0x4] ss:$8 sps:$4 sm:$0xff]   ;;  %v638_v12 = vld [vmem:[%s716_s24] ss:$8 sps:$4 sm:$0xff]   ;;  %v644_v14 = vld [vmem:[%s716_s24 + $0x14] ss:$8 sps:$4 sm:$0xff]  }
   0xf   : > { %v643_v6 = vld [vmem:[%s716_s24 + $0x44] ss:$8 sps:$4 sm:$0xff]   ;;  %591 = vmatprep.mubr.msk.bf16.mxu0 %vm345_vm0, %v640_v5  ;;  %v641_v13 = vld [vmem:[%s716_s24 + $0x40] ss:$8 sps:$4 sm:$0xff]   ;;  %v646_v15 = vld [vmem:[%s716_s24 + $0x54] ss:$8 sps:$4 sm:$0xff]  }
  0x10   : > { %595 = vmatprep.mubr.msk.bf16.mxu1 %vm345_vm0, %v643_v6  ;;  %v637_v11 = vld [vmem:[%s808_s1 + $0x40] sm:$0xff]   ;;  %v648_v16 = vld [vmem:[%s716_s24 + $0x10] ss:$8 sps:$4 sm:$0xff]   ;;  %v656_v22 = vld [vmem:[%s716_s24 + $0x34] ss:$8 sps:$4 sm:$0xff]  }
  0x11   : > { %373 = vmatpush1.bf16.msra.mxu0 %v630_v2  ;;  %612 = vmatpush1.bf16.msra.mxu1 %v630_v2  ;;  %v649_v17 = vld [vmem:[%s716_s24 + $0x50] ss:$8 sps:$4 sm:$0xff]   ;;  %v650_v18 = vld [vmem:[%s716_s24 + $0x24] ss:$8 sps:$4 sm:$0xff]   ;;  %v654_v20 = vld [vmem:[%s716_s24 + $0x20] ss:$8 sps:$4 sm:$0xff]  }
  0x12   : > { %374 = vmatprep.subr.bf16.mxu0 %v670_v1  ;;  %604 = vmatprep.subr.bf16.mxu1 %v670_v1  ;;  %v652_v19 = vld [vmem:[%s716_s24 + $0x64] ss:$8 sps:$4 sm:$0xff]   ;;  %v655_v21 = vld [vmem:[%s716_s24 + $0x60] ss:$8 sps:$4 sm:$0xff]   ;;  %v658_v23 = vld [vmem:[%s716_s24 + $0x74] ss:$8 sps:$4 sm:$0xff]  }
  0x13   : > { %v660_v24 = vld [vmem:[%s716_s24 + $0x30] ss:$8 sps:$4 sm:$0xff]   ;;  %v763_v26 = vld [vmem:[%s809_s2] ss:$0 sm:$0xff] }
  0x14   : > { %v661_v25 = vld [vmem:[%s716_s24 + $0x70] ss:$8 sps:$4 sm:$0xff]  }
  0x15   : > { %375 = vmatpush1.bf16.msra.mxu0 %v631_v3  ;;  %613 = vmatpush1.bf16.msra.mxu1 %v631_v3 }
  0x16   : > { %376 = vmatprep.subr.bf16.mxu0 %v670_v1  ;;  %605 = vmatprep.subr.bf16.mxu1 %v670_v1 }
  0x19   : > { %377 = vmatpush1.bf16.msra.mxu0 %v632_v4  ;;  %614 = vmatpush1.bf16.msra.mxu1 %v632_v4 }
  0x1a   : > { %378 = vmatprep.subr.bf16.mxu0 %v670_v1  ;;  %606 = vmatprep.subr.bf16.mxu1 %v670_v1 }
  0x1d   : > { %379 = vmatpush1.bf16.msra.mxu0 %v633_v7  ;;  %615 = vmatpush1.bf16.msra.mxu1 %v633_v7 }
  0x1e   : > { %380 = vmatprep.subr.bf16.mxu0 %v670_v1  ;;  %607 = vmatprep.subr.bf16.mxu1 %v670_v1 }
  0x21   : > { %381 = vmatpush1.bf16.msra.mxu0 %v634_v8  ;;  %616 = vmatpush1.bf16.msra.mxu1 %v634_v8 }
  0x22   : > { %382 = vmatprep.subr.bf16.mxu0 %v670_v1  ;;  %608 = vmatprep.subr.bf16.mxu1 %v670_v1 }
  0x25   : > { %383 = vmatpush1.bf16.msra.mxu0 %v635_v9  ;;  %617 = vmatpush1.bf16.msra.mxu1 %v635_v9 }
  0x26   : > { %384 = vmatprep.subr.bf16.mxu0 %v670_v1  ;;  %609 = vmatprep.subr.bf16.mxu1 %v670_v1 }
  0x29   : > { %385 = vmatpush1.bf16.msra.mxu0 %v636_v10  ;;  %618 = vmatpush1.bf16.msra.mxu1 %v636_v10 }
  0x2a   : > { %400 = vmatprep.subr.bf16.mxu0 %v670_v1  ;;  %610 = vmatprep.subr.bf16.mxu1 %v670_v1 }
  0x2d   : > { %401 = vmatpush2.bf16.msra.mxu0 %v637_v11  ;;  %619 = vmatpush2.bf16.msra.mxu1 %v637_v11 }
  0x30   : > { %403 = vmatmul.mubr.bf16.vlgmr.msra.gmra.mxu0 %v638_v12  ;;  %435 = vmatmul.mubr.bf16.vlgmr.msra.gmra.mxu1 %v641_v13 }
  0x31   : > { %592 = vmatprep.mubr.msk.bf16.mxu0 %vm345_vm0, %v644_v14  ;;  %596 = vmatprep.mubr.msk.bf16.mxu1 %vm345_vm0, %v646_v15 }
  0x38   : > { %411 = vmatmul.mubr.bf16.gmra.mxu0 %v648_v16  ;;  %443 = vmatmul.mubr.bf16.gmra.mxu1 %v649_v17 }
  0x39   : > { %593 = vmatprep.mubr.msk.bf16.mxu0 %vm345_vm0, %v650_v18  ;;  %597 = vmatprep.mubr.msk.bf16.mxu1 %vm345_vm0, %v652_v19 }
  0x40   : > { %419 = vmatmul.mubr.bf16.gmra.mxu0 %v654_v20  ;;  %451 = vmatmul.mubr.bf16.gmra.mxu1 %v655_v21 }
  0x41   : > { %594 = vmatprep.mubr.msk.bf16.mxu0 %vm345_vm0, %v656_v22  ;;  %598 = vmatprep.mubr.msk.bf16.mxu1 %vm345_vm0, %v658_v23 }
  0x48   : > { %427 = vmatmul.mubr.bf16.gmra.mxu0 %v660_v24  ;;  %459 = vmatmul.mubr.bf16.gmra.mxu1 %v661_v25 }
  0xf0   : > { %v404_v27 = vpop.f32.mrf.mxu0  ;;  %v436_v28 = vpop.f32.mrf.mxu1 }
  0xf1   : > { %v405_v29 = vadd.f32 %v763_v26, %v404_v27  ;;  %v437_v30 = vadd.f32 %v763_v26, %v436_v28 }
  0xf2   : > { %v406_v31 = vpop.f32.mrf.mxu0  ;;  %v438_v32 = vpop.f32.mrf.mxu1 }
  0xf3   : > { %v467_v33 = vmax.f32 %v405_v29, 0.0  ;;  %v475_v34 = vmax.f32 %v437_v30, 0.0 }
  0xf4   : > { %v407_v35 = vpop.f32.mrf.mxu0  ;;  %v439_v36 = vpop.f32.mrf.mxu1 }
  0xf5   : > { %483 = vst [vmem:[%s772_s15] sm:$0xff] %v467_v33  ;;  %491 = vst [vmem:[%s772_s15 + $0x40] sm:$0xff] %v475_v34  ;;  %v408_v37 = vadd.f32 %v763_v26, %v407_v35  ;;  %v440_v38 = vadd.f32 %v763_v26, %v439_v36 }
  0xf6   : > { %v409_v39 = vpop.f32.mrf.mxu0  ;;  %v441_v40 = vpop.f32.mrf.mxu1 }
  0xf7   : > { %v468_v41 = vmax.f32 %v408_v37, 0.0  ;;  %v476_v42 = vmax.f32 %v440_v38, 0.0 }
  0xf8   : > { %v412_v43 = vpop.f32.mrf.mxu0  ;;  %v444_v44 = vpop.f32.mrf.mxu1 }
  0xf9   : > { %484 = vst [vmem:[%s772_s15 + $0x8] sm:$0xff] %v468_v41  ;;  %492 = vst [vmem:[%s772_s15 + $0x48] sm:$0xff] %v476_v42  ;;  %v413_v45 = vadd.f32 %v763_v26, %v412_v43  ;;  %v445_v46 = vadd.f32 %v763_v26, %v444_v44 }
  0xfa   : > { %v414_v47 = vpop.f32.mrf.mxu0  ;;  %v446_v48 = vpop.f32.mrf.mxu1 }
  0xfb   : > { %v469_v49 = vmax.f32 %v413_v45, 0.0  ;;  %v477_v50 = vmax.f32 %v445_v46, 0.0 }
  0xfc   : > { %v415_v51 = vpop.f32.mrf.mxu0  ;;  %v447_v52 = vpop.f32.mrf.mxu1 }
  0xfd   : > { %485 = vst [vmem:[%s772_s15 + $0x10] sm:$0xff] %v469_v49  ;;  %493 = vst [vmem:[%s772_s15 + $0x50] sm:$0xff] %v477_v50  ;;  %v416_v53 = vadd.f32 %v763_v26, %v415_v51  ;;  %v448_v54 = vadd.f32 %v763_v26, %v447_v52 }
  0xfe   : > { %v417_v55 = vpop.f32.mrf.mxu0  ;;  %v449_v56 = vpop.f32.mrf.mxu1 }
  0xff   : > { %v470_v57 = vmax.f32 %v416_v53, 0.0  ;;  %v478_v58 = vmax.f32 %v448_v54, 0.0 }
 0x100   : > { %v420_v59 = vpop.f32.mrf.mxu0  ;;  %v452_v60 = vpop.f32.mrf.mxu1 }
 0x101   : > { %486 = vst [vmem:[%s772_s15 + $0x18] sm:$0xff] %v470_v57  ;;  %494 = vst [vmem:[%s772_s15 + $0x58] sm:$0xff] %v478_v58  ;;  %v421_v61 = vadd.f32 %v763_v26, %v420_v59  ;;  %v453_v62 = vadd.f32 %v763_v26, %v452_v60 }
 0x102   : > { %v422_v63 = vpop.f32.mrf.mxu0  ;;  %v454_v0 = vpop.f32.mrf.mxu1 }
 0x103   : > { %v471_v1 = vmax.f32 %v421_v61, 0.0  ;;  %v479_v2 = vmax.f32 %v453_v62, 0.0 }
 0x104   : > { %v423_v3 = vpop.f32.mrf.mxu0  ;;  %v455_v4 = vpop.f32.mrf.mxu1 }
 0x105   : > { %487 = vst [vmem:[%s772_s15 + $0x20] sm:$0xff] %v471_v1  ;;  %495 = vst [vmem:[%s772_s15 + $0x60] sm:$0xff] %v479_v2  ;;  %v424_v5 = vadd.f32 %v763_v26, %v423_v3  ;;  %v456_v6 = vadd.f32 %v763_v26, %v455_v4 }
 0x106   : > { %v425_v7 = vpop.f32.mrf.mxu0  ;;  %v457_v8 = vpop.f32.mrf.mxu1 }
 0x107   : > { %v472_v9 = vmax.f32 %v424_v5, 0.0  ;;  %v480_v10 = vmax.f32 %v456_v6, 0.0 }
 0x108   : > { %v428_v11 = vpop.f32.mrf.mxu0  ;;  %v460_v12 = vpop.f32.mrf.mxu1 }
 0x109   : > { %488 = vst [vmem:[%s772_s15 + $0x28] sm:$0xff] %v472_v9  ;;  %496 = vst [vmem:[%s772_s15 + $0x68] sm:$0xff] %v480_v10  ;;  %v429_v13 = vadd.f32 %v763_v26, %v428_v11  ;;  %v461_v14 = vadd.f32 %v763_v26, %v460_v12 }
 0x10a   : > { %v430_v15 = vpop.f32.mrf.mxu0  ;;  %v462_v16 = vpop.f32.mrf.mxu1 }
 0x10b   : > { %v473_v17 = vmax.f32 %v429_v13, 0.0  ;;  %v481_v18 = vmax.f32 %v461_v14, 0.0 }
 0x10c   : > { %v431_v19 = vpop.f32.mrf.mxu0  ;;  %v463_v20 = vpop.f32.mrf.mxu1 }
 0x10d   : > { %489 = vst [vmem:[%s772_s15 + $0x30] sm:$0xff] %v473_v17  ;;  %497 = vst [vmem:[%s772_s15 + $0x70] sm:$0xff] %v481_v18  ;;  %v432_v21 = vadd.f32 %v763_v26, %v431_v19  ;;  %v464_v22 = vadd.f32 %v763_v26, %v463_v20 }
 0x10e   : > { %v433_v23 = vpop.f32.mrf.mxu0  ;;  %v465_v24 = vpop.f32.mrf.mxu1 }
 0x10f   : > { %v474_v25 = vmax.f32 %v432_v21, 0.0  ;;  %v482_v27 = vmax.f32 %v464_v22, 0.0 }
 0x111   : > { %490 = vst [vmem:[%s772_s15 + $0x38] sm:$0xff] %v474_v25  ;;  %498 = vst [vmem:[%s772_s15 + $0x78] sm:$0xff] %v482_v27 }
 0x112 PF: > { %s13_s12 = sadd.s32 1, %s668_s12  }
 0x113   : > { %p10_p4 = scmp.ge.s32.totalorder %s13_s12, 4  }
 0x115   :  { %12 = sbr.rel (!%p10_p4) target bundleno = 1 (0x1), region = 62 }

// kernel: tile.13
= control target key start
LH: loop header
LB: loop body
LE: loop exit
PB: predicated region body
PF: predicated region fallthrough
CT: control target
= control target key end

     0   :  { %s22_s0 = inlined_call_operand.vmem [shape: f32[8], index: 0, kind: input, shape index: {}]   ;;  %s23_s1 = inlined_call_operand.vmem [shape: f32[4,8], index: 1, kind: output, shape index: {}]  }
   0x1   :  { %v4_v0 = vld [vmem:[%s22_s0] ss:$0 sm:$0xff] }
   0x2   :  { %5 = vst [vmem:[%s23_s1] sm:$0xf] %v4_v0 }

// kernel: tile.14
= control target key start
LH: loop header
LB: loop body
LE: loop exit
PB: predicated region body
PF: predicated region fallthrough
CT: control target
= control target key end

     0   :  { %vm8_vm0 = vcmask 64512   ;;  %s40_s8 = smov 8   ;;  %s41_s9 = smov 16   ;;  %vm14_vm1 = vcmask 261312   ;;  %vm20_vm2 = vcmask 195712   ;;  %vm26_vm3 = vcmask 130112   ;;  %s58_s0 = inlined_call_operand.vmem [shape: f32[4,8], index: 0, kind: input, shape index: {}]   ;;  %s59_s1 = inlined_call_operand.vmem [shape: f32[32], index: 1, kind: output, shape index: {}]  }
   0x1   :  { %v5_v0 = vld [vmem:[%s58_s0] sm:$0xf]  ;;  %s39_s0 = smov 24  }
   0x2   :  { %6 = vst [vmem:[#allocation1] sm:$0xf] %v5_v0 }
   0x9   :  { %v11_v1 = vld [vmem:[#allocation1 + $0x3] sm:$0x1]   ;;  %v23_v2 = vld [vmem:[#allocation1 + $0x1] sm:$0x1]   ;;  %v7_v3 = vld [vmem:[#allocation1] sm:$0x1]  }
   0xa   :  { %12 = vrot.lane.b32.xlu0 %v11_v1, %s39_s0  ;;  %24 = vrot.lane.b32.xlu1 %v23_v2, %s40_s8  ;;  %v17_v4 = vld [vmem:[#allocation1 + $0x2] sm:$0x1]   ;;  %9 = vst.msk [vmem:[#allocation0] sm:$0x1] %vm8_vm0, %v7_v3  }
   0xe   :  { %18 = vrot.lane.b32.xlu0 %v17_v4, %s41_s9 }
  0x7c   :  { %v13_v5 = vpop.permute.xlu0 %12   ;;  %v25_v6 = vpop.permute.xlu1 %24  }
  0x7d   :  { %15 = vst.msk [vmem:[#allocation0] sm:$0x1] %vm14_vm1, %v13_v5  }
  0x80   :  { %v19_v7 = vpop.permute.xlu0 %18  }
  0x81   :  { %21 = vst.msk [vmem:[#allocation0] sm:$0x1] %vm20_vm2, %v19_v7  }
  0x82   :  { %27 = vst.msk [vmem:[#allocation0] sm:$0x1] %vm26_vm3, %v25_v6  }
  0x89   :  { %v32_v8 = vld [vmem:[#allocation0] sm:$0x1] }
  0x8a   :  { %35 = vst [vmem:[%s59_s1] sm:$0x1] %v32_v8 }

// kernel: crunet_d_mon_nws_forward.68
= control target key start
LH: loop header
LB: loop body
LE: loop exit
PB: predicated region body
PF: predicated region fallthrough
CT: control target
= control target key end

     0   :  { %s556_s12 = smov 0   ;;  %s605_s0 = inlined_call_operand.vmem [shape: bf16[256,8], index: 0, kind: input, shape index: {}]   ;;  %s606_s1 = inlined_call_operand.vmem [shape: bf16[8,128], index: 1, kind: input, shape index: {}]   ;;  %s607_s2 = inlined_call_operand.vmem [shape: f32[1,128], index: 2, kind: input, shape index: {}]   ;;  %s608_s3 = inlined_call_operand.vmem [shape: f32[256,128], index: 3, kind: output, shape index: {}]  }
   0x1 LB: > { %s453_s13 = sadd.s32 4294967295, %s534_s12   ;;  %p457_p0 = scmp.ge.s32.totalorder %s534_s12, 1  ;;  %s534_s12 = sphi %s556_s12, %s13_s12  }
   0x2   : > { %p138_p1 = scmp.lt.s32.totalorder %s534_s12, 3 }
   0x4   : > { %p139_p2 = pnand %p457_p0, %p138_p1 }
   0x5   : > { %s458_s16 = sshll.u32 (!%p139_p2), %s453_s13, 4 }
   0x6   : > { %142 = sbr.rel (%p139_p2) target bundleno = 229 (0xe5), region = 32  ;;  %p163_p3 = scmp.lt.s32.totalorder (!%p139_p2), %s458_s16, 31 }
   0xb   : > { %v191_v0 = vld [vmem:[%s606_s1] sm:$0xf]  ;;  %vm264_vm0 = vcmask 1043456   ;;  %s610_s16 = smov (!%p163_p3, %s458_s16), 31  ;;  %vm239_vm1 = vcmask 64512  }
   0xc   : > { %510 = vmatprep.subr.msk.bf16.mxu0 %vm264_vm0, %v191_v0  ;;  %511 = vmatprep.subr.msk.bf16.mxu1 %vm264_vm0, %v191_v0  ;;  %v266_v1 = vsel %vm264_vm0, %v191_v0, 0  ;;  %s459_s17 = sshll.u32 %s610_s16, 2  ;;  %v462_v10 = vld [vmem:[%s607_s2] ss:$0 sm:$0xff]  ;;  %s461_s23 = sshll.u32 %s610_s16, 3 }
   0xd   : > { %491 = vmatpush3.bf16.msra.mxu0 %v266_v1  ;;  %509 = vmatpush3.bf16.msra.mxu1 %v266_v1  ;;  %s166_s20 = scalar_lea.vmem %s605_s0, %s459_s17  ;;  %s584_s26 = scalar_lea.vmem %s608_s3, %s461_s23 }
   0xe   : > { %v520_v2 = vld [vmem:[%s166_s20] sm:$0xff]   ;;  %v522_v4 = vld [vmem:[%s166_s20 + $0x8] sm:$0xff]   ;;  %v524_v6 = vld [vmem:[%s166_s20 + $0x10] sm:$0xff]  }
   0xf   : > { %v521_v3 = vld [vmem:[%s166_s20 + $0x20] sm:$0xff]   ;;  %492 = vmatprep.mubr.msk.bf16.mxu0 %vm239_vm1, %v520_v2  ;;  %v523_v5 = vld [vmem:[%s166_s20 + $0x28] sm:$0xff]   ;;  %v525_v7 = vld [vmem:[%s166_s20 + $0x30] sm:$0xff]  }
  0x10   : > { %500 = vmatprep.mubr.msk.bf16.mxu1 %vm239_vm1, %v521_v3  ;;  %493 = vmatmul.mubr.msk.bf16.vlgmr.msra.gmra.mxu0 %vm239_vm1, %v522_v4  ;;  %v526_v8 = vld [vmem:[%s166_s20 + $0x18] sm:$0xff]  }
  0x11   : > { %501 = vmatmul.mubr.msk.bf16.vlgmr.msra.gmra.mxu1 %vm239_vm1, %v523_v5  ;;  %496 = vmatprep.mubr.msk.bf16.mxu0 %vm239_vm1, %v524_v6  ;;  %v527_v9 = vld [vmem:[%s166_s20 + $0x38] sm:$0xff]  }
  0x12   : > { %504 = vmatprep.mubr.msk.bf16.mxu1 %vm239_vm1, %v525_v7 }
  0x18   : > { %497 = vmatmul.mubr.msk.bf16.gmra.mxu0 %vm239_vm1, %v526_v8 }
  0x19   : > { %505 = vmatmul.mubr.msk.bf16.gmra.mxu1 %vm239_vm1, %v527_v9 }
  0xd0   : > { %v494_v11 = vpop.f32.mrf.mxu0 }
  0xd1   : > { %v311_v12 = vadd.f32 %v494_v11, %v462_v10  ;;  %v502_v13 = vpop.f32.mrf.mxu1 }
  0xd2   : > { %v343_v14 = vadd.f32 %v502_v13, %v462_v10  ;;  %v302_v15 = vpop.f32.mrf.mxu0 }
  0xd3   : > { %v367_v16 = vmax.f32 %v311_v12, 0.0  ;;  %v303_v17 = vadd.f32 %v462_v10, %v302_v15  ;;  %v334_v18 = vpop.f32.mrf.mxu1 }
  0xd4   : > { %v375_v19 = vmax.f32 %v343_v14, 0.0  ;;  %v335_v20 = vadd.f32 %v462_v10, %v334_v18  ;;  %v495_v21 = vpop.f32.mrf.mxu0 }
  0xd5   : > { %383 = vst [vmem:[%s584_s26 + $0x10] sm:$0xff] %v367_v16  ;;  %v365_v22 = vmax.f32 %v303_v17, 0.0  ;;  %v314_v23 = vadd.f32 %v495_v21, %v462_v10  ;;  %v503_v24 = vpop.f32.mrf.mxu1 }
  0xd6   : > { %391 = vst [vmem:[%s584_s26 + $0x50] sm:$0xff] %v375_v19  ;;  %v373_v25 = vmax.f32 %v335_v20, 0.0  ;;  %v346_v26 = vadd.f32 %v503_v24, %v462_v10  ;;  %v305_v27 = vpop.f32.mrf.mxu0 }
  0xd7   : > { %381 = vst [vmem:[%s584_s26] sm:$0xff] %v365_v22  ;;  %v368_v28 = vmax.f32 %v314_v23, 0.0  ;;  %v306_v29 = vadd.f32 %v462_v10, %v305_v27  ;;  %v337_v30 = vpop.f32.mrf.mxu1 }
  0xd8   : > { %389 = vst [vmem:[%s584_s26 + $0x40] sm:$0xff] %v373_v25  ;;  %v376_v31 = vmax.f32 %v346_v26, 0.0  ;;  %v338_v32 = vadd.f32 %v462_v10, %v337_v30  ;;  %v498_v33 = vpop.f32.mrf.mxu0 }
  0xd9   : > { %384 = vst [vmem:[%s584_s26 + $0x18] sm:$0xff] %v368_v28  ;;  %v366_v34 = vmax.f32 %v306_v29, 0.0  ;;  %v327_v35 = vadd.f32 %v498_v33, %v462_v10  ;;  %v506_v36 = vpop.f32.mrf.mxu1 }
  0xda   : > { %392 = vst [vmem:[%s584_s26 + $0x58] sm:$0xff] %v376_v31  ;;  %v374_v37 = vmax.f32 %v338_v32, 0.0  ;;  %v359_v38 = vadd.f32 %v506_v36, %v462_v10  ;;  %v318_v39 = vpop.f32.mrf.mxu0 }
  0xdb   : > { %382 = vst [vmem:[%s584_s26 + $0x8] sm:$0xff] %v366_v34  ;;  %v371_v40 = vmax.f32 %v327_v35, 0.0  ;;  %v319_v41 = vadd.f32 %v462_v10, %v318_v39  ;;  %v350_v42 = vpop.f32.mrf.mxu1 }
  0xdc   : > { %390 = vst [vmem:[%s584_s26 + $0x48] sm:$0xff] %v374_v37  ;;  %v379_v43 = vmax.f32 %v359_v38, 0.0  ;;  %v351_v44 = vadd.f32 %v462_v10, %v350_v42  ;;  %v499_v45 = vpop.f32.mrf.mxu0 }
  0xdd   : > { %387 = vst [vmem:[%s584_s26 + $0x30] sm:$0xff] %v371_v40  ;;  %v369_v46 = vmax.f32 %v319_v41, 0.0  ;;  %v330_v47 = vadd.f32 %v499_v45, %v462_v10  ;;  %v507_v48 = vpop.f32.mrf.mxu1 }
  0xde   : > { %395 = vst [vmem:[%s584_s26 + $0x70] sm:$0xff] %v379_v43  ;;  %v377_v49 = vmax.f32 %v351_v44, 0.0  ;;  %v362_v50 = vadd.f32 %v507_v48, %v462_v10  ;;  %v321_v51 = vpop.f32.mrf.mxu0 }
  0xdf   : > { %385 = vst [vmem:[%s584_s26 + $0x20] sm:$0xff] %v369_v46  ;;  %v372_v52 = vmax.f32 %v330_v47, 0.0  ;;  %v322_v53 = vadd.f32 %v462_v10, %v321_v51  ;;  %v353_v54 = vpop.f32.mrf.mxu1 }
  0xe0   : > { %393 = vst [vmem:[%s584_s26 + $0x60] sm:$0xff] %v377_v49  ;;  %v380_v55 = vmax.f32 %v362_v50, 0.0  ;;  %v354_v56 = vadd.f32 %v462_v10, %v353_v54 }
  0xe1   : > { %388 = vst [vmem:[%s584_s26 + $0x38] sm:$0xff] %v372_v52  ;;  %v370_v57 = vmax.f32 %v322_v53, 0.0 }
  0xe2   : > { %396 = vst [vmem:[%s584_s26 + $0x78] sm:$0xff] %v380_v55  ;;  %v378_v58 = vmax.f32 %v354_v56, 0.0 }
  0xe3   : > { %386 = vst [vmem:[%s584_s26 + $0x28] sm:$0xff] %v370_v57 }
  0xe4   : > { %394 = vst [vmem:[%s584_s26 + $0x68] sm:$0xff] %v378_v58 }
  0xe5 PF: > { %s13_s12 = sadd.s32 1, %s534_s12  }
  0xe6   : > { %p10_p4 = scmp.ge.s32.totalorder %s13_s12, 4  }
  0xe8   :  { %12 = sbr.rel (!%p10_p4) target bundleno = 1 (0x1), region = 62 }

// kernel: crunet_d_mon_nws_forward.69
= control target key start
LH: loop header
LB: loop body
LE: loop exit
PB: predicated region body
PF: predicated region fallthrough
CT: control target
= control target key end

     0   :  { %s1184_s12 = smov 0   ;;  %s1412_s0 = inlined_call_operand.vmem [shape: bf16[1024,24], index: 0, kind: input, shape index: {}]   ;;  %s1413_s1 = inlined_call_operand.vmem [shape: bf16[24,128], index: 1, kind: input, shape index: {}]   ;;  %s1414_s2 = inlined_call_operand.vmem [shape: f32[1,128], index: 2, kind: input, shape index: {}]   ;;  %s1415_s3 = inlined_call_operand.vmem [shape: f32[1024,128], index: 3, kind: output, shape index: {}]  }
   0x1 LB: > { %s928_s13 = sadd.s32 4294967295, %s1162_s12   ;;  %p932_p0 = scmp.ge.s32.totalorder %s1162_s12, 1  ;;  %s1162_s12 = sphi %s1184_s12, %s13_s12  }
   0x2   : > { %p138_p1 = scmp.lt.s32.totalorder %s1162_s12, 3 }
   0x4   : > { %p139_p2 = pnand %p932_p0, %p138_p1 }
   0x5   : > { %s933_s18 = sshll.u32 (!%p139_p2), %s928_s13, 6 }
   0x6   : > { %142 = sbr.rel (%p139_p2) target bundleno = 278 (0x116), region = 32  ;;  %p163_p3 = scmp.lt.s32.totalorder (!%p139_p2), %s933_s18, 127 }
   0xb   : > { %v1122_v0 = vld [vmem:[%s1413_s1 + $0x8] ss:$0 sps:$4 sm:$0xff]   ;;  %vm515_vm0 = vcmask 1043456   ;;  %v1123_v1 = vld [vmem:[%s1413_s1] sm:$0xff]   ;;  %s1417_s18 = smov (!%p163_p3, %s933_s18), 127  ;;  %vm418_vm1 = vcmask 195584  }
   0xc   : > { %1112 = vmatprep.subr.msk.bf16.mxu0 %vm515_vm0, %v1122_v0  ;;  %1113 = vmatprep.subr.msk.bf16.mxu1 %vm515_vm0, %v1122_v0  ;;  %v517_v2 = vsel %vm515_vm0, %v1122_v0, 0  ;;  %s934_s19 = sshll.u32 %s1417_s18, 2  ;;  %s936_s23 = sshll.u32 %s1417_s18, 3  ;;  %v1274_v35 = vld [vmem:[%s1414_s2] ss:$0 sm:$0xff] }
   0xd   : > { %1041 = vmatpush3.bf16.msra.mxu0 %v517_v2  ;;  %1110 = vmatpush3.bf16.msra.mxu1 %v517_v2  ;;  %s1204_s22 = scalar_lea.vmem %s1412_s0, %s934_s19  ;;  %s1279_s28 = scalar_lea.vmem %s1415_s3, %s936_s23 }
   0xe   : > { %1042 = vmatprep.subr.bf16.mxu0 %v1123_v1  ;;  %1109 = vmatprep.subr.bf16.mxu1 %v1123_v1  ;;  %v1124_v3 = vld [vmem:[%s1204_s22] sm:$0xff]   ;;  %v1126_v5 = vld [vmem:[%s1204_s22 + $0x8] sm:$0xff]   ;;  %v1128_v7 = vld [vmem:[%s1204_s22 + $0x10] sm:$0xff]  }
   0xf   : > { %v1125_v4 = vld [vmem:[%s1204_s22 + $0x80] sm:$0xff]   ;;  %1044 = vmatprep.mubr.msk.bf16.mxu0 %vm418_vm1, %v1124_v3  ;;  %v1127_v6 = vld [vmem:[%s1204_s22 + $0x88] sm:$0xff]   ;;  %v1129_v8 = vld [vmem:[%s1204_s22 + $0x90] sm:$0xff]  }
  0x10   : > { %1076 = vmatprep.mubr.msk.bf16.mxu1 %vm418_vm1, %v1125_v4  ;;  %v1130_v9 = vld [vmem:[%s1204_s22 + $0x18] sm:$0xff]   ;;  %v1132_v11 = vld [vmem:[%s1204_s22 + $0x20] sm:$0xff]   ;;  %v1134_v13 = vld [vmem:[%s1204_s22 + $0x28] sm:$0xff]  }
  0x11   : > { %1043 = vmatpush3.bf16.msra.mxu0 %v1123_v1  ;;  %1111 = vmatpush3.bf16.msra.mxu1 %v1123_v1  ;;  %v1131_v10 = vld [vmem:[%s1204_s22 + $0x98] sm:$0xff]   ;;  %v1133_v12 = vld [vmem:[%s1204_s22 + $0xa0] sm:$0xff]   ;;  %v1135_v14 = vld [vmem:[%s1204_s22 + $0xa8] sm:$0xff]  }
  0x12   : > { %v1136_v15 = vld [vmem:[%s1204_s22 + $0x30] sm:$0xff]   ;;  %v1138_v17 = vld [vmem:[%s1204_s22 + $0x38] sm:$0xff]   ;;  %v1140_v19 = vld [vmem:[%s1204_s22 + $0x40] sm:$0xff]  }
  0x13   : > { %v1137_v16 = vld [vmem:[%s1204_s22 + $0xb0] sm:$0xff]   ;;  %v1139_v18 = vld [vmem:[%s1204_s22 + $0xb8] sm:$0xff]   ;;  %v1141_v20 = vld [vmem:[%s1204_s22 + $0xc0] sm:$0xff]  }
  0x14   : > { %1045 = vmatmul.mubr.msk.bf16.vlgmr.msra.gmra.mxu0 %vm418_vm1, %v1126_v5  ;;  %1077 = vmatmul.mubr.msk.bf16.vlgmr.msra.gmra.mxu1 %vm418_vm1, %v1127_v6  ;;  %v1142_v21 = vld [vmem:[%s1204_s22 + $0x48] sm:$0xff]   ;;  %v1144_v23 = vld [vmem:[%s1204_s22 + $0x50] sm:$0xff]   ;;  %v1146_v25 = vld [vmem:[%s1204_s22 + $0x58] sm:$0xff]  }
  0x15   : > { %1048 = vmatprep.mubr.msk.bf16.mxu0 %vm418_vm1, %v1128_v7  ;;  %1080 = vmatprep.mubr.msk.bf16.mxu1 %vm418_vm1, %v1129_v8  ;;  %v1143_v22 = vld [vmem:[%s1204_s22 + $0xc8] sm:$0xff]   ;;  %v1145_v24 = vld [vmem:[%s1204_s22 + $0xd0] sm:$0xff]   ;;  %v1147_v26 = vld [vmem:[%s1204_s22 + $0xd8] sm:$0xff]  }
  0x16   : > { %v1148_v27 = vld [vmem:[%s1204_s22 + $0x60] sm:$0xff]   ;;  %v1150_v29 = vld [vmem:[%s1204_s22 + $0x68] sm:$0xff]   ;;  %v1152_v31 = vld [vmem:[%s1204_s22 + $0x70] sm:$0xff]  }
  0x17   : > { %v1149_v28 = vld [vmem:[%s1204_s22 + $0xe0] sm:$0xff]   ;;  %v1151_v30 = vld [vmem:[%s1204_s22 + $0xe8] sm:$0xff]   ;;  %v1153_v32 = vld [vmem:[%s1204_s22 + $0xf0] sm:$0xff]  }
  0x18   : > { %v1154_v33 = vld [vmem:[%s1204_s22 + $0x78] sm:$0xff]  }
  0x19   : > { %v1155_v34 = vld [vmem:[%s1204_s22 + $0xf8] sm:$0xff]  }
  0x1c   : > { %1049 = vmatmul.mubr.msk.bf16.gmra.mxu0 %vm418_vm1, %v1130_v9  ;;  %1081 = vmatmul.mubr.msk.bf16.gmra.mxu1 %vm418_vm1, %v1131_v10 }
  0x1d   : > { %1052 = vmatprep.mubr.msk.bf16.mxu0 %vm418_vm1, %v1132_v11  ;;  %1084 = vmatprep.mubr.msk.bf16.mxu1 %vm418_vm1, %v1133_v12 }
  0x24   : > { %1053 = vmatmul.mubr.msk.bf16.gmra.mxu0 %vm418_vm1, %v1134_v13  ;;  %1085 = vmatmul.mubr.msk.bf16.gmra.mxu1 %vm418_vm1, %v1135_v14 }
  0x25   : > { %1056 = vmatprep.mubr.msk.bf16.mxu0 %vm418_vm1, %v1136_v15  ;;  %1088 = vmatprep.mubr.msk.bf16.mxu1 %vm418_vm1, %v1137_v16 }
  0x2c   : > { %1057 = vmatmul.mubr.msk.bf16.gmra.mxu0 %vm418_vm1, %v1138_v17  ;;  %1089 = vmatmul.mubr.msk.bf16.gmra.mxu1 %vm418_vm1, %v1139_v18 }
  0x2d   : > { %1060 = vmatprep.mubr.msk.bf16.mxu0 %vm418_vm1, %v1140_v19  ;;  %1092 = vmatprep.mubr.msk.bf16.mxu1 %vm418_vm1, %v1141_v20 }
  0x34   : > { %1061 = vmatmul.mubr.msk.bf16.gmra.mxu0 %vm418_vm1, %v1142_v21  ;;  %1093 = vmatmul.mubr.msk.bf16.gmra.mxu1 %vm418_vm1, %v1143_v22 }
  0x35   : > { %1064 = vmatprep.mubr.msk.bf16.mxu0 %vm418_vm1, %v1144_v23  ;;  %1096 = vmatprep.mubr.msk.bf16.mxu1 %vm418_vm1, %v1145_v24 }
  0x3c   : > { %1065 = vmatmul.mubr.msk.bf16.gmra.mxu0 %vm418_vm1, %v1146_v25  ;;  %1097 = vmatmul.mubr.msk.bf16.gmra.mxu1 %vm418_vm1, %v1147_v26 }
  0x3d   : > { %1068 = vmatprep.mubr.msk.bf16.mxu0 %vm418_vm1, %v1148_v27  ;;  %1100 = vmatprep.mubr.msk.bf16.mxu1 %vm418_vm1, %v1149_v28 }
  0x44   : > { %1069 = vmatmul.mubr.msk.bf16.gmra.mxu0 %vm418_vm1, %v1150_v29  ;;  %1101 = vmatmul.mubr.msk.bf16.gmra.mxu1 %vm418_vm1, %v1151_v30 }
  0x45   : > { %1072 = vmatprep.mubr.msk.bf16.mxu0 %vm418_vm1, %v1152_v31  ;;  %1104 = vmatprep.mubr.msk.bf16.mxu1 %vm418_vm1, %v1153_v32 }
  0x4c   : > { %1073 = vmatmul.mubr.msk.bf16.gmra.mxu0 %vm418_vm1, %v1154_v33  ;;  %1105 = vmatmul.mubr.msk.bf16.gmra.mxu1 %vm418_vm1, %v1155_v34 }
  0xd4   : > { %v1046_v36 = vpop.f32.mrf.mxu0  ;;  %v1078_v38 = vpop.f32.mrf.mxu1 }
  0xd5   : > { %v562_v37 = vadd.f32 %v1046_v36, %v1274_v35  ;;  %v690_v39 = vadd.f32 %v1078_v38, %v1274_v35 }
  0xd6   : > { %v553_v40 = vpop.f32.mrf.mxu0  ;;  %v681_v42 = vpop.f32.mrf.mxu1 }
  0xd7   : > { %810 = vst [vmem:[%s1279_s28 + $0x10] sm:$0xff] %v562_v37  ;;  %v554_v41 = vadd.f32 %v1274_v35, %v553_v40  ;;  %842 = vst [vmem:[%s1279_s28 + $0x110] sm:$0xff] %v690_v39  ;;  %v682_v43 = vadd.f32 %v1274_v35, %v681_v42 }
  0xd8   : > { %v1047_v44 = vpop.f32.mrf.mxu0  ;;  %v1079_v46 = vpop.f32.mrf.mxu1 }
  0xd9   : > { %808 = vst [vmem:[%s1279_s28] sm:$0xff] %v554_v41  ;;  %v565_v45 = vadd.f32 %v1047_v44, %v1274_v35  ;;  %840 = vst [vmem:[%s1279_s28 + $0x100] sm:$0xff] %v682_v43  ;;  %v693_v47 = vadd.f32 %v1079_v46, %v1274_v35 }
  0xda   : > { %v556_v48 = vpop.f32.mrf.mxu0  ;;  %v684_v50 = vpop.f32.mrf.mxu1 }
  0xdb   : > { %811 = vst [vmem:[%s1279_s28 + $0x18] sm:$0xff] %v565_v45  ;;  %v557_v49 = vadd.f32 %v1274_v35, %v556_v48  ;;  %843 = vst [vmem:[%s1279_s28 + $0x118] sm:$0xff] %v693_v47  ;;  %v685_v51 = vadd.f32 %v1274_v35, %v684_v50 }
  0xdc   : > { %v1050_v52 = vpop.f32.mrf.mxu0  ;;  %v1082_v54 = vpop.f32.mrf.mxu1 }
  0xdd   : > { %809 = vst [vmem:[%s1279_s28 + $0x8] sm:$0xff] %v557_v49  ;;  %v578_v53 = vadd.f32 %v1050_v52, %v1274_v35  ;;  %841 = vst [vmem:[%s1279_s28 + $0x108] sm:$0xff] %v685_v51  ;;  %v706_v55 = vadd.f32 %v1082_v54, %v1274_v35 }
  0xde   : > { %v569_v56 = vpop.f32.mrf.mxu0  ;;  %v697_v58 = vpop.f32.mrf.mxu1 }
  0xdf   : > { %814 = vst [vmem:[%s1279_s28 + $0x30] sm:$0xff] %v578_v53  ;;  %v570_v57 = vadd.f32 %v1274_v35, %v569_v56  ;;  %846 = vst [vmem:[%s1279_s28 + $0x130] sm:$0xff] %v706_v55  ;;  %v698_v59 = vadd.f32 %v1274_v35, %v697_v58 }
  0xe0   : > { %v1051_v60 = vpop.f32.mrf.mxu0  ;;  %v1083_v62 = vpop.f32.mrf.mxu1 }
  0xe1   : > { %812 = vst [vmem:[%s1279_s28 + $0x20] sm:$0xff] %v570_v57  ;;  %v581_v61 = vadd.f32 %v1051_v60, %v1274_v35  ;;  %844 = vst [vmem:[%s1279_s28 + $0x120] sm:$0xff] %v698_v59  ;;  %v709_v63 = vadd.f32 %v1083_v62, %v1274_v35 }
  0xe2   : > { %v572_v0 = vpop.f32.mrf.mxu0  ;;  %v700_v2 = vpop.f32.mrf.mxu1 }
  0xe3   : > { %815 = vst [vmem:[%s1279_s28 + $0x38] sm:$0xff] %v581_v61  ;;  %v573_v1 = vadd.f32 %v1274_v35, %v572_v0  ;;  %847 = vst [vmem:[%s1279_s28 + $0x138] sm:$0xff] %v709_v63  ;;  %v701_v3 = vadd.f32 %v1274_v35, %v700_v2 }
  0xe4   : > { %v1054_v4 = vpop.f32.mrf.mxu0  ;;  %v1086_v6 = vpop.f32.mrf.mxu1 }
  0xe5   : > { %813 = vst [vmem:[%s1279_s28 + $0x28] sm:$0xff] %v573_v1  ;;  %v594_v5 = vadd.f32 %v1054_v4, %v1274_v35  ;;  %845 = vst [vmem:[%s1279_s28 + $0x128] sm:$0xff] %v701_v3  ;;  %v722_v7 = vadd.f32 %v1086_v6, %v1274_v35 }
  0xe6   : > { %v585_v8 = vpop.f32.mrf.mxu0  ;;  %v713_v10 = vpop.f32.mrf.mxu1 }
  0xe7   : > { %818 = vst [vmem:[%s1279_s28 + $0x50] sm:$0xff] %v594_v5  ;;  %v586_v9 = vadd.f32 %v1274_v35, %v585_v8  ;;  %850 = vst [vmem:[%s1279_s28 + $0x150] sm:$0xff] %v722_v7  ;;  %v714_v11 = vadd.f32 %v1274_v35, %v713_v10 }
  0xe8   : > { %v1055_v12 = vpop.f32.mrf.mxu0  ;;  %v1087_v14 = vpop.f32.mrf.mxu1 }
  0xe9   : > { %816 = vst [vmem:[%s1279_s28 + $0x40] sm:$0xff] %v586_v9  ;;  %v597_v13 = vadd.f32 %v1055_v12, %v1274_v35  ;;  %848 = vst [vmem:[%s1279_s28 + $0x140] sm:$0xff] %v714_v11  ;;  %v725_v15 = vadd.f32 %v1087_v14, %v1274_v35 }
  0xea   : > { %v588_v16 = vpop.f32.mrf.mxu0  ;;  %v716_v18 = vpop.f32.mrf.mxu1 }
  0xeb   : > { %819 = vst [vmem:[%s1279_s28 + $0x58] sm:$0xff] %v597_v13  ;;  %v589_v17 = vadd.f32 %v1274_v35, %v588_v16  ;;  %851 = vst [vmem:[%s1279_s28 + $0x158] sm:$0xff] %v725_v15  ;;  %v717_v19 = vadd.f32 %v1274_v35, %v716_v18 }
  0xec   : > { %v1058_v20 = vpop.f32.mrf.mxu0  ;;  %v1090_v22 = vpop.f32.mrf.mxu1 }
  0xed   : > { %817 = vst [vmem:[%s1279_s28 + $0x48] sm:$0xff] %v589_v17  ;;  %v610_v21 = vadd.f32 %v1058_v20, %v1274_v35  ;;  %849 = vst [vmem:[%s1279_s28 + $0x148] sm:$0xff] %v717_v19  ;;  %v738_v23 = vadd.f32 %v1090_v22, %v1274_v35 }
  0xee   : > { %v601_v24 = vpop.f32.mrf.mxu0  ;;  %v729_v26 = vpop.f32.mrf.mxu1 }
  0xef   : > { %822 = vst [vmem:[%s1279_s28 + $0x70] sm:$0xff] %v610_v21  ;;  %v602_v25 = vadd.f32 %v1274_v35, %v601_v24  ;;  %854 = vst [vmem:[%s1279_s28 + $0x170] sm:$0xff] %v738_v23  ;;  %v730_v27 = vadd.f32 %v1274_v35, %v729_v26 }
  0xf0   : > { %v1059_v28 = vpop.f32.mrf.mxu0  ;;  %v1091_v30 = vpop.f32.mrf.mxu1 }
  0xf1   : > { %820 = vst [vmem:[%s1279_s28 + $0x60] sm:$0xff] %v602_v25  ;;  %v613_v29 = vadd.f32 %v1059_v28, %v1274_v35  ;;  %852 = vst [vmem:[%s1279_s28 + $0x160] sm:$0xff] %v730_v27  ;;  %v741_v31 = vadd.f32 %v1091_v30, %v1274_v35 }
  0xf2   : > { %v604_v32 = vpop.f32.mrf.mxu0  ;;  %v732_v34 = vpop.f32.mrf.mxu1 }
  0xf3   : > { %823 = vst [vmem:[%s1279_s28 + $0x78] sm:$0xff] %v613_v29  ;;  %v605_v33 = vadd.f32 %v1274_v35, %v604_v32  ;;  %855 = vst [vmem:[%s1279_s28 + $0x178] sm:$0xff] %v741_v31  ;;  %v733_v36 = vadd.f32 %v1274_v35, %v732_v34 }
  0xf4   : > { %v1062_v37 = vpop.f32.mrf.mxu0  ;;  %v1094_v39 = vpop.f32.mrf.mxu1 }
  0xf5   : > { %821 = vst [vmem:[%s1279_s28 + $0x68] sm:$0xff] %v605_v33  ;;  %v626_v38 = vadd.f32 %v1062_v37, %v1274_v35  ;;  %853 = vst [vmem:[%s1279_s28 + $0x168] sm:$0xff] %v733_v36  ;;  %v754_v40 = vadd.f32 %v1094_v39, %v1274_v35 }
  0xf6   : > { %v617_v41 = vpop.f32.mrf.mxu0  ;;  %v745_v43 = vpop.f32.mrf.mxu1 }
  0xf7   : > { %826 = vst [vmem:[%s1279_s28 + $0x90] sm:$0xff] %v626_v38  ;;  %v618_v42 = vadd.f32 %v1274_v35, %v617_v41  ;;  %858 = vst [vmem:[%s1279_s28 + $0x190] sm:$0xff] %v754_v40  ;;  %v746_v44 = vadd.f32 %v1274_v35, %v745_v43 }
  0xf8   : > { %v1063_v45 = vpop.f32.mrf.mxu0  ;;  %v1095_v47 = vpop.f32.mrf.mxu1 }
  0xf9   : > { %824 = vst [vmem:[%s1279_s28 + $0x80] sm:$0xff] %v618_v42  ;;  %v629_v46 = vadd.f32 %v1063_v45, %v1274_v35  ;;  %856 = vst [vmem:[%s1279_s28 + $0x180] sm:$0xff] %v746_v44  ;;  %v757_v48 = vadd.f32 %v1095_v47, %v1274_v35 }
  0xfa   : > { %v620_v49 = vpop.f32.mrf.mxu0  ;;  %v748_v51 = vpop.f32.mrf.mxu1 }
  0xfb   : > { %827 = vst [vmem:[%s1279_s28 + $0x98] sm:$0xff] %v629_v46  ;;  %v621_v50 = vadd.f32 %v1274_v35, %v620_v49  ;;  %859 = vst [vmem:[%s1279_s28 + $0x198] sm:$0xff] %v757_v48  ;;  %v749_v52 = vadd.f32 %v1274_v35, %v748_v51 }
  0xfc   : > { %v1066_v53 = vpop.f32.mrf.mxu0  ;;  %v1098_v55 = vpop.f32.mrf.mxu1 }
  0xfd   : > { %825 = vst [vmem:[%s1279_s28 + $0x88] sm:$0xff] %v621_v50  ;;  %v642_v54 = vadd.f32 %v1066_v53, %v1274_v35  ;;  %857 = vst [vmem:[%s1279_s28 + $0x188] sm:$0xff] %v749_v52  ;;  %v770_v56 = vadd.f32 %v1098_v55, %v1274_v35 }
  0xfe   : > { %v633_v57 = vpop.f32.mrf.mxu0  ;;  %v761_v59 = vpop.f32.mrf.mxu1 }
  0xff   : > { %830 = vst [vmem:[%s1279_s28 + $0xb0] sm:$0xff] %v642_v54  ;;  %v634_v58 = vadd.f32 %v1274_v35, %v633_v57  ;;  %862 = vst [vmem:[%s1279_s28 + $0x1b0] sm:$0xff] %v770_v56  ;;  %v762_v60 = vadd.f32 %v1274_v35, %v761_v59 }
 0x100   : > { %v1067_v61 = vpop.f32.mrf.mxu0  ;;  %v1099_v63 = vpop.f32.mrf.mxu1 }
 0x101   : > { %828 = vst [vmem:[%s1279_s28 + $0xa0] sm:$0xff] %v634_v58  ;;  %v645_v62 = vadd.f32 %v1067_v61, %v1274_v35  ;;  %860 = vst [vmem:[%s1279_s28 + $0x1a0] sm:$0xff] %v762_v60  ;;  %v773_v0 = vadd.f32 %v1099_v63, %v1274_v35 }
 0x102   : > { %v636_v1 = vpop.f32.mrf.mxu0  ;;  %v764_v3 = vpop.f32.mrf.mxu1 }
 0x103   : > { %831 = vst [vmem:[%s1279_s28 + $0xb8] sm:$0xff] %v645_v62  ;;  %v637_v2 = vadd.f32 %v1274_v35, %v636_v1  ;;  %863 = vst [vmem:[%s1279_s28 + $0x1b8] sm:$0xff] %v773_v0  ;;  %v765_v4 = vadd.f32 %v1274_v35, %v764_v3 }
 0x104   : > { %v1070_v5 = vpop.f32.mrf.mxu0  ;;  %v1102_v7 = vpop.f32.mrf.mxu1 }
 0x105   : > { %829 = vst [vmem:[%s1279_s28 + $0xa8] sm:$0xff] %v637_v2  ;;  %v658_v6 = vadd.f32 %v1070_v5, %v1274_v35  ;;  %861 = vst [vmem:[%s1279_s28 + $0x1a8] sm:$0xff] %v765_v4  ;;  %v786_v8 = vadd.f32 %v1102_v7, %v1274_v35 }
 0x106   : > { %v649_v9 = vpop.f32.mrf.mxu0  ;;  %v777_v11 = vpop.f32.mrf.mxu1 }
 0x107   : > { %834 = vst [vmem:[%s1279_s28 + $0xd0] sm:$0xff] %v658_v6  ;;  %v650_v10 = vadd.f32 %v1274_v35, %v649_v9  ;;  %866 = vst [vmem:[%s1279_s28 + $0x1d0] sm:$0xff] %v786_v8  ;;  %v778_v12 = vadd.f32 %v1274_v35, %v777_v11 }
 0x108   : > { %v1071_v13 = vpop.f32.mrf.mxu0  ;;  %v1103_v15 = vpop.f32.mrf.mxu1 }
 0x109   : > { %832 = vst [vmem:[%s1279_s28 + $0xc0] sm:$0xff] %v650_v10  ;;  %v661_v14 = vadd.f32 %v1071_v13, %v1274_v35  ;;  %864 = vst [vmem:[%s1279_s28 + $0x1c0] sm:$0xff] %v778_v12  ;;  %v789_v16 = vadd.f32 %v1103_v15, %v1274_v35 }
 0x10a   : > { %v652_v17 = vpop.f32.mrf.mxu0  ;;  %v780_v19 = vpop.f32.mrf.mxu1 }
 0x10b   : > { %835 = vst [vmem:[%s1279_s28 + $0xd8] sm:$0xff] %v661_v14  ;;  %v653_v18 = vadd.f32 %v1274_v35, %v652_v17  ;;  %867 = vst [vmem:[%s1279_s28 + $0x1d8] sm:$0xff] %v789_v16  ;;  %v781_v20 = vadd.f32 %v1274_v35, %v780_v19 }
 0x10c   : > { %v1074_v21 = vpop.f32.mrf.mxu0  ;;  %v1106_v23 = vpop.f32.mrf.mxu1 }
 0x10d   : > { %833 = vst [vmem:[%s1279_s28 + $0xc8] sm:$0xff] %v653_v18  ;;  %v674_v22 = vadd.f32 %v1074_v21, %v1274_v35  ;;  %865 = vst [vmem:[%s1279_s28 + $0x1c8] sm:$0xff] %v781_v20  ;;  %v802_v24 = vadd.f32 %v1106_v23, %v1274_v35 }
 0x10e   : > { %v665_v25 = vpop.f32.mrf.mxu0  ;;  %v793_v27 = vpop.f32.mrf.mxu1 }
 0x10f   : > { %838 = vst [vmem:[%s1279_s28 + $0xf0] sm:$0xff] %v674_v22  ;;  %v666_v26 = vadd.f32 %v1274_v35, %v665_v25  ;;  %870 = vst [vmem:[%s1279_s28 + $0x1f0] sm:$0xff] %v802_v24  ;;  %v794_v28 = vadd.f32 %v1274_v35, %v793_v27 }
 0x110   : > { %v1075_v29 = vpop.f32.mrf.mxu0  ;;  %v1107_v31 = vpop.f32.mrf.mxu1 }
 0x111   : > { %836 = vst [vmem:[%s1279_s28 + $0xe0] sm:$0xff] %v666_v26  ;;  %v677_v30 = vadd.f32 %v1075_v29, %v1274_v35  ;;  %868 = vst [vmem:[%s1279_s28 + $0x1e0] sm:$0xff] %v794_v28  ;;  %v805_v32 = vadd.f32 %v1107_v31, %v1274_v35 }
 0x112   : > { %v668_v33 = vpop.f32.mrf.mxu0  ;;  %v796_v36 = vpop.f32.mrf.mxu1 }
 0x113   : > { %839 = vst [vmem:[%s1279_s28 + $0xf8] sm:$0xff] %v677_v30  ;;  %v669_v34 = vadd.f32 %v1274_v35, %v668_v33  ;;  %871 = vst [vmem:[%s1279_s28 + $0x1f8] sm:$0xff] %v805_v32  ;;  %v797_v37 = vadd.f32 %v1274_v35, %v796_v36 }
 0x115   : > { %837 = vst [vmem:[%s1279_s28 + $0xe8] sm:$0xff] %v669_v34  ;;  %869 = vst [vmem:[%s1279_s28 + $0x1e8] sm:$0xff] %v797_v37 }
 0x116 PF: > { %s13_s12 = sadd.s32 1, %s1162_s12  }
 0x117   : > { %p10_p4 = scmp.ge.s32.totalorder %s13_s12, 4  }
 0x119   :  { %12 = sbr.rel (!%p10_p4) target bundleno = 1 (0x1), region = 62 }

// kernel: crunet_d_mon_nws_forward.72
= control target key start
LH: loop header
LB: loop body
LE: loop exit
PB: predicated region body
PF: predicated region fallthrough
CT: control target
= control target key end

     0   :  { %s1459_s12 = smov 0   ;;  %s1743_s0 = inlined_call_operand.vmem [shape: bf16[1024,144], index: 0, kind: input, shape index: {}]   ;;  %s1744_s1 = inlined_call_operand.vmem [shape: bf16[144,128], index: 1, kind: input, shape index: {}]   ;;  %s1745_s2 = inlined_call_operand.vmem [shape: f32[1,128], index: 2, kind: input, shape index: {}]   ;;  %s1746_s3 = inlined_call_operand.vmem [shape: f32[1024,128], index: 3, kind: output, shape index: {}]  }
   0x1 LB: > { %s1179_s13 = sadd.s32 4294967295, %s1436_s12   ;;  %p1183_p0 = scmp.ge.s32.totalorder %s1436_s12, 1  ;;  %s1436_s12 = sphi %s1459_s12, %s13_s12  }
   0x2   : > { %p139_p1 = scmp.lt.s32.totalorder %s1436_s12, 3 }
   0x4   : > { %p140_p2 = pnand %p1183_p0, %p139_p1 }
   0x5   : > { %s1184_s16 = sshll.u32 (!%p140_p2), %s1179_s13, 6 }
   0x6   : > { %143 = sbr.rel (%p140_p2) target bundleno = 370 (0x172), region = 32  ;;  %p165_p3 = scmp.lt.s32.totalorder (!%p140_p2), %s1184_s16, 127 }
   0xb   : > { %v1325_v0 = vld [vmem:[%s1744_s1 + $0x38] sm:$0xff]   ;;  %v1438_v1 = vmov 0   ;;  %v1326_v2 = vld [vmem:[%s1744_s1 + $0x30] sm:$0xff]   ;;  %s1748_s16 = smov (!%p165_p3, %s1184_s16), 127  ;;  %v1327_v3 = vld [vmem:[%s1744_s1 + $0x28] sm:$0xff]   ;;  %vm609_vm0 = vcmask 130048  }
   0xc   : > { %706 = vmatprep.subr.bf16.mxu0 %v1438_v1  ;;  %1298 = vmatprep.subr.bf16.mxu1 %v1438_v1  ;;  %s1297_s21 = sshll.u32 %s1748_s16, 3  ;;  %v1328_v4 = vld [vmem:[%s1744_s1 + $0x20] sm:$0xff]   ;;  %v1329_v7 = vld [vmem:[%s1744_s1 + $0x18] sm:$0xff]   ;;  %v1330_v8 = vld [vmem:[%s1744_s1 + $0x10] sm:$0xff]  }
   0xd   : > { %707 = vmatpush1.bf16.msra.mxu0 %v1325_v0  ;;  %1307 = vmatpush1.bf16.msra.mxu1 %v1325_v0  ;;  %s1484_s24 = scalar_lea.vmem %s1743_s0, %s1297_s21  ;;  %v1331_v9 = vld [vmem:[%s1744_s1 + $0x8] sm:$0xff]   ;;  %v1332_v10 = vld [vmem:[%s1744_s1] sm:$0xff]   ;;  %s1612_s15 = scalar_lea.vmem %s1746_s3, %s1297_s21 }
   0xe   : > { %708 = vmatprep.subr.bf16.mxu0 %v1438_v1  ;;  %1299 = vmatprep.subr.bf16.mxu1 %v1438_v1  ;;  %v1336_v5 = vld [vmem:[%s1484_s24 + $0x4] ss:$8 sps:$4 sm:$0xff]   ;;  %v1334_v12 = vld [vmem:[%s1484_s24] ss:$8 sps:$4 sm:$0xff]   ;;  %v1340_v14 = vld [vmem:[%s1484_s24 + $0x14] ss:$8 sps:$4 sm:$0xff]  }
   0xf   : > { %v1339_v6 = vld [vmem:[%s1484_s24 + $0x104] ss:$8 sps:$4 sm:$0xff]   ;;  %1263 = vmatprep.mubr.msk.bf16.mxu0 %vm609_vm0, %v1336_v5  ;;  %v1337_v13 = vld [vmem:[%s1484_s24 + $0x100] ss:$8 sps:$4 sm:$0xff]   ;;  %v1342_v15 = vld [vmem:[%s1484_s24 + $0x114] ss:$8 sps:$4 sm:$0xff]  }
  0x10   : > { %1279 = vmatprep.mubr.msk.bf16.mxu1 %vm609_vm0, %v1339_v6  ;;  %v1333_v11 = vld [vmem:[%s1744_s1 + $0x40] sm:$0xff]   ;;  %v1344_v16 = vld [vmem:[%s1484_s24 + $0x10] ss:$8 sps:$4 sm:$0xff]   ;;  %v1352_v22 = vld [vmem:[%s1484_s24 + $0x34] ss:$8 sps:$4 sm:$0xff]  }
  0x11   : > { %709 = vmatpush1.bf16.msra.mxu0 %v1326_v2  ;;  %1308 = vmatpush1.bf16.msra.mxu1 %v1326_v2  ;;  %v1345_v17 = vld [vmem:[%s1484_s24 + $0x110] ss:$8 sps:$4 sm:$0xff]   ;;  %v1346_v18 = vld [vmem:[%s1484_s24 + $0x24] ss:$8 sps:$4 sm:$0xff]   ;;  %v1350_v20 = vld [vmem:[%s1484_s24 + $0x20] ss:$8 sps:$4 sm:$0xff]  }
  0x12   : > { %710 = vmatprep.subr.bf16.mxu0 %v1438_v1  ;;  %1300 = vmatprep.subr.bf16.mxu1 %v1438_v1  ;;  %v1348_v19 = vld [vmem:[%s1484_s24 + $0x124] ss:$8 sps:$4 sm:$0xff]   ;;  %v1351_v21 = vld [vmem:[%s1484_s24 + $0x120] ss:$8 sps:$4 sm:$0xff]   ;;  %v1354_v23 = vld [vmem:[%s1484_s24 + $0x134] ss:$8 sps:$4 sm:$0xff]  }
  0x13   : > { %v1356_v24 = vld [vmem:[%s1484_s24 + $0x30] ss:$8 sps:$4 sm:$0xff]   ;;  %v1358_v26 = vld [vmem:[%s1484_s24 + $0x44] ss:$8 sps:$4 sm:$0xff]   ;;  %v1362_v28 = vld [vmem:[%s1484_s24 + $0x40] ss:$8 sps:$4 sm:$0xff]  }
  0x14   : > { %v1357_v25 = vld [vmem:[%s1484_s24 + $0x130] ss:$8 sps:$4 sm:$0xff]   ;;  %v1360_v27 = vld [vmem:[%s1484_s24 + $0x144] ss:$8 sps:$4 sm:$0xff]   ;;  %v1363_v29 = vld [vmem:[%s1484_s24 + $0x140] ss:$8 sps:$4 sm:$0xff]  }
  0x15   : > { %711 = vmatpush1.bf16.msra.mxu0 %v1327_v3  ;;  %1309 = vmatpush1.bf16.msra.mxu1 %v1327_v3  ;;  %v1364_v30 = vld [vmem:[%s1484_s24 + $0x54] ss:$8 sps:$4 sm:$0xff]   ;;  %v1368_v32 = vld [vmem:[%s1484_s24 + $0x50] ss:$8 sps:$4 sm:$0xff]   ;;  %v1370_v34 = vld [vmem:[%s1484_s24 + $0x64] ss:$8 sps:$4 sm:$0xff]  }
  0x16   : > { %712 = vmatprep.subr.bf16.mxu0 %v1438_v1  ;;  %1301 = vmatprep.subr.bf16.mxu1 %v1438_v1  ;;  %v1366_v31 = vld [vmem:[%s1484_s24 + $0x154] ss:$8 sps:$4 sm:$0xff]   ;;  %v1369_v33 = vld [vmem:[%s1484_s24 + $0x150] ss:$8 sps:$4 sm:$0xff]   ;;  %v1372_v35 = vld [vmem:[%s1484_s24 + $0x164] ss:$8 sps:$4 sm:$0xff]  }
  0x17   : > { %v1374_v36 = vld [vmem:[%s1484_s24 + $0x60] ss:$8 sps:$4 sm:$0xff]   ;;  %v1376_v38 = vld [vmem:[%s1484_s24 + $0x74] ss:$8 sps:$4 sm:$0xff]   ;;  %v1380_v40 = vld [vmem:[%s1484_s24 + $0x70] ss:$8 sps:$4 sm:$0xff]  }
  0x18   : > { %v1375_v37 = vld [vmem:[%s1484_s24 + $0x160] ss:$8 sps:$4 sm:$0xff]   ;;  %v1378_v39 = vld [vmem:[%s1484_s24 + $0x174] ss:$8 sps:$4 sm:$0xff]   ;;  %v1381_v41 = vld [vmem:[%s1484_s24 + $0x170] ss:$8 sps:$4 sm:$0xff]  }
  0x19   : > { %713 = vmatpush1.bf16.msra.mxu0 %v1328_v4  ;;  %1310 = vmatpush1.bf16.msra.mxu1 %v1328_v4  ;;  %v1382_v42 = vld [vmem:[%s1484_s24 + $0x84] ss:$8 sps:$4 sm:$0xff]   ;;  %v1386_v44 = vld [vmem:[%s1484_s24 + $0x80] ss:$8 sps:$4 sm:$0xff]   ;;  %v1388_v46 = vld [vmem:[%s1484_s24 + $0x94] ss:$8 sps:$4 sm:$0xff]  }
  0x1a   : > { %714 = vmatprep.subr.bf16.mxu0 %v1438_v1  ;;  %1302 = vmatprep.subr.bf16.mxu1 %v1438_v1  ;;  %v1384_v43 = vld [vmem:[%s1484_s24 + $0x184] ss:$8 sps:$4 sm:$0xff]   ;;  %v1387_v45 = vld [vmem:[%s1484_s24 + $0x180] ss:$8 sps:$4 sm:$0xff]   ;;  %v1390_v47 = vld [vmem:[%s1484_s24 + $0x194] ss:$8 sps:$4 sm:$0xff]  }
  0x1b   : > { %v1392_v48 = vld [vmem:[%s1484_s24 + $0x90] ss:$8 sps:$4 sm:$0xff]   ;;  %v1394_v50 = vld [vmem:[%s1484_s24 + $0xa4] ss:$8 sps:$4 sm:$0xff]   ;;  %v1398_v52 = vld [vmem:[%s1484_s24 + $0xa0] ss:$8 sps:$4 sm:$0xff]  }
  0x1c   : > { %v1393_v49 = vld [vmem:[%s1484_s24 + $0x190] ss:$8 sps:$4 sm:$0xff]   ;;  %v1396_v51 = vld [vmem:[%s1484_s24 + $0x1a4] ss:$8 sps:$4 sm:$0xff]   ;;  %v1399_v53 = vld [vmem:[%s1484_s24 + $0x1a0] ss:$8 sps:$4 sm:$0xff]  }
  0x1d   : > { %715 = vmatpush1.bf16.msra.mxu0 %v1329_v7  ;;  %1311 = vmatpush1.bf16.msra.mxu1 %v1329_v7  ;;  %v1400_v54 = vld [vmem:[%s1484_s24 + $0xb4] ss:$8 sps:$4 sm:$0xff]   ;;  %v1404_v56 = vld [vmem:[%s1484_s24 + $0xb0] ss:$8 sps:$4 sm:$0xff]   ;;  %v1406_v58 = vld [vmem:[%s1484_s24 + $0xc4] ss:$8 sps:$4 sm:$0xff]  }
  0x1e   : > { %716 = vmatprep.subr.bf16.mxu0 %v1438_v1  ;;  %1303 = vmatprep.subr.bf16.mxu1 %v1438_v1  ;;  %v1402_v55 = vld [vmem:[%s1484_s24 + $0x1b4] ss:$8 sps:$4 sm:$0xff]   ;;  %v1405_v57 = vld [vmem:[%s1484_s24 + $0x1b0] ss:$8 sps:$4 sm:$0xff]   ;;  %v1408_v59 = vld [vmem:[%s1484_s24 + $0x1c4] ss:$8 sps:$4 sm:$0xff]  }
  0x1f   : > { %v1410_v60 = vld [vmem:[%s1484_s24 + $0xc0] ss:$8 sps:$4 sm:$0xff]   ;;  %v1412_v62 = vld [vmem:[%s1484_s24 + $0xd4] ss:$8 sps:$4 sm:$0xff]   ;;  %v1416_v0 = vld [vmem:[%s1484_s24 + $0xd0] ss:$8 sps:$4 sm:$0xff]  }
  0x20   : > { %v1411_v61 = vld [vmem:[%s1484_s24 + $0x1c0] ss:$8 sps:$4 sm:$0xff]   ;;  %v1414_v63 = vld [vmem:[%s1484_s24 + $0x1d4] ss:$8 sps:$4 sm:$0xff]   ;;  %v1418_v2 = vld [vmem:[%s1484_s24 + $0xe4] ss:$8 sps:$4 sm:$0xff]  }
  0x21   : > { %717 = vmatpush1.bf16.msra.mxu0 %v1330_v8  ;;  %1312 = vmatpush1.bf16.msra.mxu1 %v1330_v8  ;;  %v1420_v3 = vld [vmem:[%s1484_s24 + $0x1e4] ss:$8 sps:$4 sm:$0xff]   ;;  %v1422_v4 = vld [vmem:[%s1484_s24 + $0xe0] ss:$8 sps:$4 sm:$0xff]   ;;  %v1424_v6 = vld [vmem:[%s1484_s24 + $0xf4] ss:$8 sps:$4 sm:$0xff]  }
  0x22   : > { %718 = vmatprep.subr.bf16.mxu0 %v1438_v1  ;;  %1304 = vmatprep.subr.bf16.mxu1 %v1438_v1  ;;  %v1423_v5 = vld [vmem:[%s1484_s24 + $0x1e0] ss:$8 sps:$4 sm:$0xff]   ;;  %v1426_v7 = vld [vmem:[%s1484_s24 + $0x1f4] ss:$8 sps:$4 sm:$0xff]   ;;  %v1428_v8 = vld [vmem:[%s1484_s24 + $0xf0] ss:$8 sps:$4 sm:$0xff]  }
  0x25   : > { %719 = vmatpush1.bf16.msra.mxu0 %v1331_v9  ;;  %1313 = vmatpush1.bf16.msra.mxu1 %v1331_v9  ;;  %v1429_v9 = vld [vmem:[%s1484_s24 + $0x1f0] ss:$8 sps:$4 sm:$0xff]  }
  0x26   : > { %720 = vmatprep.subr.bf16.mxu0 %v1438_v1  ;;  %1305 = vmatprep.subr.bf16.mxu1 %v1438_v1 }
  0x29   : > { %721 = vmatpush1.bf16.msra.mxu0 %v1332_v10  ;;  %1314 = vmatpush1.bf16.msra.mxu1 %v1332_v10  ;;  %v1603_v10 = vld [vmem:[%s1745_s2] ss:$0 sm:$0xff] }
  0x2a   : > { %736 = vmatprep.subr.bf16.mxu0 %v1438_v1  ;;  %1306 = vmatprep.subr.bf16.mxu1 %v1438_v1  ;;  %v1417_v1 = vld [vmem:[%s1484_s24 + $0x1d0] ss:$8 sps:$4 sm:$0xff]  }
  0x2d   : > { %737 = vmatpush2.bf16.msra.mxu0 %v1333_v11  ;;  %1315 = vmatpush2.bf16.msra.mxu1 %v1333_v11 }
  0x30   : > { %739 = vmatmul.mubr.bf16.vlgmr.msra.gmra.mxu0 %v1334_v12  ;;  %867 = vmatmul.mubr.bf16.vlgmr.msra.gmra.mxu1 %v1337_v13 }
  0x31   : > { %1264 = vmatprep.mubr.msk.bf16.mxu0 %vm609_vm0, %v1340_v14  ;;  %1280 = vmatprep.mubr.msk.bf16.mxu1 %vm609_vm0, %v1342_v15 }
  0x38   : > { %747 = vmatmul.mubr.bf16.gmra.mxu0 %v1344_v16  ;;  %875 = vmatmul.mubr.bf16.gmra.mxu1 %v1345_v17 }
  0x39   : > { %1265 = vmatprep.mubr.msk.bf16.mxu0 %vm609_vm0, %v1346_v18  ;;  %1281 = vmatprep.mubr.msk.bf16.mxu1 %vm609_vm0, %v1348_v19 }
  0x40   : > { %755 = vmatmul.mubr.bf16.gmra.mxu0 %v1350_v20  ;;  %883 = vmatmul.mubr.bf16.gmra.mxu1 %v1351_v21 }
  0x41   : > { %1266 = vmatprep.mubr.msk.bf16.mxu0 %vm609_vm0, %v1352_v22  ;;  %1282 = vmatprep.mubr.msk.bf16.mxu1 %vm609_vm0, %v1354_v23 }
  0x48   : > { %763 = vmatmul.mubr.bf16.gmra.mxu0 %v1356_v24  ;;  %891 = vmatmul.mubr.bf16.gmra.mxu1 %v1357_v25 }
  0x49   : > { %1267 = vmatprep.mubr.msk.bf16.mxu0 %vm609_vm0, %v1358_v26  ;;  %1283 = vmatprep.mubr.msk.bf16.mxu1 %vm609_vm0, %v1360_v27 }
  0x50   : > { %771 = vmatmul.mubr.bf16.gmra.mxu0 %v1362_v28  ;;  %899 = vmatmul.mubr.bf16.gmra.mxu1 %v1363_v29 }
  0x51   : > { %1268 = vmatprep.mubr.msk.bf16.mxu0 %vm609_vm0, %v1364_v30  ;;  %1284 = vmatprep.mubr.msk.bf16.mxu1 %vm609_vm0, %v1366_v31 }
  0x58   : > { %779 = vmatmul.mubr.bf16.gmra.mxu0 %v1368_v32  ;;  %907 = vmatmul.mubr.bf16.gmra.mxu1 %v1369_v33 }
  0x59   : > { %1269 = vmatprep.mubr.msk.bf16.mxu0 %vm609_vm0, %v1370_v34  ;;  %1285 = vmatprep.mubr.msk.bf16.mxu1 %vm609_vm0, %v1372_v35 }
  0x60   : > { %787 = vmatmul.mubr.bf16.gmra.mxu0 %v1374_v36  ;;  %915 = vmatmul.mubr.bf16.gmra.mxu1 %v1375_v37 }
  0x61   : > { %1270 = vmatprep.mubr.msk.bf16.mxu0 %vm609_vm0, %v1376_v38  ;;  %1286 = vmatprep.mubr.msk.bf16.mxu1 %vm609_vm0, %v1378_v39 }
  0x68   : > { %795 = vmatmul.mubr.bf16.gmra.mxu0 %v1380_v40  ;;  %923 = vmatmul.mubr.bf16.gmra.mxu1 %v1381_v41 }
  0x69   : > { %1271 = vmatprep.mubr.msk.bf16.mxu0 %vm609_vm0, %v1382_v42  ;;  %1287 = vmatprep.mubr.msk.bf16.mxu1 %vm609_vm0, %v1384_v43 }
  0x70   : > { %803 = vmatmul.mubr.bf16.gmra.mxu0 %v1386_v44  ;;  %931 = vmatmul.mubr.bf16.gmra.mxu1 %v1387_v45 }
  0x71   : > { %1272 = vmatprep.mubr.msk.bf16.mxu0 %vm609_vm0, %v1388_v46  ;;  %1288 = vmatprep.mubr.msk.bf16.mxu1 %vm609_vm0, %v1390_v47 }
  0x78   : > { %811 = vmatmul.mubr.bf16.gmra.mxu0 %v1392_v48  ;;  %939 = vmatmul.mubr.bf16.gmra.mxu1 %v1393_v49 }
  0x79   : > { %1273 = vmatprep.mubr.msk.bf16.mxu0 %vm609_vm0, %v1394_v50  ;;  %1289 = vmatprep.mubr.msk.bf16.mxu1 %vm609_vm0, %v1396_v51 }
  0x80   : > { %819 = vmatmul.mubr.bf16.gmra.mxu0 %v1398_v52  ;;  %947 = vmatmul.mubr.bf16.gmra.mxu1 %v1399_v53 }
  0x81   : > { %1274 = vmatprep.mubr.msk.bf16.mxu0 %vm609_vm0, %v1400_v54  ;;  %1290 = vmatprep.mubr.msk.bf16.mxu1 %vm609_vm0, %v1402_v55 }
  0x88   : > { %827 = vmatmul.mubr.bf16.gmra.mxu0 %v1404_v56  ;;  %955 = vmatmul.mubr.bf16.gmra.mxu1 %v1405_v57 }
  0x89   : > { %1275 = vmatprep.mubr.msk.bf16.mxu0 %vm609_vm0, %v1406_v58  ;;  %1291 = vmatprep.mubr.msk.bf16.mxu1 %vm609_vm0, %v1408_v59 }
  0x90   : > { %835 = vmatmul.mubr.bf16.gmra.mxu0 %v1410_v60  ;;  %963 = vmatmul.mubr.bf16.gmra.mxu1 %v1411_v61 }
  0x91   : > { %1276 = vmatprep.mubr.msk.bf16.mxu0 %vm609_vm0, %v1412_v62  ;;  %1292 = vmatprep.mubr.msk.bf16.mxu1 %vm609_vm0, %v1414_v63 }
  0x98   : > { %843 = vmatmul.mubr.bf16.gmra.mxu0 %v1416_v0  ;;  %971 = vmatmul.mubr.bf16.gmra.mxu1 %v1417_v1 }
  0x99   : > { %1277 = vmatprep.mubr.msk.bf16.mxu0 %vm609_vm0, %v1418_v2  ;;  %1293 = vmatprep.mubr.msk.bf16.mxu1 %vm609_vm0, %v1420_v3 }
  0xa0   : > { %851 = vmatmul.mubr.bf16.gmra.mxu0 %v1422_v4  ;;  %979 = vmatmul.mubr.bf16.gmra.mxu1 %v1423_v5 }
  0xa1   : > { %1278 = vmatprep.mubr.msk.bf16.mxu0 %vm609_vm0, %v1424_v6  ;;  %1294 = vmatprep.mubr.msk.bf16.mxu1 %vm609_vm0, %v1426_v7 }
  0xa8   : > { %859 = vmatmul.mubr.bf16.gmra.mxu0 %v1428_v8  ;;  %987 = vmatmul.mubr.bf16.gmra.mxu1 %v1429_v9 }
  0xf0   : > { %v740_v11 = vpop.f32.mrf.mxu0  ;;  %v868_v12 = vpop.f32.mrf.mxu1 }
  0xf1   : > { %v741_v13 = vadd.f32 %v1603_v10, %v740_v11  ;;  %v869_v14 = vadd.f32 %v1603_v10, %v868_v12 }
  0xf2   : > { %v742_v15 = vpop.f32.mrf.mxu0  ;;  %v870_v16 = vpop.f32.mrf.mxu1 }
  0xf3   : > { %v995_v17 = vmax.f32 %v741_v13, 0.0  ;;  %v1027_v18 = vmax.f32 %v869_v14, 0.0 }
  0xf4   : > { %v743_v19 = vpop.f32.mrf.mxu0  ;;  %v871_v20 = vpop.f32.mrf.mxu1 }
  0xf5   : > { %1059 = vst [vmem:[%s1612_s15] sm:$0xff] %v995_v17  ;;  %1091 = vst [vmem:[%s1612_s15 + $0x100] sm:$0xff] %v1027_v18  ;;  %v744_v21 = vadd.f32 %v1603_v10, %v743_v19  ;;  %v872_v22 = vadd.f32 %v1603_v10, %v871_v20 }
  0xf6   : > { %v745_v23 = vpop.f32.mrf.mxu0  ;;  %v873_v24 = vpop.f32.mrf.mxu1 }
  0xf7   : > { %v996_v25 = vmax.f32 %v744_v21, 0.0  ;;  %v1028_v26 = vmax.f32 %v872_v22, 0.0 }
  0xf8   : > { %v748_v27 = vpop.f32.mrf.mxu0  ;;  %v876_v28 = vpop.f32.mrf.mxu1 }
  0xf9   : > { %1060 = vst [vmem:[%s1612_s15 + $0x8] sm:$0xff] %v996_v25  ;;  %1092 = vst [vmem:[%s1612_s15 + $0x108] sm:$0xff] %v1028_v26  ;;  %v749_v29 = vadd.f32 %v1603_v10, %v748_v27  ;;  %v877_v30 = vadd.f32 %v1603_v10, %v876_v28 }
  0xfa   : > { %v750_v31 = vpop.f32.mrf.mxu0  ;;  %v878_v32 = vpop.f32.mrf.mxu1 }
  0xfb   : > { %v997_v33 = vmax.f32 %v749_v29, 0.0  ;;  %v1029_v34 = vmax.f32 %v877_v30, 0.0 }
  0xfc   : > { %v751_v35 = vpop.f32.mrf.mxu0  ;;  %v879_v36 = vpop.f32.mrf.mxu1 }
  0xfd   : > { %1061 = vst [vmem:[%s1612_s15 + $0x10] sm:$0xff] %v997_v33  ;;  %1093 = vst [vmem:[%s1612_s15 + $0x110] sm:$0xff] %v1029_v34  ;;  %v752_v37 = vadd.f32 %v1603_v10, %v751_v35  ;;  %v880_v38 = vadd.f32 %v1603_v10, %v879_v36 }
  0xfe   : > { %v753_v39 = vpop.f32.mrf.mxu0  ;;  %v881_v40 = vpop.f32.mrf.mxu1 }
  0xff   : > { %v998_v41 = vmax.f32 %v752_v37, 0.0  ;;  %v1030_v42 = vmax.f32 %v880_v38, 0.0 }
 0x100   : > { %v756_v43 = vpop.f32.mrf.mxu0  ;;  %v884_v44 = vpop.f32.mrf.mxu1 }
 0x101   : > { %1062 = vst [vmem:[%s1612_s15 + $0x18] sm:$0xff] %v998_v41  ;;  %1094 = vst [vmem:[%s1612_s15 + $0x118] sm:$0xff] %v1030_v42  ;;  %v757_v45 = vadd.f32 %v1603_v10, %v756_v43  ;;  %v885_v46 = vadd.f32 %v1603_v10, %v884_v44 }
 0x102   : > { %v758_v47 = vpop.f32.mrf.mxu0  ;;  %v886_v48 = vpop.f32.mrf.mxu1 }
 0x103   : > { %v999_v49 = vmax.f32 %v757_v45, 0.0  ;;  %v1031_v50 = vmax.f32 %v885_v46, 0.0 }
 0x104   : > { %v759_v51 = vpop.f32.mrf.mxu0  ;;  %v887_v52 = vpop.f32.mrf.mxu1 }
 0x105   : > { %1063 = vst [vmem:[%s1612_s15 + $0x20] sm:$0xff] %v999_v49  ;;  %1095 = vst [vmem:[%s1612_s15 + $0x120] sm:$0xff] %v1031_v50  ;;  %v760_v53 = vadd.f32 %v1603_v10, %v759_v51  ;;  %v888_v54 = vadd.f32 %v1603_v10, %v887_v52 }
 0x106   : > { %v761_v55 = vpop.f32.mrf.mxu0  ;;  %v889_v56 = vpop.f32.mrf.mxu1 }
 0x107   : > { %v1000_v57 = vmax.f32 %v760_v53, 0.0  ;;  %v1032_v58 = vmax.f32 %v888_v54, 0.0 }
 0x108   : > { %v764_v59 = vpop.f32.mrf.mxu0  ;;  %v892_v60 = vpop.f32.mrf.mxu1 }
 0x109   : > { %1064 = vst [vmem:[%s1612_s15 + $0x28] sm:$0xff] %v1000_v57  ;;  %1096 = vst [vmem:[%s1612_s15 + $0x128] sm:$0xff] %v1032_v58  ;;  %v765_v61 = vadd.f32 %v1603_v10, %v764_v59  ;;  %v893_v62 = vadd.f32 %v1603_v10, %v892_v60 }
 0x10a   : > { %v766_v63 = vpop.f32.mrf.mxu0  ;;  %v894_v0 = vpop.f32.mrf.mxu1 }
 0x10b   : > { %v1001_v1 = vmax.f32 %v765_v61, 0.0  ;;  %v1033_v2 = vmax.f32 %v893_v62, 0.0 }
 0x10c   : > { %v767_v3 = vpop.f32.mrf.mxu0  ;;  %v895_v4 = vpop.f32.mrf.mxu1 }
 0x10d   : > { %1065 = vst [vmem:[%s1612_s15 + $0x30] sm:$0xff] %v1001_v1  ;;  %1097 = vst [vmem:[%s1612_s15 + $0x130] sm:$0xff] %v1033_v2  ;;  %v768_v5 = vadd.f32 %v1603_v10, %v767_v3  ;;  %v896_v6 = vadd.f32 %v1603_v10, %v895_v4 }
 0x10e   : > { %v769_v7 = vpop.f32.mrf.mxu0  ;;  %v897_v8 = vpop.f32.mrf.mxu1 }
 0x10f   : > { %v1002_v9 = vmax.f32 %v768_v5, 0.0  ;;  %v1034_v11 = vmax.f32 %v896_v6, 0.0 }
 0x110   : > { %v772_v12 = vpop.f32.mrf.mxu0  ;;  %v900_v13 = vpop.f32.mrf.mxu1 }
 0x111   : > { %1066 = vst [vmem:[%s1612_s15 + $0x38] sm:$0xff] %v1002_v9  ;;  %1098 = vst [vmem:[%s1612_s15 + $0x138] sm:$0xff] %v1034_v11  ;;  %v773_v14 = vadd.f32 %v1603_v10, %v772_v12  ;;  %v901_v15 = vadd.f32 %v1603_v10, %v900_v13 }
 0x112   : > { %v774_v16 = vpop.f32.mrf.mxu0  ;;  %v902_v17 = vpop.f32.mrf.mxu1 }
 0x113   : > { %v1003_v18 = vmax.f32 %v773_v14, 0.0  ;;  %v1035_v19 = vmax.f32 %v901_v15, 0.0 }
 0x114   : > { %v775_v20 = vpop.f32.mrf.mxu0  ;;  %v903_v21 = vpop.f32.mrf.mxu1 }
 0x115   : > { %1067 = vst [vmem:[%s1612_s15 + $0x40] sm:$0xff] %v1003_v18  ;;  %1099 = vst [vmem:[%s1612_s15 + $0x140] sm:$0xff] %v1035_v19  ;;  %v776_v22 = vadd.f32 %v1603_v10, %v775_v20  ;;  %v904_v23 = vadd.f32 %v1603_v10, %v903_v21 }
 0x116   : > { %v777_v24 = vpop.f32.mrf.mxu0  ;;  %v905_v25 = vpop.f32.mrf.mxu1 }
 0x117   : > { %v1004_v26 = vmax.f32 %v776_v22, 0.0  ;;  %v1036_v27 = vmax.f32 %v904_v23, 0.0 }
 0x118   : > { %v780_v28 = vpop.f32.mrf.mxu0  ;;  %v908_v29 = vpop.f32.mrf.mxu1 }
 0x119   : > { %1068 = vst [vmem:[%s1612_s15 + $0x48] sm:$0xff] %v1004_v26  ;;  %1100 = vst [vmem:[%s1612_s15 + $0x148] sm:$0xff] %v1036_v27  ;;  %v781_v30 = vadd.f32 %v1603_v10, %v780_v28  ;;  %v909_v31 = vadd.f32 %v1603_v10, %v908_v29 }
 0x11a   : > { %v782_v32 = vpop.f32.mrf.mxu0  ;;  %v910_v33 = vpop.f32.mrf.mxu1 }
 0x11b   : > { %v1005_v34 = vmax.f32 %v781_v30, 0.0  ;;  %v1037_v35 = vmax.f32 %v909_v31, 0.0 }
 0x11c   : > { %v783_v36 = vpop.f32.mrf.mxu0  ;;  %v911_v37 = vpop.f32.mrf.mxu1 }
 0x11d   : > { %1069 = vst [vmem:[%s1612_s15 + $0x50] sm:$0xff] %v1005_v34  ;;  %1101 = vst [vmem:[%s1612_s15 + $0x150] sm:$0xff] %v1037_v35  ;;  %v784_v38 = vadd.f32 %v1603_v10, %v783_v36  ;;  %v912_v39 = vadd.f32 %v1603_v10, %v911_v37 }
 0x11e   : > { %v785_v40 = vpop.f32.mrf.mxu0  ;;  %v913_v41 = vpop.f32.mrf.mxu1 }
 0x11f   : > { %v1006_v42 = vmax.f32 %v784_v38, 0.0  ;;  %v1038_v43 = vmax.f32 %v912_v39, 0.0 }
 0x120   : > { %v788_v44 = vpop.f32.mrf.mxu0  ;;  %v916_v45 = vpop.f32.mrf.mxu1 }
 0x121   : > { %1070 = vst [vmem:[%s1612_s15 + $0x58] sm:$0xff] %v1006_v42  ;;  %1102 = vst [vmem:[%s1612_s15 + $0x158] sm:$0xff] %v1038_v43  ;;  %v789_v46 = vadd.f32 %v1603_v10, %v788_v44  ;;  %v917_v47 = vadd.f32 %v1603_v10, %v916_v45 }
 0x122   : > { %v790_v48 = vpop.f32.mrf.mxu0  ;;  %v918_v49 = vpop.f32.mrf.mxu1 }
 0x123   : > { %v1007_v50 = vmax.f32 %v789_v46, 0.0  ;;  %v1039_v51 = vmax.f32 %v917_v47, 0.0 }
 0x124   : > { %v791_v52 = vpop.f32.mrf.mxu0  ;;  %v919_v53 = vpop.f32.mrf.mxu1 }
 0x125   : > { %1071 = vst [vmem:[%s1612_s15 + $0x60] sm:$0xff] %v1007_v50  ;;  %1103 = vst [vmem:[%s1612_s15 + $0x160] sm:$0xff] %v1039_v51  ;;  %v792_v54 = vadd.f32 %v1603_v10, %v791_v52  ;;  %v920_v55 = vadd.f32 %v1603_v10, %v919_v53 }
 0x126   : > { %v793_v56 = vpop.f32.mrf.mxu0  ;;  %v921_v57 = vpop.f32.mrf.mxu1 }
 0x127   : > { %v1008_v58 = vmax.f32 %v792_v54, 0.0  ;;  %v1040_v59 = vmax.f32 %v920_v55, 0.0 }
 0x128   : > { %v796_v60 = vpop.f32.mrf.mxu0  ;;  %v924_v61 = vpop.f32.mrf.mxu1 }
 0x129   : > { %1072 = vst [vmem:[%s1612_s15 + $0x68] sm:$0xff] %v1008_v58  ;;  %1104 = vst [vmem:[%s1612_s15 + $0x168] sm:$0xff] %v1040_v59  ;;  %v797_v62 = vadd.f32 %v1603_v10, %v796_v60  ;;  %v925_v63 = vadd.f32 %v1603_v10, %v924_v61 }
 0x12a   : > { %v798_v0 = vpop.f32.mrf.mxu0  ;;  %v926_v1 = vpop.f32.mrf.mxu1 }
 0x12b   : > { %v1009_v2 = vmax.f32 %v797_v62, 0.0  ;;  %v1041_v3 = vmax.f32 %v925_v63, 0.0 }
 0x12c   : > { %v799_v4 = vpop.f32.mrf.mxu0  ;;  %v927_v5 = vpop.f32.mrf.mxu1 }
 0x12d   : > { %1073 = vst [vmem:[%s1612_s15 + $0x70] sm:$0xff] %v1009_v2  ;;  %1105 = vst [vmem:[%s1612_s15 + $0x170] sm:$0xff] %v1041_v3  ;;  %v800_v6 = vadd.f32 %v1603_v10, %v799_v4  ;;  %v928_v7 = vadd.f32 %v1603_v10, %v927_v5 }
 0x12e   : > { %v801_v8 = vpop.f32.mrf.mxu0  ;;  %v929_v9 = vpop.f32.mrf.mxu1 }
 0x12f   : > { %v1010_v11 = vmax.f32 %v800_v6, 0.0  ;;  %v1042_v12 = vmax.f32 %v928_v7, 0.0 }
 0x130   : > { %v804_v13 = vpop.f32.mrf.mxu0  ;;  %v932_v14 = vpop.f32.mrf.mxu1 }
 0x131   : > { %1074 = vst [vmem:[%s1612_s15 + $0x78] sm:$0xff] %v1010_v11  ;;  %1106 = vst [vmem:[%s1612_s15 + $0x178] sm:$0xff] %v1042_v12  ;;  %v805_v15 = vadd.f32 %v1603_v10, %v804_v13  ;;  %v933_v16 = vadd.f32 %v1603_v10, %v932_v14 }
 0x132   : > { %v806_v17 = vpop.f32.mrf.mxu0  ;;  %v934_v18 = vpop.f32.mrf.mxu1 }
 0x133   : > { %v1011_v19 = vmax.f32 %v805_v15, 0.0  ;;  %v1043_v20 = vmax.f32 %v933_v16, 0.0 }
 0x134   : > { %v807_v21 = vpop.f32.mrf.mxu0  ;;  %v935_v22 = vpop.f32.mrf.mxu1 }
 0x135   : > { %1075 = vst [vmem:[%s1612_s15 + $0x80] sm:$0xff] %v1011_v19  ;;  %1107 = vst [vmem:[%s1612_s15 + $0x180] sm:$0xff] %v1043_v20  ;;  %v808_v23 = vadd.f32 %v1603_v10, %v807_v21  ;;  %v936_v24 = vadd.f32 %v1603_v10, %v935_v22 }
 0x136   : > { %v809_v25 = vpop.f32.mrf.mxu0  ;;  %v937_v26 = vpop.f32.mrf.mxu1 }
 0x137   : > { %v1012_v27 = vmax.f32 %v808_v23, 0.0  ;;  %v1044_v28 = vmax.f32 %v936_v24, 0.0 }
 0x138   : > { %v812_v29 = vpop.f32.mrf.mxu0  ;;  %v940_v30 = vpop.f32.mrf.mxu1 }
 0x139   : > { %1076 = vst [vmem:[%s1612_s15 + $0x88] sm:$0xff] %v1012_v27  ;;  %1108 = vst [vmem:[%s1612_s15 + $0x188] sm:$0xff] %v1044_v28  ;;  %v813_v31 = vadd.f32 %v1603_v10, %v812_v29  ;;  %v941_v32 = vadd.f32 %v1603_v10, %v940_v30 }
 0x13a   : > { %v814_v33 = vpop.f32.mrf.mxu0  ;;  %v942_v34 = vpop.f32.mrf.mxu1 }
 0x13b   : > { %v1013_v35 = vmax.f32 %v813_v31, 0.0  ;;  %v1045_v36 = vmax.f32 %v941_v32, 0.0 }
 0x13c   : > { %v815_v37 = vpop.f32.mrf.mxu0  ;;  %v943_v38 = vpop.f32.mrf.mxu1 }
 0x13d   : > { %1077 = vst [vmem:[%s1612_s15 + $0x90] sm:$0xff] %v1013_v35  ;;  %1109 = vst [vmem:[%s1612_s15 + $0x190] sm:$0xff] %v1045_v36  ;;  %v816_v39 = vadd.f32 %v1603_v10, %v815_v37  ;;  %v944_v40 = vadd.f32 %v1603_v10, %v943_v38 }
 0x13e   : > { %v817_v41 = vpop.f32.mrf.mxu0  ;;  %v945_v42 = vpop.f32.mrf.mxu1 }
 0x13f   : > { %v1014_v43 = vmax.f32 %v816_v39, 0.0  ;;  %v1046_v44 = vmax.f32 %v944_v40, 0.0 }
 0x140   : > { %v820_v45 = vpop.f32.mrf.mxu0  ;;  %v948_v46 = vpop.f32.mrf.mxu1 }
 0x141   : > { %1078 = vst [vmem:[%s1612_s15 + $0x98] sm:$0xff] %v1014_v43  ;;  %1110 = vst [vmem:[%s1612_s15 + $0x198] sm:$0xff] %v1046_v44  ;;  %v821_v47 = vadd.f32 %v1603_v10, %v820_v45  ;;  %v949_v48 = vadd.f32 %v1603_v10, %v948_v46 }
 0x142   : > { %v822_v49 = vpop.f32.mrf.mxu0  ;;  %v950_v50 = vpop.f32.mrf.mxu1 }
 0x143   : > { %v1015_v51 = vmax.f32 %v821_v47, 0.0  ;;  %v1047_v52 = vmax.f32 %v949_v48, 0.0 }
 0x144   : > { %v823_v53 = vpop.f32.mrf.mxu0  ;;  %v951_v54 = vpop.f32.mrf.mxu1 }
 0x145   : > { %1079 = vst [vmem:[%s1612_s15 + $0xa0] sm:$0xff] %v1015_v51  ;;  %1111 = vst [vmem:[%s1612_s15 + $0x1a0] sm:$0xff] %v1047_v52  ;;  %v824_v55 = vadd.f32 %v1603_v10, %v823_v53  ;;  %v952_v56 = vadd.f32 %v1603_v10, %v951_v54 }
 0x146   : > { %v825_v57 = vpop.f32.mrf.mxu0  ;;  %v953_v58 = vpop.f32.mrf.mxu1 }
 0x147   : > { %v1016_v59 = vmax.f32 %v824_v55, 0.0  ;;  %v1048_v60 = vmax.f32 %v952_v56, 0.0 }
 0x148   : > { %v828_v61 = vpop.f32.mrf.mxu0  ;;  %v956_v62 = vpop.f32.mrf.mxu1 }
 0x149   : > { %1080 = vst [vmem:[%s1612_s15 + $0xa8] sm:$0xff] %v1016_v59  ;;  %1112 = vst [vmem:[%s1612_s15 + $0x1a8] sm:$0xff] %v1048_v60  ;;  %v829_v63 = vadd.f32 %v1603_v10, %v828_v61  ;;  %v957_v0 = vadd.f32 %v1603_v10, %v956_v62 }
 0x14a   : > { %v830_v1 = vpop.f32.mrf.mxu0  ;;  %v958_v2 = vpop.f32.mrf.mxu1 }
 0x14b   : > { %v1017_v3 = vmax.f32 %v829_v63, 0.0  ;;  %v1049_v4 = vmax.f32 %v957_v0, 0.0 }
 0x14c   : > { %v831_v5 = vpop.f32.mrf.mxu0  ;;  %v959_v6 = vpop.f32.mrf.mxu1 }
 0x14d   : > { %1081 = vst [vmem:[%s1612_s15 + $0xb0] sm:$0xff] %v1017_v3  ;;  %1113 = vst [vmem:[%s1612_s15 + $0x1b0] sm:$0xff] %v1049_v4  ;;  %v832_v7 = vadd.f32 %v1603_v10, %v831_v5  ;;  %v960_v8 = vadd.f32 %v1603_v10, %v959_v6 }
 0x14e   : > { %v833_v9 = vpop.f32.mrf.mxu0  ;;  %v961_v11 = vpop.f32.mrf.mxu1 }
 0x14f   : > { %v1018_v12 = vmax.f32 %v832_v7, 0.0  ;;  %v1050_v13 = vmax.f32 %v960_v8, 0.0 }
 0x150   : > { %v836_v14 = vpop.f32.mrf.mxu0  ;;  %v964_v15 = vpop.f32.mrf.mxu1 }
 0x151   : > { %1082 = vst [vmem:[%s1612_s15 + $0xb8] sm:$0xff] %v1018_v12  ;;  %1114 = vst [vmem:[%s1612_s15 + $0x1b8] sm:$0xff] %v1050_v13  ;;  %v837_v16 = vadd.f32 %v1603_v10, %v836_v14  ;;  %v965_v17 = vadd.f32 %v1603_v10, %v964_v15 }
 0x152   : > { %v838_v18 = vpop.f32.mrf.mxu0  ;;  %v966_v19 = vpop.f32.mrf.mxu1 }
 0x153   : > { %v1019_v20 = vmax.f32 %v837_v16, 0.0  ;;  %v1051_v21 = vmax.f32 %v965_v17, 0.0 }
 0x154   : > { %v839_v22 = vpop.f32.mrf.mxu0  ;;  %v967_v23 = vpop.f32.mrf.mxu1 }
 0x155   : > { %1083 = vst [vmem:[%s1612_s15 + $0xc0] sm:$0xff] %v1019_v20  ;;  %1115 = vst [vmem:[%s1612_s15 + $0x1c0] sm:$0xff] %v1051_v21  ;;  %v840_v24 = vadd.f32 %v1603_v10, %v839_v22  ;;  %v968_v25 = vadd.f32 %v1603_v10, %v967_v23 }
 0x156   : > { %v841_v26 = vpop.f32.mrf.mxu0  ;;  %v969_v27 = vpop.f32.mrf.mxu1 }
 0x157   : > { %v1020_v28 = vmax.f32 %v840_v24, 0.0  ;;  %v1052_v29 = vmax.f32 %v968_v25, 0.0 }
 0x158   : > { %v844_v30 = vpop.f32.mrf.mxu0  ;;  %v972_v31 = vpop.f32.mrf.mxu1 }
 0x159   : > { %1084 = vst [vmem:[%s1612_s15 + $0xc8] sm:$0xff] %v1020_v28  ;;  %1116 = vst [vmem:[%s1612_s15 + $0x1c8] sm:$0xff] %v1052_v29  ;;  %v845_v32 = vadd.f32 %v1603_v10, %v844_v30  ;;  %v973_v33 = vadd.f32 %v1603_v10, %v972_v31 }
 0x15a   : > { %v846_v34 = vpop.f32.mrf.mxu0  ;;  %v974_v35 = vpop.f32.mrf.mxu1 }
 0x15b   : > { %v1021_v36 = vmax.f32 %v845_v32, 0.0  ;;  %v1053_v37 = vmax.f32 %v973_v33, 0.0 }
 0x15c   : > { %v847_v38 = vpop.f32.mrf.mxu0  ;;  %v975_v39 = vpop.f32.mrf.mxu1 }
 0x15d   : > { %1085 = vst [vmem:[%s1612_s15 + $0xd0] sm:$0xff] %v1021_v36  ;;  %1117 = vst [vmem:[%s1612_s15 + $0x1d0] sm:$0xff] %v1053_v37  ;;  %v848_v40 = vadd.f32 %v1603_v10, %v847_v38  ;;  %v976_v41 = vadd.f32 %v1603_v10, %v975_v39 }
 0x15e   : > { %v849_v42 = vpop.f32.mrf.mxu0  ;;  %v977_v43 = vpop.f32.mrf.mxu1 }
 0x15f   : > { %v1022_v44 = vmax.f32 %v848_v40, 0.0  ;;  %v1054_v45 = vmax.f32 %v976_v41, 0.0 }
 0x160   : > { %v852_v46 = vpop.f32.mrf.mxu0  ;;  %v980_v47 = vpop.f32.mrf.mxu1 }
 0x161   : > { %1086 = vst [vmem:[%s1612_s15 + $0xd8] sm:$0xff] %v1022_v44  ;;  %1118 = vst [vmem:[%s1612_s15 + $0x1d8] sm:$0xff] %v1054_v45  ;;  %v853_v48 = vadd.f32 %v1603_v10, %v852_v46  ;;  %v981_v49 = vadd.f32 %v1603_v10, %v980_v47 }
 0x162   : > { %v854_v50 = vpop.f32.mrf.mxu0  ;;  %v982_v51 = vpop.f32.mrf.mxu1 }
 0x163   : > { %v1023_v52 = vmax.f32 %v853_v48, 0.0  ;;  %v1055_v53 = vmax.f32 %v981_v49, 0.0 }
 0x164   : > { %v855_v54 = vpop.f32.mrf.mxu0  ;;  %v983_v55 = vpop.f32.mrf.mxu1 }
 0x165   : > { %1087 = vst [vmem:[%s1612_s15 + $0xe0] sm:$0xff] %v1023_v52  ;;  %1119 = vst [vmem:[%s1612_s15 + $0x1e0] sm:$0xff] %v1055_v53  ;;  %v856_v56 = vadd.f32 %v1603_v10, %v855_v54  ;;  %v984_v57 = vadd.f32 %v1603_v10, %v983_v55 }
 0x166   : > { %v857_v58 = vpop.f32.mrf.mxu0  ;;  %v985_v59 = vpop.f32.mrf.mxu1 }
 0x167   : > { %v1024_v60 = vmax.f32 %v856_v56, 0.0  ;;  %v1056_v61 = vmax.f32 %v984_v57, 0.0 }
 0x168   : > { %v860_v62 = vpop.f32.mrf.mxu0  ;;  %v988_v63 = vpop.f32.mrf.mxu1 }
 0x169   : > { %1088 = vst [vmem:[%s1612_s15 + $0xe8] sm:$0xff] %v1024_v60  ;;  %1120 = vst [vmem:[%s1612_s15 + $0x1e8] sm:$0xff] %v1056_v61  ;;  %v861_v0 = vadd.f32 %v1603_v10, %v860_v62  ;;  %v989_v1 = vadd.f32 %v1603_v10, %v988_v63 }
 0x16a   : > { %v862_v2 = vpop.f32.mrf.mxu0  ;;  %v990_v3 = vpop.f32.mrf.mxu1 }
 0x16b   : > { %v1025_v4 = vmax.f32 %v861_v0, 0.0  ;;  %v1057_v5 = vmax.f32 %v989_v1, 0.0 }
 0x16c   : > { %v863_v6 = vpop.f32.mrf.mxu0  ;;  %v991_v7 = vpop.f32.mrf.mxu1 }
 0x16d   : > { %1089 = vst [vmem:[%s1612_s15 + $0xf0] sm:$0xff] %v1025_v4  ;;  %1121 = vst [vmem:[%s1612_s15 + $0x1f0] sm:$0xff] %v1057_v5  ;;  %v864_v8 = vadd.f32 %v1603_v10, %v863_v6  ;;  %v992_v9 = vadd.f32 %v1603_v10, %v991_v7 }
 0x16e   : > { %v865_v11 = vpop.f32.mrf.mxu0  ;;  %v993_v12 = vpop.f32.mrf.mxu1 }
 0x16f   : > { %v1026_v13 = vmax.f32 %v864_v8, 0.0  ;;  %v1058_v14 = vmax.f32 %v992_v9, 0.0 }
 0x171   : > { %1090 = vst [vmem:[%s1612_s15 + $0xf8] sm:$0xff] %v1026_v13  ;;  %1122 = vst [vmem:[%s1612_s15 + $0x1f8] sm:$0xff] %v1058_v14 }
 0x172 PF: > { %s13_s12 = sadd.s32 1, %s1436_s12  }
 0x173   : > { %p10_p4 = scmp.ge.s32.totalorder %s13_s12, 4  }
 0x175   :  { %12 = sbr.rel (!%p10_p4) target bundleno = 1 (0x1), region = 62 }

// kernel: crunet_d_mon_nws_forward.76
= control target key start
LH: loop header
LB: loop body
LE: loop exit
PB: predicated region body
PF: predicated region fallthrough
CT: control target
= control target key end

     0   :  { %s1229_s12 = smov 0   ;;  %s1466_s0 = inlined_call_operand.vmem [shape: bf16[1024,72], index: 0, kind: input, shape index: {}]   ;;  %s1467_s1 = inlined_call_operand.vmem [shape: bf16[72,128], index: 1, kind: input, shape index: {}]   ;;  %s1468_s2 = inlined_call_operand.vmem [shape: f32[1,128], index: 2, kind: input, shape index: {}]   ;;  %s1469_s3 = inlined_call_operand.vmem [shape: f32[1024,128], index: 3, kind: output, shape index: {}]  }
   0x1 LB: > { %s952_s13 = sadd.s32 4294967295, %s1207_s12   ;;  %p956_p0 = scmp.ge.s32.totalorder %s1207_s12, 1  ;;  %s1207_s12 = sphi %s1229_s12, %s13_s12  }
   0x2   : > { %p138_p1 = scmp.lt.s32.totalorder %s1207_s12, 3 }
   0x4   : > { %p139_p2 = pnand %p956_p0, %p138_p1 }
   0x5   : > { %s957_s18 = sshll.u32 (!%p139_p2), %s952_s13, 6 }
   0x6   : > { %142 = sbr.rel (%p139_p2) target bundleno = 290 (0x122), region = 32  ;;  %p163_p3 = scmp.lt.s32.totalorder (!%p139_p2), %s957_s18, 127 }
   0xb   : > { %v1164_v0 = vld [vmem:[%s1467_s1 + $0x20] ss:$0 sps:$4 sm:$0xff]   ;;  %vm539_vm0 = vcmask 1043456   ;;  %v1165_v1 = vld [vmem:[%s1467_s1 + $0x18] sm:$0xff]   ;;  %v1166_v3 = vld [vmem:[%s1467_s1 + $0x10] sm:$0xff]   ;;  %s1471_s18 = smov (!%p163_p3, %s957_s18), 127 }
   0xc   : > { %1154 = vmatprep.subr.msk.bf16.mxu0 %vm539_vm0, %v1164_v0  ;;  %1155 = vmatprep.subr.msk.bf16.mxu1 %vm539_vm0, %v1164_v0  ;;  %v541_v2 = vsel %vm539_vm0, %v1164_v0, 0  ;;  %v1167_v4 = vld [vmem:[%s1467_s1 + $0x8] sm:$0xff]   ;;  %s958_s23 = sshll.u32 %s1471_s18, 2  ;;  %vm442_vm1 = vcmask 588800   ;;  %v1168_v7 = vld [vmem:[%s1467_s1] sm:$0xff]   ;;  %s960_s29 = sshll.u32 %s1471_s18, 3 }
   0xd   : > { %1071 = vmatpush3.bf16.msra.mxu0 %v541_v2  ;;  %1149 = vmatpush3.bf16.msra.mxu1 %v541_v2  ;;  %s1255_s26 = scalar_lea.vmem %s1466_s0, %s958_s23  ;;  %v1328_v38 = vld [vmem:[%s1468_s2] ss:$0 sm:$0xff]  ;;  %s1333_s7 = scalar_lea.vmem %s1469_s3, %s960_s29 }
   0xe   : > { %1072 = vmatprep.subr.bf16.mxu0 %v1165_v1  ;;  %1145 = vmatprep.subr.bf16.mxu1 %v1165_v1  ;;  %v1169_v5 = vld [vmem:[%s1255_s26] sm:$0xff]   ;;  %v1171_v8 = vld [vmem:[%s1255_s26 + $0x8] sm:$0xff]   ;;  %v1173_v10 = vld [vmem:[%s1255_s26 + $0x10] sm:$0xff]  }
   0xf   : > { %v1170_v6 = vld [vmem:[%s1255_s26 + $0x80] sm:$0xff]   ;;  %1080 = vmatprep.mubr.msk.bf16.mxu0 %vm442_vm1, %v1169_v5  ;;  %v1172_v9 = vld [vmem:[%s1255_s26 + $0x88] sm:$0xff]   ;;  %v1174_v11 = vld [vmem:[%s1255_s26 + $0x90] sm:$0xff]  }
  0x10   : > { %1112 = vmatprep.mubr.msk.bf16.mxu1 %vm442_vm1, %v1170_v6  ;;  %v1175_v12 = vld [vmem:[%s1255_s26 + $0x18] sm:$0xff]   ;;  %v1177_v14 = vld [vmem:[%s1255_s26 + $0x20] sm:$0xff]   ;;  %v1179_v16 = vld [vmem:[%s1255_s26 + $0x28] sm:$0xff]  }
  0x11   : > { %1073 = vmatpush3.bf16.msra.mxu0 %v1165_v1  ;;  %1150 = vmatpush3.bf16.msra.mxu1 %v1165_v1  ;;  %v1176_v13 = vld [vmem:[%s1255_s26 + $0x98] sm:$0xff]   ;;  %v1178_v15 = vld [vmem:[%s1255_s26 + $0xa0] sm:$0xff]   ;;  %v1180_v17 = vld [vmem:[%s1255_s26 + $0xa8] sm:$0xff]  }
  0x12   : > { %1074 = vmatprep.subr.bf16.mxu0 %v1166_v3  ;;  %1146 = vmatprep.subr.bf16.mxu1 %v1166_v3  ;;  %v1181_v18 = vld [vmem:[%s1255_s26 + $0x30] sm:$0xff]   ;;  %v1183_v20 = vld [vmem:[%s1255_s26 + $0x38] sm:$0xff]   ;;  %v1185_v22 = vld [vmem:[%s1255_s26 + $0x40] sm:$0xff]  }
  0x13   : > { %v1182_v19 = vld [vmem:[%s1255_s26 + $0xb0] sm:$0xff]   ;;  %v1184_v21 = vld [vmem:[%s1255_s26 + $0xb8] sm:$0xff]   ;;  %v1186_v23 = vld [vmem:[%s1255_s26 + $0xc0] sm:$0xff]  }
  0x14   : > { %v1187_v24 = vld [vmem:[%s1255_s26 + $0x48] sm:$0xff]   ;;  %v1189_v26 = vld [vmem:[%s1255_s26 + $0x50] sm:$0xff]   ;;  %v1191_v28 = vld [vmem:[%s1255_s26 + $0x58] sm:$0xff]  }
  0x15   : > { %1075 = vmatpush3.bf16.msra.mxu0 %v1166_v3  ;;  %1151 = vmatpush3.bf16.msra.mxu1 %v1166_v3  ;;  %v1188_v25 = vld [vmem:[%s1255_s26 + $0xc8] sm:$0xff]   ;;  %v1190_v27 = vld [vmem:[%s1255_s26 + $0xd0] sm:$0xff]   ;;  %v1192_v29 = vld [vmem:[%s1255_s26 + $0xd8] sm:$0xff]  }
  0x16   : > { %1076 = vmatprep.subr.bf16.mxu0 %v1167_v4  ;;  %1147 = vmatprep.subr.bf16.mxu1 %v1167_v4  ;;  %v1193_v30 = vld [vmem:[%s1255_s26 + $0x60] sm:$0xff]   ;;  %v1195_v32 = vld [vmem:[%s1255_s26 + $0x68] sm:$0xff]   ;;  %v1197_v34 = vld [vmem:[%s1255_s26 + $0x70] sm:$0xff]  }
  0x17   : > { %v1194_v31 = vld [vmem:[%s1255_s26 + $0xe0] sm:$0xff]   ;;  %v1196_v33 = vld [vmem:[%s1255_s26 + $0xe8] sm:$0xff]   ;;  %v1198_v35 = vld [vmem:[%s1255_s26 + $0xf0] sm:$0xff]  }
  0x18   : > { %v1199_v36 = vld [vmem:[%s1255_s26 + $0x78] sm:$0xff]  }
  0x19   : > { %1077 = vmatpush3.bf16.msra.mxu0 %v1167_v4  ;;  %1152 = vmatpush3.bf16.msra.mxu1 %v1167_v4  ;;  %v1200_v37 = vld [vmem:[%s1255_s26 + $0xf8] sm:$0xff]  }
  0x1a   : > { %1078 = vmatprep.subr.bf16.mxu0 %v1168_v7  ;;  %1148 = vmatprep.subr.bf16.mxu1 %v1168_v7 }
  0x1d   : > { %1079 = vmatpush3.bf16.msra.mxu0 %v1168_v7  ;;  %1153 = vmatpush3.bf16.msra.mxu1 %v1168_v7 }
  0x20   : > { %1081 = vmatmul.mubr.msk.bf16.vlgmr.msra.gmra.mxu0 %vm442_vm1, %v1171_v8  ;;  %1113 = vmatmul.mubr.msk.bf16.vlgmr.msra.gmra.mxu1 %vm442_vm1, %v1172_v9 }
  0x21   : > { %1084 = vmatprep.mubr.msk.bf16.mxu0 %vm442_vm1, %v1173_v10  ;;  %1116 = vmatprep.mubr.msk.bf16.mxu1 %vm442_vm1, %v1174_v11 }
  0x28   : > { %1085 = vmatmul.mubr.msk.bf16.gmra.mxu0 %vm442_vm1, %v1175_v12  ;;  %1117 = vmatmul.mubr.msk.bf16.gmra.mxu1 %vm442_vm1, %v1176_v13 }
  0x29   : > { %1088 = vmatprep.mubr.msk.bf16.mxu0 %vm442_vm1, %v1177_v14  ;;  %1120 = vmatprep.mubr.msk.bf16.mxu1 %vm442_vm1, %v1178_v15 }
  0x30   : > { %1089 = vmatmul.mubr.msk.bf16.gmra.mxu0 %vm442_vm1, %v1179_v16  ;;  %1121 = vmatmul.mubr.msk.bf16.gmra.mxu1 %vm442_vm1, %v1180_v17 }
  0x31   : > { %1092 = vmatprep.mubr.msk.bf16.mxu0 %vm442_vm1, %v1181_v18  ;;  %1124 = vmatprep.mubr.msk.bf16.mxu1 %vm442_vm1, %v1182_v19 }
  0x38   : > { %1093 = vmatmul.mubr.msk.bf16.gmra.mxu0 %vm442_vm1, %v1183_v20  ;;  %1125 = vmatmul.mubr.msk.bf16.gmra.mxu1 %vm442_vm1, %v1184_v21 }
  0x39   : > { %1096 = vmatprep.mubr.msk.bf16.mxu0 %vm442_vm1, %v1185_v22  ;;  %1128 = vmatprep.mubr.msk.bf16.mxu1 %vm442_vm1, %v1186_v23 }
  0x40   : > { %1097 = vmatmul.mubr.msk.bf16.gmra.mxu0 %vm442_vm1, %v1187_v24  ;;  %1129 = vmatmul.mubr.msk.bf16.gmra.mxu1 %vm442_vm1, %v1188_v25 }
  0x41   : > { %1100 = vmatprep.mubr.msk.bf16.mxu0 %vm442_vm1, %v1189_v26  ;;  %1132 = vmatprep.mubr.msk.bf16.mxu1 %vm442_vm1, %v1190_v27 }
  0x48   : > { %1101 = vmatmul.mubr.msk.bf16.gmra.mxu0 %vm442_vm1, %v1191_v28  ;;  %1133 = vmatmul.mubr.msk.bf16.gmra.mxu1 %vm442_vm1, %v1192_v29 }
  0x49   : > { %1104 = vmatprep.mubr.msk.bf16.mxu0 %vm442_vm1, %v1193_v30  ;;  %1136 = vmatprep.mubr.msk.bf16.mxu1 %vm442_vm1, %v1194_v31 }
  0x50   : > { %1105 = vmatmul.mubr.msk.bf16.gmra.mxu0 %vm442_vm1, %v1195_v32  ;;  %1137 = vmatmul.mubr.msk.bf16.gmra.mxu1 %vm442_vm1, %v1196_v33 }
  0x51   : > { %1108 = vmatprep.mubr.msk.bf16.mxu0 %vm442_vm1, %v1197_v34  ;;  %1140 = vmatprep.mubr.msk.bf16.mxu1 %vm442_vm1, %v1198_v35 }
  0x58   : > { %1109 = vmatmul.mubr.msk.bf16.gmra.mxu0 %vm442_vm1, %v1199_v36  ;;  %1141 = vmatmul.mubr.msk.bf16.gmra.mxu1 %vm442_vm1, %v1200_v37 }
  0xe0   : > { %v1082_v39 = vpop.f32.mrf.mxu0  ;;  %v1114_v40 = vpop.f32.mrf.mxu1 }
  0xe1   : > { %v586_v41 = vadd.f32 %v1082_v39, %v1328_v38  ;;  %v714_v42 = vadd.f32 %v1114_v40, %v1328_v38 }
  0xe2   : > { %v577_v43 = vpop.f32.mrf.mxu0  ;;  %v705_v44 = vpop.f32.mrf.mxu1 }
  0xe3   : > { %834 = vst [vmem:[%s1333_s7 + $0x10] sm:$0xff] %v586_v41  ;;  %866 = vst [vmem:[%s1333_s7 + $0x110] sm:$0xff] %v714_v42  ;;  %v578_v45 = vadd.f32 %v1328_v38, %v577_v43  ;;  %v706_v46 = vadd.f32 %v1328_v38, %v705_v44 }
  0xe4   : > { %v1083_v47 = vpop.f32.mrf.mxu0  ;;  %v1115_v48 = vpop.f32.mrf.mxu1 }
  0xe5   : > { %832 = vst [vmem:[%s1333_s7] sm:$0xff] %v578_v45  ;;  %864 = vst [vmem:[%s1333_s7 + $0x100] sm:$0xff] %v706_v46  ;;  %v589_v49 = vadd.f32 %v1083_v47, %v1328_v38  ;;  %v717_v50 = vadd.f32 %v1115_v48, %v1328_v38 }
  0xe6   : > { %v580_v51 = vpop.f32.mrf.mxu0  ;;  %v708_v52 = vpop.f32.mrf.mxu1 }
  0xe7   : > { %835 = vst [vmem:[%s1333_s7 + $0x18] sm:$0xff] %v589_v49  ;;  %867 = vst [vmem:[%s1333_s7 + $0x118] sm:$0xff] %v717_v50  ;;  %v581_v53 = vadd.f32 %v1328_v38, %v580_v51  ;;  %v709_v54 = vadd.f32 %v1328_v38, %v708_v52 }
  0xe8   : > { %v1086_v55 = vpop.f32.mrf.mxu0  ;;  %v1118_v56 = vpop.f32.mrf.mxu1 }
  0xe9   : > { %833 = vst [vmem:[%s1333_s7 + $0x8] sm:$0xff] %v581_v53  ;;  %865 = vst [vmem:[%s1333_s7 + $0x108] sm:$0xff] %v709_v54  ;;  %v602_v57 = vadd.f32 %v1086_v55, %v1328_v38  ;;  %v730_v58 = vadd.f32 %v1118_v56, %v1328_v38 }
  0xea   : > { %v593_v59 = vpop.f32.mrf.mxu0  ;;  %v721_v60 = vpop.f32.mrf.mxu1 }
  0xeb   : > { %838 = vst [vmem:[%s1333_s7 + $0x30] sm:$0xff] %v602_v57  ;;  %870 = vst [vmem:[%s1333_s7 + $0x130] sm:$0xff] %v730_v58  ;;  %v594_v61 = vadd.f32 %v1328_v38, %v593_v59  ;;  %v722_v62 = vadd.f32 %v1328_v38, %v721_v60 }
  0xec   : > { %v1087_v63 = vpop.f32.mrf.mxu0  ;;  %v1119_v0 = vpop.f32.mrf.mxu1 }
  0xed   : > { %836 = vst [vmem:[%s1333_s7 + $0x20] sm:$0xff] %v594_v61  ;;  %868 = vst [vmem:[%s1333_s7 + $0x120] sm:$0xff] %v722_v62  ;;  %v605_v1 = vadd.f32 %v1087_v63, %v1328_v38  ;;  %v733_v2 = vadd.f32 %v1119_v0, %v1328_v38 }
  0xee   : > { %v596_v3 = vpop.f32.mrf.mxu0  ;;  %v724_v4 = vpop.f32.mrf.mxu1 }
  0xef   : > { %839 = vst [vmem:[%s1333_s7 + $0x38] sm:$0xff] %v605_v1  ;;  %871 = vst [vmem:[%s1333_s7 + $0x138] sm:$0xff] %v733_v2  ;;  %v597_v5 = vadd.f32 %v1328_v38, %v596_v3  ;;  %v725_v6 = vadd.f32 %v1328_v38, %v724_v4 }
  0xf0   : > { %v1090_v7 = vpop.f32.mrf.mxu0  ;;  %v1122_v8 = vpop.f32.mrf.mxu1 }
  0xf1   : > { %837 = vst [vmem:[%s1333_s7 + $0x28] sm:$0xff] %v597_v5  ;;  %869 = vst [vmem:[%s1333_s7 + $0x128] sm:$0xff] %v725_v6  ;;  %v618_v9 = vadd.f32 %v1090_v7, %v1328_v38  ;;  %v746_v10 = vadd.f32 %v1122_v8, %v1328_v38 }
  0xf2   : > { %v609_v11 = vpop.f32.mrf.mxu0  ;;  %v737_v12 = vpop.f32.mrf.mxu1 }
  0xf3   : > { %842 = vst [vmem:[%s1333_s7 + $0x50] sm:$0xff] %v618_v9  ;;  %874 = vst [vmem:[%s1333_s7 + $0x150] sm:$0xff] %v746_v10  ;;  %v610_v13 = vadd.f32 %v1328_v38, %v609_v11  ;;  %v738_v14 = vadd.f32 %v1328_v38, %v737_v12 }
  0xf4   : > { %v1091_v15 = vpop.f32.mrf.mxu0  ;;  %v1123_v16 = vpop.f32.mrf.mxu1 }
  0xf5   : > { %840 = vst [vmem:[%s1333_s7 + $0x40] sm:$0xff] %v610_v13  ;;  %872 = vst [vmem:[%s1333_s7 + $0x140] sm:$0xff] %v738_v14  ;;  %v621_v17 = vadd.f32 %v1091_v15, %v1328_v38  ;;  %v749_v18 = vadd.f32 %v1123_v16, %v1328_v38 }
  0xf6   : > { %v612_v19 = vpop.f32.mrf.mxu0  ;;  %v740_v20 = vpop.f32.mrf.mxu1 }
  0xf7   : > { %843 = vst [vmem:[%s1333_s7 + $0x58] sm:$0xff] %v621_v17  ;;  %875 = vst [vmem:[%s1333_s7 + $0x158] sm:$0xff] %v749_v18  ;;  %v613_v21 = vadd.f32 %v1328_v38, %v612_v19  ;;  %v741_v22 = vadd.f32 %v1328_v38, %v740_v20 }
  0xf8   : > { %v1094_v23 = vpop.f32.mrf.mxu0  ;;  %v1126_v24 = vpop.f32.mrf.mxu1 }
  0xf9   : > { %841 = vst [vmem:[%s1333_s7 + $0x48] sm:$0xff] %v613_v21  ;;  %873 = vst [vmem:[%s1333_s7 + $0x148] sm:$0xff] %v741_v22  ;;  %v634_v25 = vadd.f32 %v1094_v23, %v1328_v38  ;;  %v762_v26 = vadd.f32 %v1126_v24, %v1328_v38 }
  0xfa   : > { %v625_v27 = vpop.f32.mrf.mxu0  ;;  %v753_v28 = vpop.f32.mrf.mxu1 }
  0xfb   : > { %846 = vst [vmem:[%s1333_s7 + $0x70] sm:$0xff] %v634_v25  ;;  %878 = vst [vmem:[%s1333_s7 + $0x170] sm:$0xff] %v762_v26  ;;  %v626_v29 = vadd.f32 %v1328_v38, %v625_v27  ;;  %v754_v30 = vadd.f32 %v1328_v38, %v753_v28 }
  0xfc   : > { %v1095_v31 = vpop.f32.mrf.mxu0  ;;  %v1127_v32 = vpop.f32.mrf.mxu1 }
  0xfd   : > { %844 = vst [vmem:[%s1333_s7 + $0x60] sm:$0xff] %v626_v29  ;;  %876 = vst [vmem:[%s1333_s7 + $0x160] sm:$0xff] %v754_v30  ;;  %v637_v33 = vadd.f32 %v1095_v31, %v1328_v38  ;;  %v765_v34 = vadd.f32 %v1127_v32, %v1328_v38 }
  0xfe   : > { %v628_v35 = vpop.f32.mrf.mxu0  ;;  %v756_v36 = vpop.f32.mrf.mxu1 }
  0xff   : > { %847 = vst [vmem:[%s1333_s7 + $0x78] sm:$0xff] %v637_v33  ;;  %879 = vst [vmem:[%s1333_s7 + $0x178] sm:$0xff] %v765_v34  ;;  %v629_v37 = vadd.f32 %v1328_v38, %v628_v35  ;;  %v757_v39 = vadd.f32 %v1328_v38, %v756_v36 }
 0x100   : > { %v1098_v40 = vpop.f32.mrf.mxu0  ;;  %v1130_v41 = vpop.f32.mrf.mxu1 }
 0x101   : > { %845 = vst [vmem:[%s1333_s7 + $0x68] sm:$0xff] %v629_v37  ;;  %877 = vst [vmem:[%s1333_s7 + $0x168] sm:$0xff] %v757_v39  ;;  %v650_v42 = vadd.f32 %v1098_v40, %v1328_v38  ;;  %v778_v43 = vadd.f32 %v1130_v41, %v1328_v38 }
 0x102   : > { %v641_v44 = vpop.f32.mrf.mxu0  ;;  %v769_v45 = vpop.f32.mrf.mxu1 }
 0x103   : > { %850 = vst [vmem:[%s1333_s7 + $0x90] sm:$0xff] %v650_v42  ;;  %882 = vst [vmem:[%s1333_s7 + $0x190] sm:$0xff] %v778_v43  ;;  %v642_v46 = vadd.f32 %v1328_v38, %v641_v44  ;;  %v770_v47 = vadd.f32 %v1328_v38, %v769_v45 }
 0x104   : > { %v1099_v48 = vpop.f32.mrf.mxu0  ;;  %v1131_v49 = vpop.f32.mrf.mxu1 }
 0x105   : > { %848 = vst [vmem:[%s1333_s7 + $0x80] sm:$0xff] %v642_v46  ;;  %880 = vst [vmem:[%s1333_s7 + $0x180] sm:$0xff] %v770_v47  ;;  %v653_v50 = vadd.f32 %v1099_v48, %v1328_v38  ;;  %v781_v51 = vadd.f32 %v1131_v49, %v1328_v38 }
 0x106   : > { %v644_v52 = vpop.f32.mrf.mxu0  ;;  %v772_v53 = vpop.f32.mrf.mxu1 }
 0x107   : > { %851 = vst [vmem:[%s1333_s7 + $0x98] sm:$0xff] %v653_v50  ;;  %883 = vst [vmem:[%s1333_s7 + $0x198] sm:$0xff] %v781_v51  ;;  %v645_v54 = vadd.f32 %v1328_v38, %v644_v52  ;;  %v773_v55 = vadd.f32 %v1328_v38, %v772_v53 }
 0x108   : > { %v1102_v56 = vpop.f32.mrf.mxu0  ;;  %v1134_v57 = vpop.f32.mrf.mxu1 }
 0x109   : > { %849 = vst [vmem:[%s1333_s7 + $0x88] sm:$0xff] %v645_v54  ;;  %881 = vst [vmem:[%s1333_s7 + $0x188] sm:$0xff] %v773_v55  ;;  %v666_v58 = vadd.f32 %v1102_v56, %v1328_v38  ;;  %v794_v59 = vadd.f32 %v1134_v57, %v1328_v38 }
 0x10a   : > { %v657_v60 = vpop.f32.mrf.mxu0  ;;  %v785_v61 = vpop.f32.mrf.mxu1 }
 0x10b   : > { %854 = vst [vmem:[%s1333_s7 + $0xb0] sm:$0xff] %v666_v58  ;;  %886 = vst [vmem:[%s1333_s7 + $0x1b0] sm:$0xff] %v794_v59  ;;  %v658_v62 = vadd.f32 %v1328_v38, %v657_v60  ;;  %v786_v63 = vadd.f32 %v1328_v38, %v785_v61 }
 0x10c   : > { %v1103_v0 = vpop.f32.mrf.mxu0  ;;  %v1135_v1 = vpop.f32.mrf.mxu1 }
 0x10d   : > { %852 = vst [vmem:[%s1333_s7 + $0xa0] sm:$0xff] %v658_v62  ;;  %884 = vst [vmem:[%s1333_s7 + $0x1a0] sm:$0xff] %v786_v63  ;;  %v669_v2 = vadd.f32 %v1103_v0, %v1328_v38  ;;  %v797_v3 = vadd.f32 %v1135_v1, %v1328_v38 }
 0x10e   : > { %v660_v4 = vpop.f32.mrf.mxu0  ;;  %v788_v5 = vpop.f32.mrf.mxu1 }
 0x10f   : > { %855 = vst [vmem:[%s1333_s7 + $0xb8] sm:$0xff] %v669_v2  ;;  %887 = vst [vmem:[%s1333_s7 + $0x1b8] sm:$0xff] %v797_v3  ;;  %v661_v6 = vadd.f32 %v1328_v38, %v660_v4  ;;  %v789_v7 = vadd.f32 %v1328_v38, %v788_v5 }
 0x110   : > { %v1106_v8 = vpop.f32.mrf.mxu0  ;;  %v1138_v9 = vpop.f32.mrf.mxu1 }
 0x111   : > { %853 = vst [vmem:[%s1333_s7 + $0xa8] sm:$0xff] %v661_v6  ;;  %885 = vst [vmem:[%s1333_s7 + $0x1a8] sm:$0xff] %v789_v7  ;;  %v682_v10 = vadd.f32 %v1106_v8, %v1328_v38  ;;  %v810_v11 = vadd.f32 %v1138_v9, %v1328_v38 }
 0x112   : > { %v673_v12 = vpop.f32.mrf.mxu0  ;;  %v801_v13 = vpop.f32.mrf.mxu1 }
 0x113   : > { %858 = vst [vmem:[%s1333_s7 + $0xd0] sm:$0xff] %v682_v10  ;;  %890 = vst [vmem:[%s1333_s7 + $0x1d0] sm:$0xff] %v810_v11  ;;  %v674_v14 = vadd.f32 %v1328_v38, %v673_v12  ;;  %v802_v15 = vadd.f32 %v1328_v38, %v801_v13 }
 0x114   : > { %v1107_v16 = vpop.f32.mrf.mxu0  ;;  %v1139_v17 = vpop.f32.mrf.mxu1 }
 0x115   : > { %856 = vst [vmem:[%s1333_s7 + $0xc0] sm:$0xff] %v674_v14  ;;  %888 = vst [vmem:[%s1333_s7 + $0x1c0] sm:$0xff] %v802_v15  ;;  %v685_v18 = vadd.f32 %v1107_v16, %v1328_v38  ;;  %v813_v19 = vadd.f32 %v1139_v17, %v1328_v38 }
 0x116   : > { %v676_v20 = vpop.f32.mrf.mxu0  ;;  %v804_v21 = vpop.f32.mrf.mxu1 }
 0x117   : > { %859 = vst [vmem:[%s1333_s7 + $0xd8] sm:$0xff] %v685_v18  ;;  %891 = vst [vmem:[%s1333_s7 + $0x1d8] sm:$0xff] %v813_v19  ;;  %v677_v22 = vadd.f32 %v1328_v38, %v676_v20  ;;  %v805_v23 = vadd.f32 %v1328_v38, %v804_v21 }
 0x118   : > { %v1110_v24 = vpop.f32.mrf.mxu0  ;;  %v1142_v25 = vpop.f32.mrf.mxu1 }
 0x119   : > { %857 = vst [vmem:[%s1333_s7 + $0xc8] sm:$0xff] %v677_v22  ;;  %889 = vst [vmem:[%s1333_s7 + $0x1c8] sm:$0xff] %v805_v23  ;;  %v698_v26 = vadd.f32 %v1110_v24, %v1328_v38  ;;  %v826_v27 = vadd.f32 %v1142_v25, %v1328_v38 }
 0x11a   : > { %v689_v28 = vpop.f32.mrf.mxu0  ;;  %v817_v29 = vpop.f32.mrf.mxu1 }
 0x11b   : > { %862 = vst [vmem:[%s1333_s7 + $0xf0] sm:$0xff] %v698_v26  ;;  %894 = vst [vmem:[%s1333_s7 + $0x1f0] sm:$0xff] %v826_v27  ;;  %v690_v30 = vadd.f32 %v1328_v38, %v689_v28  ;;  %v818_v31 = vadd.f32 %v1328_v38, %v817_v29 }
 0x11c   : > { %v1111_v32 = vpop.f32.mrf.mxu0  ;;  %v1143_v33 = vpop.f32.mrf.mxu1 }
 0x11d   : > { %860 = vst [vmem:[%s1333_s7 + $0xe0] sm:$0xff] %v690_v30  ;;  %892 = vst [vmem:[%s1333_s7 + $0x1e0] sm:$0xff] %v818_v31  ;;  %v701_v34 = vadd.f32 %v1111_v32, %v1328_v38  ;;  %v829_v35 = vadd.f32 %v1143_v33, %v1328_v38 }
 0x11e   : > { %v692_v36 = vpop.f32.mrf.mxu0  ;;  %v820_v37 = vpop.f32.mrf.mxu1 }
 0x11f   : > { %863 = vst [vmem:[%s1333_s7 + $0xf8] sm:$0xff] %v701_v34  ;;  %895 = vst [vmem:[%s1333_s7 + $0x1f8] sm:$0xff] %v829_v35  ;;  %v693_v39 = vadd.f32 %v1328_v38, %v692_v36  ;;  %v821_v40 = vadd.f32 %v1328_v38, %v820_v37 }
 0x121   : > { %861 = vst [vmem:[%s1333_s7 + $0xe8] sm:$0xff] %v693_v39  ;;  %893 = vst [vmem:[%s1333_s7 + $0x1e8] sm:$0xff] %v821_v40 }
 0x122 PF: > { %s13_s12 = sadd.s32 1, %s1207_s12  }
 0x123   : > { %p10_p4 = scmp.ge.s32.totalorder %s13_s12, 4  }
 0x125   :  { %12 = sbr.rel (!%p10_p4) target bundleno = 1 (0x1), region = 62 }

// kernel: crunet_d_mon_nws_forward.74
= control target key start
LH: loop header
LB: loop body
LE: loop exit
PB: predicated region body
PF: predicated region fallthrough
CT: control target
= control target key end

     0   :  { %s1443_s12 = smov 0   ;;  %s1765_s0 = inlined_call_operand.vmem [shape: bf16[1024,200], index: 0, kind: input, shape index: {}]   ;;  %s1766_s1 = inlined_call_operand.vmem [shape: bf16[200,128], index: 1, kind: input, shape index: {}]   ;;  %s1767_s2 = inlined_call_operand.vmem [shape: f32[1,128], index: 2, kind: input, shape index: {}]   ;;  %s1768_s3 = inlined_call_operand.vmem [shape: f32[1024,128], index: 3, kind: output, shape index: {}]  }
   0x1 LB: > { %s1147_s13 = sadd.s32 4294967295, %s1420_s12   ;;  %p1151_p0 = scmp.ge.s32.totalorder %s1420_s12, 1  ;;  %s1420_s12 = sphi %s1443_s12, %s13_s12  }
   0x2   : > { %p139_p1 = scmp.lt.s32.totalorder %s1420_s12, 3 }
   0x4   : > { %p140_p2 = pnand %p1151_p0, %p139_p1 }
   0x5   : > { %s1152_s18 = sshll.u32 (!%p140_p2), %s1147_s13, 6 }
   0x6   : > { %143 = sbr.rel (%p140_p2) target bundleno = 384 (0x180), region = 32  ;;  %p165_p3 = scmp.lt.s32.totalorder (!%p140_p2), %s1152_s18, 127 }
   0xb   : > { %v1305_v0 = vld [vmem:[%s1766_s1 + $0x38] sm:$0xff]   ;;  %v1422_v1 = vmov 0   ;;  %v1306_v2 = vld [vmem:[%s1766_s1 + $0x30] sm:$0xff]   ;;  %s1770_s18 = smov (!%p165_p3, %s1152_s18), 127  ;;  %v1307_v3 = vld [vmem:[%s1766_s1 + $0x28] sm:$0xff]   ;;  %vm637_vm0 = vcmask 588800  }
   0xc   : > { %738 = vmatprep.subr.bf16.mxu0 %v1422_v1  ;;  %1270 = vmatprep.subr.bf16.mxu1 %v1422_v1  ;;  %s1269_s21 = sshll.u32 %s1770_s18, 3  ;;  %v1308_v4 = vld [vmem:[%s1766_s1 + $0x20] sm:$0xff]   ;;  %v1309_v6 = vld [vmem:[%s1766_s1 + $0x18] sm:$0xff]   ;;  %v1310_v8 = vld [vmem:[%s1766_s1 + $0x10] sm:$0xff]   ;;  %vm734_vm1 = vcmask 1043456  }
   0xd   : > { %739 = vmatpush1.bf16.msra.mxu0 %v1305_v0  ;;  %1283 = vmatpush1.bf16.msra.mxu1 %v1305_v0  ;;  %s1477_s26 = scalar_lea.vmem %s1765_s0, %s1269_s21  ;;  %v1311_v9 = vld [vmem:[%s1766_s1 + $0x8] sm:$0xff]   ;;  %v1312_v10 = vld [vmem:[%s1766_s1] sm:$0xff]   ;;  %v1314_v13 = vld [vmem:[%s1766_s1 + $0x58] sm:$0xff]   ;;  %s1632_s25 = scalar_lea.vmem %s1768_s3, %s1269_s21 }
   0xe   : > { %740 = vmatprep.subr.bf16.mxu0 %v1422_v1  ;;  %1271 = vmatprep.subr.bf16.mxu1 %v1422_v1  ;;  %v1320_v5 = vld [vmem:[%s1477_s26 + $0x4] ss:$8 sps:$4 sm:$0xff]   ;;  %v1313_v11 = vld [vmem:[%s1766_s1 + $0x60] ss:$0 sps:$4 sm:$0xff]   ;;  %v1315_v14 = vld [vmem:[%s1766_s1 + $0x50] sm:$0xff]  }
   0xf   : > { %v1323_v7 = vld [vmem:[%s1477_s26 + $0x104] ss:$8 sps:$4 sm:$0xff]   ;;  %1235 = vmatprep.mubr.msk.bf16.mxu0 %vm637_vm0, %v1320_v5  ;;  %v736_v12 = vsel %vm734_vm1, %v1313_v11, 0  ;;  %v1318_v17 = vld [vmem:[%s1477_s26] ss:$8 sps:$4 sm:$0xff]  }
  0x10   : > { %1251 = vmatprep.mubr.msk.bf16.mxu1 %vm637_vm0, %v1323_v7  ;;  %v1316_v15 = vld [vmem:[%s1766_s1 + $0x48] sm:$0xff]   ;;  %v1317_v16 = vld [vmem:[%s1766_s1 + $0x40] sm:$0xff]   ;;  %v1324_v19 = vld [vmem:[%s1477_s26 + $0x14] ss:$8 sps:$4 sm:$0xff]  }
  0x11   : > { %741 = vmatpush1.bf16.msra.mxu0 %v1306_v2  ;;  %1284 = vmatpush1.bf16.msra.mxu1 %v1306_v2  ;;  %v1321_v18 = vld [vmem:[%s1477_s26 + $0x100] ss:$8 sps:$4 sm:$0xff]   ;;  %v1326_v20 = vld [vmem:[%s1477_s26 + $0x114] ss:$8 sps:$4 sm:$0xff]   ;;  %v1328_v21 = vld [vmem:[%s1477_s26 + $0x10] ss:$8 sps:$4 sm:$0xff]  }
  0x12   : > { %742 = vmatprep.subr.bf16.mxu0 %v1422_v1  ;;  %1272 = vmatprep.subr.bf16.mxu1 %v1422_v1  ;;  %v1329_v22 = vld [vmem:[%s1477_s26 + $0x110] ss:$8 sps:$4 sm:$0xff]   ;;  %v1330_v23 = vld [vmem:[%s1477_s26 + $0x24] ss:$8 sps:$4 sm:$0xff]   ;;  %v1334_v25 = vld [vmem:[%s1477_s26 + $0x20] ss:$8 sps:$4 sm:$0xff]  }
  0x13   : > { %v1332_v24 = vld [vmem:[%s1477_s26 + $0x124] ss:$8 sps:$4 sm:$0xff]   ;;  %v1335_v26 = vld [vmem:[%s1477_s26 + $0x120] ss:$8 sps:$4 sm:$0xff]   ;;  %v1336_v27 = vld [vmem:[%s1477_s26 + $0x34] ss:$8 sps:$4 sm:$0xff]  }
  0x14   : > { %v1338_v28 = vld [vmem:[%s1477_s26 + $0x134] ss:$8 sps:$4 sm:$0xff]   ;;  %v1340_v29 = vld [vmem:[%s1477_s26 + $0x30] ss:$8 sps:$4 sm:$0xff]   ;;  %v1342_v31 = vld [vmem:[%s1477_s26 + $0x44] ss:$8 sps:$4 sm:$0xff]  }
  0x15   : > { %743 = vmatpush1.bf16.msra.mxu0 %v1307_v3  ;;  %1285 = vmatpush1.bf16.msra.mxu1 %v1307_v3  ;;  %v1341_v30 = vld [vmem:[%s1477_s26 + $0x130] ss:$8 sps:$4 sm:$0xff]   ;;  %v1344_v32 = vld [vmem:[%s1477_s26 + $0x144] ss:$8 sps:$4 sm:$0xff]   ;;  %v1346_v33 = vld [vmem:[%s1477_s26 + $0x40] ss:$8 sps:$4 sm:$0xff]  }
  0x16   : > { %744 = vmatprep.subr.bf16.mxu0 %v1422_v1  ;;  %1273 = vmatprep.subr.bf16.mxu1 %v1422_v1  ;;  %v1347_v34 = vld [vmem:[%s1477_s26 + $0x140] ss:$8 sps:$4 sm:$0xff]   ;;  %v1348_v35 = vld [vmem:[%s1477_s26 + $0x54] ss:$8 sps:$4 sm:$0xff]   ;;  %v1352_v37 = vld [vmem:[%s1477_s26 + $0x50] ss:$8 sps:$4 sm:$0xff]  }
  0x17   : > { %v1350_v36 = vld [vmem:[%s1477_s26 + $0x154] ss:$8 sps:$4 sm:$0xff]   ;;  %v1353_v38 = vld [vmem:[%s1477_s26 + $0x150] ss:$8 sps:$4 sm:$0xff]   ;;  %v1354_v39 = vld [vmem:[%s1477_s26 + $0x64] ss:$8 sps:$4 sm:$0xff]  }
  0x18   : > { %v1356_v40 = vld [vmem:[%s1477_s26 + $0x164] ss:$8 sps:$4 sm:$0xff]   ;;  %v1358_v41 = vld [vmem:[%s1477_s26 + $0x60] ss:$8 sps:$4 sm:$0xff]   ;;  %v1360_v43 = vld [vmem:[%s1477_s26 + $0x74] ss:$8 sps:$4 sm:$0xff]  }
  0x19   : > { %745 = vmatpush1.bf16.msra.mxu0 %v1308_v4  ;;  %1286 = vmatpush1.bf16.msra.mxu1 %v1308_v4  ;;  %v1359_v42 = vld [vmem:[%s1477_s26 + $0x160] ss:$8 sps:$4 sm:$0xff]   ;;  %v1362_v44 = vld [vmem:[%s1477_s26 + $0x174] ss:$8 sps:$4 sm:$0xff]   ;;  %v1364_v45 = vld [vmem:[%s1477_s26 + $0x70] ss:$8 sps:$4 sm:$0xff]  }
  0x1a   : > { %746 = vmatprep.subr.bf16.mxu0 %v1422_v1  ;;  %1274 = vmatprep.subr.bf16.mxu1 %v1422_v1  ;;  %v1365_v46 = vld [vmem:[%s1477_s26 + $0x170] ss:$8 sps:$4 sm:$0xff]   ;;  %v1366_v47 = vld [vmem:[%s1477_s26 + $0x84] ss:$8 sps:$4 sm:$0xff]   ;;  %v1370_v49 = vld [vmem:[%s1477_s26 + $0x80] ss:$8 sps:$4 sm:$0xff]  }
  0x1b   : > { %v1368_v48 = vld [vmem:[%s1477_s26 + $0x184] ss:$8 sps:$4 sm:$0xff]   ;;  %v1371_v50 = vld [vmem:[%s1477_s26 + $0x180] ss:$8 sps:$4 sm:$0xff]   ;;  %v1372_v51 = vld [vmem:[%s1477_s26 + $0x94] ss:$8 sps:$4 sm:$0xff]  }
  0x1c   : > { %v1374_v52 = vld [vmem:[%s1477_s26 + $0x194] ss:$8 sps:$4 sm:$0xff]   ;;  %v1376_v53 = vld [vmem:[%s1477_s26 + $0x90] ss:$8 sps:$4 sm:$0xff]   ;;  %v1378_v55 = vld [vmem:[%s1477_s26 + $0xa4] ss:$8 sps:$4 sm:$0xff]  }
  0x1d   : > { %747 = vmatpush1.bf16.msra.mxu0 %v1309_v6  ;;  %1287 = vmatpush1.bf16.msra.mxu1 %v1309_v6  ;;  %v1377_v54 = vld [vmem:[%s1477_s26 + $0x190] ss:$8 sps:$4 sm:$0xff]   ;;  %v1380_v56 = vld [vmem:[%s1477_s26 + $0x1a4] ss:$8 sps:$4 sm:$0xff]   ;;  %v1382_v57 = vld [vmem:[%s1477_s26 + $0xa0] ss:$8 sps:$4 sm:$0xff]  }
  0x1e   : > { %748 = vmatprep.subr.bf16.mxu0 %v1422_v1  ;;  %1275 = vmatprep.subr.bf16.mxu1 %v1422_v1  ;;  %v1383_v58 = vld [vmem:[%s1477_s26 + $0x1a0] ss:$8 sps:$4 sm:$0xff]   ;;  %v1384_v59 = vld [vmem:[%s1477_s26 + $0xb4] ss:$8 sps:$4 sm:$0xff]   ;;  %v1388_v61 = vld [vmem:[%s1477_s26 + $0xb0] ss:$8 sps:$4 sm:$0xff]  }
  0x1f   : > { %v1386_v60 = vld [vmem:[%s1477_s26 + $0x1b4] ss:$8 sps:$4 sm:$0xff]   ;;  %v1389_v62 = vld [vmem:[%s1477_s26 + $0x1b0] ss:$8 sps:$4 sm:$0xff]   ;;  %v1390_v63 = vld [vmem:[%s1477_s26 + $0xc4] ss:$8 sps:$4 sm:$0xff]  }
  0x20   : > { %v1392_v0 = vld [vmem:[%s1477_s26 + $0x1c4] ss:$8 sps:$4 sm:$0xff]   ;;  %v1395_v2 = vld [vmem:[%s1477_s26 + $0x1c0] ss:$8 sps:$4 sm:$0xff]   ;;  %v1396_v3 = vld [vmem:[%s1477_s26 + $0xd4] ss:$8 sps:$4 sm:$0xff]  }
  0x21   : > { %749 = vmatpush1.bf16.msra.mxu0 %v1310_v8  ;;  %1288 = vmatpush1.bf16.msra.mxu1 %v1310_v8  ;;  %v1398_v4 = vld [vmem:[%s1477_s26 + $0x1d4] ss:$8 sps:$4 sm:$0xff]   ;;  %v1400_v5 = vld [vmem:[%s1477_s26 + $0xd0] ss:$8 sps:$4 sm:$0xff]   ;;  %v1402_v7 = vld [vmem:[%s1477_s26 + $0xe4] ss:$8 sps:$4 sm:$0xff]  }
  0x22   : > { %750 = vmatprep.subr.bf16.mxu0 %v1422_v1  ;;  %1276 = vmatprep.subr.bf16.mxu1 %v1422_v1  ;;  %v1401_v6 = vld [vmem:[%s1477_s26 + $0x1d0] ss:$8 sps:$4 sm:$0xff]   ;;  %v1404_v8 = vld [vmem:[%s1477_s26 + $0x1e4] ss:$8 sps:$4 sm:$0xff]   ;;  %v1408_v11 = vld [vmem:[%s1477_s26 + $0xf4] ss:$8 sps:$4 sm:$0xff]  }
  0x25   : > { %751 = vmatpush1.bf16.msra.mxu0 %v1311_v9  ;;  %1289 = vmatpush1.bf16.msra.mxu1 %v1311_v9  ;;  %v1406_v9 = vld [vmem:[%s1477_s26 + $0xe0] ss:$8 sps:$4 sm:$0xff]  }
  0x26   : > { %752 = vmatprep.subr.bf16.mxu0 %v1422_v1  ;;  %1277 = vmatprep.subr.bf16.mxu1 %v1422_v1 }
  0x29   : > { %753 = vmatpush1.bf16.msra.mxu0 %v1312_v10  ;;  %1290 = vmatpush1.bf16.msra.mxu1 %v1312_v10  ;;  %v1407_v10 = vld [vmem:[%s1477_s26 + $0x1e0] ss:$8 sps:$4 sm:$0xff]  }
  0x2a   : > { %760 = vmatprep.subr.bf16.mxu0 %v1422_v1  ;;  %1278 = vmatprep.subr.bf16.mxu1 %v1422_v1 }
  0x2d   : > { %761 = vmatpush2.bf16.msra.mxu0 %v736_v12  ;;  %1291 = vmatpush2.bf16.msra.mxu1 %v736_v12  ;;  %v1410_v12 = vld [vmem:[%s1477_s26 + $0x1f4] ss:$8 sps:$4 sm:$0xff]  }
  0x2e   : > { %762 = vmatprep.subr.bf16.mxu0 %v1422_v1  ;;  %1279 = vmatprep.subr.bf16.mxu1 %v1422_v1 }
  0x31   : > { %763 = vmatpush2.bf16.msra.mxu0 %v1314_v13  ;;  %1292 = vmatpush2.bf16.msra.mxu1 %v1314_v13  ;;  %v1412_v13 = vld [vmem:[%s1477_s26 + $0xf0] ss:$8 sps:$4 sm:$0xff]  }
  0x32   : > { %764 = vmatprep.subr.bf16.mxu0 %v1422_v1  ;;  %1280 = vmatprep.subr.bf16.mxu1 %v1422_v1 }
  0x35   : > { %765 = vmatpush2.bf16.msra.mxu0 %v1315_v14  ;;  %1293 = vmatpush2.bf16.msra.mxu1 %v1315_v14  ;;  %v1413_v14 = vld [vmem:[%s1477_s26 + $0x1f0] ss:$8 sps:$4 sm:$0xff]  }
  0x36   : > { %766 = vmatprep.subr.bf16.mxu0 %v1422_v1  ;;  %1281 = vmatprep.subr.bf16.mxu1 %v1422_v1 }
  0x39   : > { %767 = vmatpush2.bf16.msra.mxu0 %v1316_v15  ;;  %1294 = vmatpush2.bf16.msra.mxu1 %v1316_v15  ;;  %v1625_v15 = vld [vmem:[%s1767_s2] ss:$0 sm:$0xff] }
  0x3a   : > { %768 = vmatprep.subr.bf16.mxu0 %v1422_v1  ;;  %1282 = vmatprep.subr.bf16.mxu1 %v1422_v1  ;;  %v1394_v1 = vld [vmem:[%s1477_s26 + $0xc0] ss:$8 sps:$4 sm:$0xff]  }
  0x3d   : > { %769 = vmatpush2.bf16.msra.mxu0 %v1317_v16  ;;  %1295 = vmatpush2.bf16.msra.mxu1 %v1317_v16 }
  0x40   : > { %771 = vmatmul.mubr.bf16.vlgmr.msra.gmra.mxu0 %v1318_v17  ;;  %899 = vmatmul.mubr.bf16.vlgmr.msra.gmra.mxu1 %v1321_v18 }
  0x41   : > { %1236 = vmatprep.mubr.msk.bf16.mxu0 %vm637_vm0, %v1324_v19  ;;  %1252 = vmatprep.mubr.msk.bf16.mxu1 %vm637_vm0, %v1326_v20 }
  0x48   : > { %779 = vmatmul.mubr.bf16.gmra.mxu0 %v1328_v21  ;;  %907 = vmatmul.mubr.bf16.gmra.mxu1 %v1329_v22 }
  0x49   : > { %1237 = vmatprep.mubr.msk.bf16.mxu0 %vm637_vm0, %v1330_v23  ;;  %1253 = vmatprep.mubr.msk.bf16.mxu1 %vm637_vm0, %v1332_v24 }
  0x50   : > { %787 = vmatmul.mubr.bf16.gmra.mxu0 %v1334_v25  ;;  %915 = vmatmul.mubr.bf16.gmra.mxu1 %v1335_v26 }
  0x51   : > { %1238 = vmatprep.mubr.msk.bf16.mxu0 %vm637_vm0, %v1336_v27  ;;  %1254 = vmatprep.mubr.msk.bf16.mxu1 %vm637_vm0, %v1338_v28 }
  0x58   : > { %795 = vmatmul.mubr.bf16.gmra.mxu0 %v1340_v29  ;;  %923 = vmatmul.mubr.bf16.gmra.mxu1 %v1341_v30 }
  0x59   : > { %1239 = vmatprep.mubr.msk.bf16.mxu0 %vm637_vm0, %v1342_v31  ;;  %1255 = vmatprep.mubr.msk.bf16.mxu1 %vm637_vm0, %v1344_v32 }
  0x60   : > { %803 = vmatmul.mubr.bf16.gmra.mxu0 %v1346_v33  ;;  %931 = vmatmul.mubr.bf16.gmra.mxu1 %v1347_v34 }
  0x61   : > { %1240 = vmatprep.mubr.msk.bf16.mxu0 %vm637_vm0, %v1348_v35  ;;  %1256 = vmatprep.mubr.msk.bf16.mxu1 %vm637_vm0, %v1350_v36 }
  0x68   : > { %811 = vmatmul.mubr.bf16.gmra.mxu0 %v1352_v37  ;;  %939 = vmatmul.mubr.bf16.gmra.mxu1 %v1353_v38 }
  0x69   : > { %1241 = vmatprep.mubr.msk.bf16.mxu0 %vm637_vm0, %v1354_v39  ;;  %1257 = vmatprep.mubr.msk.bf16.mxu1 %vm637_vm0, %v1356_v40 }
  0x70   : > { %819 = vmatmul.mubr.bf16.gmra.mxu0 %v1358_v41  ;;  %947 = vmatmul.mubr.bf16.gmra.mxu1 %v1359_v42 }
  0x71   : > { %1242 = vmatprep.mubr.msk.bf16.mxu0 %vm637_vm0, %v1360_v43  ;;  %1258 = vmatprep.mubr.msk.bf16.mxu1 %vm637_vm0, %v1362_v44 }
  0x78   : > { %827 = vmatmul.mubr.bf16.gmra.mxu0 %v1364_v45  ;;  %955 = vmatmul.mubr.bf16.gmra.mxu1 %v1365_v46 }
  0x79   : > { %1243 = vmatprep.mubr.msk.bf16.mxu0 %vm637_vm0, %v1366_v47  ;;  %1259 = vmatprep.mubr.msk.bf16.mxu1 %vm637_vm0, %v1368_v48 }
  0x80   : > { %835 = vmatmul.mubr.bf16.gmra.mxu0 %v1370_v49  ;;  %963 = vmatmul.mubr.bf16.gmra.mxu1 %v1371_v50 }
  0x81   : > { %1244 = vmatprep.mubr.msk.bf16.mxu0 %vm637_vm0, %v1372_v51  ;;  %1260 = vmatprep.mubr.msk.bf16.mxu1 %vm637_vm0, %v1374_v52 }
  0x88   : > { %843 = vmatmul.mubr.bf16.gmra.mxu0 %v1376_v53  ;;  %971 = vmatmul.mubr.bf16.gmra.mxu1 %v1377_v54 }
  0x89   : > { %1245 = vmatprep.mubr.msk.bf16.mxu0 %vm637_vm0, %v1378_v55  ;;  %1261 = vmatprep.mubr.msk.bf16.mxu1 %vm637_vm0, %v1380_v56 }
  0x90   : > { %851 = vmatmul.mubr.bf16.gmra.mxu0 %v1382_v57  ;;  %979 = vmatmul.mubr.bf16.gmra.mxu1 %v1383_v58 }
  0x91   : > { %1246 = vmatprep.mubr.msk.bf16.mxu0 %vm637_vm0, %v1384_v59  ;;  %1262 = vmatprep.mubr.msk.bf16.mxu1 %vm637_vm0, %v1386_v60 }
  0x98   : > { %859 = vmatmul.mubr.bf16.gmra.mxu0 %v1388_v61  ;;  %987 = vmatmul.mubr.bf16.gmra.mxu1 %v1389_v62 }
  0x99   : > { %1247 = vmatprep.mubr.msk.bf16.mxu0 %vm637_vm0, %v1390_v63  ;;  %1263 = vmatprep.mubr.msk.bf16.mxu1 %vm637_vm0, %v1392_v0 }
  0xa0   : > { %867 = vmatmul.mubr.bf16.gmra.mxu0 %v1394_v1  ;;  %995 = vmatmul.mubr.bf16.gmra.mxu1 %v1395_v2 }
  0xa1   : > { %1248 = vmatprep.mubr.msk.bf16.mxu0 %vm637_vm0, %v1396_v3  ;;  %1264 = vmatprep.mubr.msk.bf16.mxu1 %vm637_vm0, %v1398_v4 }
  0xa8   : > { %875 = vmatmul.mubr.bf16.gmra.mxu0 %v1400_v5  ;;  %1003 = vmatmul.mubr.bf16.gmra.mxu1 %v1401_v6 }
  0xa9   : > { %1249 = vmatprep.mubr.msk.bf16.mxu0 %vm637_vm0, %v1402_v7  ;;  %1265 = vmatprep.mubr.msk.bf16.mxu1 %vm637_vm0, %v1404_v8 }
  0xb0   : > { %883 = vmatmul.mubr.bf16.gmra.mxu0 %v1406_v9  ;;  %1011 = vmatmul.mubr.bf16.gmra.mxu1 %v1407_v10 }
  0xb1   : > { %1250 = vmatprep.mubr.msk.bf16.mxu0 %vm637_vm0, %v1408_v11  ;;  %1266 = vmatprep.mubr.msk.bf16.mxu1 %vm637_vm0, %v1410_v12 }
  0xb8   : > { %891 = vmatmul.mubr.bf16.gmra.mxu0 %v1412_v13  ;;  %1019 = vmatmul.mubr.bf16.gmra.mxu1 %v1413_v14 }
 0x100   : > { %v772_v16 = vpop.f32.mrf.mxu0  ;;  %v900_v17 = vpop.f32.mrf.mxu1 }
 0x101   : > { %v773_v18 = vadd.f32 %v1625_v15, %v772_v16  ;;  %v901_v19 = vadd.f32 %v1625_v15, %v900_v17 }
 0x102   : > { %v774_v20 = vpop.f32.mrf.mxu0  ;;  %v902_v21 = vpop.f32.mrf.mxu1 }
 0x103   : > { %1027 = vst [vmem:[%s1632_s25] sm:$0xff] %v773_v18  ;;  %1059 = vst [vmem:[%s1632_s25 + $0x100] sm:$0xff] %v901_v19 }
 0x104   : > { %v775_v22 = vpop.f32.mrf.mxu0  ;;  %v903_v23 = vpop.f32.mrf.mxu1 }
 0x105   : > { %v776_v24 = vadd.f32 %v1625_v15, %v775_v22  ;;  %v904_v25 = vadd.f32 %v1625_v15, %v903_v23 }
 0x106   : > { %v777_v26 = vpop.f32.mrf.mxu0  ;;  %v905_v27 = vpop.f32.mrf.mxu1 }
 0x107   : > { %1028 = vst [vmem:[%s1632_s25 + $0x8] sm:$0xff] %v776_v24  ;;  %1060 = vst [vmem:[%s1632_s25 + $0x108] sm:$0xff] %v904_v25 }
 0x108   : > { %v780_v28 = vpop.f32.mrf.mxu0  ;;  %v908_v29 = vpop.f32.mrf.mxu1 }
 0x109   : > { %v781_v30 = vadd.f32 %v1625_v15, %v780_v28  ;;  %v909_v31 = vadd.f32 %v1625_v15, %v908_v29 }
 0x10a   : > { %v782_v32 = vpop.f32.mrf.mxu0  ;;  %v910_v33 = vpop.f32.mrf.mxu1 }
 0x10b   : > { %1029 = vst [vmem:[%s1632_s25 + $0x10] sm:$0xff] %v781_v30  ;;  %1061 = vst [vmem:[%s1632_s25 + $0x110] sm:$0xff] %v909_v31 }
 0x10c   : > { %v783_v34 = vpop.f32.mrf.mxu0  ;;  %v911_v35 = vpop.f32.mrf.mxu1 }
 0x10d   : > { %v784_v36 = vadd.f32 %v1625_v15, %v783_v34  ;;  %v912_v37 = vadd.f32 %v1625_v15, %v911_v35 }
 0x10e   : > { %v785_v38 = vpop.f32.mrf.mxu0  ;;  %v913_v39 = vpop.f32.mrf.mxu1 }
 0x10f   : > { %1030 = vst [vmem:[%s1632_s25 + $0x18] sm:$0xff] %v784_v36  ;;  %1062 = vst [vmem:[%s1632_s25 + $0x118] sm:$0xff] %v912_v37 }
 0x110   : > { %v788_v40 = vpop.f32.mrf.mxu0  ;;  %v916_v41 = vpop.f32.mrf.mxu1 }
 0x111   : > { %v789_v42 = vadd.f32 %v1625_v15, %v788_v40  ;;  %v917_v43 = vadd.f32 %v1625_v15, %v916_v41 }
 0x112   : > { %v790_v44 = vpop.f32.mrf.mxu0  ;;  %v918_v45 = vpop.f32.mrf.mxu1 }
 0x113   : > { %1031 = vst [vmem:[%s1632_s25 + $0x20] sm:$0xff] %v789_v42  ;;  %1063 = vst [vmem:[%s1632_s25 + $0x120] sm:$0xff] %v917_v43 }
 0x114   : > { %v791_v46 = vpop.f32.mrf.mxu0  ;;  %v919_v47 = vpop.f32.mrf.mxu1 }
 0x115   : > { %v792_v48 = vadd.f32 %v1625_v15, %v791_v46  ;;  %v920_v49 = vadd.f32 %v1625_v15, %v919_v47 }
 0x116   : > { %v793_v50 = vpop.f32.mrf.mxu0  ;;  %v921_v51 = vpop.f32.mrf.mxu1 }
 0x117   : > { %1032 = vst [vmem:[%s1632_s25 + $0x28] sm:$0xff] %v792_v48  ;;  %1064 = vst [vmem:[%s1632_s25 + $0x128] sm:$0xff] %v920_v49 }
 0x118   : > { %v796_v52 = vpop.f32.mrf.mxu0  ;;  %v924_v53 = vpop.f32.mrf.mxu1 }
 0x119   : > { %v797_v54 = vadd.f32 %v1625_v15, %v796_v52  ;;  %v925_v55 = vadd.f32 %v1625_v15, %v924_v53 }
 0x11a   : > { %v798_v56 = vpop.f32.mrf.mxu0  ;;  %v926_v57 = vpop.f32.mrf.mxu1 }
 0x11b   : > { %1033 = vst [vmem:[%s1632_s25 + $0x30] sm:$0xff] %v797_v54  ;;  %1065 = vst [vmem:[%s1632_s25 + $0x130] sm:$0xff] %v925_v55 }
 0x11c   : > { %v799_v58 = vpop.f32.mrf.mxu0  ;;  %v927_v59 = vpop.f32.mrf.mxu1 }
 0x11d   : > { %v800_v60 = vadd.f32 %v1625_v15, %v799_v58  ;;  %v928_v61 = vadd.f32 %v1625_v15, %v927_v59 }
 0x11e   : > { %v801_v62 = vpop.f32.mrf.mxu0  ;;  %v929_v63 = vpop.f32.mrf.mxu1 }
 0x11f   : > { %1034 = vst [vmem:[%s1632_s25 + $0x38] sm:$0xff] %v800_v60  ;;  %1066 = vst [vmem:[%s1632_s25 + $0x138] sm:$0xff] %v928_v61 }
 0x120   : > { %v804_v0 = vpop.f32.mrf.mxu0  ;;  %v932_v1 = vpop.f32.mrf.mxu1 }
 0x121   : > { %v805_v2 = vadd.f32 %v1625_v15, %v804_v0  ;;  %v933_v3 = vadd.f32 %v1625_v15, %v932_v1 }
 0x122   : > { %v806_v4 = vpop.f32.mrf.mxu0  ;;  %v934_v5 = vpop.f32.mrf.mxu1 }
 0x123   : > { %1035 = vst [vmem:[%s1632_s25 + $0x40] sm:$0xff] %v805_v2  ;;  %1067 = vst [vmem:[%s1632_s25 + $0x140] sm:$0xff] %v933_v3 }
 0x124   : > { %v807_v6 = vpop.f32.mrf.mxu0  ;;  %v935_v7 = vpop.f32.mrf.mxu1 }
 0x125   : > { %v808_v8 = vadd.f32 %v1625_v15, %v807_v6  ;;  %v936_v9 = vadd.f32 %v1625_v15, %v935_v7 }
 0x126   : > { %v809_v10 = vpop.f32.mrf.mxu0  ;;  %v937_v11 = vpop.f32.mrf.mxu1 }
 0x127   : > { %1036 = vst [vmem:[%s1632_s25 + $0x48] sm:$0xff] %v808_v8  ;;  %1068 = vst [vmem:[%s1632_s25 + $0x148] sm:$0xff] %v936_v9 }
 0x128   : > { %v812_v12 = vpop.f32.mrf.mxu0  ;;  %v940_v13 = vpop.f32.mrf.mxu1 }
 0x129   : > { %v813_v14 = vadd.f32 %v1625_v15, %v812_v12  ;;  %v941_v16 = vadd.f32 %v1625_v15, %v940_v13 }
 0x12a   : > { %v814_v17 = vpop.f32.mrf.mxu0  ;;  %v942_v18 = vpop.f32.mrf.mxu1 }
 0x12b   : > { %1037 = vst [vmem:[%s1632_s25 + $0x50] sm:$0xff] %v813_v14  ;;  %1069 = vst [vmem:[%s1632_s25 + $0x150] sm:$0xff] %v941_v16 }
 0x12c   : > { %v815_v19 = vpop.f32.mrf.mxu0  ;;  %v943_v20 = vpop.f32.mrf.mxu1 }
 0x12d   : > { %v816_v21 = vadd.f32 %v1625_v15, %v815_v19  ;;  %v944_v22 = vadd.f32 %v1625_v15, %v943_v20 }
 0x12e   : > { %v817_v23 = vpop.f32.mrf.mxu0  ;;  %v945_v24 = vpop.f32.mrf.mxu1 }
 0x12f   : > { %1038 = vst [vmem:[%s1632_s25 + $0x58] sm:$0xff] %v816_v21  ;;  %1070 = vst [vmem:[%s1632_s25 + $0x158] sm:$0xff] %v944_v22 }
 0x130   : > { %v820_v25 = vpop.f32.mrf.mxu0  ;;  %v948_v26 = vpop.f32.mrf.mxu1 }
 0x131   : > { %v821_v27 = vadd.f32 %v1625_v15, %v820_v25  ;;  %v949_v28 = vadd.f32 %v1625_v15, %v948_v26 }
 0x132   : > { %v822_v29 = vpop.f32.mrf.mxu0  ;;  %v950_v30 = vpop.f32.mrf.mxu1 }
 0x133   : > { %1039 = vst [vmem:[%s1632_s25 + $0x60] sm:$0xff] %v821_v27  ;;  %1071 = vst [vmem:[%s1632_s25 + $0x160] sm:$0xff] %v949_v28 }
 0x134   : > { %v823_v31 = vpop.f32.mrf.mxu0  ;;  %v951_v32 = vpop.f32.mrf.mxu1 }
 0x135   : > { %v824_v33 = vadd.f32 %v1625_v15, %v823_v31  ;;  %v952_v34 = vadd.f32 %v1625_v15, %v951_v32 }
 0x136   : > { %v825_v35 = vpop.f32.mrf.mxu0  ;;  %v953_v36 = vpop.f32.mrf.mxu1 }
 0x137   : > { %1040 = vst [vmem:[%s1632_s25 + $0x68] sm:$0xff] %v824_v33  ;;  %1072 = vst [vmem:[%s1632_s25 + $0x168] sm:$0xff] %v952_v34 }
 0x138   : > { %v828_v37 = vpop.f32.mrf.mxu0  ;;  %v956_v38 = vpop.f32.mrf.mxu1 }
 0x139   : > { %v829_v39 = vadd.f32 %v1625_v15, %v828_v37  ;;  %v957_v40 = vadd.f32 %v1625_v15, %v956_v38 }
 0x13a   : > { %v830_v41 = vpop.f32.mrf.mxu0  ;;  %v958_v42 = vpop.f32.mrf.mxu1 }
 0x13b   : > { %1041 = vst [vmem:[%s1632_s25 + $0x70] sm:$0xff] %v829_v39  ;;  %1073 = vst [vmem:[%s1632_s25 + $0x170] sm:$0xff] %v957_v40 }
 0x13c   : > { %v831_v43 = vpop.f32.mrf.mxu0  ;;  %v959_v44 = vpop.f32.mrf.mxu1 }
 0x13d   : > { %v832_v45 = vadd.f32 %v1625_v15, %v831_v43  ;;  %v960_v46 = vadd.f32 %v1625_v15, %v959_v44 }
 0x13e   : > { %v833_v47 = vpop.f32.mrf.mxu0  ;;  %v961_v48 = vpop.f32.mrf.mxu1 }
 0x13f   : > { %1042 = vst [vmem:[%s1632_s25 + $0x78] sm:$0xff] %v832_v45  ;;  %1074 = vst [vmem:[%s1632_s25 + $0x178] sm:$0xff] %v960_v46 }
 0x140   : > { %v836_v49 = vpop.f32.mrf.mxu0  ;;  %v964_v50 = vpop.f32.mrf.mxu1 }
 0x141   : > { %v837_v51 = vadd.f32 %v1625_v15, %v836_v49  ;;  %v965_v52 = vadd.f32 %v1625_v15, %v964_v50 }
 0x142   : > { %v838_v53 = vpop.f32.mrf.mxu0  ;;  %v966_v54 = vpop.f32.mrf.mxu1 }
 0x143   : > { %1043 = vst [vmem:[%s1632_s25 + $0x80] sm:$0xff] %v837_v51  ;;  %1075 = vst [vmem:[%s1632_s25 + $0x180] sm:$0xff] %v965_v52 }
 0x144   : > { %v839_v55 = vpop.f32.mrf.mxu0  ;;  %v967_v56 = vpop.f32.mrf.mxu1 }
 0x145   : > { %v840_v57 = vadd.f32 %v1625_v15, %v839_v55  ;;  %v968_v58 = vadd.f32 %v1625_v15, %v967_v56 }
 0x146   : > { %v841_v59 = vpop.f32.mrf.mxu0  ;;  %v969_v60 = vpop.f32.mrf.mxu1 }
 0x147   : > { %1044 = vst [vmem:[%s1632_s25 + $0x88] sm:$0xff] %v840_v57  ;;  %1076 = vst [vmem:[%s1632_s25 + $0x188] sm:$0xff] %v968_v58 }
 0x148   : > { %v844_v61 = vpop.f32.mrf.mxu0  ;;  %v972_v62 = vpop.f32.mrf.mxu1 }
 0x149   : > { %v845_v63 = vadd.f32 %v1625_v15, %v844_v61  ;;  %v973_v0 = vadd.f32 %v1625_v15, %v972_v62 }
 0x14a   : > { %v846_v1 = vpop.f32.mrf.mxu0  ;;  %v974_v2 = vpop.f32.mrf.mxu1 }
 0x14b   : > { %1045 = vst [vmem:[%s1632_s25 + $0x90] sm:$0xff] %v845_v63  ;;  %1077 = vst [vmem:[%s1632_s25 + $0x190] sm:$0xff] %v973_v0 }
 0x14c   : > { %v847_v3 = vpop.f32.mrf.mxu0  ;;  %v975_v4 = vpop.f32.mrf.mxu1 }
 0x14d   : > { %v848_v5 = vadd.f32 %v1625_v15, %v847_v3  ;;  %v976_v6 = vadd.f32 %v1625_v15, %v975_v4 }
 0x14e   : > { %v849_v7 = vpop.f32.mrf.mxu0  ;;  %v977_v8 = vpop.f32.mrf.mxu1 }
 0x14f   : > { %1046 = vst [vmem:[%s1632_s25 + $0x98] sm:$0xff] %v848_v5  ;;  %1078 = vst [vmem:[%s1632_s25 + $0x198] sm:$0xff] %v976_v6 }
 0x150   : > { %v852_v9 = vpop.f32.mrf.mxu0  ;;  %v980_v10 = vpop.f32.mrf.mxu1 }
 0x151   : > { %v853_v11 = vadd.f32 %v1625_v15, %v852_v9  ;;  %v981_v12 = vadd.f32 %v1625_v15, %v980_v10 }
 0x152   : > { %v854_v13 = vpop.f32.mrf.mxu0  ;;  %v982_v14 = vpop.f32.mrf.mxu1 }
 0x153   : > { %1047 = vst [vmem:[%s1632_s25 + $0xa0] sm:$0xff] %v853_v11  ;;  %1079 = vst [vmem:[%s1632_s25 + $0x1a0] sm:$0xff] %v981_v12 }
 0x154   : > { %v855_v16 = vpop.f32.mrf.mxu0  ;;  %v983_v17 = vpop.f32.mrf.mxu1 }
 0x155   : > { %v856_v18 = vadd.f32 %v1625_v15, %v855_v16  ;;  %v984_v19 = vadd.f32 %v1625_v15, %v983_v17 }
 0x156   : > { %v857_v20 = vpop.f32.mrf.mxu0  ;;  %v985_v21 = vpop.f32.mrf.mxu1 }
 0x157   : > { %1048 = vst [vmem:[%s1632_s25 + $0xa8] sm:$0xff] %v856_v18  ;;  %1080 = vst [vmem:[%s1632_s25 + $0x1a8] sm:$0xff] %v984_v19 }
 0x158   : > { %v860_v22 = vpop.f32.mrf.mxu0  ;;  %v988_v23 = vpop.f32.mrf.mxu1 }
 0x159   : > { %v861_v24 = vadd.f32 %v1625_v15, %v860_v22  ;;  %v989_v25 = vadd.f32 %v1625_v15, %v988_v23 }
 0x15a   : > { %v862_v26 = vpop.f32.mrf.mxu0  ;;  %v990_v27 = vpop.f32.mrf.mxu1 }
 0x15b   : > { %1049 = vst [vmem:[%s1632_s25 + $0xb0] sm:$0xff] %v861_v24  ;;  %1081 = vst [vmem:[%s1632_s25 + $0x1b0] sm:$0xff] %v989_v25 }
 0x15c   : > { %v863_v28 = vpop.f32.mrf.mxu0  ;;  %v991_v29 = vpop.f32.mrf.mxu1 }
 0x15d   : > { %v864_v30 = vadd.f32 %v1625_v15, %v863_v28  ;;  %v992_v31 = vadd.f32 %v1625_v15, %v991_v29 }
 0x15e   : > { %v865_v32 = vpop.f32.mrf.mxu0  ;;  %v993_v33 = vpop.f32.mrf.mxu1 }
 0x15f   : > { %1050 = vst [vmem:[%s1632_s25 + $0xb8] sm:$0xff] %v864_v30  ;;  %1082 = vst [vmem:[%s1632_s25 + $0x1b8] sm:$0xff] %v992_v31 }
 0x160   : > { %v868_v34 = vpop.f32.mrf.mxu0  ;;  %v996_v35 = vpop.f32.mrf.mxu1 }
 0x161   : > { %v869_v36 = vadd.f32 %v1625_v15, %v868_v34  ;;  %v997_v37 = vadd.f32 %v1625_v15, %v996_v35 }
 0x162   : > { %v870_v38 = vpop.f32.mrf.mxu0  ;;  %v998_v39 = vpop.f32.mrf.mxu1 }
 0x163   : > { %1051 = vst [vmem:[%s1632_s25 + $0xc0] sm:$0xff] %v869_v36  ;;  %1083 = vst [vmem:[%s1632_s25 + $0x1c0] sm:$0xff] %v997_v37 }
 0x164   : > { %v871_v40 = vpop.f32.mrf.mxu0  ;;  %v999_v41 = vpop.f32.mrf.mxu1 }
 0x165   : > { %v872_v42 = vadd.f32 %v1625_v15, %v871_v40  ;;  %v1000_v43 = vadd.f32 %v1625_v15, %v999_v41 }
 0x166   : > { %v873_v44 = vpop.f32.mrf.mxu0  ;;  %v1001_v45 = vpop.f32.mrf.mxu1 }
 0x167   : > { %1052 = vst [vmem:[%s1632_s25 + $0xc8] sm:$0xff] %v872_v42  ;;  %1084 = vst [vmem:[%s1632_s25 + $0x1c8] sm:$0xff] %v1000_v43 }
 0x168   : > { %v876_v46 = vpop.f32.mrf.mxu0  ;;  %v1004_v47 = vpop.f32.mrf.mxu1 }
 0x169   : > { %v877_v48 = vadd.f32 %v1625_v15, %v876_v46  ;;  %v1005_v49 = vadd.f32 %v1625_v15, %v1004_v47 }
 0x16a   : > { %v878_v50 = vpop.f32.mrf.mxu0  ;;  %v1006_v51 = vpop.f32.mrf.mxu1 }
 0x16b   : > { %1053 = vst [vmem:[%s1632_s25 + $0xd0] sm:$0xff] %v877_v48  ;;  %1085 = vst [vmem:[%s1632_s25 + $0x1d0] sm:$0xff] %v1005_v49 }
 0x16c   : > { %v879_v52 = vpop.f32.mrf.mxu0  ;;  %v1007_v53 = vpop.f32.mrf.mxu1 }
 0x16d   : > { %v880_v54 = vadd.f32 %v1625_v15, %v879_v52  ;;  %v1008_v55 = vadd.f32 %v1625_v15, %v1007_v53 }
 0x16e   : > { %v881_v56 = vpop.f32.mrf.mxu0  ;;  %v1009_v57 = vpop.f32.mrf.mxu1 }
 0x16f   : > { %1054 = vst [vmem:[%s1632_s25 + $0xd8] sm:$0xff] %v880_v54  ;;  %1086 = vst [vmem:[%s1632_s25 + $0x1d8] sm:$0xff] %v1008_v55 }
 0x170   : > { %v884_v58 = vpop.f32.mrf.mxu0  ;;  %v1012_v59 = vpop.f32.mrf.mxu1 }
 0x171   : > { %v885_v60 = vadd.f32 %v1625_v15, %v884_v58  ;;  %v1013_v61 = vadd.f32 %v1625_v15, %v1012_v59 }
 0x172   : > { %v886_v62 = vpop.f32.mrf.mxu0  ;;  %v1014_v63 = vpop.f32.mrf.mxu1 }
 0x173   : > { %1055 = vst [vmem:[%s1632_s25 + $0xe0] sm:$0xff] %v885_v60  ;;  %1087 = vst [vmem:[%s1632_s25 + $0x1e0] sm:$0xff] %v1013_v61 }
 0x174   : > { %v887_v0 = vpop.f32.mrf.mxu0  ;;  %v1015_v1 = vpop.f32.mrf.mxu1 }
 0x175   : > { %v888_v2 = vadd.f32 %v1625_v15, %v887_v0  ;;  %v1016_v3 = vadd.f32 %v1625_v15, %v1015_v1 }
 0x176   : > { %v889_v4 = vpop.f32.mrf.mxu0  ;;  %v1017_v5 = vpop.f32.mrf.mxu1 }
 0x177   : > { %1056 = vst [vmem:[%s1632_s25 + $0xe8] sm:$0xff] %v888_v2  ;;  %1088 = vst [vmem:[%s1632_s25 + $0x1e8] sm:$0xff] %v1016_v3 }
 0x178   : > { %v892_v6 = vpop.f32.mrf.mxu0  ;;  %v1020_v7 = vpop.f32.mrf.mxu1 }
 0x179   : > { %v893_v8 = vadd.f32 %v1625_v15, %v892_v6  ;;  %v1021_v9 = vadd.f32 %v1625_v15, %v1020_v7 }
 0x17a   : > { %v894_v10 = vpop.f32.mrf.mxu0  ;;  %v1022_v11 = vpop.f32.mrf.mxu1 }
 0x17b   : > { %1057 = vst [vmem:[%s1632_s25 + $0xf0] sm:$0xff] %v893_v8  ;;  %1089 = vst [vmem:[%s1632_s25 + $0x1f0] sm:$0xff] %v1021_v9 }
 0x17c   : > { %v895_v12 = vpop.f32.mrf.mxu0  ;;  %v1023_v13 = vpop.f32.mrf.mxu1 }
 0x17d   : > { %v896_v14 = vadd.f32 %v1625_v15, %v895_v12  ;;  %v1024_v16 = vadd.f32 %v1625_v15, %v1023_v13 }
 0x17e   : > { %v897_v17 = vpop.f32.mrf.mxu0  ;;  %v1025_v18 = vpop.f32.mrf.mxu1 }
 0x17f   : > { %1058 = vst [vmem:[%s1632_s25 + $0xf8] sm:$0xff] %v896_v14  ;;  %1090 = vst [vmem:[%s1632_s25 + $0x1f8] sm:$0xff] %v1024_v16 }
 0x180 PF: > { %s13_s12 = sadd.s32 1, %s1420_s12  }
 0x181   : > { %p10_p4 = scmp.ge.s32.totalorder %s13_s12, 4  }
 0x183   :  { %12 = sbr.rel (!%p10_p4) target bundleno = 1 (0x1), region = 62 }

</bundles_post_ra>
